<compile_context>
chip_gen: v6e
topology: v6e:2x2x1
jax: 0.10.0
libtpu: 0.0.40
codegen_flags: <defaults>
</compile_context>

<pallas_src>
import functools

import jax
import jax.numpy as jnp
from jax.experimental import pallas as pl
from jax.experimental.pallas import tpu as pltpu

DISEASES = ['eczema', 'seborrheic_keratosis']
NUM_HEADS = len(DISEASES)     # 2
FEAT_DIM = 1280               # EfficientNet-B0 feature channels
HID = 256                     # per-head hidden width
PATCH = 32                    # EfficientNet-B0 total spatial stride
K_DIM = PATCH * PATCH * 3     # 3072 (multiple of 128)
TARGET_M = 512                # target MXU M rows per grid step


def _round_up(a, b):
    return ((a + b - 1) // b) * b


def _cdiv(a, b):
    return (a + b - 1) // b


# ---------------------------------------------------------------------------
# Fused kernel: patchify-conv (bf16 MXU matmul, f32 accumulate) + SiLU
#               + spatial mean-pool + both Linear->ReLU->Linear->Sigmoid heads.
#
#   grid = (G, num_p_tiles)   axis 0: image groups of nb ("parallel")
#                             axis 1: patch tiles ("arbitrary", reduction)
#   x_ref  : (nb, tp, K)  bf16   im2col patch tiles of nb images
#   w_ref  : (K, 1280)    bf16   stem weight (VMEM-resident, single-buffered)
#   b_ref  : (1, 1280)    f32    stem bias
#   w1_ref : (1280, 512)  bf16   concat of the two (1280, 256) head-1 weights
#   b1_ref : (1, 512)     f32
#   w2_ref : (512, 2)     f32    block-diagonal head-2 weights (col j = head j)
#   b2_ref : (1, 2)       f32
#   o_ref  : (1, nb, 2)   f32    sigmoid probs for the nb images of this group
#   acc_ref: (nb, 8, 1280) f32   per-image pooled-sum accumulator (scratch)
# ---------------------------------------------------------------------------
def _fused_kernel(x_ref, w_ref, b_ref, w1_ref, b1_ref, w2_ref, b2_ref,
                  o_ref, acc_ref, *, nb, tp, true_p, p_pad):
    p = pl.program_id(1)

    @pl.when(p == 0)
    def _():
        acc_ref[...] = jnp.zeros_like(acc_ref)

    # (nb, tp, K) -> (nb*tp, K): one MXU matmul whose M dim is filled by both
    # the patch axis AND the image sub-batch.
    x = x_ref[...].reshape(nb * tp, K_DIM)
    feat = jnp.dot(x, w_ref[...], preferred_element_type=jnp.float32)
    feat = feat + b_ref[...]
    feat = feat * jax.nn.sigmoid(feat)                               # SiLU (f32)

    # Hot-loop accumulate: keep the (8, 1280) minor tiles intact so the partial
    # spatial sum is pure VPU adds with unmasked stores (no XLU / no mask here).
    acc_ref[...] += feat.reshape(nb, tp // 8, 8, FEAT_DIM).sum(axis=1)

    @pl.when(p == pl.num_programs(1) - 1)
    def _():
        pooled_sum = acc_ref[...].sum(axis=1)                        # (nb, 1280)
        # Zero-padded patch rows each contributed exactly silu(b_stem); subtract
        # once here (replaces the old per-step iota/compare/select mask).
        pad_rows = p_pad - true_p
        if pad_rows:
            b = b_ref[...]
            pooled_sum = pooled_sum - jnp.float32(pad_rows) * (b * jax.nn.sigmoid(b))
        pooled = pooled_sum * jnp.float32(1.0 / true_p)              # AdaptiveAvgPool2d(1)

        h = jnp.dot(pooled.astype(jnp.bfloat16), w1_ref[...],
                    preferred_element_type=jnp.float32)
        h = jnp.maximum(h + b1_ref[...], 0.0)                        # ReLU
        # TODO(synk): Dropout(0.5) has no effect at inference -> identity.
        logits = (jnp.dot(h, w2_ref[...], preferred_element_type=jnp.float32)
                  + b2_ref[...])
        o_ref[0] = jax.nn.sigmoid(logits)                            # (nb, 2)


# ---------------------------------------------------------------------------
# Wrapper
# ---------------------------------------------------------------------------
def hybrid_forward(x_nchw, params):
    N, C, H, W = x_nchw.shape
    assert C == 3 and H % PATCH == 0 and W % PATCH == 0
    Hp, Wp = H // PATCH, W // PATCH
    P = Hp * Wp                                   # spatial positions per image

    # im2col with a single transpose; cast to bf16 BEFORE the transpose so the
    # wrapper moves 2-byte elements through HBM instead of 4-byte ones.
    x = x_nchw.astype(jnp.bfloat16).reshape(N, C, Hp, PATCH, Wp, PATCH)
    x = jnp.transpose(x, (0, 2, 4, 3, 5, 1))      # (N, Hp, Wp, PATCH, PATCH, C)
    x = x.reshape(N, P, K_DIM)

    # Patch-axis tiling: tp ~ P / num_tiles (minimizes zero padding), multiple
    # of 8 (sublane), capped at TARGET_M.
    num_p_tiles = max(1, _cdiv(P, TARGET_M))
    tp = _round_up(_cdiv(P, num_p_tiles), 8)
    p_pad = tp * num_p_tiles

    # Image sub-batching: fill the MXU M dim (nb * tp ~ TARGET_M rows) when P
    # per image is small (e.g. 224x224 -> P=49).  Grid axis 0 remains
    # "parallel" over groups, so with N >= 2*nb both v7x TensorCores are used.
    nb = max(1, min(N, TARGET_M // tp))
    G = _cdiv(N, nb)
    n_pad = G * nb

    if p_pad != P or n_pad != N:
        x = jnp.pad(x, ((0, n_pad - N), (0, p_pad - P), (0, 0)))

    grid = (G, num_p_tiles)

    # VMEM budget: w_stem bf16 7.9 MiB + w1 bf16 1.3 MiB (both single-buffered)
    # + x tile bf16 double-buffered <= 6.3 MiB + acc/misc  ->  < 20 MiB total,
    # comfortably under v7x's 64 MiB physical ceiling.
    vmem_limit = 40 << 20

    cost = pl.CostEstimate(
        flops=2 * n_pad * p_pad * K_DIM * FEAT_DIM
              + 2 * n_pad * (FEAT_DIM * NUM_HEADS * HID + NUM_HEADS * HID * NUM_HEADS),
        transcendentals=n_pad * p_pad * FEAT_DIM + n_pad * NUM_HEADS,
        bytes_accessed=n_pad * p_pad * K_DIM * 2 + K_DIM * FEAT_DIM * 2
                       + FEAT_DIM * NUM_HEADS * HID * 2 + n_pad * NUM_HEADS * 4,
    )

    const = lambda n, p: (0, 0)          # grid-constant weight blocks
    resident = pl.Buffered(1)            # single-buffer: block index never changes

    out = pl.pallas_call(
        functools.partial(_fused_kernel, nb=nb, tp=tp, true_p=P, p_pad=p_pad),
        out_shape=jax.ShapeDtypeStruct((G, nb, NUM_HEADS), jnp.float32),
        grid_spec=pltpu.PrefetchScalarGridSpec(
            num_scalar_prefetch=0,
            grid=grid,
            in_specs=[
                pl.BlockSpec((nb, tp, K_DIM), lambda n, p: (n, p, 0)),        # x tile
                pl.BlockSpec((K_DIM, FEAT_DIM), const, pipeline_mode=resident),     # w_stem
                pl.BlockSpec((1, FEAT_DIM), const, pipeline_mode=resident),         # b_stem
                pl.BlockSpec((FEAT_DIM, NUM_HEADS * HID), const, pipeline_mode=resident),  # w1
                pl.BlockSpec((1, NUM_HEADS * HID), const, pipeline_mode=resident),   # b1
                pl.BlockSpec((NUM_HEADS * HID, NUM_HEADS), const, pipeline_mode=resident),  # w2
                pl.BlockSpec((1, NUM_HEADS), const, pipeline_mode=resident),          # b2
            ],
            out_specs=pl.BlockSpec((1, nb, NUM_HEADS), lambda n, p: (n, 0, 0)),
            scratch_shapes=[pltpu.VMEM((nb, 8, FEAT_DIM), jnp.float32)],
        ),
        compiler_params=pltpu.CompilerParams(
            dimension_semantics=("parallel", "arbitrary"),
            vmem_limit_bytes=vmem_limit,
        ),
        cost_estimate=cost,
    )(x, params["w_stem"], params["b_stem"],
      params["w1"], params["b1"], params["w2"], params["b2"])

    return out.reshape(G * nb, NUM_HEADS)[:N]     # (N, 2) sigmoid probs per disease


def init_params(key):
    k = jax.random.split(key, 6)
    # Stem weight kept in bf16 (MXU operand; f32 accumulate in-kernel).
    w_stem = (jax.random.normal(k[0], (K_DIM, FEAT_DIM), jnp.float32)
              / jnp.sqrt(K_DIM)).astype(jnp.bfloat16)
    b_stem = jnp.zeros((1, FEAT_DIM), jnp.float32)

    # Per-head Linear(1280, 256) weights, packed side-by-side (bf16 MXU operand).
    w1 = (jax.random.normal(k[1], (FEAT_DIM, NUM_HEADS * HID), jnp.float32)
          / jnp.sqrt(FEAT_DIM)).astype(jnp.bfloat16)
    b1 = 0.01 * jax.random.normal(k[2], (1, NUM_HEADS * HID), jnp.float32)

    # Per-head Linear(256, 1) weights, packed block-diagonally -> concat output.
    w2_h0 = jax.random.normal(k[3], (HID,), jnp.float32) / jnp.sqrt(HID)
    w2_h1 = jax.random.normal(k[4], (HID,), jnp.float32) / jnp.sqrt(HID)
    w2 = jnp.zeros((NUM_HEADS * HID, NUM_HEADS), jnp.float32)
    w2 = w2.at[:HID, 0].set(w2_h0).at[HID:, 1].set(w2_h1)
    b2 = 0.01 * jax.random.normal(k[5], (1, NUM_HEADS), jnp.float32)

    return dict(w_stem=w_stem, b_stem=b_stem, w1=w1, b1=b1, w2=w2, b2=b2)


if __name__ == "__main__":
    key = jax.random.PRNGKey(0)
    kx, kp = jax.random.split(key)
    # Small NCHW image batch: batch=2, 3 channels, 64x64 spatial (-> 2x2 feature grid).
    x = jax.random.normal(kx, (2, 3, 64, 64), jnp.float32)
    params = init_params(kp)

    out = jax.jit(hybrid_forward)(x, params)
    out = jax.block_until_ready(out)

    assert out.shape == (2, NUM_HEADS)
    assert bool(jnp.all((out >= 0.0) & (out <= 1.0)))   # sigmoid outputs
    print("KERNEL_OK")
</pallas_src>

<mosaic_0001>
module attributes {stable_mosaic.version = 11 : i64} {
  func.func @_fused_kernel(%arg0: i32, %arg1: i32, %arg2: memref<2x8x3072xbf16, #tpu.memory_space<vmem>>, %arg3: memref<3072x1280xbf16, #tpu.memory_space<vmem>>, %arg4: memref<1x1280xf32, #tpu.memory_space<vmem>>, %arg5: memref<1280x512xbf16, #tpu.memory_space<vmem>>, %arg6: memref<1x512xf32, #tpu.memory_space<vmem>>, %arg7: memref<512x2xf32, #tpu.memory_space<vmem>>, %arg8: memref<1x2xf32, #tpu.memory_space<vmem>>, %arg9: memref<1x2x2xf32, #tpu.memory_space<vmem>>, %arg10: memref<2x8x1280xf32, #tpu.memory_space<vmem>>) attributes {dimension_semantics = [#tpu.dimension_semantics<parallel>, #tpu.dimension_semantics<arbitrary>], iteration_bounds = array<i64: 1, 1>, scalar_prefetch = 0 : i64, scratch_operands = 1 : i64, tpu.core_type = #tpu.core_type<tc>, window_params = [{transform_indices = @transform_0, window_bounds = array<i64: 2, 8, 3072>}, {pipeline_mode = #tpu.pipeline_mode<synchronous>, transform_indices = @transform_1, window_bounds = array<i64: 3072, 1280>}, {pipeline_mode = #tpu.pipeline_mode<synchronous>, transform_indices = @transform_2, window_bounds = array<i64: 1, 1280>}, {pipeline_mode = #tpu.pipeline_mode<synchronous>, transform_indices = @transform_3, window_bounds = array<i64: 1280, 512>}, {pipeline_mode = #tpu.pipeline_mode<synchronous>, transform_indices = @transform_4, window_bounds = array<i64: 1, 512>}, {pipeline_mode = #tpu.pipeline_mode<synchronous>, transform_indices = @transform_5, window_bounds = array<i64: 512, 2>}, {pipeline_mode = #tpu.pipeline_mode<synchronous>, transform_indices = @transform_6, window_bounds = array<i64: 1, 2>}, {transform_indices = @transform_7, window_bounds = array<i64: 1, 2, 2>}]} {
    %c0_i32 = arith.constant 0 : i32
    %0 = arith.cmpi eq, %arg1, %c0_i32 : i32
    %1 = arith.extui %0 : i1 to i32
    %c0_i32_0 = arith.constant 0 : i32
    %2 = arith.cmpi ne, %1, %c0_i32_0 : i32
    scf.if %2 {
      %cst_17 = arith.constant 0.000000e+00 : f32
      %24 = vector.broadcast %cst_17 : f32 to vector<2x8x1280xf32>
      %c0_18 = arith.constant 0 : index
      %c0_19 = arith.constant 0 : index
      %c0_20 = arith.constant 0 : index
      %25 = vector.load %arg10[%c0_18, %c0_19, %c0_20] : memref<2x8x1280xf32, #tpu.memory_space<vmem>>, vector<2x8x1280xf32>
      tpu.vector_store %arg10[%c0_18, %c0_19, %c0_20], %24 {strides = array<i32>} : memref<2x8x1280xf32, #tpu.memory_space<vmem>>, vector<2x8x1280xf32>,
    } else {
    }
    %c0 = arith.constant 0 : index
    %c0_1 = arith.constant 0 : index
    %c0_2 = arith.constant 0 : index
    %3 = vector.load %arg2[%c0, %c0_1, %c0_2] : memref<2x8x3072xbf16, #tpu.memory_space<vmem>>, vector<2x8x3072xbf16>
    %4 = vector.shape_cast %3 : vector<2x8x3072xbf16> to vector<16x3072xbf16>
    %c0_3 = arith.constant 0 : index
    %c0_4 = arith.constant 0 : index
    %5 = vector.load %arg3[%c0_3, %c0_4] : memref<3072x1280xbf16, #tpu.memory_space<vmem>>, vector<3072x1280xbf16>
    %cst = arith.constant dense<0.000000e+00> : vector<16x1280xf32>
    %6 = tpu.matmul %4, %5, %cst {dimension_numbers = #tpu.dot_dimension_numbers<[1], [0], [0], [1], [0, 0, 1, 1], [], []>} : vector<16x3072xbf16>, vector<3072x1280xbf16>, vector<16x1280xf32> -> vector<16x1280xf32>
    %c0_5 = arith.constant 0 : index
    %c0_6 = arith.constant 0 : index
    %7 = vector.load %arg4[%c0_5, %c0_6] : memref<1x1280xf32, #tpu.memory_space<vmem>>, vector<1x1280xf32>
    %8 = vector.broadcast %7 : vector<1x1280xf32> to vector<16x1280xf32>
    %9 = arith.addf %6, %8 : vector<16x1280xf32>
    %10 = arith.negf %9 : vector<16x1280xf32>
    %11 = math.exp %10 : vector<16x1280xf32>
    %cst_7 = arith.constant 1.000000e+00 : f32
    %12 = vector.broadcast %cst_7 : f32 to vector<16x1280xf32>
    %13 = arith.addf %12, %11 : vector<16x1280xf32>
    %14 = arith.divf %12, %13 : vector<16x1280xf32>
    %15 = arith.mulf %9, %14 : vector<16x1280xf32>
    %c0_8 = arith.constant 0 : index
    %c0_9 = arith.constant 0 : index
    %c0_10 = arith.constant 0 : index
    %16 = vector.load %arg10[%c0_8, %c0_9, %c0_10] : memref<2x8x1280xf32, #tpu.memory_space<vmem>>, vector<2x8x1280xf32>
    %17 = vector.shape_cast %15 : vector<16x1280xf32> to vector<2x1x8x1280xf32>
    %cst_11 = arith.constant dense<0.000000e+00> : vector<2x8x1280xf32>
    %18 = vector.multi_reduction <add>, %17, %cst_11 [1] : vector<2x1x8x1280xf32> to vector<2x8x1280xf32>
    %19 = arith.addf %16, %18 : vector<2x8x1280xf32>
    %c0_12 = arith.constant 0 : index
    %c0_13 = arith.constant 0 : index
    %c0_14 = arith.constant 0 : index
    %20 = vector.load %arg10[%c0_12, %c0_13, %c0_14] : memref<2x8x1280xf32, #tpu.memory_space<vmem>>, vector<2x8x1280xf32>
    tpu.vector_store %arg10[%c0_12, %c0_13, %c0_14], %19 {strides = array<i32>} : memref<2x8x1280xf32, #tpu.memory_space<vmem>>, vector<2x8x1280xf32>,
    %c0_i32_15 = arith.constant 0 : i32
    %21 = arith.cmpi eq, %arg1, %c0_i32_15 : i32
    %22 = arith.extui %21 : i1 to i32
    %c0_i32_16 = arith.constant 0 : i32
    %23 = arith.cmpi ne, %22, %c0_i32_16 : i32
    scf.if %23 {
      %c0_17 = arith.constant 0 : index
      %c0_18 = arith.constant 0 : index
      %c0_19 = arith.constant 0 : index
      %24 = vector.load %arg10[%c0_17, %c0_18, %c0_19] : memref<2x8x1280xf32, #tpu.memory_space<vmem>>, vector<2x8x1280xf32>
      %cst_20 = arith.constant dense<0.000000e+00> : vector<2x1280xf32>
      %25 = vector.multi_reduction <add>, %24, %cst_20 [1] : vector<2x8x1280xf32> to vector<2x1280xf32>
      %c0_21 = arith.constant 0 : index
      %c0_22 = arith.constant 0 : index
      %26 = vector.load %arg4[%c0_21, %c0_22] : memref<1x1280xf32, #tpu.memory_space<vmem>>, vector<1x1280xf32>
      %27 = arith.negf %26 : vector<1x1280xf32>
      %28 = math.exp %27 : vector<1x1280xf32>
      %cst_23 = arith.constant 1.000000e+00 : f32
      %29 = vector.broadcast %cst_23 : f32 to vector<1x1280xf32>
      %30 = arith.addf %29, %28 : vector<1x1280xf32>
      %31 = arith.divf %29, %30 : vector<1x1280xf32>
      %32 = arith.mulf %26, %31 : vector<1x1280xf32>
      %cst_24 = arith.constant 4.000000e+00 : f32
      %33 = vector.broadcast %cst_24 : f32 to vector<1x1280xf32>
      %34 = arith.mulf %33, %32 : vector<1x1280xf32>
      %35 = vector.broadcast %34 : vector<1x1280xf32> to vector<2x1280xf32>
      %36 = arith.subf %25, %35 : vector<2x1280xf32>
      %cst_25 = arith.constant 2.500000e-01 : f32
      %37 = vector.broadcast %cst_25 : f32 to vector<2x1280xf32>
      %38 = arith.mulf %36, %37 : vector<2x1280xf32>
      %39 = arith.truncf %38 : vector<2x1280xf32> to vector<2x1280xbf16>
      %c0_26 = arith.constant 0 : index
      %c0_27 = arith.constant 0 : index
      %40 = vector.load %arg5[%c0_26, %c0_27] : memref<1280x512xbf16, #tpu.memory_space<vmem>>, vector<1280x512xbf16>
      %cst_28 = arith.constant dense<0.000000e+00> : vector<2x512xf32>
      %41 = tpu.matmul %39, %40, %cst_28 {dimension_numbers = #tpu.dot_dimension_numbers<[1], [0], [0], [1], [0, 0, 1, 1], [], []>} : vector<2x1280xbf16>, vector<1280x512xbf16>, vector<2x512xf32> -> vector<2x512xf32>
      %c0_29 = arith.constant 0 : index
      %c0_30 = arith.constant 0 : index
      %42 = vector.load %arg6[%c0_29, %c0_30] : memref<1x512xf32, #tpu.memory_space<vmem>>, vector<1x512xf32>
      %43 = vector.broadcast %42 : vector<1x512xf32> to vector<2x512xf32>
      %44 = arith.addf %41, %43 : vector<2x512xf32>
      %cst_31 = arith.constant 0.000000e+00 : f32
      %45 = vector.broadcast %cst_31 : f32 to vector<2x512xf32>
      %46 = arith.maximumf %44, %45 : vector<2x512xf32>
      %c0_32 = arith.constant 0 : index
      %c0_33 = arith.constant 0 : index
      %47 = vector.load %arg7[%c0_32, %c0_33] : memref<512x2xf32, #tpu.memory_space<vmem>>, vector<512x2xf32>
      %cst_34 = arith.constant dense<0.000000e+00> : vector<2x2xf32>
      %48 = tpu.matmul %46, %47, %cst_34 {dimension_numbers = #tpu.dot_dimension_numbers<[1], [0], [0], [1], [0, 0, 1, 1], [], []>} : vector<2x512xf32>, vector<512x2xf32>, vector<2x2xf32> -> vector<2x2xf32>
      %c0_35 = arith.constant 0 : index
      %c0_36 = arith.constant 0 : index
      %49 = vector.load %arg8[%c0_35, %c0_36] : memref<1x2xf32, #tpu.memory_space<vmem>>, vector<1x2xf32>
      %50 = vector.broadcast %49 : vector<1x2xf32> to vector<2x2xf32>
      %51 = arith.addf %48, %50 : vector<2x2xf32>
      %52 = arith.negf %51 : vector<2x2xf32>
      %53 = math.exp %52 : vector<2x2xf32>
      %cst_37 = arith.constant 1.000000e+00 : f32
      %54 = vector.broadcast %cst_37 : f32 to vector<2x2xf32>
      %55 = arith.addf %54, %53 : vector<2x2xf32>
      %56 = arith.divf %54, %55 : vector<2x2xf32>
      %c0_38 = arith.constant 0 : index
      %c0_39 = arith.constant 0 : index
      %c0_40 = arith.constant 0 : index
      %57 = vector.load %arg9[%c0_38, %c0_39, %c0_40] : memref<1x2x2xf32, #tpu.memory_space<vmem>>, vector<1x2x2xf32>
      %58 = vector.shape_cast %57 : vector<1x2x2xf32> to vector<2x2xf32>
      %59 = vector.shape_cast %56 : vector<2x2xf32> to vector<1x2x2xf32>
      tpu.vector_store %arg9[%c0_38, %c0_39, %c0_40], %59 {strides = array<i32>} : memref<1x2x2xf32, #tpu.memory_space<vmem>>, vector<1x2x2xf32>,
    } else {
    }
    return
  }
  func.func @transform_0(%arg0: i32, %arg1: i32) -> (i32, i32, i32) {
    %c0_i32 = arith.constant 0 : i32
    %c0_i32_0 = arith.constant 0 : i32
    return %arg0, %arg1, %c0_i32 : i32, i32, i32
  }
  func.func @transform_1(%arg0: i32, %arg1: i32) -> (i32, i32) {
    %c0_i32 = arith.constant 0 : i32
    %c0_i32_0 = arith.constant 0 : i32
    %c0_i32_1 = arith.constant 0 : i32
    return %c0_i32, %c0_i32_0 : i32, i32
  }
  func.func @transform_2(%arg0: i32, %arg1: i32) -> (i32, i32) {
    %c0_i32 = arith.constant 0 : i32
    %c0_i32_0 = arith.constant 0 : i32
    %c0_i32_1 = arith.constant 0 : i32
    return %c0_i32, %c0_i32_0 : i32, i32
  }
  func.func @transform_3(%arg0: i32, %arg1: i32) -> (i32, i32) {
    %c0_i32 = arith.constant 0 : i32
    %c0_i32_0 = arith.constant 0 : i32
    %c0_i32_1 = arith.constant 0 : i32
    return %c0_i32, %c0_i32_0 : i32, i32
  }
  func.func @transform_4(%arg0: i32, %arg1: i32) -> (i32, i32) {
    %c0_i32 = arith.constant 0 : i32
    %c0_i32_0 = arith.constant 0 : i32
    %c0_i32_1 = arith.constant 0 : i32
    return %c0_i32, %c0_i32_0 : i32, i32
  }
  func.func @transform_5(%arg0: i32, %arg1: i32) -> (i32, i32) {
    %c0_i32 = arith.constant 0 : i32
    %c0_i32_0 = arith.constant 0 : i32
    %c0_i32_1 = arith.constant 0 : i32
    return %c0_i32, %c0_i32_0 : i32, i32
  }
  func.func @transform_6(%arg0: i32, %arg1: i32) -> (i32, i32) {
    %c0_i32 = arith.constant 0 : i32
    %c0_i32_0 = arith.constant 0 : i32
    %c0_i32_1 = arith.constant 0 : i32
    return %c0_i32, %c0_i32_0 : i32, i32
  }
  func.func @transform_7(%arg0: i32, %arg1: i32) -> (i32, i32, i32) {
    %c0_i32 = arith.constant 0 : i32
    %c0_i32_0 = arith.constant 0 : i32
    %c0_i32_1 = arith.constant 0 : i32
    return %arg0, %c0_i32, %c0_i32_0 : i32, i32, i32
  }
}

</mosaic_0001>

<bundles_post_ra>
// kernel: hybrid_forward.1
= control target key start
LH: loop header
LB: loop body
LE: loop exit
PB: predicated region body
PF: predicated region fallthrough
CT: control target
= control target key end

     0   :  { %12 = vsyncpa [#allocation4], 0  ;;  %s25622_s0 = inlined_call_operand.vmem [shape: bf16[2,8,3072], index: 0, kind: input, shape index: {}]   ;;  %s25623_s1 = inlined_call_operand.hbm [shape: bf16[3072,1280], index: 1, kind: input, shape index: {}]   ;;  %s25624_s2 = inlined_call_operand.vmem [shape: f32[1,1280], index: 2, kind: input, shape index: {}]   ;;  %s25625_s3 = inlined_call_operand.vmem [shape: bf16[1280,512], index: 3, kind: input, shape index: {}]   ;;  %s25626_s4 = inlined_call_operand.vmem [shape: f32[1,512], index: 4, kind: input, shape index: {}]   ;;  %s25627_s5 = inlined_call_operand.vmem [shape: f32[512,2], index: 5, kind: input, shape index: {}]   ;;  %s25628_s6 = inlined_call_operand.vmem [shape: f32[1,2], index: 6, kind: input, shape index: {}]   ;;  %s25629_s7 = inlined_call_operand.hbm [shape: f32[1,2,2], index: 7, kind: output, shape index: {}]  }
   0x1   :  { %13 = vsyncpa [#allocation5], 0  ;;  %s23389_s24 = smov [#allocation3]  }
   0x2   :  { %s21_s25 = sshll.u32 %s23389_s24, 4  ;;  %s22_s25 = int_to_ptr.vmem [resolvable:$true] %s21_s25 }
   0x3   :  { %s23353_s26 = scalar_lea.vmem %s22_s25, 245760  ;;  %p23358_p1 = scmp.lt.s32.totalorder %s22_s25, %s22_s25 }
   0x4   :  { %p23354_p0 = scmp.ne.s32.totalorder %s22_s25, %s23353_s26  ;;  %p23359_p2 = scmp.lt.s32.totalorder %s23353_s26, %s23353_s26 }
   0x6   :  { %p23360_p3 = por %p23359_p2, %p23358_p1 }
   0x8   :  { %p23361_p4 = pnand %p23360_p3, %p23354_p0 }
   0xa   :  { %23364 = shalt.err (!%p23361_p4)
}
   0xb   :  { %s23390_s27 = smov 640   ;;  %s23391_s28 = smov 40  }
   0xc   :  { %27 = dma.hbm_to_vmem [thread:$0]  %s25623_s1, 245760, %s22_s25, [#allocation4], %s23390_s27, %s23390_s27, %s23391_s28  }
   0xd   :  { %23385 = dma.done.wait [#allocation4], 245760  }
   0xe   :  { %23386 = vsyncadd [#allocation4], 4294721536  ;;  %v19889_v0 = vld [vmem:[#allocation3 + $0x234] ss:$40 sps:$4 sm:$0xff]   ;;  %v19893_v2 = vld [vmem:[#allocation3 + $0x230] ss:$40 sps:$4 sm:$0xff]  }
   0xf   :  { %v19891_v1 = vld [vmem:[#allocation3 + $0x734] ss:$40 sps:$4 sm:$0xff]   ;;  %11783 = vmatprep.subr.bf16.mxu0 %v19889_v0  ;;  %v19894_v3 = vld [vmem:[#allocation3 + $0x730] ss:$40 sps:$4 sm:$0xff]   ;;  %v19895_v4 = vld [vmem:[#allocation3 + $0x1e4] ss:$40 sps:$4 sm:$0xff]  }
  0x10   :  { %11826 = vmatprep.subr.bf16.mxu1 %v19891_v1  ;;  %11784 = vmatpush1.bf16.msra.mxu0 %v19893_v2  ;;  %v19897_v5 = vld [vmem:[#allocation3 + $0x6e4] ss:$40 sps:$4 sm:$0xff]   ;;  %v19899_v6 = vld [vmem:[#allocation3 + $0x1e0] ss:$40 sps:$4 sm:$0xff]   ;;  %v19901_v8 = vld [vmem:[#allocation3 + $0x194] ss:$40 sps:$4 sm:$0xff]  }
  0x11   :  { %11827 = vmatpush1.bf16.msra.mxu1 %v19894_v3  ;;  %11785 = vmatprep.subr.bf16.mxu0 %v19895_v4  ;;  %v19900_v7 = vld [vmem:[#allocation3 + $0x6e0] ss:$40 sps:$4 sm:$0xff]   ;;  %v19903_v9 = vld [vmem:[#allocation3 + $0x694] ss:$40 sps:$4 sm:$0xff]   ;;  %v19905_v10 = vld [vmem:[#allocation3 + $0x190] ss:$40 sps:$4 sm:$0xff]  }
  0x12   :  { %11828 = vmatprep.subr.bf16.mxu1 %v19897_v5  ;;  %v19906_v11 = vld [vmem:[#allocation3 + $0x690] ss:$40 sps:$4 sm:$0xff]   ;;  %v19907_v12 = vld [vmem:[#allocation3 + $0x144] ss:$40 sps:$4 sm:$0xff]   ;;  %v19911_v14 = vld [vmem:[#allocation3 + $0x140] ss:$40 sps:$4 sm:$0xff]  }
  0x13   :  { %v19909_v13 = vld [vmem:[#allocation3 + $0x644] ss:$40 sps:$4 sm:$0xff]   ;;  %v19912_v15 = vld [vmem:[#allocation3 + $0x640] ss:$40 sps:$4 sm:$0xff]   ;;  %v19913_v16 = vld [vmem:[#allocation3 + $0xf4] ss:$40 sps:$4 sm:$0xff]  }
  0x14   :  { %11786 = vmatpush1.bf16.msra.mxu0 %v19899_v6  ;;  %v19915_v17 = vld [vmem:[#allocation3 + $0x5f4] ss:$40 sps:$4 sm:$0xff]   ;;  %v19917_v18 = vld [vmem:[#allocation3 + $0xf0] ss:$40 sps:$4 sm:$0xff]   ;;  %v19919_v20 = vld [vmem:[#allocation3 + $0xa4] ss:$40 sps:$4 sm:$0xff]  }
  0x15   :  { %11829 = vmatpush1.bf16.msra.mxu1 %v19900_v7  ;;  %11787 = vmatprep.subr.bf16.mxu0 %v19901_v8  ;;  %v19918_v19 = vld [vmem:[#allocation3 + $0x5f0] ss:$40 sps:$4 sm:$0xff]   ;;  %v19921_v21 = vld [vmem:[#allocation3 + $0x5a4] ss:$40 sps:$4 sm:$0xff]   ;;  %v19923_v22 = vld [vmem:[#allocation3 + $0xa0] ss:$40 sps:$4 sm:$0xff]  }
  0x16   :  { %11830 = vmatprep.subr.bf16.mxu1 %v19903_v9  ;;  %v19924_v23 = vld [vmem:[#allocation3 + $0x5a0] ss:$40 sps:$4 sm:$0xff]   ;;  %v19925_v24 = vld [vmem:[#allocation3 + $0x54] ss:$40 sps:$4 sm:$0xff]   ;;  %v19929_v26 = vld [vmem:[#allocation3 + $0x50] ss:$40 sps:$4 sm:$0xff]  }
  0x17   :  { %v19927_v25 = vld [vmem:[#allocation3 + $0x554] ss:$40 sps:$4 sm:$0xff]   ;;  %v19930_v27 = vld [vmem:[#allocation3 + $0x550] ss:$40 sps:$4 sm:$0xff]   ;;  %v19931_v28 = vld [vmem:[#allocation3 + $0x4] ss:$40 sps:$4 sm:$0xff]  }
  0x18   :  { %11788 = vmatpush1.bf16.msra.mxu0 %v19905_v10  ;;  %v19933_v29 = vld [vmem:[#allocation3 + $0x504] ss:$40 sps:$4 sm:$0xff]   ;;  %v19935_v30 = vld [vmem:[#allocation3] ss:$40 sps:$4 sm:$0xff]   ;;  %v19937_v32 = vld [vmem:[#allocation3 + $0x4b4] ss:$40 sps:$4 sm:$0xff]  }
  0x19   :  { %11831 = vmatpush1.bf16.msra.mxu1 %v19906_v11  ;;  %11789 = vmatprep.subr.bf16.mxu0 %v19907_v12  ;;  %v19936_v31 = vld [vmem:[#allocation3 + $0x500] ss:$40 sps:$4 sm:$0xff]   ;;  %v19939_v33 = vld [vmem:[#allocation3 + $0x9b4] ss:$40 sps:$4 sm:$0xff]   ;;  %v19941_v34 = vld [vmem:[#allocation3 + $0x4b0] ss:$40 sps:$4 sm:$0xff]  }
  0x1a   :  { %11832 = vmatprep.subr.bf16.mxu1 %v19909_v13  ;;  %v19942_v35 = vld [vmem:[#allocation3 + $0x9b0] ss:$40 sps:$4 sm:$0xff]   ;;  %v19943_v36 = vld [vmem:[#allocation3 + $0x464] ss:$40 sps:$4 sm:$0xff]   ;;  %v19947_v38 = vld [vmem:[#allocation3 + $0x460] ss:$40 sps:$4 sm:$0xff]  }
  0x1b   :  { %v19945_v37 = vld [vmem:[#allocation3 + $0x964] ss:$40 sps:$4 sm:$0xff]   ;;  %v19948_v39 = vld [vmem:[#allocation3 + $0x960] ss:$40 sps:$4 sm:$0xff]   ;;  %v19949_v40 = vld [vmem:[#allocation3 + $0x414] ss:$40 sps:$4 sm:$0xff]  }
  0x1c   :  { %11790 = vmatpush1.bf16.msra.mxu0 %v19911_v14  ;;  %v19951_v41 = vld [vmem:[#allocation3 + $0x914] ss:$40 sps:$4 sm:$0xff]   ;;  %v19953_v42 = vld [vmem:[#allocation3 + $0x410] ss:$40 sps:$4 sm:$0xff]   ;;  %v19955_v44 = vld [vmem:[#allocation3 + $0x3c4] ss:$40 sps:$4 sm:$0xff]  }
  0x1d   :  { %11833 = vmatpush1.bf16.msra.mxu1 %v19912_v15  ;;  %11791 = vmatprep.subr.bf16.mxu0 %v19913_v16  ;;  %v19954_v43 = vld [vmem:[#allocation3 + $0x910] ss:$40 sps:$4 sm:$0xff]   ;;  %v19957_v45 = vld [vmem:[#allocation3 + $0x8c4] ss:$40 sps:$4 sm:$0xff]   ;;  %v19959_v46 = vld [vmem:[#allocation3 + $0x3c0] ss:$40 sps:$4 sm:$0xff]  }
  0x1e   :  { %11834 = vmatprep.subr.bf16.mxu1 %v19915_v17  ;;  %v19960_v47 = vld [vmem:[#allocation3 + $0x8c0] ss:$40 sps:$4 sm:$0xff]   ;;  %v19961_v52 = vld [vmem:[#allocation3 + $0x374] ss:$40 sps:$4 sm:$0xff]   ;;  %v19965_v56 = vld [vmem:[#allocation3 + $0x370] ss:$40 sps:$4 sm:$0xff]  }
  0x1f   :  { %v65_v48 = vld [vmem:[%s25622_s0] sm:$0xff]  ;;  %v66_v50 = vld [vmem:[%s25622_s0 + $0x8] sm:$0xff]  ;;  %v19963_v55 = vld [vmem:[#allocation3 + $0x874] ss:$40 sps:$4 sm:$0xff]   ;;  %vm15239_vm0 = vcmask 1041409   ;;  %s23392_s12 = smov [#allocation6]  }
  0x20   :  { %11792 = vmatpush1.bf16.msra.mxu0 %v19917_v18  ;;  %v77_v49 = vld [vmem:[%s25622_s0 + $0x60] sm:$0xff]  ;;  %v78_v51 = vld [vmem:[%s25622_s0 + $0x68] sm:$0xff]  ;;  %v19966_v57 = vld [vmem:[#allocation3 + $0x870] ss:$40 sps:$4 sm:$0xff]   ;;  %s17518_s13 = sshll.u32 %s23392_s12, 4  ;;  %vm17510_vm1 = vcmask 9216   ;;  %s17519_s13 = int_to_ptr.vmem [resolvable:$true] %s17518_s13 }
  0x21   :  { %11835 = vmatpush1.bf16.msra.mxu1 %v19918_v19  ;;  %11793 = vmatprep.subr.bf16.mxu0 %v19919_v20  ;;  %v23448_v53 = vcombine.high %v65_v48, %v77_v49  ;;  %v23450_v54 = vcombine.high %v66_v50, %v78_v51  ;;  %v19967_v58 = vld [vmem:[#allocation3 + $0x324] ss:$40 sps:$4 sm:$0xff]   ;;  %v19971_v60 = vld [vmem:[#allocation3 + $0x320] ss:$40 sps:$4 sm:$0xff]   ;;  %v19973_v62 = vld [vmem:[#allocation3 + $0x2d4] ss:$40 sps:$4 sm:$0xff]   ;;  %v23454_v8 = vcombine.low %v65_v48, %v77_v49  ;;  %p23370_p6 = scmp.lt.s32.totalorder %s17519_s13, %s17519_s13 }
  0x22   :  { %11836 = vmatprep.subr.bf16.mxu1 %v19921_v21  ;;  %v19969_v59 = vld [vmem:[#allocation3 + $0x824] ss:$40 sps:$4 sm:$0xff]   ;;  %v19972_v61 = vld [vmem:[#allocation3 + $0x820] ss:$40 sps:$4 sm:$0xff]   ;;  %v19975_v63 = vld [vmem:[#allocation3 + $0x7d4] ss:$40 sps:$4 sm:$0xff]   ;;  %v23456_v9 = vcombine.low %v66_v50, %v78_v51 }
  0x23   :  { %11815 = vmatprep.mubr.bf16.mxu0 %v23448_v53  ;;  %11858 = vmatprep.mubr.bf16.mxu1 %v23450_v54  ;;  %v19977_v0 = vld [vmem:[#allocation3 + $0x2d0] ss:$40 sps:$4 sm:$0xff]   ;;  %v19979_v2 = vld [vmem:[#allocation3 + $0x284] ss:$40 sps:$4 sm:$0xff]   ;;  %v19983_v4 = vld [vmem:[#allocation3 + $0x280] ss:$40 sps:$4 sm:$0xff]  }
  0x24   :  { %11794 = vmatpush1.bf16.msra.mxu0 %v19923_v22  ;;  %v19978_v1 = vld [vmem:[#allocation3 + $0x7d0] ss:$40 sps:$4 sm:$0xff]   ;;  %v19981_v3 = vld [vmem:[#allocation3 + $0x784] ss:$40 sps:$4 sm:$0xff]   ;;  %v19984_v5 = vld [vmem:[#allocation3 + $0x780] ss:$40 sps:$4 sm:$0xff]  }
  0x25   :  { %11837 = vmatpush1.bf16.msra.mxu1 %v19924_v23  ;;  %11795 = vmatprep.subr.bf16.mxu0 %v19925_v24  ;;  %v19987_v6 = vld [vmem:[#allocation3 + $0xc34] ss:$40 sps:$4 sm:$0xff]   ;;  %v19985_v10 = vld [vmem:[#allocation3 + $0xc30] ss:$40 sps:$4 sm:$0xff]   ;;  %v19993_v12 = vld [vmem:[#allocation3 + $0xbe4] ss:$40 sps:$4 sm:$0xff]  }
  0x26   :  { %11838 = vmatprep.subr.bf16.mxu1 %v19927_v25  ;;  %v19990_v7 = vld [vmem:[#allocation3 + $0x1134] ss:$40 sps:$4 sm:$0xff]   ;;  %v19988_v11 = vld [vmem:[#allocation3 + $0x1130] ss:$40 sps:$4 sm:$0xff]   ;;  %v19996_v13 = vld [vmem:[#allocation3 + $0x10e4] ss:$40 sps:$4 sm:$0xff]  }
  0x27   :  { %v19991_v14 = vld [vmem:[#allocation3 + $0xbe0] ss:$40 sps:$4 sm:$0xff]   ;;  %v19999_v16 = vld [vmem:[#allocation3 + $0xb94] ss:$40 sps:$4 sm:$0xff]   ;;  %v19997_v18 = vld [vmem:[#allocation3 + $0xb90] ss:$40 sps:$4 sm:$0xff]  }
  0x28   :  { %11796 = vmatpush1.bf16.msra.mxu0 %v19929_v26  ;;  %v19994_v15 = vld [vmem:[#allocation3 + $0x10e0] ss:$40 sps:$4 sm:$0xff]   ;;  %v20002_v17 = vld [vmem:[#allocation3 + $0x1094] ss:$40 sps:$4 sm:$0xff]   ;;  %v20000_v19 = vld [vmem:[#allocation3 + $0x1090] ss:$40 sps:$4 sm:$0xff]  }
  0x29   :  { %11839 = vmatpush1.bf16.msra.mxu1 %v19930_v27  ;;  %11797 = vmatprep.subr.bf16.mxu0 %v19931_v28  ;;  %v20005_v20 = vld [vmem:[#allocation3 + $0xb44] ss:$40 sps:$4 sm:$0xff]   ;;  %v20003_v22 = vld [vmem:[#allocation3 + $0xb40] ss:$40 sps:$4 sm:$0xff]   ;;  %v20011_v24 = vld [vmem:[#allocation3 + $0xaf4] ss:$40 sps:$4 sm:$0xff]  }
  0x2a   :  { %11840 = vmatprep.subr.bf16.mxu1 %v19933_v29  ;;  %v20008_v21 = vld [vmem:[#allocation3 + $0x1044] ss:$40 sps:$4 sm:$0xff]   ;;  %v20006_v23 = vld [vmem:[#allocation3 + $0x1040] ss:$40 sps:$4 sm:$0xff]   ;;  %v20014_v25 = vld [vmem:[#allocation3 + $0xff4] ss:$40 sps:$4 sm:$0xff]  }
  0x2b   :  { %v20009_v26 = vld [vmem:[#allocation3 + $0xaf0] ss:$40 sps:$4 sm:$0xff]   ;;  %v20017_v28 = vld [vmem:[#allocation3 + $0xaa4] ss:$40 sps:$4 sm:$0xff]  }
  0x2c   :  { %11798 = vmatpush1.bf16.msra.mxu0 %v19935_v30  ;;  %v20012_v27 = vld [vmem:[#allocation3 + $0xff0] ss:$40 sps:$4 sm:$0xff]   ;;  %v20020_v29 = vld [vmem:[#allocation3 + $0xfa4] ss:$40 sps:$4 sm:$0xff]   ;;  %v20015_v30 = vld [vmem:[#allocation3 + $0xaa0] ss:$40 sps:$4 sm:$0xff]  }
  0x2d   :  { %11841 = vmatpush1.bf16.msra.mxu1 %v19936_v31  ;;  %11799 = vmatprep.subr.bf16.mxu0 %v19937_v32  ;;  %v20018_v31 = vld [vmem:[#allocation3 + $0xfa0] ss:$40 sps:$4 sm:$0xff]   ;;  %v20023_v32 = vld [vmem:[#allocation3 + $0xa54] ss:$40 sps:$4 sm:$0xff]   ;;  %v20033_v48 = vld [vmem:[#allocation3 + $0xeb0] ss:$40 sps:$4 sm:$0xff]  }
  0x2e   :  { %11842 = vmatprep.subr.bf16.mxu1 %v19939_v33  ;;  %v20026_v33 = vld [vmem:[#allocation3 + $0xf54] ss:$40 sps:$4 sm:$0xff]   ;;  %v20036_v49 = vld [vmem:[#allocation3 + $0x13b0] ss:$40 sps:$4 sm:$0xff]   ;;  %v20041_v50 = vld [vmem:[#allocation3 + $0xe64] ss:$40 sps:$4 sm:$0xff]  }
  0x2f   :  { %v20044_v51 = vld [vmem:[#allocation3 + $0x1364] ss:$40 sps:$4 sm:$0xff]  }
  0x30   :  { %11800 = vmatpush2.bf16.msra.mxu0 %v19941_v34  ;;  %v20021_v34 = vld [vmem:[#allocation3 + $0xa50] ss:$40 sps:$4 sm:$0xff]  }
  0x31   :  { %11843 = vmatpush2.bf16.msra.mxu1 %v19942_v35  ;;  %11801 = vmatprep.subr.bf16.mxu0 %v19943_v36  ;;  %v20024_v35 = vld [vmem:[#allocation3 + $0xf50] ss:$40 sps:$4 sm:$0xff]  }
  0x32   :  { %11844 = vmatprep.subr.bf16.mxu1 %v19945_v37  ;;  %v23463_v36 = vld [vmem:[%s25622_s0 + $0x10] sm:$0xff] }
  0x33   :  { %v23468_v37 = vld [vmem:[%s25622_s0 + $0x70] sm:$0xff] }
  0x34   :  { %11802 = vmatpush2.bf16.msra.mxu0 %v19947_v38  ;;  %v23473_v38 = vld [vmem:[%s25622_s0 + $0x18] sm:$0xff] }
  0x35   :  { %11845 = vmatpush2.bf16.msra.mxu1 %v19948_v39  ;;  %11803 = vmatprep.subr.bf16.mxu0 %v19949_v40  ;;  %v23478_v39 = vld [vmem:[%s25622_s0 + $0x78] sm:$0xff]  ;;  %v20029_v40 = vld [vmem:[#allocation3 + $0xa04] ss:$40 sps:$4 sm:$0xff]  }
  0x36   :  { %11846 = vmatprep.subr.bf16.mxu1 %v19951_v41  ;;  %v23482_v41 = vcombine.high %v23463_v36, %v23468_v37 }
  0x38   :  { %11804 = vmatpush2.bf16.msra.mxu0 %v19953_v42  ;;  %v23486_v42 = vcombine.high %v23473_v38, %v23478_v39 }
  0x39   :  { %11847 = vmatpush2.bf16.msra.mxu1 %v19954_v43  ;;  %11805 = vmatprep.subr.bf16.mxu0 %v19955_v44  ;;  %v20032_v43 = vld [vmem:[#allocation3 + $0xf04] ss:$40 sps:$4 sm:$0xff]   ;;  %v20027_v44 = vld [vmem:[#allocation3 + $0xa00] ss:$40 sps:$4 sm:$0xff]  }
  0x3a   :  { %11848 = vmatprep.subr.bf16.mxu1 %v19957_v45  ;;  %v20030_v45 = vld [vmem:[#allocation3 + $0xf00] ss:$40 sps:$4 sm:$0xff]  }
  0x3c   :  { %11806 = vmatpush2.bf16.msra.mxu0 %v19959_v46  ;;  %v20035_v46 = vld [vmem:[#allocation3 + $0xeb4] ss:$40 sps:$4 sm:$0xff]  }
  0x3d   :  { %11849 = vmatpush2.bf16.msra.mxu1 %v19960_v47  ;;  %11807 = vmatprep.subr.bf16.mxu0 %v19961_v52  ;;  %v20038_v47 = vld [vmem:[#allocation3 + $0x13b4] ss:$40 sps:$4 sm:$0xff]   ;;  %v20039_v52 = vld [vmem:[#allocation3 + $0xe60] ss:$40 sps:$4 sm:$0xff]  }
  0x3e   :  { %11850 = vmatprep.subr.bf16.mxu1 %v19963_v55  ;;  %v20042_v55 = vld [vmem:[#allocation3 + $0x1360] ss:$40 sps:$4 sm:$0xff]  }
  0x40   :  { %11808 = vmatpush2.bf16.msra.mxu0 %v19965_v56  ;;  %v20047_v56 = vld [vmem:[#allocation3 + $0xe14] ss:$40 sps:$4 sm:$0xff]  }
  0x41   :  { %11851 = vmatpush2.bf16.msra.mxu1 %v19966_v57  ;;  %11809 = vmatprep.subr.bf16.mxu0 %v19967_v58  ;;  %v20050_v57 = vld [vmem:[#allocation3 + $0x1314] ss:$40 sps:$4 sm:$0xff]   ;;  %v20045_v58 = vld [vmem:[#allocation3 + $0xe10] ss:$40 sps:$4 sm:$0xff]  }
  0x42   :  { %11852 = vmatprep.subr.bf16.mxu1 %v19969_v59  ;;  %v20048_v59 = vld [vmem:[#allocation3 + $0x1310] ss:$40 sps:$4 sm:$0xff]  }
  0x44   :  { %11810 = vmatpush2.bf16.msra.mxu0 %v19971_v60  ;;  %v20053_v60 = vld [vmem:[#allocation3 + $0xdc4] ss:$40 sps:$4 sm:$0xff]  }
  0x45   :  { %11853 = vmatpush2.bf16.msra.mxu1 %v19972_v61  ;;  %11811 = vmatprep.subr.bf16.mxu0 %v19973_v62  ;;  %v20056_v61 = vld [vmem:[#allocation3 + $0x12c4] ss:$40 sps:$4 sm:$0xff]   ;;  %v20051_v62 = vld [vmem:[#allocation3 + $0xdc0] ss:$40 sps:$4 sm:$0xff]  }
  0x46   :  { %11854 = vmatprep.subr.bf16.mxu1 %v19975_v63  ;;  %v20054_v63 = vld [vmem:[#allocation3 + $0x12c0] ss:$40 sps:$4 sm:$0xff]  }
  0x48   :  { %11812 = vmatpush2.bf16.msra.mxu0 %v19977_v0  ;;  %v20059_v0 = vld [vmem:[#allocation3 + $0xd74] ss:$40 sps:$4 sm:$0xff]  }
  0x49   :  { %11855 = vmatpush2.bf16.msra.mxu1 %v19978_v1  ;;  %11813 = vmatprep.subr.bf16.mxu0 %v19979_v2  ;;  %v20062_v1 = vld [vmem:[#allocation3 + $0x1274] ss:$40 sps:$4 sm:$0xff]   ;;  %v20057_v2 = vld [vmem:[#allocation3 + $0xd70] ss:$40 sps:$4 sm:$0xff]  }
  0x4a   :  { %11856 = vmatprep.subr.bf16.mxu1 %v19981_v3  ;;  %v20060_v3 = vld [vmem:[#allocation3 + $0x1270] ss:$40 sps:$4 sm:$0xff]  }
  0x4c   :  { %11814 = vmatpush2.bf16.msra.mxu0 %v19983_v4  ;;  %v20065_v4 = vld [vmem:[#allocation3 + $0xd24] ss:$40 sps:$4 sm:$0xff]  }
  0x4d   :  { %11857 = vmatpush2.bf16.msra.mxu1 %v19984_v5  ;;  %11869 = vmatprep.subr.bf16.mxu0 %v19987_v6  ;;  %v20068_v5 = vld [vmem:[#allocation3 + $0x1224] ss:$40 sps:$4 sm:$0xff]   ;;  %v20063_v6 = vld [vmem:[#allocation3 + $0xd20] ss:$40 sps:$4 sm:$0xff]  }
  0x4e   :  { %11912 = vmatprep.subr.bf16.mxu1 %v19990_v7  ;;  %v20066_v7 = vld [vmem:[#allocation3 + $0x1220] ss:$40 sps:$4 sm:$0xff]  }
  0x4f   :  { %11816 = vmatmul.mubr.bf16.vlgmr.msra.gmra.mxu0 %v23454_v8 }
  0x50   :  { %11859 = vmatmul.mubr.bf16.vlgmr.msra.gmra.mxu1 %v23456_v9  ;;  %11870 = vmatpush1.bf16.msra.mxu0 %v19985_v10  ;;  %v20071_v10 = vld [vmem:[#allocation3 + $0xcd4] ss:$40 sps:$4 sm:$0xff]  }
  0x51   :  { %11913 = vmatpush1.bf16.msra.mxu1 %v19988_v11  ;;  %11871 = vmatprep.subr.bf16.mxu0 %v19993_v12  ;;  %v20074_v11 = vld [vmem:[#allocation3 + $0x11d4] ss:$40 sps:$4 sm:$0xff]   ;;  %v20069_v12 = vld [vmem:[#allocation3 + $0xcd0] ss:$40 sps:$4 sm:$0xff]  }
  0x52   :  { %11914 = vmatprep.subr.bf16.mxu1 %v19996_v13  ;;  %11901 = vmatprep.mubr.bf16.mxu0 %v23482_v41  ;;  %v20072_v13 = vld [vmem:[#allocation3 + $0x11d0] ss:$40 sps:$4 sm:$0xff]  }
  0x53   :  { %11944 = vmatprep.mubr.bf16.mxu1 %v23486_v42 }
  0x54   :  { %11872 = vmatpush1.bf16.msra.mxu0 %v19991_v14  ;;  %v20077_v14 = vld [vmem:[#allocation3 + $0xc84] ss:$40 sps:$4 sm:$0xff]  }
  0x55   :  { %11915 = vmatpush1.bf16.msra.mxu1 %v19994_v15  ;;  %11873 = vmatprep.subr.bf16.mxu0 %v19999_v16  ;;  %v20080_v15 = vld [vmem:[#allocation3 + $0x1184] ss:$40 sps:$4 sm:$0xff]   ;;  %v20075_v16 = vld [vmem:[#allocation3 + $0xc80] ss:$40 sps:$4 sm:$0xff]  }
  0x56   :  { %11916 = vmatprep.subr.bf16.mxu1 %v20002_v17  ;;  %v20078_v17 = vld [vmem:[#allocation3 + $0x1180] ss:$40 sps:$4 sm:$0xff]  }
  0x58   :  { %11874 = vmatpush1.bf16.msra.mxu0 %v19997_v18  ;;  %v20083_v18 = vld [vmem:[#allocation3 + $0x1634] ss:$40 sps:$4 sm:$0xff]  }
  0x59   :  { %11917 = vmatpush1.bf16.msra.mxu1 %v20000_v19  ;;  %11875 = vmatprep.subr.bf16.mxu0 %v20005_v20  ;;  %v20086_v19 = vld [vmem:[#allocation3 + $0x1b34] ss:$40 sps:$4 sm:$0xff]   ;;  %v23492_v20 = vcombine.low %v23463_v36, %v23468_v37  ;;  %v20093_v36 = vld [vmem:[#allocation3 + $0x1590] ss:$40 sps:$4 sm:$0xff]  }
  0x5a   :  { %11918 = vmatprep.subr.bf16.mxu1 %v20008_v21  ;;  %v23496_v21 = vcombine.low %v23473_v38, %v23478_v39  ;;  %v20096_v37 = vld [vmem:[#allocation3 + $0x1a90] ss:$40 sps:$4 sm:$0xff]   ;;  %v20101_v38 = vld [vmem:[#allocation3 + $0x1544] ss:$40 sps:$4 sm:$0xff]  }
  0x5b   :  { %v20104_v39 = vld [vmem:[#allocation3 + $0x1a44] ss:$40 sps:$4 sm:$0xff]  }
  0x5c   :  { %11876 = vmatpush1.bf16.msra.mxu0 %v20003_v22  ;;  %v20081_v22 = vld [vmem:[#allocation3 + $0x1630] ss:$40 sps:$4 sm:$0xff]  }
  0x5d   :  { %11919 = vmatpush1.bf16.msra.mxu1 %v20006_v23  ;;  %11877 = vmatprep.subr.bf16.mxu0 %v20011_v24  ;;  %v20084_v23 = vld [vmem:[#allocation3 + $0x1b30] ss:$40 sps:$4 sm:$0xff]   ;;  %v20089_v24 = vld [vmem:[#allocation3 + $0x15e4] ss:$40 sps:$4 sm:$0xff]  }
  0x5e   :  { %11920 = vmatprep.subr.bf16.mxu1 %v20014_v25  ;;  %v20092_v25 = vld [vmem:[#allocation3 + $0x1ae4] ss:$40 sps:$4 sm:$0xff]  }
  0x60   :  { %11878 = vmatpush1.bf16.msra.mxu0 %v20009_v26  ;;  %v20087_v26 = vld [vmem:[#allocation3 + $0x15e0] ss:$40 sps:$4 sm:$0xff]  }
  0x61   :  { %11921 = vmatpush1.bf16.msra.mxu1 %v20012_v27  ;;  %11879 = vmatprep.subr.bf16.mxu0 %v20017_v28  ;;  %v20090_v27 = vld [vmem:[#allocation3 + $0x1ae0] ss:$40 sps:$4 sm:$0xff]  }
  0x62   :  { %11922 = vmatprep.subr.bf16.mxu1 %v20020_v29  ;;  %v23501_v28 = vld [vmem:[%s25622_s0 + $0x20] sm:$0xff] }
  0x63   :  { %v23508_v29 = vld [vmem:[%s25622_s0 + $0x80] sm:$0xff] }
  0x64   :  { %11880 = vmatpush1.bf16.msra.mxu0 %v20015_v30  ;;  %v23513_v30 = vld [vmem:[%s25622_s0 + $0x28] sm:$0xff] }
  0x65   :  { %11923 = vmatpush1.bf16.msra.mxu1 %v20018_v31  ;;  %11881 = vmatprep.subr.bf16.mxu0 %v20023_v32  ;;  %v23518_v31 = vld [vmem:[%s25622_s0 + $0x88] sm:$0xff]  ;;  %v20095_v32 = vld [vmem:[#allocation3 + $0x1594] ss:$40 sps:$4 sm:$0xff]  }
  0x66   :  { %11924 = vmatprep.subr.bf16.mxu1 %v20026_v33  ;;  %v23522_v33 = vcombine.high %v23501_v28, %v23508_v29 }
  0x68   :  { %11882 = vmatpush1.bf16.msra.mxu0 %v20021_v34  ;;  %v23526_v34 = vcombine.high %v23513_v30, %v23518_v31 }
  0x69   :  { %11925 = vmatpush1.bf16.msra.mxu1 %v20024_v35  ;;  %11883 = vmatprep.subr.bf16.mxu0 %v20029_v40  ;;  %v20098_v35 = vld [vmem:[#allocation3 + $0x1a94] ss:$40 sps:$4 sm:$0xff]   ;;  %v20099_v40 = vld [vmem:[#allocation3 + $0x1540] ss:$40 sps:$4 sm:$0xff]  }
  0x6a   :  { %11926 = vmatprep.subr.bf16.mxu1 %v20032_v43  ;;  %v20102_v43 = vld [vmem:[#allocation3 + $0x1a40] ss:$40 sps:$4 sm:$0xff]  }
  0x6c   :  { %11884 = vmatpush1.bf16.msra.mxu0 %v20027_v44  ;;  %v20107_v44 = vld [vmem:[#allocation3 + $0x14f4] ss:$40 sps:$4 sm:$0xff]  }
  0x6d   :  { %11927 = vmatpush1.bf16.msra.mxu1 %v20030_v45  ;;  %11885 = vmatprep.subr.bf16.mxu0 %v20035_v46  ;;  %v20110_v45 = vld [vmem:[#allocation3 + $0x19f4] ss:$40 sps:$4 sm:$0xff]   ;;  %v20105_v46 = vld [vmem:[#allocation3 + $0x14f0] ss:$40 sps:$4 sm:$0xff]  }
  0x6e   :  { %11928 = vmatprep.subr.bf16.mxu1 %v20038_v47  ;;  %v20108_v47 = vld [vmem:[#allocation3 + $0x19f0] ss:$40 sps:$4 sm:$0xff]  }
  0x70   :  { %11886 = vmatpush2.bf16.msra.mxu0 %v20033_v48  ;;  %v20113_v48 = vld [vmem:[#allocation3 + $0x14a4] ss:$40 sps:$4 sm:$0xff]  }
  0x71   :  { %11929 = vmatpush2.bf16.msra.mxu1 %v20036_v49  ;;  %11887 = vmatprep.subr.bf16.mxu0 %v20041_v50  ;;  %v20116_v49 = vld [vmem:[#allocation3 + $0x19a4] ss:$40 sps:$4 sm:$0xff]   ;;  %v20111_v50 = vld [vmem:[#allocation3 + $0x14a0] ss:$40 sps:$4 sm:$0xff]  }
  0x72   :  { %11930 = vmatprep.subr.bf16.mxu1 %v20044_v51  ;;  %v20114_v51 = vld [vmem:[#allocation3 + $0x19a0] ss:$40 sps:$4 sm:$0xff]  }
  0x74   :  { %11888 = vmatpush2.bf16.msra.mxu0 %v20039_v52  ;;  %v20119_v52 = vld [vmem:[#allocation3 + $0x1454] ss:$40 sps:$4 sm:$0xff]  }
  0x75   :  { %11931 = vmatpush2.bf16.msra.mxu1 %v20042_v55  ;;  %11889 = vmatprep.subr.bf16.mxu0 %v20047_v56  ;;  %v20122_v55 = vld [vmem:[#allocation3 + $0x1954] ss:$40 sps:$4 sm:$0xff]   ;;  %v20117_v56 = vld [vmem:[#allocation3 + $0x1450] ss:$40 sps:$4 sm:$0xff]  }
  0x76   :  { %11932 = vmatprep.subr.bf16.mxu1 %v20050_v57  ;;  %v20120_v57 = vld [vmem:[#allocation3 + $0x1950] ss:$40 sps:$4 sm:$0xff]  }
  0x78   :  { %11890 = vmatpush2.bf16.msra.mxu0 %v20045_v58  ;;  %v20125_v58 = vld [vmem:[#allocation3 + $0x1404] ss:$40 sps:$4 sm:$0xff]  }
  0x79   :  { %11933 = vmatpush2.bf16.msra.mxu1 %v20048_v59  ;;  %11891 = vmatprep.subr.bf16.mxu0 %v20053_v60  ;;  %v20128_v59 = vld [vmem:[#allocation3 + $0x1904] ss:$40 sps:$4 sm:$0xff]   ;;  %v20123_v60 = vld [vmem:[#allocation3 + $0x1400] ss:$40 sps:$4 sm:$0xff]  }
  0x7a   :  { %11934 = vmatprep.subr.bf16.mxu1 %v20056_v61  ;;  %v20126_v61 = vld [vmem:[#allocation3 + $0x1900] ss:$40 sps:$4 sm:$0xff]  }
  0x7c   :  { %11892 = vmatpush2.bf16.msra.mxu0 %v20051_v62  ;;  %v20131_v62 = vld [vmem:[#allocation3 + $0x18b4] ss:$40 sps:$4 sm:$0xff]  }
  0x7d   :  { %11935 = vmatpush2.bf16.msra.mxu1 %v20054_v63  ;;  %11893 = vmatprep.subr.bf16.mxu0 %v20059_v0  ;;  %v20134_v63 = vld [vmem:[#allocation3 + $0x1db4] ss:$40 sps:$4 sm:$0xff]   ;;  %v20129_v0 = vld [vmem:[#allocation3 + $0x18b0] ss:$40 sps:$4 sm:$0xff]  }
  0x7e   :  { %11936 = vmatprep.subr.bf16.mxu1 %v20062_v1  ;;  %v20132_v1 = vld [vmem:[#allocation3 + $0x1db0] ss:$40 sps:$4 sm:$0xff]  }
  0x80   :  { %11894 = vmatpush2.bf16.msra.mxu0 %v20057_v2  ;;  %v20137_v2 = vld [vmem:[#allocation3 + $0x1864] ss:$40 sps:$4 sm:$0xff]  }
  0x81   :  { %11937 = vmatpush2.bf16.msra.mxu1 %v20060_v3  ;;  %11895 = vmatprep.subr.bf16.mxu0 %v20065_v4  ;;  %v20140_v3 = vld [vmem:[#allocation3 + $0x1d64] ss:$40 sps:$4 sm:$0xff]   ;;  %v20135_v4 = vld [vmem:[#allocation3 + $0x1860] ss:$40 sps:$4 sm:$0xff]  }
  0x82   :  { %11938 = vmatprep.subr.bf16.mxu1 %v20068_v5  ;;  %v20138_v5 = vld [vmem:[#allocation3 + $0x1d60] ss:$40 sps:$4 sm:$0xff]  }
  0x84   :  { %11896 = vmatpush2.bf16.msra.mxu0 %v20063_v6  ;;  %v20143_v6 = vld [vmem:[#allocation3 + $0x1814] ss:$40 sps:$4 sm:$0xff]  }
  0x85   :  { %11939 = vmatpush2.bf16.msra.mxu1 %v20066_v7  ;;  %11897 = vmatprep.subr.bf16.mxu0 %v20071_v10  ;;  %v20146_v7 = vld [vmem:[#allocation3 + $0x1d14] ss:$40 sps:$4 sm:$0xff]   ;;  %v20141_v10 = vld [vmem:[#allocation3 + $0x1810] ss:$40 sps:$4 sm:$0xff]  }
  0x86   :  { %11940 = vmatprep.subr.bf16.mxu1 %v20074_v11  ;;  %v20144_v11 = vld [vmem:[#allocation3 + $0x1d10] ss:$40 sps:$4 sm:$0xff]  }
  0x88   :  { %11898 = vmatpush2.bf16.msra.mxu0 %v20069_v12  ;;  %v20149_v12 = vld [vmem:[#allocation3 + $0x17c4] ss:$40 sps:$4 sm:$0xff]  }
  0x89   :  { %11941 = vmatpush2.bf16.msra.mxu1 %v20072_v13  ;;  %11899 = vmatprep.subr.bf16.mxu0 %v20077_v14  ;;  %v20152_v13 = vld [vmem:[#allocation3 + $0x1cc4] ss:$40 sps:$4 sm:$0xff]   ;;  %v20147_v14 = vld [vmem:[#allocation3 + $0x17c0] ss:$40 sps:$4 sm:$0xff]  }
  0x8a   :  { %11942 = vmatprep.subr.bf16.mxu1 %v20080_v15  ;;  %v20150_v15 = vld [vmem:[#allocation3 + $0x1cc0] ss:$40 sps:$4 sm:$0xff]  }
  0x8c   :  { %11900 = vmatpush2.bf16.msra.mxu0 %v20075_v16  ;;  %v20155_v16 = vld [vmem:[#allocation3 + $0x1774] ss:$40 sps:$4 sm:$0xff]  }
  0x8d   :  { %11943 = vmatpush2.bf16.msra.mxu1 %v20078_v17  ;;  %11955 = vmatprep.subr.bf16.mxu0 %v20083_v18  ;;  %v20158_v17 = vld [vmem:[#allocation3 + $0x1c74] ss:$40 sps:$4 sm:$0xff]   ;;  %v20153_v18 = vld [vmem:[#allocation3 + $0x1770] ss:$40 sps:$4 sm:$0xff]  }
  0x8e   :  { %11998 = vmatprep.subr.bf16.mxu1 %v20086_v19  ;;  %v20156_v19 = vld [vmem:[#allocation3 + $0x1c70] ss:$40 sps:$4 sm:$0xff]  }
  0x8f   :  { %11902 = vmatmul.mubr.bf16.vlgmr.msra.gmra.mxu0 %v23492_v20 }
  0x90   :  { %11945 = vmatmul.mubr.bf16.vlgmr.msra.gmra.mxu1 %v23496_v21  ;;  %11956 = vmatpush1.bf16.msra.mxu0 %v20081_v22  ;;  %v20161_v22 = vld [vmem:[#allocation3 + $0x1724] ss:$40 sps:$4 sm:$0xff]  }
  0x91   :  { %11999 = vmatpush1.bf16.msra.mxu1 %v20084_v23  ;;  %11957 = vmatprep.subr.bf16.mxu0 %v20089_v24  ;;  %v20164_v23 = vld [vmem:[#allocation3 + $0x1c24] ss:$40 sps:$4 sm:$0xff]   ;;  %v20159_v24 = vld [vmem:[#allocation3 + $0x1720] ss:$40 sps:$4 sm:$0xff]  }
  0x92   :  { %12000 = vmatprep.subr.bf16.mxu1 %v20092_v25  ;;  %11987 = vmatprep.mubr.bf16.mxu0 %v23522_v33  ;;  %v20162_v25 = vld [vmem:[#allocation3 + $0x1c20] ss:$40 sps:$4 sm:$0xff]  }
  0x93   :  { %12030 = vmatprep.mubr.bf16.mxu1 %v23526_v34 }
  0x94   :  { %11958 = vmatpush1.bf16.msra.mxu0 %v20087_v26  ;;  %v20167_v26 = vld [vmem:[#allocation3 + $0x16d4] ss:$40 sps:$4 sm:$0xff]  }
  0x95   :  { %12001 = vmatpush1.bf16.msra.mxu1 %v20090_v27  ;;  %11959 = vmatprep.subr.bf16.mxu0 %v20095_v32  ;;  %v20170_v27 = vld [vmem:[#allocation3 + $0x1bd4] ss:$40 sps:$4 sm:$0xff]   ;;  %v20165_v32 = vld [vmem:[#allocation3 + $0x16d0] ss:$40 sps:$4 sm:$0xff]  }
  0x96   :  { %12002 = vmatprep.subr.bf16.mxu1 %v20098_v35  ;;  %v20168_v35 = vld [vmem:[#allocation3 + $0x1bd0] ss:$40 sps:$4 sm:$0xff]  }
  0x98   :  { %11960 = vmatpush1.bf16.msra.mxu0 %v20093_v36  ;;  %v20173_v36 = vld [vmem:[#allocation3 + $0x1684] ss:$40 sps:$4 sm:$0xff]  }
  0x99   :  { %12003 = vmatpush1.bf16.msra.mxu1 %v20096_v37  ;;  %11961 = vmatprep.subr.bf16.mxu0 %v20101_v38  ;;  %v20176_v37 = vld [vmem:[#allocation3 + $0x1b84] ss:$40 sps:$4 sm:$0xff]   ;;  %v20171_v38 = vld [vmem:[#allocation3 + $0x1680] ss:$40 sps:$4 sm:$0xff]  }
  0x9a   :  { %12004 = vmatprep.subr.bf16.mxu1 %v20104_v39  ;;  %v20174_v39 = vld [vmem:[#allocation3 + $0x1b80] ss:$40 sps:$4 sm:$0xff]  }
  0x9c   :  { %11962 = vmatpush1.bf16.msra.mxu0 %v20099_v40  ;;  %v20179_v40 = vld [vmem:[#allocation3 + $0x2034] ss:$40 sps:$4 sm:$0xff]  }
  0x9d   :  { %12005 = vmatpush1.bf16.msra.mxu1 %v20102_v43  ;;  %11963 = vmatprep.subr.bf16.mxu0 %v20107_v44  ;;  %v20182_v43 = vld [vmem:[#allocation3 + $0x2534] ss:$40 sps:$4 sm:$0xff]  }
  0x9e   :  { %12006 = vmatprep.subr.bf16.mxu1 %v20110_v45  ;;  %v23533_v44 = vld [vmem:[%s25622_s0 + $0x30] sm:$0xff] }
  0x9f   :  { %v20177_v45 = vld [vmem:[#allocation3 + $0x2030] ss:$40 sps:$4 sm:$0xff]  }
  0xa0   :  { %11964 = vmatpush1.bf16.msra.mxu0 %v20105_v46  ;;  %v23538_v46 = vld [vmem:[%s25622_s0 + $0x90] sm:$0xff] }
  0xa1   :  { %12007 = vmatpush1.bf16.msra.mxu1 %v20108_v47  ;;  %11965 = vmatprep.subr.bf16.mxu0 %v20113_v48  ;;  %v23543_v47 = vld [vmem:[%s25622_s0 + $0x38] sm:$0xff]  ;;  %v23547_v48 = vcombine.low %v23501_v28, %v23508_v29  ;;  %v23560_v28 = vcombine.high %v23533_v44, %v23538_v46 }
  0xa2   :  { %12008 = vmatprep.subr.bf16.mxu1 %v20116_v49  ;;  %v23551_v49 = vcombine.low %v23513_v30, %v23518_v31  ;;  %v20183_v30 = vld [vmem:[#allocation3 + $0x1fe0] ss:$40 sps:$4 sm:$0xff]  }
  0xa3   :  { %v20186_v31 = vld [vmem:[#allocation3 + $0x24e0] ss:$40 sps:$4 sm:$0xff]  }
  0xa4   :  { %11966 = vmatpush1.bf16.msra.mxu0 %v20111_v50  ;;  %v23556_v50 = vld [vmem:[%s25622_s0 + $0x98] sm:$0xff] }
  0xa5   :  { %12009 = vmatpush1.bf16.msra.mxu1 %v20114_v51  ;;  %11967 = vmatprep.subr.bf16.mxu0 %v20119_v52  ;;  %v20180_v51 = vld [vmem:[#allocation3 + $0x2530] ss:$40 sps:$4 sm:$0xff]   ;;  %v20185_v52 = vld [vmem:[#allocation3 + $0x1fe4] ss:$40 sps:$4 sm:$0xff]   ;;  %v23564_v29 = vcombine.high %v23543_v47, %v23556_v50 }
  0xa6   :  { %12010 = vmatprep.subr.bf16.mxu1 %v20122_v55  ;;  %v20188_v55 = vld [vmem:[#allocation3 + $0x24e4] ss:$40 sps:$4 sm:$0xff]  }
  0xa8   :  { %11968 = vmatpush1.bf16.msra.mxu0 %v20117_v56  ;;  %v20191_v56 = vld [vmem:[#allocation3 + $0x1f94] ss:$40 sps:$4 sm:$0xff]  }
  0xa9   :  { %12011 = vmatpush1.bf16.msra.mxu1 %v20120_v57  ;;  %11969 = vmatprep.subr.bf16.mxu0 %v20125_v58  ;;  %v20194_v57 = vld [vmem:[#allocation3 + $0x2494] ss:$40 sps:$4 sm:$0xff]   ;;  %v20189_v58 = vld [vmem:[#allocation3 + $0x1f90] ss:$40 sps:$4 sm:$0xff]  }
  0xaa   :  { %12012 = vmatprep.subr.bf16.mxu1 %v20128_v59  ;;  %v20192_v59 = vld [vmem:[#allocation3 + $0x2490] ss:$40 sps:$4 sm:$0xff]  }
  0xac   :  { %11970 = vmatpush1.bf16.msra.mxu0 %v20123_v60  ;;  %v20197_v60 = vld [vmem:[#allocation3 + $0x1f44] ss:$40 sps:$4 sm:$0xff]  }
  0xad   :  { %12013 = vmatpush1.bf16.msra.mxu1 %v20126_v61  ;;  %11971 = vmatprep.subr.bf16.mxu0 %v20131_v62  ;;  %v20200_v61 = vld [vmem:[#allocation3 + $0x2444] ss:$40 sps:$4 sm:$0xff]   ;;  %v20195_v62 = vld [vmem:[#allocation3 + $0x1f40] ss:$40 sps:$4 sm:$0xff]  }
  0xae   :  { %12014 = vmatprep.subr.bf16.mxu1 %v20134_v63  ;;  %v20198_v63 = vld [vmem:[#allocation3 + $0x2440] ss:$40 sps:$4 sm:$0xff]  }
  0xb0   :  { %11972 = vmatpush2.bf16.msra.mxu0 %v20129_v0  ;;  %v20203_v0 = vld [vmem:[#allocation3 + $0x1ef4] ss:$40 sps:$4 sm:$0xff]  }
  0xb1   :  { %12015 = vmatpush2.bf16.msra.mxu1 %v20132_v1  ;;  %11973 = vmatprep.subr.bf16.mxu0 %v20137_v2  ;;  %v20206_v1 = vld [vmem:[#allocation3 + $0x23f4] ss:$40 sps:$4 sm:$0xff]   ;;  %v20201_v2 = vld [vmem:[#allocation3 + $0x1ef0] ss:$40 sps:$4 sm:$0xff]  }
  0xb2   :  { %12016 = vmatprep.subr.bf16.mxu1 %v20140_v3  ;;  %v20204_v3 = vld [vmem:[#allocation3 + $0x23f0] ss:$40 sps:$4 sm:$0xff]  }
  0xb4   :  { %11974 = vmatpush2.bf16.msra.mxu0 %v20135_v4  ;;  %v20209_v4 = vld [vmem:[#allocation3 + $0x1ea4] ss:$40 sps:$4 sm:$0xff]  }
  0xb5   :  { %12017 = vmatpush2.bf16.msra.mxu1 %v20138_v5  ;;  %11975 = vmatprep.subr.bf16.mxu0 %v20143_v6  ;;  %v20212_v5 = vld [vmem:[#allocation3 + $0x23a4] ss:$40 sps:$4 sm:$0xff]   ;;  %v20207_v6 = vld [vmem:[#allocation3 + $0x1ea0] ss:$40 sps:$4 sm:$0xff]  }
  0xb6   :  { %12018 = vmatprep.subr.bf16.mxu1 %v20146_v7  ;;  %v20210_v7 = vld [vmem:[#allocation3 + $0x23a0] ss:$40 sps:$4 sm:$0xff]  }
  0xb8   :  { %11976 = vmatpush2.bf16.msra.mxu0 %v20141_v10  ;;  %v20215_v10 = vld [vmem:[#allocation3 + $0x1e54] ss:$40 sps:$4 sm:$0xff]  }
  0xb9   :  { %12019 = vmatpush2.bf16.msra.mxu1 %v20144_v11  ;;  %11977 = vmatprep.subr.bf16.mxu0 %v20149_v12  ;;  %v20218_v11 = vld [vmem:[#allocation3 + $0x2354] ss:$40 sps:$4 sm:$0xff]   ;;  %v20213_v12 = vld [vmem:[#allocation3 + $0x1e50] ss:$40 sps:$4 sm:$0xff]  }
  0xba   :  { %12020 = vmatprep.subr.bf16.mxu1 %v20152_v13  ;;  %v20216_v13 = vld [vmem:[#allocation3 + $0x2350] ss:$40 sps:$4 sm:$0xff]  }
  0xbc   :  { %11978 = vmatpush2.bf16.msra.mxu0 %v20147_v14  ;;  %v20221_v14 = vld [vmem:[#allocation3 + $0x1e04] ss:$40 sps:$4 sm:$0xff]  }
  0xbd   :  { %12021 = vmatpush2.bf16.msra.mxu1 %v20150_v15  ;;  %11979 = vmatprep.subr.bf16.mxu0 %v20155_v16  ;;  %v20224_v15 = vld [vmem:[#allocation3 + $0x2304] ss:$40 sps:$4 sm:$0xff]   ;;  %v20219_v16 = vld [vmem:[#allocation3 + $0x1e00] ss:$40 sps:$4 sm:$0xff]  }
  0xbe   :  { %12022 = vmatprep.subr.bf16.mxu1 %v20158_v17  ;;  %v20222_v17 = vld [vmem:[#allocation3 + $0x2300] ss:$40 sps:$4 sm:$0xff]  }
  0xc0   :  { %11980 = vmatpush2.bf16.msra.mxu0 %v20153_v18  ;;  %v20227_v18 = vld [vmem:[#allocation3 + $0x22b4] ss:$40 sps:$4 sm:$0xff]  }
  0xc1   :  { %12023 = vmatpush2.bf16.msra.mxu1 %v20156_v19  ;;  %11981 = vmatprep.subr.bf16.mxu0 %v20161_v22  ;;  %v20230_v19 = vld [vmem:[#allocation3 + $0x27b4] ss:$40 sps:$4 sm:$0xff]   ;;  %v20225_v22 = vld [vmem:[#allocation3 + $0x22b0] ss:$40 sps:$4 sm:$0xff]  }
  0xc2   :  { %12024 = vmatprep.subr.bf16.mxu1 %v20164_v23  ;;  %v20228_v23 = vld [vmem:[#allocation3 + $0x27b0] ss:$40 sps:$4 sm:$0xff]  }
  0xc4   :  { %11982 = vmatpush2.bf16.msra.mxu0 %v20159_v24  ;;  %v20233_v24 = vld [vmem:[#allocation3 + $0x2264] ss:$40 sps:$4 sm:$0xff]  }
  0xc5   :  { %12025 = vmatpush2.bf16.msra.mxu1 %v20162_v25  ;;  %11983 = vmatprep.subr.bf16.mxu0 %v20167_v26  ;;  %v20236_v25 = vld [vmem:[#allocation3 + $0x2764] ss:$40 sps:$4 sm:$0xff]   ;;  %v20231_v26 = vld [vmem:[#allocation3 + $0x2260] ss:$40 sps:$4 sm:$0xff]  }
  0xc6   :  { %12026 = vmatprep.subr.bf16.mxu1 %v20170_v27  ;;  %v20234_v27 = vld [vmem:[#allocation3 + $0x2760] ss:$40 sps:$4 sm:$0xff]  }
  0xc8   :  { %11984 = vmatpush2.bf16.msra.mxu0 %v20165_v32  ;;  %v20239_v32 = vld [vmem:[#allocation3 + $0x2214] ss:$40 sps:$4 sm:$0xff]  }
  0xc9   :  { %12027 = vmatpush2.bf16.msra.mxu1 %v20168_v35  ;;  %11985 = vmatprep.subr.bf16.mxu0 %v20173_v36  ;;  %v20242_v35 = vld [vmem:[#allocation3 + $0x2714] ss:$40 sps:$4 sm:$0xff]   ;;  %v20237_v36 = vld [vmem:[#allocation3 + $0x2210] ss:$40 sps:$4 sm:$0xff]  }
  0xca   :  { %12028 = vmatprep.subr.bf16.mxu1 %v20176_v37  ;;  %v20240_v37 = vld [vmem:[#allocation3 + $0x2710] ss:$40 sps:$4 sm:$0xff]  }
  0xcc   :  { %11986 = vmatpush2.bf16.msra.mxu0 %v20171_v38  ;;  %v20245_v38 = vld [vmem:[#allocation3 + $0x21c4] ss:$40 sps:$4 sm:$0xff]  }
  0xcd   :  { %12029 = vmatpush2.bf16.msra.mxu1 %v20174_v39  ;;  %12041 = vmatprep.subr.bf16.mxu0 %v20179_v40  ;;  %v20248_v39 = vld [vmem:[#allocation3 + $0x26c4] ss:$40 sps:$4 sm:$0xff]   ;;  %v20243_v40 = vld [vmem:[#allocation3 + $0x21c0] ss:$40 sps:$4 sm:$0xff]  }
  0xce   :  { %12084 = vmatprep.subr.bf16.mxu1 %v20182_v43  ;;  %v20246_v43 = vld [vmem:[#allocation3 + $0x26c0] ss:$40 sps:$4 sm:$0xff]  }
  0xcf   :  { %11988 = vmatmul.mubr.bf16.vlgmr.msra.gmra.mxu0 %v23547_v48 }
  0xd0   :  { %12031 = vmatmul.mubr.bf16.vlgmr.msra.gmra.mxu1 %v23551_v49  ;;  %12042 = vmatpush1.bf16.msra.mxu0 %v20177_v45  ;;  %v20251_v45 = vld [vmem:[#allocation3 + $0x2174] ss:$40 sps:$4 sm:$0xff]  }
  0xd1   :  { %12085 = vmatpush1.bf16.msra.mxu1 %v20180_v51  ;;  %12043 = vmatprep.subr.bf16.mxu0 %v20185_v52  ;;  %v20254_v51 = vld [vmem:[#allocation3 + $0x2674] ss:$40 sps:$4 sm:$0xff]   ;;  %v20249_v52 = vld [vmem:[#allocation3 + $0x2170] ss:$40 sps:$4 sm:$0xff]  }
  0xd2   :  { %12086 = vmatprep.subr.bf16.mxu1 %v20188_v55  ;;  %12073 = vmatprep.mubr.bf16.mxu0 %v23560_v28  ;;  %v20252_v55 = vld [vmem:[#allocation3 + $0x2670] ss:$40 sps:$4 sm:$0xff]  }
  0xd3   :  { %12116 = vmatprep.mubr.bf16.mxu1 %v23564_v29 }
  0xd4   :  { %12044 = vmatpush1.bf16.msra.mxu0 %v20183_v30  ;;  %v20257_v30 = vld [vmem:[#allocation3 + $0x2124] ss:$40 sps:$4 sm:$0xff]  }
  0xd5   :  { %12087 = vmatpush1.bf16.msra.mxu1 %v20186_v31  ;;  %12045 = vmatprep.subr.bf16.mxu0 %v20191_v56  ;;  %v20260_v31 = vld [vmem:[#allocation3 + $0x2624] ss:$40 sps:$4 sm:$0xff]   ;;  %v20255_v56 = vld [vmem:[#allocation3 + $0x2120] ss:$40 sps:$4 sm:$0xff]  }
  0xd6   :  { %12088 = vmatprep.subr.bf16.mxu1 %v20194_v57  ;;  %v20258_v57 = vld [vmem:[#allocation3 + $0x2620] ss:$40 sps:$4 sm:$0xff]  }
  0xd8   :  { %12046 = vmatpush1.bf16.msra.mxu0 %v20189_v58  ;;  %v2013_v58 = vlaneseq }
  0xd9   :  { %12089 = vmatpush1.bf16.msra.mxu1 %v20192_v59  ;;  %12047 = vmatprep.subr.bf16.mxu0 %v20197_v60  ;;  %v20263_v59 = vld [vmem:[#allocation3 + $0x20d4] ss:$40 sps:$4 sm:$0xff]  }
  0xda   :  { %12090 = vmatprep.subr.bf16.mxu1 %v20200_v61  ;;  %v20266_v60 = vld [vmem:[#allocation3 + $0x25d4] ss:$40 sps:$4 sm:$0xff]   ;;  %v20261_v61 = vld [vmem:[#allocation3 + $0x20d0] ss:$40 sps:$4 sm:$0xff]  }
  0xdc   :  { %12048 = vmatpush1.bf16.msra.mxu0 %v20195_v62  ;;  %v20264_v62 = vld [vmem:[#allocation3 + $0x25d0] ss:$40 sps:$4 sm:$0xff]  }
  0xdd   :  { %12091 = vmatpush1.bf16.msra.mxu1 %v20198_v63  ;;  %12049 = vmatprep.subr.bf16.mxu0 %v20203_v0  ;;  %v23570_v63 = vshrl.u32 %v2013_v58, 7  ;;  %v20269_v0 = vld [vmem:[#allocation3 + $0x2084] ss:$40 sps:$4 sm:$0xff]   ;;  %v20294_v58 = vld [vmem:[#allocation3 + $0x2e40] ss:$40 sps:$4 sm:$0xff]  }
  0xde   :  { %12092 = vmatprep.subr.bf16.mxu1 %v20206_v1  ;;  %v20272_v1 = vld [vmem:[#allocation3 + $0x2584] ss:$40 sps:$4 sm:$0xff]  }
  0xe0   :  { %12050 = vmatpush1.bf16.msra.mxu0 %v20201_v2  ;;  %v20267_v2 = vld [vmem:[#allocation3 + $0x2080] ss:$40 sps:$4 sm:$0xff]  }
  0xe1   :  { %12093 = vmatpush1.bf16.msra.mxu1 %v20204_v3  ;;  %12051 = vmatprep.subr.bf16.mxu0 %v20209_v4  ;;  %v20270_v3 = vld [vmem:[#allocation3 + $0x2580] ss:$40 sps:$4 sm:$0xff]  }
  0xe2   :  { %12094 = vmatprep.subr.bf16.mxu1 %v20212_v5  ;;  %v2009_v4 = vld [vmem:[%s25624_s2] sm:$0xff]  ;;  %v23576_v5 = vsub.s32 0, %v23570_v63 }
  0xe4   :  { %12052 = vmatpush1.bf16.msra.mxu0 %v20207_v6  ;;  %25639 = vst [vmem:[#allocation9_spill] sm:$0xff] %v23576_v5  ;;  %v20275_v6 = vld [vmem:[#allocation3 + $0x2a34] ss:$40 sps:$4 sm:$0xff]  }
  0xe5   :  { %12095 = vmatpush1.bf16.msra.mxu1 %v20210_v7  ;;  %12053 = vmatprep.subr.bf16.mxu0 %v20215_v10  ;;  %v20278_v7 = vld [vmem:[#allocation3 + $0x2f34] ss:$40 sps:$4 sm:$0xff]   ;;  %v23581_v10 = vld [vmem:[%s25622_s0 + $0x40] sm:$0xff] }
  0xe6   :  { %12096 = vmatprep.subr.bf16.mxu1 %v20218_v11  ;;  %v20273_v11 = vld [vmem:[#allocation3 + $0x2a30] ss:$40 sps:$4 sm:$0xff]  }
  0xe8   :  { %12054 = vmatpush1.bf16.msra.mxu0 %v20213_v12  ;;  %v23584_v12 = vsub.s32 1, %v23570_v63 }
  0xe9   :  { %12097 = vmatpush1.bf16.msra.mxu1 %v20216_v13  ;;  %12055 = vmatprep.subr.bf16.mxu0 %v20221_v14  ;;  %v23589_v13 = vld [vmem:[%s25622_s0 + $0xa0] sm:$0xff]  ;;  %v23594_v14 = vld [vmem:[%s25622_s0 + $0x48] sm:$0xff] }
  0xea   :  { %12098 = vmatprep.subr.bf16.mxu1 %v20224_v15  ;;  %25640 = vst [vmem:[#allocation10_spill] sm:$0xff] %v23584_v12  ;;  %v23598_v15 = vcombine.low %v23533_v44, %v23538_v46  ;;  %v23611_v44 = vrot.slane %v2009_v4, %v23584_v12  ;;  %v23615_v46 = vcombine.high %v23581_v10, %v23589_v13 }
  0xec   :  { %12056 = vmatpush1.bf16.msra.mxu0 %v20219_v16  ;;  %v23602_v16 = vcombine.low %v23543_v47, %v23556_v50 }
  0xed   :  { %12099 = vmatpush1.bf16.msra.mxu1 %v20222_v17  ;;  %12057 = vmatprep.subr.bf16.mxu0 %v20227_v18  ;;  %v23607_v17 = vld [vmem:[%s25622_s0 + $0xa8] sm:$0xff]  ;;  %v2016_v18 = vrot.slane %v2009_v4, %v23576_v5  ;;  %v20311_v4 = vld [vmem:[#allocation3 + $0x2854] ss:$40 sps:$4 sm:$0xff]  }
  0xee   :  { %12100 = vmatprep.subr.bf16.mxu1 %v20230_v19  ;;  %v20276_v19 = vld [vmem:[#allocation3 + $0x2f30] ss:$40 sps:$4 sm:$0xff]   ;;  %v23619_v47 = vcombine.high %v23594_v14, %v23607_v17 }
  0xf0   :  { %12058 = vmatpush2.bf16.msra.mxu0 %v20225_v22  ;;  %v20281_v22 = vld [vmem:[#allocation3 + $0x29e4] ss:$40 sps:$4 sm:$0xff]  }
  0xf1   :  { %12101 = vmatpush2.bf16.msra.mxu1 %v20228_v23  ;;  %12059 = vmatprep.subr.bf16.mxu0 %v20233_v24  ;;  %v20284_v23 = vld [vmem:[#allocation3 + $0x2ee4] ss:$40 sps:$4 sm:$0xff]  }
  0xf2   :  { %12102 = vmatprep.subr.bf16.mxu1 %v20236_v25  ;;  %v20279_v25 = vld [vmem:[#allocation3 + $0x29e0] ss:$40 sps:$4 sm:$0xff]  }
  0xf4   :  { %12060 = vmatpush2.bf16.msra.mxu0 %v20231_v26 }
  0xf5   :  { %12103 = vmatpush2.bf16.msra.mxu1 %v20234_v27  ;;  %12061 = vmatprep.subr.bf16.mxu0 %v20239_v32  ;;  %v20282_v27 = vld [vmem:[#allocation3 + $0x2ee0] ss:$40 sps:$4 sm:$0xff]  }
  0xf6   :  { %12104 = vmatprep.subr.bf16.mxu1 %v20242_v35 }
  0xf8   :  { %12062 = vmatpush2.bf16.msra.mxu0 %v20237_v36  ;;  %v20287_v36 = vld [vmem:[#allocation3 + $0x2994] ss:$40 sps:$4 sm:$0xff]  }
  0xf9   :  { %12105 = vmatpush2.bf16.msra.mxu1 %v20240_v37  ;;  %12063 = vmatprep.subr.bf16.mxu0 %v20245_v38  ;;  %v20290_v37 = vld [vmem:[#allocation3 + $0x2e94] ss:$40 sps:$4 sm:$0xff]  }
  0xfa   :  { %12106 = vmatprep.subr.bf16.mxu1 %v20248_v39 }
  0xfc   :  { %12064 = vmatpush2.bf16.msra.mxu0 %v20243_v40 }
  0xfd   :  { %12107 = vmatpush2.bf16.msra.mxu1 %v20246_v43  ;;  %12065 = vmatprep.subr.bf16.mxu0 %v20251_v45  ;;  %v20285_v43 = vld [vmem:[#allocation3 + $0x2990] ss:$40 sps:$4 sm:$0xff]  }
  0xfe   :  { %12108 = vmatprep.subr.bf16.mxu1 %v20254_v51 }
 0x100   :  { %12066 = vmatpush2.bf16.msra.mxu0 %v20249_v52  ;;  %v20288_v52 = vld [vmem:[#allocation3 + $0x2e90] ss:$40 sps:$4 sm:$0xff]  }
 0x101   :  { %12109 = vmatpush2.bf16.msra.mxu1 %v20252_v55  ;;  %12067 = vmatprep.subr.bf16.mxu0 %v20257_v30  ;;  %v20293_v30 = vld [vmem:[#allocation3 + $0x2944] ss:$40 sps:$4 sm:$0xff]  }
 0x102   :  { %12110 = vmatprep.subr.bf16.mxu1 %v20260_v31  ;;  %v20296_v31 = vld [vmem:[#allocation3 + $0x2e44] ss:$40 sps:$4 sm:$0xff]  }
 0x104   :  { %12068 = vmatpush2.bf16.msra.mxu0 %v20255_v56 }
 0x105   :  { %12111 = vmatpush2.bf16.msra.mxu1 %v20258_v57  ;;  %12069 = vmatprep.subr.bf16.mxu0 %v20263_v59  ;;  %v20291_v57 = vld [vmem:[#allocation3 + $0x2940] ss:$40 sps:$4 sm:$0xff]   ;;  %v20299_v59 = vld [vmem:[#allocation3 + $0x28f4] ss:$40 sps:$4 sm:$0xff]  }
 0x106   :  { %12112 = vmatprep.subr.bf16.mxu1 %v20266_v60  ;;  %v20302_v60 = vld [vmem:[#allocation3 + $0x2df4] ss:$40 sps:$4 sm:$0xff]  }
 0x108   :  { %12070 = vmatpush2.bf16.msra.mxu0 %v20261_v61  ;;  %v20297_v61 = vld [vmem:[#allocation3 + $0x28f0] ss:$40 sps:$4 sm:$0xff]  }
 0x109   :  { %12113 = vmatpush2.bf16.msra.mxu1 %v20264_v62  ;;  %12071 = vmatprep.subr.bf16.mxu0 %v20269_v0  ;;  %v20300_v62 = vld [vmem:[#allocation3 + $0x2df0] ss:$40 sps:$4 sm:$0xff]   ;;  %v20305_v0 = vld [vmem:[#allocation3 + $0x28a4] ss:$40 sps:$4 sm:$0xff]  }
 0x10a   :  { %12114 = vmatprep.subr.bf16.mxu1 %v20272_v1  ;;  %v20308_v1 = vld [vmem:[#allocation3 + $0x2da4] ss:$40 sps:$4 sm:$0xff]  }
 0x10c   :  { %12072 = vmatpush2.bf16.msra.mxu0 %v20267_v2  ;;  %v20303_v2 = vld [vmem:[#allocation3 + $0x28a0] ss:$40 sps:$4 sm:$0xff]  }
 0x10d   :  { %12115 = vmatpush2.bf16.msra.mxu1 %v20270_v3  ;;  %12127 = vmatprep.subr.bf16.mxu0 %v20275_v6  ;;  %v20306_v3 = vld [vmem:[#allocation3 + $0x2da0] ss:$40 sps:$4 sm:$0xff]   ;;  %v20314_v6 = vld [vmem:[#allocation3 + $0x2d54] ss:$40 sps:$4 sm:$0xff]  }
 0x10e   :  { %12170 = vmatprep.subr.bf16.mxu1 %v20278_v7  ;;  %v20309_v7 = vld [vmem:[#allocation3 + $0x2850] ss:$40 sps:$4 sm:$0xff]  }
 0x10f   :  { %v11817_v50 = vpop.f32.mrf.mxu0  ;;  %12074 = vmatmul.mubr.bf16.vlgmr.msra.gmra.mxu0 %v23598_v15 }
 0x110   :  { %v11860_v24 = vpop.f32.mrf.mxu1  ;;  %12117 = vmatmul.mubr.bf16.vlgmr.msra.gmra.mxu1 %v23602_v16  ;;  %v11818_v26 = vadd.f32 %v11817_v50, %v2016_v18  ;;  %12128 = vmatpush1.bf16.msra.mxu0 %v20273_v11  ;;  %v20312_v11 = vld [vmem:[#allocation3 + $0x2d50] ss:$40 sps:$4 sm:$0xff]   ;;  %v20323_v50 = vld [vmem:[#allocation3 + $0x2cb4] ss:$40 sps:$4 sm:$0xff]  }
 0x111   :  { %12171 = vmatpush1.bf16.msra.mxu1 %v20276_v19  ;;  %v11819_v32 = vpop.f32.mrf.mxu0  ;;  %12129 = vmatprep.subr.bf16.mxu0 %v20281_v22  ;;  %v20320_v19 = vld [vmem:[#allocation3 + $0x2d04] ss:$40 sps:$4 sm:$0xff]   ;;  %v20315_v22 = vld [vmem:[#allocation3 + $0x2800] ss:$40 sps:$4 sm:$0xff]  }
 0x112   :  { %v11862_v35 = vpop.f32.mrf.mxu1  ;;  %12172 = vmatprep.subr.bf16.mxu1 %v20284_v23  ;;  %v23623_v38 = vadd.f32 %v11860_v24, %v11818_v26  ;;  %v11820_v39 = vadd.f32 %v11819_v32, %v23611_v44  ;;  %12159 = vmatprep.mubr.bf16.mxu0 %v23615_v46  ;;  %v20318_v23 = vld [vmem:[#allocation3 + $0x2d00] ss:$40 sps:$4 sm:$0xff]   ;;  %v20326_v24 = vld [vmem:[#allocation3 + $0x31b4] ss:$40 sps:$4 sm:$0xff]   ;;  %v20324_v26 = vld [vmem:[#allocation3 + $0x31b0] ss:$40 sps:$4 sm:$0xff]  }
 0x113   :  { %12202 = vmatprep.mubr.bf16.mxu1 %v23619_v47  ;;  %v11821_v40 = vpop.f32.mrf.mxu0  ;;  %v20332_v32 = vld [vmem:[#allocation3 + $0x3164] ss:$40 sps:$4 sm:$0xff]  }
 0x114   :  { %v23628_v45 = vadd.f32 %v11862_v35, %v11820_v39  ;;  %v11822_v51 = vadd.f32 %v11821_v40, %v2016_v18  ;;  %12130 = vmatpush1.bf16.msra.mxu0 %v20279_v25  ;;  %v11864_v55 = vpop.f32.mrf.mxu1  ;;  %v20317_v18 = vld [vmem:[#allocation3 + $0x2804] ss:$40 sps:$4 sm:$0xff]   ;;  %v20321_v25 = vld [vmem:[#allocation3 + $0x2cb0] ss:$40 sps:$4 sm:$0xff]   ;;  %v20327_v35 = vld [vmem:[#allocation3 + $0x2c60] ss:$40 sps:$4 sm:$0xff]  }
 0x115   :  { %12173 = vmatpush1.bf16.msra.mxu1 %v20282_v27  ;;  %12131 = vmatprep.subr.bf16.mxu0 %v20287_v36  ;;  %v20329_v27 = vld [vmem:[#allocation3 + $0x2c64] ss:$40 sps:$4 sm:$0xff]   ;;  %v20330_v36 = vld [vmem:[#allocation3 + $0x3160] ss:$40 sps:$4 sm:$0xff]   ;;  %v20338_v39 = vld [vmem:[#allocation3 + $0x3114] ss:$40 sps:$4 sm:$0xff]  }
 0x116   :  { %12174 = vmatprep.subr.bf16.mxu1 %v20290_v37  ;;  %v23630_v56 = vadd.f32 %v11864_v55, %v11822_v51  ;;  %v20335_v37 = vld [vmem:[#allocation3 + $0x2c14] ss:$40 sps:$4 sm:$0xff]   ;;  %v20333_v40 = vld [vmem:[#allocation3 + $0x2c10] ss:$40 sps:$4 sm:$0xff]   ;;  %v20341_v51 = vld [vmem:[#allocation3 + $0x2bc4] ss:$40 sps:$4 sm:$0xff]  }
 0x117   :  { %v20339_v55 = vld [vmem:[#allocation3 + $0x2bc0] ss:$40 sps:$4 sm:$0xff]  }
 0x118   :  { %12132 = vmatpush1.bf16.msra.mxu0 %v20285_v43  ;;  %v20336_v43 = vld [vmem:[#allocation3 + $0x3110] ss:$40 sps:$4 sm:$0xff]  }
 0x119   :  { %12175 = vmatpush1.bf16.msra.mxu1 %v20288_v52  ;;  %12133 = vmatprep.subr.bf16.mxu0 %v20293_v30  ;;  %v20344_v52 = vld [vmem:[#allocation3 + $0x30c4] ss:$40 sps:$4 sm:$0xff]   ;;  %v20342_v30 = vld [vmem:[#allocation3 + $0x30c0] ss:$40 sps:$4 sm:$0xff]  }
 0x11a   :  { %12176 = vmatprep.subr.bf16.mxu1 %v20296_v31  ;;  %v20347_v31 = vld [vmem:[#allocation3 + $0x2b74] ss:$40 sps:$4 sm:$0xff]  }
 0x11c   :  { %12134 = vmatpush1.bf16.msra.mxu0 %v20291_v57  ;;  %v20350_v57 = vld [vmem:[#allocation3 + $0x3074] ss:$40 sps:$4 sm:$0xff]  }
 0x11d   :  { %12177 = vmatpush1.bf16.msra.mxu1 %v20294_v58  ;;  %12135 = vmatprep.subr.bf16.mxu0 %v20299_v59  ;;  %v20345_v58 = vld [vmem:[#allocation3 + $0x2b70] ss:$40 sps:$4 sm:$0xff]  }
 0x11e   :  { %12178 = vmatprep.subr.bf16.mxu1 %v20302_v60  ;;  %v20348_v59 = vld [vmem:[#allocation3 + $0x3070] ss:$40 sps:$4 sm:$0xff]   ;;  %v20353_v60 = vld [vmem:[#allocation3 + $0x2b24] ss:$40 sps:$4 sm:$0xff]  }
 0x120   :  { %12136 = vmatpush1.bf16.msra.mxu0 %v20297_v61  ;;  %v20356_v61 = vld [vmem:[#allocation3 + $0x3024] ss:$40 sps:$4 sm:$0xff]  }
 0x121   :  { %12179 = vmatpush1.bf16.msra.mxu1 %v20300_v62  ;;  %12137 = vmatprep.subr.bf16.mxu0 %v20305_v0  ;;  %v20351_v62 = vld [vmem:[#allocation3 + $0x2b20] ss:$40 sps:$4 sm:$0xff]  }
 0x122   :  { %12180 = vmatprep.subr.bf16.mxu1 %v20308_v1  ;;  %v20354_v0 = vld [vmem:[#allocation3 + $0x3020] ss:$40 sps:$4 sm:$0xff]   ;;  %v20359_v1 = vld [vmem:[#allocation3 + $0x2ad4] ss:$40 sps:$4 sm:$0xff]  }
 0x124   :  { %12138 = vmatpush1.bf16.msra.mxu0 %v20303_v2  ;;  %v20362_v2 = vld [vmem:[#allocation3 + $0x2fd4] ss:$40 sps:$4 sm:$0xff]  }
 0x125   :  { %12181 = vmatpush1.bf16.msra.mxu1 %v20306_v3  ;;  %12139 = vmatprep.subr.bf16.mxu0 %v20311_v4  ;;  %v20357_v3 = vld [vmem:[#allocation3 + $0x2ad0] ss:$40 sps:$4 sm:$0xff]  }
 0x126   :  { %12182 = vmatprep.subr.bf16.mxu1 %v20314_v6  ;;  %v20360_v4 = vld [vmem:[#allocation3 + $0x2fd0] ss:$40 sps:$4 sm:$0xff]   ;;  %v20365_v6 = vld [vmem:[#allocation3 + $0x2a84] ss:$40 sps:$4 sm:$0xff]  }
 0x128   :  { %12140 = vmatpush1.bf16.msra.mxu0 %v20309_v7  ;;  %v20368_v7 = vld [vmem:[#allocation3 + $0x2f84] ss:$40 sps:$4 sm:$0xff]  }
 0x129   :  { %12183 = vmatpush1.bf16.msra.mxu1 %v20312_v11  ;;  %12141 = vmatprep.subr.bf16.mxu0 %v20317_v18  ;;  %v20363_v11 = vld [vmem:[#allocation3 + $0x2a80] ss:$40 sps:$4 sm:$0xff]  }
 0x12a   :  { %12184 = vmatprep.subr.bf16.mxu1 %v20320_v19  ;;  %v20366_v18 = vld [vmem:[#allocation3 + $0x2f80] ss:$40 sps:$4 sm:$0xff]   ;;  %v20371_v19 = vld [vmem:[#allocation3 + $0x3434] ss:$40 sps:$4 sm:$0xff]  }
 0x12c   :  { %12142 = vmatpush1.bf16.msra.mxu0 %v20315_v22  ;;  %v20374_v22 = vld [vmem:[#allocation3 + $0x3934] ss:$40 sps:$4 sm:$0xff]  }
 0x12d   :  { %12185 = vmatpush1.bf16.msra.mxu1 %v20318_v23  ;;  %12143 = vmatprep.subr.bf16.mxu0 %v20323_v50  ;;  %v23635_v23 = vld [vmem:[%s25622_s0 + $0x50] sm:$0xff] }
 0x12e   :  { %12186 = vmatprep.subr.bf16.mxu1 %v20326_v24  ;;  %v23640_v50 = vld [vmem:[%s25622_s0 + $0xb0] sm:$0xff]  ;;  %v23645_v24 = vld [vmem:[%s25622_s0 + $0x58] sm:$0xff] }
 0x130   :  { %12144 = vmatpush2.bf16.msra.mxu0 %v20321_v25  ;;  %v23650_v25 = vld [vmem:[%s25622_s0 + $0xb8] sm:$0xff] }
 0x131   :  { %12187 = vmatpush2.bf16.msra.mxu1 %v20324_v26  ;;  %12145 = vmatprep.subr.bf16.mxu0 %v20329_v27  ;;  %v20369_v26 = vld [vmem:[#allocation3 + $0x3430] ss:$40 sps:$4 sm:$0xff]  }
 0x132   :  { %12188 = vmatprep.subr.bf16.mxu1 %v20332_v32  ;;  %v20372_v27 = vld [vmem:[#allocation3 + $0x3930] ss:$40 sps:$4 sm:$0xff]   ;;  %v23654_v32 = vcombine.low %v23581_v10, %v23589_v13  ;;  %v23666_v10 = vcombine.high %v23635_v23, %v23640_v50  ;;  %v23670_v13 = vcombine.high %v23645_v24, %v23650_v25 }
 0x134   :  { %12146 = vmatpush2.bf16.msra.mxu0 %v20327_v35  ;;  %v23658_v35 = vcombine.low %v23594_v14, %v23607_v17 }
 0x135   :  { %12189 = vmatpush2.bf16.msra.mxu1 %v20330_v36  ;;  %12147 = vmatprep.subr.bf16.mxu0 %v20335_v37  ;;  %v23660_v36 = vpop.f32.mrf.mxu0  ;;  %v23662_v37 = vpop.f32.mrf.mxu1 }
 0x136   :  { %12190 = vmatprep.subr.bf16.mxu1 %v20338_v39  ;;  %v20377_v39 = vld [vmem:[#allocation3 + $0x33e4] ss:$40 sps:$4 sm:$0xff]  }
 0x138   :  { %12148 = vmatpush2.bf16.msra.mxu0 %v20333_v40  ;;  %v20380_v40 = vld [vmem:[#allocation3 + $0x38e4] ss:$40 sps:$4 sm:$0xff]  }
 0x139   :  { %12191 = vmatpush2.bf16.msra.mxu1 %v20336_v43  ;;  %12149 = vmatprep.subr.bf16.mxu0 %v20341_v51  ;;  %v20375_v43 = vld [vmem:[#allocation3 + $0x33e0] ss:$40 sps:$4 sm:$0xff]  }
 0x13a   :  { %12192 = vmatprep.subr.bf16.mxu1 %v20344_v52  ;;  %v20378_v51 = vld [vmem:[#allocation3 + $0x38e0] ss:$40 sps:$4 sm:$0xff]  }
 0x13c   :  { %12150 = vmatpush2.bf16.msra.mxu0 %v20339_v55 }
 0x13d   :  { %12193 = vmatpush2.bf16.msra.mxu1 %v20342_v30  ;;  %12151 = vmatprep.subr.bf16.mxu0 %v20347_v31  ;;  %v20383_v31 = vld [vmem:[#allocation3 + $0x3394] ss:$40 sps:$4 sm:$0xff]  }
 0x13e   :  { %12194 = vmatprep.subr.bf16.mxu1 %v20350_v57  ;;  %v20386_v57 = vld [vmem:[#allocation3 + $0x3894] ss:$40 sps:$4 sm:$0xff]  }
 0x140   :  { %12152 = vmatpush2.bf16.msra.mxu0 %v20345_v58 }
 0x141   :  { %12195 = vmatpush2.bf16.msra.mxu1 %v20348_v59  ;;  %12153 = vmatprep.subr.bf16.mxu0 %v20353_v60  ;;  %v20381_v60 = vld [vmem:[#allocation3 + $0x3390] ss:$40 sps:$4 sm:$0xff]  }
 0x142   :  { %12196 = vmatprep.subr.bf16.mxu1 %v20356_v61  ;;  %v20384_v61 = vld [vmem:[#allocation3 + $0x3890] ss:$40 sps:$4 sm:$0xff]  }
 0x144   :  { %12154 = vmatpush2.bf16.msra.mxu0 %v20351_v62 }
 0x145   :  { %12197 = vmatpush2.bf16.msra.mxu1 %v20354_v0  ;;  %12155 = vmatprep.subr.bf16.mxu0 %v20359_v1 }
 0x146   :  { %12198 = vmatprep.subr.bf16.mxu1 %v20362_v2  ;;  %v20389_v2 = vld [vmem:[#allocation3 + $0x3344] ss:$40 sps:$4 sm:$0xff]  }
 0x148   :  { %12156 = vmatpush2.bf16.msra.mxu0 %v20357_v3  ;;  %v20392_v3 = vld [vmem:[#allocation3 + $0x3844] ss:$40 sps:$4 sm:$0xff]  }
 0x149   :  { %12199 = vmatpush2.bf16.msra.mxu1 %v20360_v4  ;;  %12157 = vmatprep.subr.bf16.mxu0 %v20365_v6  ;;  %v20390_v6 = vld [vmem:[#allocation3 + $0x3840] ss:$40 sps:$4 sm:$0xff]  }
 0x14a   :  { %12200 = vmatprep.subr.bf16.mxu1 %v20368_v7  ;;  %v20395_v7 = vld [vmem:[#allocation3 + $0x32f4] ss:$40 sps:$4 sm:$0xff]  }
 0x14c   :  { %12158 = vmatpush2.bf16.msra.mxu0 %v20363_v11  ;;  %v20398_v11 = vld [vmem:[#allocation3 + $0x37f4] ss:$40 sps:$4 sm:$0xff]  }
 0x14d   :  { %12201 = vmatpush2.bf16.msra.mxu1 %v20366_v18  ;;  %12213 = vmatprep.subr.bf16.mxu0 %v20371_v19  ;;  %v20396_v18 = vld [vmem:[#allocation3 + $0x37f0] ss:$40 sps:$4 sm:$0xff]   ;;  %v20401_v19 = vld [vmem:[#allocation3 + $0x32a4] ss:$40 sps:$4 sm:$0xff]  }
 0x14e   :  { %12256 = vmatprep.subr.bf16.mxu1 %v20374_v22  ;;  %v20404_v22 = vld [vmem:[#allocation3 + $0x37a4] ss:$40 sps:$4 sm:$0xff]  }
 0x14f   :  { %v11903_v14 = vpop.f32.mrf.mxu0  ;;  %12160 = vmatmul.mubr.bf16.vlgmr.msra.gmra.mxu0 %v23654_v32 }
 0x150   :  { %v11946_v17 = vpop.f32.mrf.mxu1  ;;  %12203 = vmatmul.mubr.bf16.vlgmr.msra.gmra.mxu1 %v23658_v35  ;;  %v11904_v52 = vadd.f32 %v11903_v14, %v23623_v38  ;;  %12214 = vmatpush1.bf16.msra.mxu0 %v20369_v26  ;;  %v20399_v26 = vld [vmem:[#allocation3 + $0x32a0] ss:$40 sps:$4 sm:$0xff]   ;;  %v20413_v14 = vld [vmem:[#allocation3 + $0x3204] ss:$40 sps:$4 sm:$0xff]  }
 0x151   :  { %12257 = vmatpush1.bf16.msra.mxu1 %v20372_v27  ;;  %v11905_v55 = vpop.f32.mrf.mxu0  ;;  %12215 = vmatprep.subr.bf16.mxu0 %v20377_v39  ;;  %v20402_v27 = vld [vmem:[#allocation3 + $0x37a0] ss:$40 sps:$4 sm:$0xff]   ;;  %v20407_v39 = vld [vmem:[#allocation3 + $0x3254] ss:$40 sps:$4 sm:$0xff]  }
 0x152   :  { %v11948_v30 = vpop.f32.mrf.mxu1  ;;  %12258 = vmatprep.subr.bf16.mxu1 %v20380_v40  ;;  %v23675_v58 = vadd.f32 %v11946_v17, %v11904_v52  ;;  %v11906_v59 = vadd.f32 %v11905_v55, %v23628_v45  ;;  %12245 = vmatprep.mubr.bf16.mxu0 %v23666_v10  ;;  %v20387_v45 = vld [vmem:[#allocation3 + $0x3340] ss:$40 sps:$4 sm:$0xff]   ;;  %v20410_v40 = vld [vmem:[#allocation3 + $0x3754] ss:$40 sps:$4 sm:$0xff]   ;;  %v20416_v17 = vld [vmem:[#allocation3 + $0x3704] ss:$40 sps:$4 sm:$0xff]  }
 0x153   :  { %12288 = vmatprep.mubr.bf16.mxu1 %v23670_v13  ;;  %v11907_v62 = vpop.f32.mrf.mxu0  ;;  %v20411_v52 = vld [vmem:[#allocation3 + $0x3200] ss:$40 sps:$4 sm:$0xff]  }
 0x154   :  { %v23680_v38 = vadd.f32 %v11948_v30, %v11906_v59  ;;  %v11908_v0 = vadd.f32 %v11907_v62, %v23630_v56  ;;  %12216 = vmatpush1.bf16.msra.mxu0 %v20375_v43  ;;  %v11950_v1 = vpop.f32.mrf.mxu1  ;;  %v20393_v56 = vld [vmem:[#allocation3 + $0x32f0] ss:$40 sps:$4 sm:$0xff]   ;;  %v20414_v55 = vld [vmem:[#allocation3 + $0x3700] ss:$40 sps:$4 sm:$0xff]   ;;  %v20419_v30 = vld [vmem:[#allocation3 + $0x36b4] ss:$40 sps:$4 sm:$0xff]  }
 0x155   :  { %12259 = vmatpush1.bf16.msra.mxu1 %v20378_v51  ;;  %12217 = vmatprep.subr.bf16.mxu0 %v20383_v31  ;;  %v20405_v43 = vld [vmem:[#allocation3 + $0x3250] ss:$40 sps:$4 sm:$0xff]   ;;  %v20422_v31 = vld [vmem:[#allocation3 + $0x3bb4] ss:$40 sps:$4 sm:$0xff]   ;;  %v20423_v62 = vld [vmem:[#allocation3 + $0x3660] ss:$40 sps:$4 sm:$0xff]  }
 0x156   :  { %12260 = vmatprep.subr.bf16.mxu1 %v20386_v57  ;;  %v23683_v4 = vadd.f32 %v11950_v1, %v11908_v0  ;;  %v20408_v51 = vld [vmem:[#allocation3 + $0x3750] ss:$40 sps:$4 sm:$0xff]   ;;  %v20426_v0 = vld [vmem:[#allocation3 + $0x3b60] ss:$40 sps:$4 sm:$0xff]   ;;  %v20431_v1 = vld [vmem:[#allocation3 + $0x3614] ss:$40 sps:$4 sm:$0xff]  }
 0x157   :  { %v20417_v57 = vld [vmem:[#allocation3 + $0x36b0] ss:$40 sps:$4 sm:$0xff]  }
 0x158   :  { %12218 = vmatpush1.bf16.msra.mxu0 %v20381_v60  ;;  %v20420_v59 = vld [vmem:[#allocation3 + $0x3bb0] ss:$40 sps:$4 sm:$0xff]   ;;  %v20425_v60 = vld [vmem:[#allocation3 + $0x3664] ss:$40 sps:$4 sm:$0xff]  }
 0x159   :  { %12261 = vmatpush1.bf16.msra.mxu1 %v20384_v61  ;;  %12219 = vmatprep.subr.bf16.mxu0 %v20389_v2  ;;  %v20428_v61 = vld [vmem:[#allocation3 + $0x3b64] ss:$40 sps:$4 sm:$0xff]   ;;  %v20434_v2 = vld [vmem:[#allocation3 + $0x3b14] ss:$40 sps:$4 sm:$0xff]  }
 0x15a   :  { %12262 = vmatprep.subr.bf16.mxu1 %v20392_v3  ;;  %v20429_v3 = vld [vmem:[#allocation3 + $0x3610] ss:$40 sps:$4 sm:$0xff]  }
 0x15c   :  { %12220 = vmatpush1.bf16.msra.mxu0 %v20387_v45  ;;  %v20432_v45 = vld [vmem:[#allocation3 + $0x3b10] ss:$40 sps:$4 sm:$0xff]  }
 0x15d   :  { %12263 = vmatpush1.bf16.msra.mxu1 %v20390_v6  ;;  %12221 = vmatprep.subr.bf16.mxu0 %v20395_v7  ;;  %v20437_v6 = vld [vmem:[#allocation3 + $0x35c4] ss:$40 sps:$4 sm:$0xff]  }
 0x15e   :  { %12264 = vmatprep.subr.bf16.mxu1 %v20398_v11  ;;  %v20440_v7 = vld [vmem:[#allocation3 + $0x3ac4] ss:$40 sps:$4 sm:$0xff]   ;;  %v20435_v11 = vld [vmem:[#allocation3 + $0x35c0] ss:$40 sps:$4 sm:$0xff]  }
 0x160   :  { %12222 = vmatpush1.bf16.msra.mxu0 %v20393_v56  ;;  %v20438_v56 = vld [vmem:[#allocation3 + $0x3ac0] ss:$40 sps:$4 sm:$0xff]  }
 0x161   :  { %12265 = vmatpush1.bf16.msra.mxu1 %v20396_v18  ;;  %12223 = vmatprep.subr.bf16.mxu0 %v20401_v19  ;;  %v20443_v18 = vld [vmem:[#allocation3 + $0x3574] ss:$40 sps:$4 sm:$0xff]  }
 0x162   :  { %12266 = vmatprep.subr.bf16.mxu1 %v20404_v22  ;;  %v20446_v19 = vld [vmem:[#allocation3 + $0x3a74] ss:$40 sps:$4 sm:$0xff]   ;;  %v20441_v22 = vld [vmem:[#allocation3 + $0x3570] ss:$40 sps:$4 sm:$0xff]  }
 0x164   :  { %12224 = vmatpush1.bf16.msra.mxu0 %v20399_v26  ;;  %v20444_v26 = vld [vmem:[#allocation3 + $0x3a70] ss:$40 sps:$4 sm:$0xff]  }
 0x165   :  { %12267 = vmatpush1.bf16.msra.mxu1 %v20402_v27  ;;  %12225 = vmatprep.subr.bf16.mxu0 %v20407_v39  ;;  %v20449_v27 = vld [vmem:[#allocation3 + $0x3524] ss:$40 sps:$4 sm:$0xff]  }
 0x166   :  { %12268 = vmatprep.subr.bf16.mxu1 %v20410_v40  ;;  %v20452_v39 = vld [vmem:[#allocation3 + $0x3a24] ss:$40 sps:$4 sm:$0xff]   ;;  %v20447_v40 = vld [vmem:[#allocation3 + $0x3520] ss:$40 sps:$4 sm:$0xff]  }
 0x168   :  { %12226 = vmatpush1.bf16.msra.mxu0 %v20405_v43  ;;  %v20450_v43 = vld [vmem:[#allocation3 + $0x3a20] ss:$40 sps:$4 sm:$0xff]  }
 0x169   :  { %12269 = vmatpush1.bf16.msra.mxu1 %v20408_v51  ;;  %12227 = vmatprep.subr.bf16.mxu0 %v20413_v14  ;;  %v20455_v51 = vld [vmem:[#allocation3 + $0x34d4] ss:$40 sps:$4 sm:$0xff]  }
 0x16a   :  { %12270 = vmatprep.subr.bf16.mxu1 %v20416_v17  ;;  %v20458_v14 = vld [vmem:[#allocation3 + $0x39d4] ss:$40 sps:$4 sm:$0xff]   ;;  %v20453_v17 = vld [vmem:[#allocation3 + $0x34d0] ss:$40 sps:$4 sm:$0xff]  }
 0x16c   :  { %12228 = vmatpush1.bf16.msra.mxu0 %v20411_v52  ;;  %v20456_v52 = vld [vmem:[#allocation3 + $0x39d0] ss:$40 sps:$4 sm:$0xff]  }
 0x16d   :  { %12271 = vmatpush1.bf16.msra.mxu1 %v20414_v55  ;;  %12229 = vmatprep.subr.bf16.mxu0 %v20419_v30  ;;  %v20461_v55 = vld [vmem:[#allocation3 + $0x3484] ss:$40 sps:$4 sm:$0xff]  }
 0x16e   :  { %12272 = vmatprep.subr.bf16.mxu1 %v20422_v31  ;;  %v20464_v30 = vld [vmem:[#allocation3 + $0x3984] ss:$40 sps:$4 sm:$0xff]   ;;  %v20459_v31 = vld [vmem:[#allocation3 + $0x3480] ss:$40 sps:$4 sm:$0xff]  }
 0x170   :  { %12230 = vmatpush2.bf16.msra.mxu0 %v20417_v57  ;;  %v20462_v57 = vld [vmem:[#allocation3 + $0x3980] ss:$40 sps:$4 sm:$0xff]  }
 0x171   :  { %12273 = vmatpush2.bf16.msra.mxu1 %v20420_v59  ;;  %12231 = vmatprep.subr.bf16.mxu0 %v20425_v60  ;;  %v20467_v59 = vld [vmem:[#allocation3 + $0x23c] ss:$40 sps:$4 sm:$0xff]  }
 0x172   :  { %12274 = vmatprep.subr.bf16.mxu1 %v20428_v61  ;;  %v20470_v60 = vld [vmem:[#allocation3 + $0x73c] ss:$40 sps:$4 sm:$0xff]   ;;  %v20465_v61 = vld [vmem:[#allocation3 + $0x238] ss:$40 sps:$4 sm:$0xff]  }
 0x174   :  { %12232 = vmatpush2.bf16.msra.mxu0 %v20423_v62  ;;  %v20468_v62 = vld [vmem:[#allocation3 + $0x738] ss:$40 sps:$4 sm:$0xff]  }
 0x175   :  { %12275 = vmatpush2.bf16.msra.mxu1 %v20426_v0  ;;  %12233 = vmatprep.subr.bf16.mxu0 %v20431_v1  ;;  %v23687_v0 = vcombine.low %v23635_v23, %v23640_v50  ;;  %v23691_v1 = vcombine.low %v23645_v24, %v23650_v25  ;;  %v20479_v25 = vld [vmem:[#allocation3 + $0x19c] ss:$40 sps:$4 sm:$0xff]  }
 0x176   :  { %12276 = vmatprep.subr.bf16.mxu1 %v20434_v2  ;;  %v23693_v2 = vpop.f32.mrf.mxu0 }
 0x178   :  { %12234 = vmatpush2.bf16.msra.mxu0 %v20429_v3  ;;  %v23695_v3 = vpop.f32.mrf.mxu1 }
 0x179   :  { %12277 = vmatpush2.bf16.msra.mxu1 %v20432_v45  ;;  %12235 = vmatprep.subr.bf16.mxu0 %v20437_v6  ;;  %25641 = vst [vmem:[#allocation11_spill] sm:$0xff] %v23695_v3  ;;  %v20473_v45 = vld [vmem:[#allocation3 + $0x1ec] ss:$40 sps:$4 sm:$0xff]  }
 0x17a   :  { %12278 = vmatprep.subr.bf16.mxu1 %v20440_v7  ;;  %v20476_v6 = vld [vmem:[#allocation3 + $0x6ec] ss:$40 sps:$4 sm:$0xff]   ;;  %v20471_v7 = vld [vmem:[#allocation3 + $0x1e8] ss:$40 sps:$4 sm:$0xff]  }
 0x17b   :  { %v21838_v3 = vld [vmem:[#allocation3 + $0x1a0c] ss:$40 sps:$4 sm:$0xff]  }
 0x17c   :  { %12236 = vmatpush2.bf16.msra.mxu0 %v20435_v11  ;;  %v20474_v11 = vld [vmem:[#allocation3 + $0x6e8] ss:$40 sps:$4 sm:$0xff]  }
 0x17d   :  { %12279 = vmatpush2.bf16.msra.mxu1 %v20438_v56  ;;  %12237 = vmatprep.subr.bf16.mxu0 %v20443_v18 }
 0x17e   :  { %12280 = vmatprep.subr.bf16.mxu1 %v20446_v19  ;;  %v20482_v19 = vld [vmem:[#allocation3 + $0x69c] ss:$40 sps:$4 sm:$0xff]  }
 0x180   :  { %12238 = vmatpush2.bf16.msra.mxu0 %v20441_v22 }
 0x181   :  { %12281 = vmatpush2.bf16.msra.mxu1 %v20444_v26  ;;  %12239 = vmatprep.subr.bf16.mxu0 %v20449_v27  ;;  %v20477_v27 = vld [vmem:[#allocation3 + $0x198] ss:$40 sps:$4 sm:$0xff]  }
 0x182   :  { %12282 = vmatprep.subr.bf16.mxu1 %v20452_v39  ;;  %v20480_v39 = vld [vmem:[#allocation3 + $0x698] ss:$40 sps:$4 sm:$0xff]  }
 0x184   :  { %12240 = vmatpush2.bf16.msra.mxu0 %v20447_v40 }
 0x185   :  { %12283 = vmatpush2.bf16.msra.mxu1 %v20450_v43  ;;  %12241 = vmatprep.subr.bf16.mxu0 %v20455_v51 }
 0x186   :  { %12284 = vmatprep.subr.bf16.mxu1 %v20458_v14  ;;  %v20485_v14 = vld [vmem:[#allocation3 + $0x14c] ss:$40 sps:$4 sm:$0xff]  }
 0x188   :  { %12242 = vmatpush2.bf16.msra.mxu0 %v20453_v17  ;;  %v20488_v17 = vld [vmem:[#allocation3 + $0x64c] ss:$40 sps:$4 sm:$0xff]  }
 0x189   :  { %12285 = vmatpush2.bf16.msra.mxu1 %v20456_v52  ;;  %12243 = vmatprep.subr.bf16.mxu0 %v20461_v55  ;;  %v20486_v55 = vld [vmem:[#allocation3 + $0x648] ss:$40 sps:$4 sm:$0xff]  }
 0x18a   :  { %12286 = vmatprep.subr.bf16.mxu1 %v20464_v30  ;;  %v20491_v30 = vld [vmem:[#allocation3 + $0xfc] ss:$40 sps:$4 sm:$0xff]  }
 0x18c   :  { %12244 = vmatpush2.bf16.msra.mxu0 %v20459_v31  ;;  %v20494_v31 = vld [vmem:[#allocation3 + $0x5fc] ss:$40 sps:$4 sm:$0xff]  }
 0x18d   :  { %12287 = vmatpush2.bf16.msra.mxu1 %v20462_v57  ;;  %12299 = vmatprep.subr.bf16.mxu0 %v20467_v59  ;;  %v20492_v57 = vld [vmem:[#allocation3 + $0x5f8] ss:$40 sps:$4 sm:$0xff]   ;;  %v20497_v59 = vld [vmem:[#allocation3 + $0xac] ss:$40 sps:$4 sm:$0xff]  }
 0x18e   :  { %12342 = vmatprep.subr.bf16.mxu1 %v20470_v60  ;;  %v20500_v60 = vld [vmem:[#allocation3 + $0x5ac] ss:$40 sps:$4 sm:$0xff]  }
 0x18f   :  { %v11989_v56 = vpop.f32.mrf.mxu0  ;;  %12246 = vmatmul.mubr.bf16.vlgmr.msra.gmra.mxu0 %v23687_v0 }
 0x190   :  { %v12032_v18 = vpop.f32.mrf.mxu1  ;;  %12289 = vmatmul.mubr.bf16.vlgmr.msra.gmra.mxu1 %v23691_v1  ;;  %v11990_v23 = vadd.f32 %v11989_v56, %v23675_v58  ;;  %12300 = vmatpush1.bf16.msra.mxu0 %v20465_v61  ;;  %v20495_v61 = vld [vmem:[#allocation3 + $0xa8] ss:$40 sps:$4 sm:$0xff]   ;;  %v20509_v56 = vld [vmem:[#allocation3 + $0xc] ss:$40 sps:$4 sm:$0xff]  }
 0x191   :  { %12343 = vmatpush1.bf16.msra.mxu1 %v20468_v62  ;;  %v11991_v50 = vpop.f32.mrf.mxu0  ;;  %12301 = vmatprep.subr.bf16.mxu0 %v20473_v45  ;;  %v20498_v62 = vld [vmem:[#allocation3 + $0x5a8] ss:$40 sps:$4 sm:$0xff]   ;;  %v20503_v45 = vld [vmem:[#allocation3 + $0x5c] ss:$40 sps:$4 sm:$0xff]  }
 0x192   :  { %v12034_v24 = vpop.f32.mrf.mxu1  ;;  %12344 = vmatprep.subr.bf16.mxu1 %v20476_v6  ;;  %v23700_v22 = vadd.f32 %v12032_v18, %v11990_v23  ;;  %v11992_v26 = vadd.f32 %v11991_v50, %v23680_v38  ;;  %12331 = vmatprep.mubr.bf16.mxu0 %v23448_v53  ;;  %v20483_v38 = vld [vmem:[#allocation3 + $0x148] ss:$40 sps:$4 sm:$0xff]   ;;  %v20506_v6 = vld [vmem:[#allocation3 + $0x55c] ss:$40 sps:$4 sm:$0xff]   ;;  %v20512_v18 = vld [vmem:[#allocation3 + $0x50c] ss:$40 sps:$4 sm:$0xff]  }
 0x193   :  { %12374 = vmatprep.mubr.bf16.mxu1 %v23450_v54  ;;  %v11993_v40 = vpop.f32.mrf.mxu0  ;;  %v20507_v23 = vld [vmem:[#allocation3 + $0x8] ss:$40 sps:$4 sm:$0xff]  }
 0x194   :  { %v23705_v58 = vadd.f32 %v12034_v24, %v11992_v26  ;;  %v11994_v43 = vadd.f32 %v11993_v40, %v23683_v4  ;;  %12302 = vmatpush1.bf16.msra.mxu0 %v20471_v7  ;;  %v12036_v51 = vpop.f32.mrf.mxu1  ;;  %v20489_v4 = vld [vmem:[#allocation3 + $0xf8] ss:$40 sps:$4 sm:$0xff]   ;;  %v20510_v50 = vld [vmem:[#allocation3 + $0x508] ss:$40 sps:$4 sm:$0xff]   ;;  %v20515_v24 = vld [vmem:[#allocation3 + $0x4bc] ss:$40 sps:$4 sm:$0xff]  }
 0x195   :  { %12345 = vmatpush1.bf16.msra.mxu1 %v20474_v11  ;;  %12303 = vmatprep.subr.bf16.mxu0 %v20479_v25  ;;  %v20501_v7 = vld [vmem:[#allocation3 + $0x58] ss:$40 sps:$4 sm:$0xff]   ;;  %v20518_v25 = vld [vmem:[#allocation3 + $0x9bc] ss:$40 sps:$4 sm:$0xff]   ;;  %v20519_v40 = vld [vmem:[#allocation3 + $0x468] ss:$40 sps:$4 sm:$0xff]  }
 0x196   :  { %12346 = vmatprep.subr.bf16.mxu1 %v20482_v19  ;;  %v23708_v52 = vadd.f32 %v12036_v51, %v11994_v43  ;;  %v20504_v11 = vld [vmem:[#allocation3 + $0x558] ss:$40 sps:$4 sm:$0xff]   ;;  %v20522_v43 = vld [vmem:[#allocation3 + $0x968] ss:$40 sps:$4 sm:$0xff]   ;;  %v20527_v51 = vld [vmem:[#allocation3 + $0x41c] ss:$40 sps:$4 sm:$0xff]  }
 0x197   :  { %v20513_v19 = vld [vmem:[#allocation3 + $0x4b8] ss:$40 sps:$4 sm:$0xff]  }
 0x198   :  { %12304 = vmatpush1.bf16.msra.mxu0 %v20477_v27  ;;  %v20516_v26 = vld [vmem:[#allocation3 + $0x9b8] ss:$40 sps:$4 sm:$0xff]   ;;  %v20521_v27 = vld [vmem:[#allocation3 + $0x46c] ss:$40 sps:$4 sm:$0xff]  }
 0x199   :  { %12347 = vmatpush1.bf16.msra.mxu1 %v20480_v39  ;;  %12305 = vmatprep.subr.bf16.mxu0 %v20485_v14  ;;  %v20524_v39 = vld [vmem:[#allocation3 + $0x96c] ss:$40 sps:$4 sm:$0xff]   ;;  %v20530_v14 = vld [vmem:[#allocation3 + $0x91c] ss:$40 sps:$4 sm:$0xff]  }
 0x19a   :  { %12348 = vmatprep.subr.bf16.mxu1 %v20488_v17  ;;  %v20525_v17 = vld [vmem:[#allocation3 + $0x418] ss:$40 sps:$4 sm:$0xff]  }
 0x19c   :  { %12306 = vmatpush1.bf16.msra.mxu0 %v20483_v38  ;;  %v20528_v38 = vld [vmem:[#allocation3 + $0x918] ss:$40 sps:$4 sm:$0xff]  }
 0x19d   :  { %12349 = vmatpush1.bf16.msra.mxu1 %v20486_v55  ;;  %12307 = vmatprep.subr.bf16.mxu0 %v20491_v30  ;;  %v20533_v55 = vld [vmem:[#allocation3 + $0x3cc] ss:$40 sps:$4 sm:$0xff]  }
 0x19e   :  { %12350 = vmatprep.subr.bf16.mxu1 %v20494_v31  ;;  %v20536_v30 = vld [vmem:[#allocation3 + $0x8cc] ss:$40 sps:$4 sm:$0xff]   ;;  %v20531_v31 = vld [vmem:[#allocation3 + $0x3c8] ss:$40 sps:$4 sm:$0xff]  }
 0x1a0   :  { %12308 = vmatpush1.bf16.msra.mxu0 %v20489_v4  ;;  %v20534_v4 = vld [vmem:[#allocation3 + $0x8c8] ss:$40 sps:$4 sm:$0xff]  }
 0x1a1   :  { %12351 = vmatpush1.bf16.msra.mxu1 %v20492_v57  ;;  %12309 = vmatprep.subr.bf16.mxu0 %v20497_v59  ;;  %v20539_v57 = vld [vmem:[#allocation3 + $0x37c] ss:$40 sps:$4 sm:$0xff]  }
 0x1a2   :  { %12352 = vmatprep.subr.bf16.mxu1 %v20500_v60  ;;  %v20542_v59 = vld [vmem:[#allocation3 + $0x87c] ss:$40 sps:$4 sm:$0xff]   ;;  %v20537_v60 = vld [vmem:[#allocation3 + $0x378] ss:$40 sps:$4 sm:$0xff]  }
 0x1a4   :  { %12310 = vmatpush1.bf16.msra.mxu0 %v20495_v61  ;;  %v20540_v61 = vld [vmem:[#allocation3 + $0x878] ss:$40 sps:$4 sm:$0xff]  }
 0x1a5   :  { %12353 = vmatpush1.bf16.msra.mxu1 %v20498_v62  ;;  %12311 = vmatprep.subr.bf16.mxu0 %v20503_v45  ;;  %v20545_v62 = vld [vmem:[#allocation3 + $0x32c] ss:$40 sps:$4 sm:$0xff]  }
 0x1a6   :  { %12354 = vmatprep.subr.bf16.mxu1 %v20506_v6  ;;  %v20548_v45 = vld [vmem:[#allocation3 + $0x82c] ss:$40 sps:$4 sm:$0xff]   ;;  %v20543_v6 = vld [vmem:[#allocation3 + $0x328] ss:$40 sps:$4 sm:$0xff]  }
 0x1a8   :  { %12312 = vmatpush1.bf16.msra.mxu0 %v20501_v7  ;;  %v20546_v7 = vld [vmem:[#allocation3 + $0x828] ss:$40 sps:$4 sm:$0xff]  }
 0x1a9   :  { %12355 = vmatpush1.bf16.msra.mxu1 %v20504_v11  ;;  %12313 = vmatprep.subr.bf16.mxu0 %v20509_v56  ;;  %v20551_v11 = vld [vmem:[#allocation3 + $0x2dc] ss:$40 sps:$4 sm:$0xff]  }
 0x1aa   :  { %12356 = vmatprep.subr.bf16.mxu1 %v20512_v18  ;;  %v20554_v56 = vld [vmem:[#allocation3 + $0x7dc] ss:$40 sps:$4 sm:$0xff]   ;;  %v20549_v18 = vld [vmem:[#allocation3 + $0x2d8] ss:$40 sps:$4 sm:$0xff]  }
 0x1ac   :  { %12314 = vmatpush1.bf16.msra.mxu0 %v20507_v23  ;;  %v20552_v23 = vld [vmem:[#allocation3 + $0x7d8] ss:$40 sps:$4 sm:$0xff]  }
 0x1ad   :  { %12357 = vmatpush1.bf16.msra.mxu1 %v20510_v50  ;;  %12315 = vmatprep.subr.bf16.mxu0 %v20515_v24  ;;  %v20557_v50 = vld [vmem:[#allocation3 + $0x28c] ss:$40 sps:$4 sm:$0xff]  }
 0x1ae   :  { %12358 = vmatprep.subr.bf16.mxu1 %v20518_v25  ;;  %v20560_v24 = vld [vmem:[#allocation3 + $0x78c] ss:$40 sps:$4 sm:$0xff]   ;;  %v20555_v25 = vld [vmem:[#allocation3 + $0x288] ss:$40 sps:$4 sm:$0xff]  }
 0x1b0   :  { %12316 = vmatpush2.bf16.msra.mxu0 %v20513_v19  ;;  %v20558_v19 = vld [vmem:[#allocation3 + $0x788] ss:$40 sps:$4 sm:$0xff]  }
 0x1b1   :  { %12359 = vmatpush2.bf16.msra.mxu1 %v20516_v26  ;;  %12317 = vmatprep.subr.bf16.mxu0 %v20521_v27  ;;  %v20563_v26 = vld [vmem:[#allocation3 + $0xc3c] ss:$40 sps:$4 sm:$0xff]  }
 0x1b2   :  { %12360 = vmatprep.subr.bf16.mxu1 %v20524_v39  ;;  %v20566_v27 = vld [vmem:[#allocation3 + $0x113c] ss:$40 sps:$4 sm:$0xff]   ;;  %v20561_v39 = vld [vmem:[#allocation3 + $0xc38] ss:$40 sps:$4 sm:$0xff]  }
 0x1b4   :  { %12318 = vmatpush2.bf16.msra.mxu0 %v20519_v40  ;;  %v20564_v40 = vld [vmem:[#allocation3 + $0x1138] ss:$40 sps:$4 sm:$0xff]  }
 0x1b5   :  { %12361 = vmatpush2.bf16.msra.mxu1 %v20522_v43  ;;  %12319 = vmatprep.subr.bf16.mxu0 %v20527_v51  ;;  %v23710_v43 = vpop.f32.mrf.mxu0  ;;  %v23712_v51 = vpop.f32.mrf.mxu1 }
 0x1b6   :  { %12362 = vmatprep.subr.bf16.mxu1 %v20530_v14  ;;  %25642 = vst [vmem:[#allocation12_spill] sm:$0xff] %v23710_v43  ;;  %25643 = vst [vmem:[#allocation13_spill] sm:$0xff] %v23712_v51  ;;  %v20569_v14 = vld [vmem:[#allocation3 + $0xbec] ss:$40 sps:$4 sm:$0xff]   ;;  %v21446_v51 = vld [vmem:[#allocation3 + $0x2e50] ss:$40 sps:$4 sm:$0xff]  }
 0x1b8   :  { %12320 = vmatpush2.bf16.msra.mxu0 %v20525_v17  ;;  %v20572_v17 = vld [vmem:[#allocation3 + $0x10ec] ss:$40 sps:$4 sm:$0xff]  }
 0x1b9   :  { %12363 = vmatpush2.bf16.msra.mxu1 %v20528_v38  ;;  %12321 = vmatprep.subr.bf16.mxu0 %v20533_v55  ;;  %v20567_v38 = vld [vmem:[#allocation3 + $0xbe8] ss:$40 sps:$4 sm:$0xff]  }
 0x1ba   :  { %12364 = vmatprep.subr.bf16.mxu1 %v20536_v30  ;;  %v20570_v55 = vld [vmem:[#allocation3 + $0x10e8] ss:$40 sps:$4 sm:$0xff]  }
 0x1bc   :  { %12322 = vmatpush2.bf16.msra.mxu0 %v20531_v31 }
 0x1bd   :  { %12365 = vmatpush2.bf16.msra.mxu1 %v20534_v4  ;;  %12323 = vmatprep.subr.bf16.mxu0 %v20539_v57 }
 0x1be   :  { %12366 = vmatprep.subr.bf16.mxu1 %v20542_v59 }
 0x1c0   :  { %12324 = vmatpush2.bf16.msra.mxu0 %v20537_v60  ;;  %v20575_v60 = vld [vmem:[#allocation3 + $0xb9c] ss:$40 sps:$4 sm:$0xff]  }
 0x1c1   :  { %12367 = vmatpush2.bf16.msra.mxu1 %v20540_v61  ;;  %12325 = vmatprep.subr.bf16.mxu0 %v20545_v62  ;;  %v20578_v61 = vld [vmem:[#allocation3 + $0x109c] ss:$40 sps:$4 sm:$0xff]  }
 0x1c2   :  { %12368 = vmatprep.subr.bf16.mxu1 %v20548_v45 }
 0x1c4   :  { %12326 = vmatpush2.bf16.msra.mxu0 %v20543_v6  ;;  %v20573_v6 = vld [vmem:[#allocation3 + $0xb98] ss:$40 sps:$4 sm:$0xff]  }
 0x1c5   :  { %12369 = vmatpush2.bf16.msra.mxu1 %v20546_v7  ;;  %12327 = vmatprep.subr.bf16.mxu0 %v20551_v11  ;;  %v20576_v7 = vld [vmem:[#allocation3 + $0x1098] ss:$40 sps:$4 sm:$0xff]  }
 0x1c6   :  { %12370 = vmatprep.subr.bf16.mxu1 %v20554_v56 }
 0x1c8   :  { %12328 = vmatpush2.bf16.msra.mxu0 %v20549_v18 }
 0x1c9   :  { %12371 = vmatpush2.bf16.msra.mxu1 %v20552_v23  ;;  %12329 = vmatprep.subr.bf16.mxu0 %v20557_v50  ;;  %v20581_v23 = vld [vmem:[#allocation3 + $0xb4c] ss:$40 sps:$4 sm:$0xff]  }
 0x1ca   :  { %12372 = vmatprep.subr.bf16.mxu1 %v20560_v24  ;;  %v20584_v50 = vld [vmem:[#allocation3 + $0x104c] ss:$40 sps:$4 sm:$0xff]  }
 0x1cc   :  { %12330 = vmatpush2.bf16.msra.mxu0 %v20555_v25  ;;  %v20582_v25 = vld [vmem:[#allocation3 + $0x1048] ss:$40 sps:$4 sm:$0xff]  }
 0x1cd   :  { %12373 = vmatpush2.bf16.msra.mxu1 %v20558_v19  ;;  %12385 = vmatprep.subr.bf16.mxu0 %v20563_v26  ;;  %v20587_v19 = vld [vmem:[#allocation3 + $0xafc] ss:$40 sps:$4 sm:$0xff]  }
 0x1ce   :  { %12428 = vmatprep.subr.bf16.mxu1 %v20566_v27  ;;  %v20590_v26 = vld [vmem:[#allocation3 + $0xffc] ss:$40 sps:$4 sm:$0xff]   ;;  %v20585_v27 = vld [vmem:[#allocation3 + $0xaf8] ss:$40 sps:$4 sm:$0xff]  }
 0x1cf   :  { %v12075_v30 = vpop.f32.mrf.mxu0  ;;  %12332 = vmatmul.mubr.bf16.vlgmr.msra.gmra.mxu0 %v23454_v8 }
 0x1d0   :  { %v12118_v31 = vpop.f32.mrf.mxu1  ;;  %12375 = vmatmul.mubr.bf16.vlgmr.msra.gmra.mxu1 %v23456_v9  ;;  %v12076_v4 = vadd.f32 %v12075_v30, %v23700_v22  ;;  %12386 = vmatpush1.bf16.msra.mxu0 %v20561_v39  ;;  %v20588_v39 = vld [vmem:[#allocation3 + $0xff8] ss:$40 sps:$4 sm:$0xff]  }
 0x1d1   :  { %12429 = vmatpush1.bf16.msra.mxu1 %v20564_v40  ;;  %v12077_v57 = vpop.f32.mrf.mxu0  ;;  %12387 = vmatprep.subr.bf16.mxu0 %v20569_v14  ;;  %v20596_v40 = vld [vmem:[#allocation3 + $0xfac] ss:$40 sps:$4 sm:$0xff]   ;;  %v20591_v14 = vld [vmem:[#allocation3 + $0xaa8] ss:$40 sps:$4 sm:$0xff]   ;;  %v20597_v30 = vld [vmem:[#allocation3 + $0xa58] ss:$40 sps:$4 sm:$0xff]  }
 0x1d2   :  { %v12120_v59 = vpop.f32.mrf.mxu1  ;;  %12430 = vmatprep.subr.bf16.mxu1 %v20572_v17  ;;  %v23717_v62 = vadd.f32 %v12118_v31, %v12076_v4  ;;  %v12078_v45 = vadd.f32 %v12077_v57, %v23705_v58  ;;  %12417 = vmatprep.mubr.bf16.mxu0 %v23482_v41  ;;  %v20579_v58 = vld [vmem:[#allocation3 + $0xb48] ss:$40 sps:$4 sm:$0xff]   ;;  %v20600_v31 = vld [vmem:[#allocation3 + $0xf58] ss:$40 sps:$4 sm:$0xff]   ;;  %v20605_v4 = vld [vmem:[#allocation3 + $0xa0c] ss:$40 sps:$4 sm:$0xff]  }
 0x1d3   :  { %12460 = vmatprep.mubr.bf16.mxu1 %v23486_v42  ;;  %v12079_v11 = vpop.f32.mrf.mxu0  ;;  %v20594_v17 = vld [vmem:[#allocation3 + $0xfa8] ss:$40 sps:$4 sm:$0xff]   ;;  %v20608_v57 = vld [vmem:[#allocation3 + $0xf0c] ss:$40 sps:$4 sm:$0xff]  }
 0x1d4   :  { %v23722_v22 = vadd.f32 %v12120_v59, %v12078_v45  ;;  %v12080_v56 = vadd.f32 %v12079_v11, %v23708_v52  ;;  %12388 = vmatpush1.bf16.msra.mxu0 %v20567_v38  ;;  %v12122_v18 = vpop.f32.mrf.mxu1  ;;  %v20593_v52 = vld [vmem:[#allocation3 + $0xaac] ss:$40 sps:$4 sm:$0xff]   ;;  %v20599_v38 = vld [vmem:[#allocation3 + $0xa5c] ss:$40 sps:$4 sm:$0xff]   ;;  %v20603_v59 = vld [vmem:[#allocation3 + $0xa08] ss:$40 sps:$4 sm:$0xff]  }
 0x1d5   :  { %12431 = vmatpush1.bf16.msra.mxu1 %v20570_v55  ;;  %12389 = vmatprep.subr.bf16.mxu0 %v20575_v60  ;;  %v20602_v55 = vld [vmem:[#allocation3 + $0xf5c] ss:$40 sps:$4 sm:$0xff]   ;;  %v20606_v60 = vld [vmem:[#allocation3 + $0xf08] ss:$40 sps:$4 sm:$0xff]   ;;  %v20617_v11 = vld [vmem:[#allocation3 + $0xe6c] ss:$40 sps:$4 sm:$0xff]  }
 0x1d6   :  { %12432 = vmatprep.subr.bf16.mxu1 %v20578_v61  ;;  %v23725_v24 = vadd.f32 %v12122_v18, %v12080_v56  ;;  %v20611_v61 = vld [vmem:[#allocation3 + $0xebc] ss:$40 sps:$4 sm:$0xff]   ;;  %v20620_v56 = vld [vmem:[#allocation3 + $0x136c] ss:$40 sps:$4 sm:$0xff]   ;;  %v20615_v18 = vld [vmem:[#allocation3 + $0xe68] ss:$40 sps:$4 sm:$0xff]  }
 0x1d7   :  { %v20614_v45 = vld [vmem:[#allocation3 + $0x13bc] ss:$40 sps:$4 sm:$0xff]  }
 0x1d8   :  { %12390 = vmatpush1.bf16.msra.mxu0 %v20573_v6  ;;  %v20609_v6 = vld [vmem:[#allocation3 + $0xeb8] ss:$40 sps:$4 sm:$0xff]  }
 0x1d9   :  { %12433 = vmatpush1.bf16.msra.mxu1 %v20576_v7  ;;  %12391 = vmatprep.subr.bf16.mxu0 %v20581_v23  ;;  %v20612_v7 = vld [vmem:[#allocation3 + $0x13b8] ss:$40 sps:$4 sm:$0xff]   ;;  %v20618_v23 = vld [vmem:[#allocation3 + $0x1368] ss:$40 sps:$4 sm:$0xff]  }
 0x1da   :  { %12434 = vmatprep.subr.bf16.mxu1 %v20584_v50  ;;  %v20623_v50 = vld [vmem:[#allocation3 + $0xe1c] ss:$40 sps:$4 sm:$0xff]  }
 0x1dc   :  { %12392 = vmatpush1.bf16.msra.mxu0 %v20579_v58  ;;  %v20626_v58 = vld [vmem:[#allocation3 + $0x131c] ss:$40 sps:$4 sm:$0xff]  }
 0x1dd   :  { %12435 = vmatpush1.bf16.msra.mxu1 %v20582_v25  ;;  %12393 = vmatprep.subr.bf16.mxu0 %v20587_v19  ;;  %v20621_v25 = vld [vmem:[#allocation3 + $0xe18] ss:$40 sps:$4 sm:$0xff]  }
 0x1de   :  { %12436 = vmatprep.subr.bf16.mxu1 %v20590_v26  ;;  %v20624_v19 = vld [vmem:[#allocation3 + $0x1318] ss:$40 sps:$4 sm:$0xff]   ;;  %v20629_v26 = vld [vmem:[#allocation3 + $0xdcc] ss:$40 sps:$4 sm:$0xff]  }
 0x1e0   :  { %12394 = vmatpush1.bf16.msra.mxu0 %v20585_v27  ;;  %v20632_v27 = vld [vmem:[#allocation3 + $0x12cc] ss:$40 sps:$4 sm:$0xff]  }
 0x1e1   :  { %12437 = vmatpush1.bf16.msra.mxu1 %v20588_v39  ;;  %12395 = vmatprep.subr.bf16.mxu0 %v20593_v52  ;;  %v20627_v39 = vld [vmem:[#allocation3 + $0xdc8] ss:$40 sps:$4 sm:$0xff]  }
 0x1e2   :  { %12438 = vmatprep.subr.bf16.mxu1 %v20596_v40  ;;  %v20630_v52 = vld [vmem:[#allocation3 + $0x12c8] ss:$40 sps:$4 sm:$0xff]   ;;  %v20635_v40 = vld [vmem:[#allocation3 + $0xd7c] ss:$40 sps:$4 sm:$0xff]  }
 0x1e4   :  { %12396 = vmatpush1.bf16.msra.mxu0 %v20591_v14  ;;  %v20638_v14 = vld [vmem:[#allocation3 + $0x127c] ss:$40 sps:$4 sm:$0xff]  }
 0x1e5   :  { %12439 = vmatpush1.bf16.msra.mxu1 %v20594_v17  ;;  %12397 = vmatprep.subr.bf16.mxu0 %v20599_v38  ;;  %v20633_v17 = vld [vmem:[#allocation3 + $0xd78] ss:$40 sps:$4 sm:$0xff]  }
 0x1e6   :  { %12440 = vmatprep.subr.bf16.mxu1 %v20602_v55  ;;  %v20636_v38 = vld [vmem:[#allocation3 + $0x1278] ss:$40 sps:$4 sm:$0xff]   ;;  %v20641_v55 = vld [vmem:[#allocation3 + $0xd2c] ss:$40 sps:$4 sm:$0xff]  }
 0x1e8   :  { %12398 = vmatpush1.bf16.msra.mxu0 %v20597_v30  ;;  %v20644_v30 = vld [vmem:[#allocation3 + $0x122c] ss:$40 sps:$4 sm:$0xff]  }
 0x1e9   :  { %12441 = vmatpush1.bf16.msra.mxu1 %v20600_v31  ;;  %12399 = vmatprep.subr.bf16.mxu0 %v20605_v4  ;;  %v20639_v31 = vld [vmem:[#allocation3 + $0xd28] ss:$40 sps:$4 sm:$0xff]  }
 0x1ea   :  { %12442 = vmatprep.subr.bf16.mxu1 %v20608_v57  ;;  %v20642_v4 = vld [vmem:[#allocation3 + $0x1228] ss:$40 sps:$4 sm:$0xff]   ;;  %v20647_v57 = vld [vmem:[#allocation3 + $0xcdc] ss:$40 sps:$4 sm:$0xff]  }
 0x1ec   :  { %12400 = vmatpush1.bf16.msra.mxu0 %v20603_v59  ;;  %v20650_v59 = vld [vmem:[#allocation3 + $0x11dc] ss:$40 sps:$4 sm:$0xff]  }
 0x1ed   :  { %12443 = vmatpush1.bf16.msra.mxu1 %v20606_v60  ;;  %12401 = vmatprep.subr.bf16.mxu0 %v20611_v61  ;;  %v20645_v60 = vld [vmem:[#allocation3 + $0xcd8] ss:$40 sps:$4 sm:$0xff]  }
 0x1ee   :  { %12444 = vmatprep.subr.bf16.mxu1 %v20614_v45  ;;  %v20648_v61 = vld [vmem:[#allocation3 + $0x11d8] ss:$40 sps:$4 sm:$0xff]   ;;  %v20653_v45 = vld [vmem:[#allocation3 + $0xc8c] ss:$40 sps:$4 sm:$0xff]  }
 0x1f0   :  { %12402 = vmatpush2.bf16.msra.mxu0 %v20609_v6  ;;  %v20656_v6 = vld [vmem:[#allocation3 + $0x118c] ss:$40 sps:$4 sm:$0xff]  }
 0x1f1   :  { %12445 = vmatpush2.bf16.msra.mxu1 %v20612_v7  ;;  %12403 = vmatprep.subr.bf16.mxu0 %v20617_v11  ;;  %v20651_v7 = vld [vmem:[#allocation3 + $0xc88] ss:$40 sps:$4 sm:$0xff]  }
 0x1f2   :  { %12446 = vmatprep.subr.bf16.mxu1 %v20620_v56  ;;  %v20654_v11 = vld [vmem:[#allocation3 + $0x1188] ss:$40 sps:$4 sm:$0xff]   ;;  %v20659_v56 = vld [vmem:[#allocation3 + $0x163c] ss:$40 sps:$4 sm:$0xff]  }
 0x1f4   :  { %12404 = vmatpush2.bf16.msra.mxu0 %v20615_v18  ;;  %v20662_v18 = vld [vmem:[#allocation3 + $0x1b3c] ss:$40 sps:$4 sm:$0xff]  }
 0x1f5   :  { %12447 = vmatpush2.bf16.msra.mxu1 %v20618_v23  ;;  %12405 = vmatprep.subr.bf16.mxu0 %v20623_v50  ;;  %v20657_v23 = vld [vmem:[#allocation3 + $0x1638] ss:$40 sps:$4 sm:$0xff]  }
 0x1f6   :  { %12448 = vmatprep.subr.bf16.mxu1 %v20626_v58  ;;  %v20660_v50 = vld [vmem:[#allocation3 + $0x1b38] ss:$40 sps:$4 sm:$0xff]   ;;  %v23727_v58 = vpop.f32.mrf.mxu0 }
 0x1f7   :  { %25644 = vst [vmem:[#allocation14_spill] sm:$0xff] %v23727_v58  ;;  %v21164_v58 = vld [vmem:[#allocation3 + $0x1000] ss:$40 sps:$4 sm:$0xff]  }
 0x1f8   :  { %12406 = vmatpush2.bf16.msra.mxu0 %v20621_v25  ;;  %v23729_v25 = vpop.f32.mrf.mxu1 }
 0x1f9   :  { %12449 = vmatpush2.bf16.msra.mxu1 %v20624_v19  ;;  %12407 = vmatprep.subr.bf16.mxu0 %v20629_v26  ;;  %25645 = vst [vmem:[#allocation15_spill] sm:$0xff] %v23729_v25  ;;  %v20665_v19 = vld [vmem:[#allocation3 + $0x15ec] ss:$40 sps:$4 sm:$0xff]   ;;  %v21152_v25 = vld [vmem:[#allocation3 + $0x10a0] ss:$40 sps:$4 sm:$0xff]  }
 0x1fa   :  { %12450 = vmatprep.subr.bf16.mxu1 %v20632_v27  ;;  %v20668_v26 = vld [vmem:[#allocation3 + $0x1aec] ss:$40 sps:$4 sm:$0xff]   ;;  %v20663_v27 = vld [vmem:[#allocation3 + $0x15e8] ss:$40 sps:$4 sm:$0xff]  }
 0x1fc   :  { %12408 = vmatpush2.bf16.msra.mxu0 %v20627_v39  ;;  %v20666_v39 = vld [vmem:[#allocation3 + $0x1ae8] ss:$40 sps:$4 sm:$0xff]  }
 0x1fd   :  { %12451 = vmatpush2.bf16.msra.mxu1 %v20630_v52  ;;  %12409 = vmatprep.subr.bf16.mxu0 %v20635_v40 }
 0x1fe   :  { %12452 = vmatprep.subr.bf16.mxu1 %v20638_v14 }
 0x200   :  { %12410 = vmatpush2.bf16.msra.mxu0 %v20633_v17 }
 0x201   :  { %12453 = vmatpush2.bf16.msra.mxu1 %v20636_v38  ;;  %12411 = vmatprep.subr.bf16.mxu0 %v20641_v55  ;;  %v20671_v55 = vld [vmem:[#allocation3 + $0x159c] ss:$40 sps:$4 sm:$0xff]  }
 0x202   :  { %12454 = vmatprep.subr.bf16.mxu1 %v20644_v30  ;;  %v20674_v30 = vld [vmem:[#allocation3 + $0x1a9c] ss:$40 sps:$4 sm:$0xff]  }
 0x204   :  { %12412 = vmatpush2.bf16.msra.mxu0 %v20639_v31 }
 0x205   :  { %12455 = vmatpush2.bf16.msra.mxu1 %v20642_v4  ;;  %12413 = vmatprep.subr.bf16.mxu0 %v20647_v57  ;;  %v20669_v57 = vld [vmem:[#allocation3 + $0x1598] ss:$40 sps:$4 sm:$0xff]  }
 0x206   :  { %12456 = vmatprep.subr.bf16.mxu1 %v20650_v59  ;;  %v20672_v59 = vld [vmem:[#allocation3 + $0x1a98] ss:$40 sps:$4 sm:$0xff]  }
 0x208   :  { %12414 = vmatpush2.bf16.msra.mxu0 %v20645_v60 }
 0x209   :  { %12457 = vmatpush2.bf16.msra.mxu1 %v20648_v61  ;;  %12415 = vmatprep.subr.bf16.mxu0 %v20653_v45 }
 0x20a   :  { %12458 = vmatprep.subr.bf16.mxu1 %v20656_v6  ;;  %v20677_v6 = vld [vmem:[#allocation3 + $0x154c] ss:$40 sps:$4 sm:$0xff]  }
 0x20c   :  { %12416 = vmatpush2.bf16.msra.mxu0 %v20651_v7  ;;  %v20680_v7 = vld [vmem:[#allocation3 + $0x1a4c] ss:$40 sps:$4 sm:$0xff]  }
 0x20d   :  { %12459 = vmatpush2.bf16.msra.mxu1 %v20654_v11  ;;  %12471 = vmatprep.subr.bf16.mxu0 %v20659_v56  ;;  %v20678_v56 = vld [vmem:[#allocation3 + $0x1a48] ss:$40 sps:$4 sm:$0xff]  }
 0x20e   :  { %12514 = vmatprep.subr.bf16.mxu1 %v20662_v18  ;;  %v20683_v18 = vld [vmem:[#allocation3 + $0x14fc] ss:$40 sps:$4 sm:$0xff]  }
 0x20f   :  { %v12161_v52 = vpop.f32.mrf.mxu0  ;;  %12418 = vmatmul.mubr.bf16.vlgmr.msra.gmra.mxu0 %v23492_v20 }
 0x210   :  { %v12204_v40 = vpop.f32.mrf.mxu1  ;;  %12461 = vmatmul.mubr.bf16.vlgmr.msra.gmra.mxu1 %v23496_v21  ;;  %v12162_v14 = vadd.f32 %v12161_v52, %v23717_v62  ;;  %12472 = vmatpush1.bf16.msra.mxu0 %v20657_v23  ;;  %v20686_v23 = vld [vmem:[#allocation3 + $0x19fc] ss:$40 sps:$4 sm:$0xff]  }
 0x211   :  { %12515 = vmatpush1.bf16.msra.mxu1 %v20660_v50  ;;  %v12163_v17 = vpop.f32.mrf.mxu0  ;;  %12473 = vmatprep.subr.bf16.mxu0 %v20665_v19  ;;  %v20684_v50 = vld [vmem:[#allocation3 + $0x19f8] ss:$40 sps:$4 sm:$0xff]   ;;  %v20689_v19 = vld [vmem:[#allocation3 + $0x14ac] ss:$40 sps:$4 sm:$0xff]   ;;  %v20695_v52 = vld [vmem:[#allocation3 + $0x145c] ss:$40 sps:$4 sm:$0xff]  }
 0x212   :  { %v12206_v38 = vpop.f32.mrf.mxu1  ;;  %12516 = vmatprep.subr.bf16.mxu1 %v20668_v26  ;;  %v23734_v31 = vadd.f32 %v12204_v40, %v12162_v14  ;;  %v12164_v4 = vadd.f32 %v12163_v17, %v23722_v22  ;;  %12503 = vmatprep.mubr.bf16.mxu0 %v23522_v33  ;;  %v20675_v22 = vld [vmem:[#allocation3 + $0x1548] ss:$40 sps:$4 sm:$0xff]   ;;  %v20692_v26 = vld [vmem:[#allocation3 + $0x19ac] ss:$40 sps:$4 sm:$0xff]   ;;  %v20698_v40 = vld [vmem:[#allocation3 + $0x195c] ss:$40 sps:$4 sm:$0xff]  }
 0x213   :  { %12546 = vmatprep.mubr.bf16.mxu1 %v23526_v34  ;;  %v12165_v60 = vpop.f32.mrf.mxu0  ;;  %v20693_v14 = vld [vmem:[#allocation3 + $0x1458] ss:$40 sps:$4 sm:$0xff]  }
 0x214   :  { %v23739_v62 = vadd.f32 %v12206_v38, %v12164_v4  ;;  %v12166_v61 = vadd.f32 %v12165_v60, %v23725_v24  ;;  %12474 = vmatpush1.bf16.msra.mxu0 %v20663_v27  ;;  %v12208_v45 = vpop.f32.mrf.mxu1  ;;  %v20681_v24 = vld [vmem:[#allocation3 + $0x14f8] ss:$40 sps:$4 sm:$0xff]   ;;  %v20687_v27 = vld [vmem:[#allocation3 + $0x14a8] ss:$40 sps:$4 sm:$0xff]   ;;  %v20701_v38 = vld [vmem:[#allocation3 + $0x140c] ss:$40 sps:$4 sm:$0xff]  }
 0x215   :  { %12517 = vmatpush1.bf16.msra.mxu1 %v20666_v39  ;;  %12475 = vmatprep.subr.bf16.mxu0 %v20671_v55  ;;  %v20690_v39 = vld [vmem:[#allocation3 + $0x19a8] ss:$40 sps:$4 sm:$0xff]   ;;  %v20696_v17 = vld [vmem:[#allocation3 + $0x1958] ss:$40 sps:$4 sm:$0xff]   ;;  %v20704_v55 = vld [vmem:[#allocation3 + $0x190c] ss:$40 sps:$4 sm:$0xff]  }
 0x216   :  { %12518 = vmatprep.subr.bf16.mxu1 %v20674_v30  ;;  %v23742_v11 = vadd.f32 %v12208_v45, %v12166_v61  ;;  %v20699_v30 = vld [vmem:[#allocation3 + $0x1408] ss:$40 sps:$4 sm:$0xff]   ;;  %v20705_v60 = vld [vmem:[#allocation3 + $0x18b8] ss:$40 sps:$4 sm:$0xff]   ;;  %v20713_v45 = vld [vmem:[#allocation3 + $0x186c] ss:$40 sps:$4 sm:$0xff]  }
 0x217   :  { %v20702_v4 = vld [vmem:[#allocation3 + $0x1908] ss:$40 sps:$4 sm:$0xff]   ;;  %v20708_v61 = vld [vmem:[#allocation3 + $0x1db8] ss:$40 sps:$4 sm:$0xff]  }
 0x218   :  { %12476 = vmatpush1.bf16.msra.mxu0 %v20669_v57  ;;  %v20707_v57 = vld [vmem:[#allocation3 + $0x18bc] ss:$40 sps:$4 sm:$0xff]  }
 0x219   :  { %12519 = vmatpush1.bf16.msra.mxu1 %v20672_v59  ;;  %12477 = vmatprep.subr.bf16.mxu0 %v20677_v6  ;;  %v20710_v59 = vld [vmem:[#allocation3 + $0x1dbc] ss:$40 sps:$4 sm:$0xff]   ;;  %v20716_v6 = vld [vmem:[#allocation3 + $0x1d6c] ss:$40 sps:$4 sm:$0xff]  }
 0x21a   :  { %12520 = vmatprep.subr.bf16.mxu1 %v20680_v7  ;;  %v20711_v7 = vld [vmem:[#allocation3 + $0x1868] ss:$40 sps:$4 sm:$0xff]  }
 0x21c   :  { %12478 = vmatpush1.bf16.msra.mxu0 %v20675_v22  ;;  %v20714_v22 = vld [vmem:[#allocation3 + $0x1d68] ss:$40 sps:$4 sm:$0xff]  }
 0x21d   :  { %12521 = vmatpush1.bf16.msra.mxu1 %v20678_v56  ;;  %12479 = vmatprep.subr.bf16.mxu0 %v20683_v18  ;;  %v20719_v56 = vld [vmem:[#allocation3 + $0x181c] ss:$40 sps:$4 sm:$0xff]  }
 0x21e   :  { %12522 = vmatprep.subr.bf16.mxu1 %v20686_v23  ;;  %v20722_v18 = vld [vmem:[#allocation3 + $0x1d1c] ss:$40 sps:$4 sm:$0xff]   ;;  %v20717_v23 = vld [vmem:[#allocation3 + $0x1818] ss:$40 sps:$4 sm:$0xff]  }
 0x220   :  { %12480 = vmatpush1.bf16.msra.mxu0 %v20681_v24  ;;  %v20720_v24 = vld [vmem:[#allocation3 + $0x1d18] ss:$40 sps:$4 sm:$0xff]  }
 0x221   :  { %12523 = vmatpush1.bf16.msra.mxu1 %v20684_v50  ;;  %12481 = vmatprep.subr.bf16.mxu0 %v20689_v19  ;;  %v20725_v50 = vld [vmem:[#allocation3 + $0x17cc] ss:$40 sps:$4 sm:$0xff]  }
 0x222   :  { %12524 = vmatprep.subr.bf16.mxu1 %v20692_v26  ;;  %v20728_v19 = vld [vmem:[#allocation3 + $0x1ccc] ss:$40 sps:$4 sm:$0xff]   ;;  %v20723_v26 = vld [vmem:[#allocation3 + $0x17c8] ss:$40 sps:$4 sm:$0xff]  }
 0x224   :  { %12482 = vmatpush1.bf16.msra.mxu0 %v20687_v27  ;;  %v20726_v27 = vld [vmem:[#allocation3 + $0x1cc8] ss:$40 sps:$4 sm:$0xff]  }
 0x225   :  { %12525 = vmatpush1.bf16.msra.mxu1 %v20690_v39  ;;  %12483 = vmatprep.subr.bf16.mxu0 %v20695_v52  ;;  %v20731_v39 = vld [vmem:[#allocation3 + $0x177c] ss:$40 sps:$4 sm:$0xff]  }
 0x226   :  { %12526 = vmatprep.subr.bf16.mxu1 %v20698_v40  ;;  %v20734_v52 = vld [vmem:[#allocation3 + $0x1c7c] ss:$40 sps:$4 sm:$0xff]   ;;  %v20729_v40 = vld [vmem:[#allocation3 + $0x1778] ss:$40 sps:$4 sm:$0xff]  }
 0x228   :  { %12484 = vmatpush1.bf16.msra.mxu0 %v20693_v14  ;;  %v20732_v14 = vld [vmem:[#allocation3 + $0x1c78] ss:$40 sps:$4 sm:$0xff]  }
 0x229   :  { %12527 = vmatpush1.bf16.msra.mxu1 %v20696_v17  ;;  %12485 = vmatprep.subr.bf16.mxu0 %v20701_v38  ;;  %v20737_v17 = vld [vmem:[#allocation3 + $0x172c] ss:$40 sps:$4 sm:$0xff]  }
 0x22a   :  { %12528 = vmatprep.subr.bf16.mxu1 %v20704_v55  ;;  %v20740_v38 = vld [vmem:[#allocation3 + $0x1c2c] ss:$40 sps:$4 sm:$0xff]   ;;  %v20735_v55 = vld [vmem:[#allocation3 + $0x1728] ss:$40 sps:$4 sm:$0xff]  }
 0x22c   :  { %12486 = vmatpush1.bf16.msra.mxu0 %v20699_v30  ;;  %v20738_v30 = vld [vmem:[#allocation3 + $0x1c28] ss:$40 sps:$4 sm:$0xff]  }
 0x22d   :  { %12529 = vmatpush1.bf16.msra.mxu1 %v20702_v4  ;;  %12487 = vmatprep.subr.bf16.mxu0 %v20707_v57  ;;  %v20743_v4 = vld [vmem:[#allocation3 + $0x16dc] ss:$40 sps:$4 sm:$0xff]  }
 0x22e   :  { %12530 = vmatprep.subr.bf16.mxu1 %v20710_v59  ;;  %v20746_v57 = vld [vmem:[#allocation3 + $0x1bdc] ss:$40 sps:$4 sm:$0xff]   ;;  %v20741_v59 = vld [vmem:[#allocation3 + $0x16d8] ss:$40 sps:$4 sm:$0xff]  }
 0x230   :  { %12488 = vmatpush2.bf16.msra.mxu0 %v20705_v60  ;;  %v20744_v60 = vld [vmem:[#allocation3 + $0x1bd8] ss:$40 sps:$4 sm:$0xff]  }
 0x231   :  { %12531 = vmatpush2.bf16.msra.mxu1 %v20708_v61  ;;  %12489 = vmatprep.subr.bf16.mxu0 %v20713_v45  ;;  %v20749_v61 = vld [vmem:[#allocation3 + $0x168c] ss:$40 sps:$4 sm:$0xff]  }
 0x232   :  { %12532 = vmatprep.subr.bf16.mxu1 %v20716_v6  ;;  %v20752_v45 = vld [vmem:[#allocation3 + $0x1b8c] ss:$40 sps:$4 sm:$0xff]   ;;  %v20747_v6 = vld [vmem:[#allocation3 + $0x1688] ss:$40 sps:$4 sm:$0xff]  }
 0x234   :  { %12490 = vmatpush2.bf16.msra.mxu0 %v20711_v7  ;;  %v20750_v7 = vld [vmem:[#allocation3 + $0x1b88] ss:$40 sps:$4 sm:$0xff]  }
 0x235   :  { %12533 = vmatpush2.bf16.msra.mxu1 %v20714_v22  ;;  %12491 = vmatprep.subr.bf16.mxu0 %v20719_v56  ;;  %v20755_v22 = vld [vmem:[#allocation3 + $0x203c] ss:$40 sps:$4 sm:$0xff]  }
 0x236   :  { %12534 = vmatprep.subr.bf16.mxu1 %v20722_v18  ;;  %v23747_v56 = vld [vmem:[%s25624_s2] sm:$0xff] }
 0x237   :  { %v20758_v18 = vld [vmem:[#allocation3 + $0x253c] ss:$40 sps:$4 sm:$0xff]  }
 0x238   :  { %12492 = vmatpush2.bf16.msra.mxu0 %v20717_v23  ;;  %v20753_v23 = vld [vmem:[#allocation3 + $0x2038] ss:$40 sps:$4 sm:$0xff]  }
 0x239   :  { %12535 = vmatpush2.bf16.msra.mxu1 %v20720_v24  ;;  %12493 = vmatprep.subr.bf16.mxu0 %v20725_v50  ;;  %v20756_v24 = vld [vmem:[#allocation3 + $0x2538] ss:$40 sps:$4 sm:$0xff]   ;;  %v20761_v50 = vld [vmem:[#allocation3 + $0x1fec] ss:$40 sps:$4 sm:$0xff]  }
 0x23a   :  { %12536 = vmatprep.subr.bf16.mxu1 %v20728_v19  ;;  %v23749_v19 = vpop.f32.mrf.mxu0 }
 0x23b   :  { %25646 = vst [vmem:[#allocation16_spill] sm:$0xff] %v23749_v19  ;;  %v21070_v19 = vld [vmem:[#allocation3 + $0x604] ss:$40 sps:$4 sm:$0xff]  }
 0x23c   :  { %12494 = vmatpush2.bf16.msra.mxu0 %v20723_v26  ;;  %v23751_v26 = vpop.f32.mrf.mxu1 }
 0x23d   :  { %12537 = vmatpush2.bf16.msra.mxu1 %v20726_v27  ;;  %12495 = vmatprep.subr.bf16.mxu0 %v20731_v39  ;;  %25647 = vst [vmem:[#allocation17_spill] sm:$0xff] %v23751_v26  ;;  %v19491_v27 = vmul.f32 -1.442695, %v23747_v56  ;;  %v20764_v39 = vld [vmem:[#allocation3 + $0x24ec] ss:$40 sps:$4 sm:$0xff]  }
 0x23e   :  { %12538 = vmatprep.subr.bf16.mxu1 %v20734_v52  ;;  %v20759_v52 = vld [vmem:[#allocation3 + $0x1fe8] ss:$40 sps:$4 sm:$0xff]  }
 0x23f   :  { %23249 = vpow2.f32 %v19491_v27  ;;  %v20771_v27 = vld [vmem:[#allocation3 + $0x1f48] ss:$40 sps:$4 sm:$0xff]  }
 0x240   :  { %12496 = vmatpush2.bf16.msra.mxu0 %v20729_v40  ;;  %v20762_v40 = vld [vmem:[#allocation3 + $0x24e8] ss:$40 sps:$4 sm:$0xff]  }
 0x241   :  { %12539 = vmatpush2.bf16.msra.mxu1 %v20732_v14  ;;  %12497 = vmatprep.subr.bf16.mxu0 %v20737_v17 }
 0x242   :  { %12540 = vmatprep.subr.bf16.mxu1 %v20740_v38 }
 0x244   :  { %12498 = vmatpush2.bf16.msra.mxu0 %v20735_v55 }
 0x245   :  { %12541 = vmatpush2.bf16.msra.mxu1 %v20738_v30  ;;  %12499 = vmatprep.subr.bf16.mxu0 %v20743_v4  ;;  %v20767_v4 = vld [vmem:[#allocation3 + $0x1f9c] ss:$40 sps:$4 sm:$0xff]  }
 0x246   :  { %12542 = vmatprep.subr.bf16.mxu1 %v20746_v57  ;;  %v20770_v57 = vld [vmem:[#allocation3 + $0x249c] ss:$40 sps:$4 sm:$0xff]  }
 0x248   :  { %12500 = vmatpush2.bf16.msra.mxu0 %v20741_v59 }
 0x249   :  { %12543 = vmatpush2.bf16.msra.mxu1 %v20744_v60  ;;  %12501 = vmatprep.subr.bf16.mxu0 %v20749_v61  ;;  %v20765_v61 = vld [vmem:[#allocation3 + $0x1f98] ss:$40 sps:$4 sm:$0xff]  }
 0x24a   :  { %12544 = vmatprep.subr.bf16.mxu1 %v20752_v45  ;;  %v20768_v45 = vld [vmem:[#allocation3 + $0x2498] ss:$40 sps:$4 sm:$0xff]  }
 0x24c   :  { %12502 = vmatpush2.bf16.msra.mxu0 %v20747_v6 }
 0x24d   :  { %12545 = vmatpush2.bf16.msra.mxu1 %v20750_v7  ;;  %12557 = vmatprep.subr.bf16.mxu0 %v20755_v22 }
 0x24e   :  { %12600 = vmatprep.subr.bf16.mxu1 %v20758_v18 }
 0x24f   :  { %v12247_v14 = vpop.f32.mrf.mxu0  ;;  %12504 = vmatmul.mubr.bf16.vlgmr.msra.gmra.mxu0 %v23547_v48 }
 0x250   :  { %v12290_v17 = vpop.f32.mrf.mxu1  ;;  %12547 = vmatmul.mubr.bf16.vlgmr.msra.gmra.mxu1 %v23551_v49  ;;  %v12248_v38 = vadd.f32 %v12247_v14, %v23734_v31  ;;  %12558 = vmatpush1.bf16.msra.mxu0 %v20753_v23  ;;  %v20773_v23 = vld [vmem:[#allocation3 + $0x1f4c] ss:$40 sps:$4 sm:$0xff]   ;;  %v20779_v14 = vld [vmem:[#allocation3 + $0x1efc] ss:$40 sps:$4 sm:$0xff]  }
 0x251   :  { %12601 = vmatpush1.bf16.msra.mxu1 %v20756_v24  ;;  %v12249_v55 = vpop.f32.mrf.mxu0  ;;  %12559 = vmatprep.subr.bf16.mxu0 %v20761_v50 }
 0x252   :  { %v12292_v30 = vpop.f32.mrf.mxu1  ;;  %12602 = vmatprep.subr.bf16.mxu1 %v20764_v39  ;;  %v23757_v59 = vadd.f32 %v12290_v17, %v12248_v38  ;;  %v12250_v60 = vadd.f32 %v12249_v55, %v23739_v62  ;;  %12589 = vmatprep.mubr.bf16.mxu0 %v23560_v28  ;;  %v20776_v62 = vld [vmem:[#allocation3 + $0x244c] ss:$40 sps:$4 sm:$0xff]   ;;  %v20774_v39 = vld [vmem:[#allocation3 + $0x2448] ss:$40 sps:$4 sm:$0xff]   ;;  %v23250_v55 = vpop.eup %23249 }
 0x253   :  { %12632 = vmatprep.mubr.bf16.mxu1 %v23564_v29  ;;  %v12251_v31 = vpop.f32.mrf.mxu0  ;;  %v20785_v17 = vld [vmem:[#allocation3 + $0x1eac] ss:$40 sps:$4 sm:$0xff]  }
 0x254   :  { %v19471_v6 = vmul.f32 -1.442695, %v23757_v59  ;;  %v23763_v7 = vadd.f32 %v12292_v30, %v12250_v60  ;;  %v12252_v22 = vadd.f32 %v12251_v31, %v23742_v11  ;;  %12560 = vmatpush1.bf16.msra.mxu0 %v20759_v52  ;;  %v12294_v18 = vpop.f32.mrf.mxu1  ;;  %v20782_v11 = vld [vmem:[#allocation3 + $0x23fc] ss:$40 sps:$4 sm:$0xff]   ;;  %v20777_v52 = vld [vmem:[#allocation3 + $0x1ef8] ss:$40 sps:$4 sm:$0xff]  }
 0x255   :  { %12603 = vmatpush1.bf16.msra.mxu1 %v20762_v40  ;;  %12561 = vmatprep.subr.bf16.mxu0 %v20767_v4  ;;  %v20780_v40 = vld [vmem:[#allocation3 + $0x23f8] ss:$40 sps:$4 sm:$0xff]   ;;  %v20788_v38 = vld [vmem:[#allocation3 + $0x23ac] ss:$40 sps:$4 sm:$0xff]   ;;  %v20783_v30 = vld [vmem:[#allocation3 + $0x1ea8] ss:$40 sps:$4 sm:$0xff]  }
 0x256   :  { %25648 = vst [vmem:[#allocation18_spill] sm:$0xff] %v23763_v7  ;;  %12604 = vmatprep.subr.bf16.mxu1 %v20770_v57  ;;  %23251 = vpow2.f32 %v19471_v6  ;;  %v23766_v24 = vadd.f32 %v12294_v18, %v12252_v22  ;;  %v20786_v4 = vld [vmem:[#allocation3 + $0x23a8] ss:$40 sps:$4 sm:$0xff]   ;;  %v14734_v57 = vadd.f32 1.0, %v23250_v55  ;;  %v20791_v60 = vld [vmem:[#allocation3 + $0x1e5c] ss:$40 sps:$4 sm:$0xff]  }
 0x257   :  { %v20789_v6 = vld [vmem:[#allocation3 + $0x1e58] ss:$40 sps:$4 sm:$0xff]   ;;  %v20797_v18 = vld [vmem:[#allocation3 + $0x1e0c] ss:$40 sps:$4 sm:$0xff]   ;;  %v20807_v55 = vld [vmem:[#allocation3 + $0x2268] ss:$40 sps:$4 sm:$0xff]  }
 0x258   :  { %v19481_v50 = vmul.f32 -1.442695, %v23766_v24  ;;  %12562 = vmatpush1.bf16.msra.mxu0 %v20765_v61  ;;  %v20794_v61 = vld [vmem:[#allocation3 + $0x235c] ss:$40 sps:$4 sm:$0xff]   ;;  %v20792_v22 = vld [vmem:[#allocation3 + $0x2358] ss:$40 sps:$4 sm:$0xff]  }
 0x259   :  { %12605 = vmatpush1.bf16.msra.mxu1 %v20768_v45  ;;  %12563 = vmatprep.subr.bf16.mxu0 %v20773_v23  ;;  %v20800_v23 = vld [vmem:[#allocation3 + $0x230c] ss:$40 sps:$4 sm:$0xff]   ;;  %v20974_v7 = vld [vmem:[#allocation3 + $0x37fc] ss:$40 sps:$4 sm:$0xff]  }
 0x25a   :  { %12606 = vmatprep.subr.bf16.mxu1 %v20776_v62  ;;  %23253 = vpow2.f32 %v19481_v50 }
 0x25b   :  { %23255 = vrcp.f32 %v14734_v57  ;;  %v20818_v57 = vld [vmem:[#allocation3 + $0x271c] ss:$40 sps:$4 sm:$0xff]  }
 0x25c   :  { %12564 = vmatpush1.bf16.msra.mxu0 %v20771_v27  ;;  %v20795_v27 = vld [vmem:[#allocation3 + $0x1e08] ss:$40 sps:$4 sm:$0xff]  }
 0x25d   :  { %12607 = vmatpush1.bf16.msra.mxu1 %v20774_v39  ;;  %12565 = vmatprep.subr.bf16.mxu0 %v20779_v14  ;;  %v20798_v39 = vld [vmem:[#allocation3 + $0x2308] ss:$40 sps:$4 sm:$0xff]   ;;  %v20803_v14 = vld [vmem:[#allocation3 + $0x22bc] ss:$40 sps:$4 sm:$0xff]  }
 0x25e   :  { %12608 = vmatprep.subr.bf16.mxu1 %v20782_v11  ;;  %v20806_v11 = vld [vmem:[#allocation3 + $0x27bc] ss:$40 sps:$4 sm:$0xff]  }
 0x260   :  { %12566 = vmatpush1.bf16.msra.mxu0 %v20777_v52  ;;  %v20801_v52 = vld [vmem:[#allocation3 + $0x22b8] ss:$40 sps:$4 sm:$0xff]  }
 0x261   :  { %12609 = vmatpush1.bf16.msra.mxu1 %v20780_v40  ;;  %12567 = vmatprep.subr.bf16.mxu0 %v20785_v17  ;;  %v20804_v40 = vld [vmem:[#allocation3 + $0x27b8] ss:$40 sps:$4 sm:$0xff]   ;;  %v20809_v17 = vld [vmem:[#allocation3 + $0x226c] ss:$40 sps:$4 sm:$0xff]  }
 0x262   :  { %12610 = vmatprep.subr.bf16.mxu1 %v20788_v38  ;;  %v20812_v38 = vld [vmem:[#allocation3 + $0x276c] ss:$40 sps:$4 sm:$0xff]  }
 0x263   :  { %v23252_v45 = vpop.eup %23251 }
 0x264   :  { %v14423_v31 = vadd.f32 1.0, %v23252_v45  ;;  %12568 = vmatpush1.bf16.msra.mxu0 %v20783_v30  ;;  %v20810_v30 = vld [vmem:[#allocation3 + $0x2768] ss:$40 sps:$4 sm:$0xff]  }
 0x265   :  { %12611 = vmatpush1.bf16.msra.mxu1 %v20786_v4  ;;  %12569 = vmatprep.subr.bf16.mxu0 %v20791_v60  ;;  %v20815_v4 = vld [vmem:[#allocation3 + $0x221c] ss:$40 sps:$4 sm:$0xff]  }
 0x266   :  { %12612 = vmatprep.subr.bf16.mxu1 %v20794_v61  ;;  %23257 = vrcp.f32 %v14423_v31  ;;  %v20813_v31 = vld [vmem:[#allocation3 + $0x2218] ss:$40 sps:$4 sm:$0xff]  }
 0x267   :  { %v23254_v62 = vpop.eup %23253 }
 0x268   :  { %v14433_v50 = vadd.f32 1.0, %v23254_v62  ;;  %12570 = vmatpush1.bf16.msra.mxu0 %v20789_v6  ;;  %v23256_v60 = vpop.eup %23255  ;;  %v20816_v6 = vld [vmem:[#allocation3 + $0x2718] ss:$40 sps:$4 sm:$0xff]  }
 0x269   :  { %12613 = vmatpush1.bf16.msra.mxu1 %v20792_v22  ;;  %12571 = vmatprep.subr.bf16.mxu0 %v20797_v18  ;;  %v20821_v22 = vld [vmem:[#allocation3 + $0x21cc] ss:$40 sps:$4 sm:$0xff]   ;;  %v14740_v62 = vmul.f32 %v23256_v60, %v23747_v56  ;;  %v20825_v56 = vld [vmem:[#allocation3 + $0x2178] ss:$40 sps:$4 sm:$0xff]  }
 0x26a   :  { %12614 = vmatprep.subr.bf16.mxu1 %v20800_v23  ;;  %23259 = vrcp.f32 %v14433_v50  ;;  %v20824_v18 = vld [vmem:[#allocation3 + $0x26cc] ss:$40 sps:$4 sm:$0xff]  }
 0x26c   :  { %12572 = vmatpush1.bf16.msra.mxu0 %v20795_v27 }
 0x26d   :  { %12615 = vmatpush1.bf16.msra.mxu1 %v20798_v39  ;;  %12573 = vmatprep.subr.bf16.mxu0 %v20803_v14  ;;  %v20819_v14 = vld [vmem:[#allocation3 + $0x21c8] ss:$40 sps:$4 sm:$0xff]  }
 0x26e   :  { %12616 = vmatprep.subr.bf16.mxu1 %v20806_v11  ;;  %v20822_v11 = vld [vmem:[#allocation3 + $0x26c8] ss:$40 sps:$4 sm:$0xff]  }
 0x270   :  { %12574 = vmatpush2.bf16.msra.mxu0 %v20801_v52  ;;  %v20830_v52 = vld [vmem:[#allocation3 + $0x267c] ss:$40 sps:$4 sm:$0xff]  }
 0x271   :  { %12617 = vmatpush2.bf16.msra.mxu1 %v20804_v40  ;;  %12575 = vmatprep.subr.bf16.mxu0 %v20809_v17  ;;  %v23772_v17 = vmul.f32 4.0, %v14740_v62  ;;  %v20842_v62 = vld [vmem:[#allocation3 + $0x25dc] ss:$40 sps:$4 sm:$0xff]  }
 0x272   :  { %12618 = vmatprep.subr.bf16.mxu1 %v20812_v38 }
 0x273   :  { %v23258_v61 = vpop.eup %23257 }
 0x274   :  { %v14483_v45 = vmul.f32 %v23258_v61, %v23757_v59  ;;  %12576 = vmatpush2.bf16.msra.mxu0 %v20807_v55  ;;  %v20827_v59 = vld [vmem:[#allocation3 + $0x217c] ss:$40 sps:$4 sm:$0xff]   ;;  %v14749_v61 = vrot.slane %v23772_v17, %v23576_v5  ;;  %v20957_v5 = vld [vmem:[#allocation3 + $0x3398] ss:$40 sps:$4 sm:$0xff]  }
 0x275   :  { %12619 = vmatpush2.bf16.msra.mxu1 %v20810_v30  ;;  %12577 = vmatprep.subr.bf16.mxu0 %v20815_v4  ;;  %v20828_v4 = vld [vmem:[#allocation3 + $0x2678] ss:$40 sps:$4 sm:$0xff]  }
 0x276   :  { %12620 = vmatprep.subr.bf16.mxu1 %v20818_v57  ;;  %v14606_v23 = vrot.slane %v14483_v45, 4  ;;  %v20836_v57 = vld [vmem:[#allocation3 + $0x262c] ss:$40 sps:$4 sm:$0xff]  }
 0x277   :  { %v23260_v50 = vpop.eup %23259 }
 0x278   :  { %v14607_v27 = vadd.f32 %v14606_v23, %v14483_v45  ;;  %v14493_v39 = vmul.f32 %v23260_v50, %v23766_v24  ;;  %12578 = vmatpush2.bf16.msra.mxu0 %v20813_v31  ;;  %v20833_v24 = vld [vmem:[#allocation3 + $0x212c] ss:$40 sps:$4 sm:$0xff]   ;;  %v20839_v23 = vld [vmem:[#allocation3 + $0x20dc] ss:$40 sps:$4 sm:$0xff]  }
 0x279   :  { %12621 = vmatpush2.bf16.msra.mxu1 %v20816_v6  ;;  %12579 = vmatprep.subr.bf16.mxu0 %v20821_v22  ;;  %v20831_v22 = vld [vmem:[#allocation3 + $0x2128] ss:$40 sps:$4 sm:$0xff]  }
 0x27a   :  { %12622 = vmatprep.subr.bf16.mxu1 %v20824_v18  ;;  %v14608_v40 = vrot.slane %v14607_v27, 2  ;;  %v14666_v38 = vrot.slane %v14493_v39, 4  ;;  %v20834_v18 = vld [vmem:[#allocation3 + $0x2628] ss:$40 sps:$4 sm:$0xff]  }
 0x27c   :  { %v14609_v55 = vadd.f32 %v14608_v40, %v14607_v27  ;;  %v14667_v30 = vadd.f32 %v14666_v38, %v14493_v39  ;;  %12580 = vmatpush2.bf16.msra.mxu0 %v20819_v14  ;;  %v20837_v14 = vld [vmem:[#allocation3 + $0x20d8] ss:$40 sps:$4 sm:$0xff]  }
 0x27d   :  { %12623 = vmatpush2.bf16.msra.mxu1 %v20822_v11  ;;  %12581 = vmatprep.subr.bf16.mxu0 %v20827_v59  ;;  %v20840_v11 = vld [vmem:[#allocation3 + $0x25d8] ss:$40 sps:$4 sm:$0xff]   ;;  %v20845_v59 = vld [vmem:[#allocation3 + $0x208c] ss:$40 sps:$4 sm:$0xff]  }
 0x27e   :  { %12624 = vmatprep.subr.bf16.mxu1 %v20830_v52  ;;  %v14610_v60 = vrot.slane %v14609_v55, 1  ;;  %v14668_v45 = vrot.slane %v14667_v30, 2  ;;  %v20848_v52 = vld [vmem:[#allocation3 + $0x258c] ss:$40 sps:$4 sm:$0xff]  }
 0x280   :  { %v14611_v31 = vadd.f32 %v14610_v60, %v14609_v55  ;;  %v14669_v6 = vadd.f32 %v14668_v45, %v14667_v30  ;;  %12582 = vmatpush2.bf16.msra.mxu0 %v20825_v56  ;;  %v20843_v55 = vld [vmem:[#allocation3 + $0x2088] ss:$40 sps:$4 sm:$0xff]  }
 0x281   :  { %12625 = vmatpush2.bf16.msra.mxu1 %v20828_v4  ;;  %12583 = vmatprep.subr.bf16.mxu0 %v20833_v24  ;;  %v20846_v56 = vld [vmem:[#allocation3 + $0x2588] ss:$40 sps:$4 sm:$0xff]   ;;  %v23777_v4 = vsub.s32 2, %v23570_v63  ;;  %v20851_v24 = vld [vmem:[#allocation3 + $0x2a3c] ss:$40 sps:$4 sm:$0xff]  }
 0x282   :  { %12626 = vmatprep.subr.bf16.mxu1 %v20836_v57  ;;  %v14796_v50 = vsub.f32 %v14611_v31, %v14749_v61  ;;  %v14670_v27 = vrot.slane %v14669_v6, 1  ;;  %v20854_v57 = vld [vmem:[#allocation3 + $0x2f3c] ss:$40 sps:$4 sm:$0xff]   ;;  %v20849_v31 = vld [vmem:[#allocation3 + $0x2a38] ss:$40 sps:$4 sm:$0xff]  }
 0x283   :  { %25649 = vst [vmem:[#allocation19_spill] sm:$0xff] %v23777_v4 }
 0x284   :  { %v14671_v39 = vadd.f32 %v14670_v27, %v14669_v6  ;;  %12584 = vmatpush2.bf16.msra.mxu0 %v20831_v22  ;;  %v14816_v40 = vmul.f32 0.25, %v14796_v50  ;;  %v20852_v6 = vld [vmem:[#allocation3 + $0x2f38] ss:$40 sps:$4 sm:$0xff]   ;;  %v20857_v50 = vld [vmem:[#allocation3 + $0x29ec] ss:$40 sps:$4 sm:$0xff]  }
 0x285   :  { %12627 = vmatpush2.bf16.msra.mxu1 %v20834_v18  ;;  %12585 = vmatprep.subr.bf16.mxu0 %v20839_v23  ;;  %v23783_v23 = vpop.f32.mrf.mxu0  ;;  %v20860_v27 = vld [vmem:[#allocation3 + $0x2eec] ss:$40 sps:$4 sm:$0xff]  }
 0x286   :  { %12628 = vmatprep.subr.bf16.mxu1 %v20842_v62  ;;  %v14806_v38 = vsub.f32 %v14671_v39, %v14749_v61  ;;  %v14836_v60 = vpack.c.bf16 %v14816_v40, %v14816_v40  ;;  %v23341_v61 = vld [vmem:[%s25624_s2] sm:$0xff]  ;;  %25650 = vst [vmem:[#allocation20_spill] sm:$0xff] %v23783_v23  ;;  %v23785_v62 = vpop.f32.mrf.mxu1 }
 0x287   :  { %v2024_v18 = vrot.slane %v23341_v61, %v23777_v4  ;;  %25651 = vst [vmem:[#allocation21_spill] sm:$0xff] %v23785_v62  ;;  %v21053_v62 = vld [vmem:[#allocation3 + $0x1a0] ss:$40 sps:$4 sm:$0xff]  }
 0x288   :  { %v14826_v30 = vmul.f32 0.25, %v14806_v38  ;;  %12586 = vmatpush2.bf16.msra.mxu0 %v20837_v14  ;;  %v15218_v39 = vunpack.c.l.b16 %v14836_v60  ;;  %v21056_v23 = vld [vmem:[#allocation3 + $0x6a0] ss:$40 sps:$4 sm:$0xff]  }
 0x289   :  { %12629 = vmatpush2.bf16.msra.mxu1 %v20840_v11  ;;  %12587 = vmatprep.subr.bf16.mxu0 %v20845_v59  ;;  %v20855_v11 = vld [vmem:[#allocation3 + $0x29e8] ss:$40 sps:$4 sm:$0xff]  }
 0x28a   :  { %12630 = vmatprep.subr.bf16.mxu1 %v20848_v52  ;;  %v14846_v45 = vpack.c.bf16 %v14826_v30, %v14826_v30  ;;  %v20858_v59 = vld [vmem:[#allocation3 + $0x2ee8] ss:$40 sps:$4 sm:$0xff]  }
 0x28c   :  { %v15228_v22 = vunpack.c.l.b16 %v14846_v45  ;;  %12588 = vmatpush2.bf16.msra.mxu0 %v20843_v55  ;;  %v20861_v45 = vld [vmem:[#allocation3 + $0x2998] ss:$40 sps:$4 sm:$0xff]  }
 0x28d   :  { %12631 = vmatpush2.bf16.msra.mxu1 %v20846_v56  ;;  %12643 = vmatprep.subr.bf16.mxu0 %v20851_v24  ;;  %v20863_v24 = vld [vmem:[#allocation3 + $0x299c] ss:$40 sps:$4 sm:$0xff]  }
 0x28e   :  { %12686 = vmatprep.subr.bf16.mxu1 %v20854_v57  ;;  %v15238_v14 = vrot.slane %v15228_v22, 7  ;;  %v20866_v57 = vld [vmem:[#allocation3 + $0x2e9c] ss:$40 sps:$4 sm:$0xff]   ;;  %v20864_v22 = vld [vmem:[#allocation3 + $0x2e98] ss:$40 sps:$4 sm:$0xff]  }
 0x28f   :  { %v12333_v52 = vpop.f32.mrf.mxu0  ;;  %12590 = vmatmul.mubr.bf16.vlgmr.msra.gmra.mxu0 %v23598_v15 }
 0x290   :  { %v12376_v40 = vpop.f32.mrf.mxu1  ;;  %12633 = vmatmul.mubr.bf16.vlgmr.msra.gmra.mxu1 %v23602_v16  ;;  %v12334_v38 = vadd.f32 %v12333_v52, %v2024_v18  ;;  %12644 = vmatpush1.bf16.msra.mxu0 %v20849_v31  ;;  %v23790_v55 = vsel %vm15239_vm0, %v15238_v14, %v15218_v39  ;;  %v20869_v39 = vld [vmem:[#allocation3 + $0x294c] ss:$40 sps:$4 sm:$0xff]   ;;  %v20867_v14 = vld [vmem:[#allocation3 + $0x2948] ss:$40 sps:$4 sm:$0xff]  }
 0x291   :  { %12687 = vmatpush1.bf16.msra.mxu1 %v20852_v6  ;;  %25652 = vst [vmem:[#allocation22_spill] sm:$0xff] %v23790_v55  ;;  %v23792_v30 = vpop.f32.mrf.mxu0  ;;  %12645 = vmatprep.subr.bf16.mxu0 %v20857_v50  ;;  %v20872_v50 = vld [vmem:[#allocation3 + $0x2e4c] ss:$40 sps:$4 sm:$0xff]   ;;  %v20870_v52 = vld [vmem:[#allocation3 + $0x2e48] ss:$40 sps:$4 sm:$0xff]  }
 0x292   :  { %v23794_v56 = vpop.f32.mrf.mxu1  ;;  %12688 = vmatprep.subr.bf16.mxu1 %v20860_v27  ;;  %v23796_v60 = vadd.f32 %v12376_v40, %v12334_v38  ;;  %12675 = vmatprep.mubr.bf16.mxu0 %v23615_v46  ;;  %v20875_v40 = vld [vmem:[#allocation3 + $0x28fc] ss:$40 sps:$4 sm:$0xff]   ;;  %v20960_v55 = vld [vmem:[#allocation3 + $0x3898] ss:$40 sps:$4 sm:$0xff]  }
 0x293   :  { %25653 = vst [vmem:[#allocation23_spill] sm:$0xff] %v23794_v56  ;;  %12718 = vmatprep.mubr.bf16.mxu1 %v23619_v47  ;;  %v12337_v31 = vpop.f32.mrf.mxu0  ;;  %v20878_v38 = vld [vmem:[#allocation3 + $0x2dfc] ss:$40 sps:$4 sm:$0xff]   ;;  %v21835_v56 = vld [vmem:[#allocation3 + $0x150c] ss:$40 sps:$4 sm:$0xff]  }
 0x294   :  { %v12338_v6 = vadd.f32 %v12337_v31, %v2024_v18  ;;  %12646 = vmatpush1.bf16.msra.mxu0 %v20855_v11  ;;  %v12380_v61 = vpop.f32.mrf.mxu1  ;;  %v20873_v18 = vld [vmem:[#allocation3 + $0x28f8] ss:$40 sps:$4 sm:$0xff]   ;;  %v20882_v31 = vld [vmem:[#allocation3 + $0x2da8] ss:$40 sps:$4 sm:$0xff]  }
 0x295   :  { %12689 = vmatpush1.bf16.msra.mxu1 %v20858_v59  ;;  %12647 = vmatprep.subr.bf16.mxu0 %v20863_v24  ;;  %v20876_v11 = vld [vmem:[#allocation3 + $0x2df8] ss:$40 sps:$4 sm:$0xff]   ;;  %v20881_v59 = vld [vmem:[#allocation3 + $0x28ac] ss:$40 sps:$4 sm:$0xff]  }
 0x296   :  { %12690 = vmatprep.subr.bf16.mxu1 %v20866_v57  ;;  %v23800_v27 = vadd.f32 %v12380_v61, %v12338_v6  ;;  %v20884_v24 = vld [vmem:[#allocation3 + $0x2dac] ss:$40 sps:$4 sm:$0xff]   ;;  %v20879_v57 = vld [vmem:[#allocation3 + $0x28a8] ss:$40 sps:$4 sm:$0xff]   ;;  %v20885_v6 = vld [vmem:[#allocation3 + $0x2858] ss:$40 sps:$4 sm:$0xff]  }
 0x297   :  { %v20888_v61 = vld [vmem:[#allocation3 + $0x2d58] ss:$40 sps:$4 sm:$0xff]  }
 0x298   :  { %12648 = vmatpush1.bf16.msra.mxu0 %v20861_v45  ;;  %v20887_v45 = vld [vmem:[#allocation3 + $0x285c] ss:$40 sps:$4 sm:$0xff]  }
 0x299   :  { %12691 = vmatpush1.bf16.msra.mxu1 %v20864_v22  ;;  %12649 = vmatprep.subr.bf16.mxu0 %v20869_v39  ;;  %v20890_v22 = vld [vmem:[#allocation3 + $0x2d5c] ss:$40 sps:$4 sm:$0xff]   ;;  %v20893_v39 = vld [vmem:[#allocation3 + $0x280c] ss:$40 sps:$4 sm:$0xff]  }
 0x29a   :  { %12692 = vmatprep.subr.bf16.mxu1 %v20872_v50  ;;  %v20896_v50 = vld [vmem:[#allocation3 + $0x2d0c] ss:$40 sps:$4 sm:$0xff]  }
 0x29c   :  { %12650 = vmatpush1.bf16.msra.mxu0 %v20867_v14  ;;  %v20891_v14 = vld [vmem:[#allocation3 + $0x2808] ss:$40 sps:$4 sm:$0xff]  }
 0x29d   :  { %12693 = vmatpush1.bf16.msra.mxu1 %v20870_v52  ;;  %12651 = vmatprep.subr.bf16.mxu0 %v20875_v40  ;;  %v20894_v52 = vld [vmem:[#allocation3 + $0x2d08] ss:$40 sps:$4 sm:$0xff]   ;;  %v20899_v40 = vld [vmem:[#allocation3 + $0x2cbc] ss:$40 sps:$4 sm:$0xff]  }
 0x29e   :  { %12694 = vmatprep.subr.bf16.mxu1 %v20878_v38  ;;  %v20902_v38 = vld [vmem:[#allocation3 + $0x31bc] ss:$40 sps:$4 sm:$0xff]  }
 0x2a0   :  { %12652 = vmatpush1.bf16.msra.mxu0 %v20873_v18  ;;  %v20897_v18 = vld [vmem:[#allocation3 + $0x2cb8] ss:$40 sps:$4 sm:$0xff]  }
 0x2a1   :  { %12695 = vmatpush1.bf16.msra.mxu1 %v20876_v11  ;;  %12653 = vmatprep.subr.bf16.mxu0 %v20881_v59  ;;  %v20900_v11 = vld [vmem:[#allocation3 + $0x31b8] ss:$40 sps:$4 sm:$0xff]   ;;  %v20905_v59 = vld [vmem:[#allocation3 + $0x2c6c] ss:$40 sps:$4 sm:$0xff]  }
 0x2a2   :  { %12696 = vmatprep.subr.bf16.mxu1 %v20884_v24  ;;  %v20908_v24 = vld [vmem:[#allocation3 + $0x316c] ss:$40 sps:$4 sm:$0xff]  }
 0x2a4   :  { %12654 = vmatpush1.bf16.msra.mxu0 %v20879_v57  ;;  %v20903_v57 = vld [vmem:[#allocation3 + $0x2c68] ss:$40 sps:$4 sm:$0xff]  }
 0x2a5   :  { %12697 = vmatpush1.bf16.msra.mxu1 %v20882_v31  ;;  %12655 = vmatprep.subr.bf16.mxu0 %v20887_v45  ;;  %v20906_v31 = vld [vmem:[#allocation3 + $0x3168] ss:$40 sps:$4 sm:$0xff]   ;;  %v20911_v45 = vld [vmem:[#allocation3 + $0x2c1c] ss:$40 sps:$4 sm:$0xff]  }
 0x2a6   :  { %12698 = vmatprep.subr.bf16.mxu1 %v20890_v22  ;;  %v20914_v22 = vld [vmem:[#allocation3 + $0x311c] ss:$40 sps:$4 sm:$0xff]  }
 0x2a8   :  { %12656 = vmatpush1.bf16.msra.mxu0 %v20885_v6  ;;  %v20909_v6 = vld [vmem:[#allocation3 + $0x2c18] ss:$40 sps:$4 sm:$0xff]  }
 0x2a9   :  { %12699 = vmatpush1.bf16.msra.mxu1 %v20888_v61  ;;  %12657 = vmatprep.subr.bf16.mxu0 %v20893_v39  ;;  %v20912_v61 = vld [vmem:[#allocation3 + $0x3118] ss:$40 sps:$4 sm:$0xff]   ;;  %v20917_v39 = vld [vmem:[#allocation3 + $0x2bcc] ss:$40 sps:$4 sm:$0xff]  }
 0x2aa   :  { %12700 = vmatprep.subr.bf16.mxu1 %v20896_v50  ;;  %v20920_v50 = vld [vmem:[#allocation3 + $0x30cc] ss:$40 sps:$4 sm:$0xff]  }
 0x2ac   :  { %12658 = vmatpush1.bf16.msra.mxu0 %v20891_v14  ;;  %v20915_v14 = vld [vmem:[#allocation3 + $0x2bc8] ss:$40 sps:$4 sm:$0xff]  }
 0x2ad   :  { %12701 = vmatpush1.bf16.msra.mxu1 %v20894_v52  ;;  %12659 = vmatprep.subr.bf16.mxu0 %v20899_v40  ;;  %v20918_v52 = vld [vmem:[#allocation3 + $0x30c8] ss:$40 sps:$4 sm:$0xff]   ;;  %v20923_v40 = vld [vmem:[#allocation3 + $0x2b7c] ss:$40 sps:$4 sm:$0xff]  }
 0x2ae   :  { %12702 = vmatprep.subr.bf16.mxu1 %v20902_v38  ;;  %v20926_v38 = vld [vmem:[#allocation3 + $0x307c] ss:$40 sps:$4 sm:$0xff]  }
 0x2b0   :  { %12660 = vmatpush2.bf16.msra.mxu0 %v20897_v18  ;;  %v20921_v18 = vld [vmem:[#allocation3 + $0x2b78] ss:$40 sps:$4 sm:$0xff]  }
 0x2b1   :  { %12703 = vmatpush2.bf16.msra.mxu1 %v20900_v11  ;;  %12661 = vmatprep.subr.bf16.mxu0 %v20905_v59  ;;  %v20924_v11 = vld [vmem:[#allocation3 + $0x3078] ss:$40 sps:$4 sm:$0xff]   ;;  %v20929_v59 = vld [vmem:[#allocation3 + $0x2b2c] ss:$40 sps:$4 sm:$0xff]  }
 0x2b2   :  { %12704 = vmatprep.subr.bf16.mxu1 %v20908_v24  ;;  %v20932_v24 = vld [vmem:[#allocation3 + $0x302c] ss:$40 sps:$4 sm:$0xff]  }
 0x2b4   :  { %12662 = vmatpush2.bf16.msra.mxu0 %v20903_v57  ;;  %v20927_v57 = vld [vmem:[#allocation3 + $0x2b28] ss:$40 sps:$4 sm:$0xff]  }
 0x2b5   :  { %12705 = vmatpush2.bf16.msra.mxu1 %v20906_v31  ;;  %12663 = vmatprep.subr.bf16.mxu0 %v20911_v45  ;;  %v20930_v31 = vld [vmem:[#allocation3 + $0x3028] ss:$40 sps:$4 sm:$0xff]   ;;  %v20935_v45 = vld [vmem:[#allocation3 + $0x2adc] ss:$40 sps:$4 sm:$0xff]  }
 0x2b6   :  { %12706 = vmatprep.subr.bf16.mxu1 %v20914_v22  ;;  %v20938_v22 = vld [vmem:[#allocation3 + $0x2fdc] ss:$40 sps:$4 sm:$0xff]  }
 0x2b8   :  { %12664 = vmatpush2.bf16.msra.mxu0 %v20909_v6  ;;  %v20933_v6 = vld [vmem:[#allocation3 + $0x2ad8] ss:$40 sps:$4 sm:$0xff]  }
 0x2b9   :  { %12707 = vmatpush2.bf16.msra.mxu1 %v20912_v61  ;;  %12665 = vmatprep.subr.bf16.mxu0 %v20917_v39  ;;  %v20936_v61 = vld [vmem:[#allocation3 + $0x2fd8] ss:$40 sps:$4 sm:$0xff]   ;;  %v20941_v39 = vld [vmem:[#allocation3 + $0x2a8c] ss:$40 sps:$4 sm:$0xff]  }
 0x2ba   :  { %12708 = vmatprep.subr.bf16.mxu1 %v20920_v50  ;;  %v20944_v50 = vld [vmem:[#allocation3 + $0x2f8c] ss:$40 sps:$4 sm:$0xff]  }
 0x2bc   :  { %12666 = vmatpush2.bf16.msra.mxu0 %v20915_v14  ;;  %v20939_v14 = vld [vmem:[#allocation3 + $0x2a88] ss:$40 sps:$4 sm:$0xff]  }
 0x2bd   :  { %12709 = vmatpush2.bf16.msra.mxu1 %v20918_v52  ;;  %12667 = vmatprep.subr.bf16.mxu0 %v20923_v40  ;;  %v20942_v52 = vld [vmem:[#allocation3 + $0x2f88] ss:$40 sps:$4 sm:$0xff]   ;;  %v20947_v40 = vld [vmem:[#allocation3 + $0x343c] ss:$40 sps:$4 sm:$0xff]  }
 0x2be   :  { %12710 = vmatprep.subr.bf16.mxu1 %v20926_v38  ;;  %v20950_v38 = vld [vmem:[#allocation3 + $0x393c] ss:$40 sps:$4 sm:$0xff]  }
 0x2c0   :  { %12668 = vmatpush2.bf16.msra.mxu0 %v20921_v18  ;;  %v20945_v18 = vld [vmem:[#allocation3 + $0x3438] ss:$40 sps:$4 sm:$0xff]  }
 0x2c1   :  { %12711 = vmatpush2.bf16.msra.mxu1 %v20924_v11  ;;  %12669 = vmatprep.subr.bf16.mxu0 %v20929_v59  ;;  %v20948_v11 = vld [vmem:[#allocation3 + $0x3938] ss:$40 sps:$4 sm:$0xff]   ;;  %v23802_v59 = vpop.f32.mrf.mxu0 }
 0x2c2   :  { %12712 = vmatprep.subr.bf16.mxu1 %v20932_v24  ;;  %v23804_v24 = vpop.f32.mrf.mxu1 }
 0x2c4   :  { %12670 = vmatpush2.bf16.msra.mxu0 %v20927_v57  ;;  %v20953_v57 = vld [vmem:[#allocation3 + $0x33ec] ss:$40 sps:$4 sm:$0xff]  }
 0x2c5   :  { %12713 = vmatpush2.bf16.msra.mxu1 %v20930_v31  ;;  %12671 = vmatprep.subr.bf16.mxu0 %v20935_v45  ;;  %v20956_v31 = vld [vmem:[#allocation3 + $0x38ec] ss:$40 sps:$4 sm:$0xff]   ;;  %v20951_v45 = vld [vmem:[#allocation3 + $0x33e8] ss:$40 sps:$4 sm:$0xff]  }
 0x2c6   :  { %12714 = vmatprep.subr.bf16.mxu1 %v20938_v22  ;;  %v20954_v22 = vld [vmem:[#allocation3 + $0x38e8] ss:$40 sps:$4 sm:$0xff]  }
 0x2c8   :  { %12672 = vmatpush2.bf16.msra.mxu0 %v20933_v6 }
 0x2c9   :  { %12715 = vmatpush2.bf16.msra.mxu1 %v20936_v61  ;;  %12673 = vmatprep.subr.bf16.mxu0 %v20941_v39 }
 0x2ca   :  { %12716 = vmatprep.subr.bf16.mxu1 %v20944_v50 }
 0x2cc   :  { %12674 = vmatpush2.bf16.msra.mxu0 %v20939_v14 }
 0x2cd   :  { %12717 = vmatpush2.bf16.msra.mxu1 %v20942_v52  ;;  %12729 = vmatprep.subr.bf16.mxu0 %v20947_v40  ;;  %v20959_v52 = vld [vmem:[#allocation3 + $0x339c] ss:$40 sps:$4 sm:$0xff]  }
 0x2ce   :  { %12772 = vmatprep.subr.bf16.mxu1 %v20950_v38  ;;  %v20962_v40 = vld [vmem:[#allocation3 + $0x389c] ss:$40 sps:$4 sm:$0xff]  }
 0x2cf   :  { %v12419_v6 = vpop.f32.mrf.mxu0  ;;  %12676 = vmatmul.mubr.bf16.vlgmr.msra.gmra.mxu0 %v23654_v32 }
 0x2d0   :  { %v12462_v61 = vpop.f32.mrf.mxu1  ;;  %12719 = vmatmul.mubr.bf16.vlgmr.msra.gmra.mxu1 %v23658_v35  ;;  %v12420_v39 = vadd.f32 %v12419_v6, %v23796_v60  ;;  %12730 = vmatpush1.bf16.msra.mxu0 %v20945_v18  ;;  %v20963_v6 = vld [vmem:[#allocation3 + $0x3348] ss:$40 sps:$4 sm:$0xff]  }
 0x2d1   :  { %12773 = vmatpush1.bf16.msra.mxu1 %v20948_v11  ;;  %v23809_v50 = vpop.f32.mrf.mxu0  ;;  %12731 = vmatprep.subr.bf16.mxu0 %v20953_v57  ;;  %v20965_v11 = vld [vmem:[#allocation3 + $0x334c] ss:$40 sps:$4 sm:$0xff]  }
 0x2d2   :  { %25654 = vst [vmem:[#allocation24_spill] sm:$0xff] %v23809_v50  ;;  %v23811_v14 = vpop.f32.mrf.mxu1  ;;  %12774 = vmatprep.subr.bf16.mxu1 %v20956_v31  ;;  %v23813_v38 = vadd.f32 %v12462_v61, %v12420_v39  ;;  %12761 = vmatprep.mubr.bf16.mxu0 %v23666_v10  ;;  %v20968_v57 = vld [vmem:[#allocation3 + $0x384c] ss:$40 sps:$4 sm:$0xff]   ;;  %v20966_v61 = vld [vmem:[#allocation3 + $0x3848] ss:$40 sps:$4 sm:$0xff]  }
 0x2d3   :  { %25655 = vst [vmem:[#allocation25_spill] sm:$0xff] %v23811_v14  ;;  %12804 = vmatprep.mubr.bf16.mxu1 %v23670_v13  ;;  %v12423_v12 = vpop.f32.mrf.mxu0  ;;  %v20971_v39 = vld [vmem:[#allocation3 + $0x32fc] ss:$40 sps:$4 sm:$0xff]   ;;  %v21443_v14 = vld [vmem:[#allocation3 + $0x2950] ss:$40 sps:$4 sm:$0xff]  }
 0x2d4   :  { %v12424_v60 = vadd.f32 %v12423_v12, %v23800_v27  ;;  %12732 = vmatpush1.bf16.msra.mxu0 %v20951_v45  ;;  %v12466_v18 = vpop.f32.mrf.mxu1  ;;  %v20969_v12 = vld [vmem:[#allocation3 + $0x32f8] ss:$40 sps:$4 sm:$0xff]   ;;  %v20977_v45 = vld [vmem:[#allocation3 + $0x32ac] ss:$40 sps:$4 sm:$0xff]  }
 0x2d5   :  { %12775 = vmatpush1.bf16.msra.mxu1 %v20954_v22  ;;  %12733 = vmatprep.subr.bf16.mxu0 %v20959_v52  ;;  %v20972_v27 = vld [vmem:[#allocation3 + $0x37f8] ss:$40 sps:$4 sm:$0xff]   ;;  %v20980_v22 = vld [vmem:[#allocation3 + $0x37ac] ss:$40 sps:$4 sm:$0xff]   ;;  %v20975_v52 = vld [vmem:[#allocation3 + $0x32a8] ss:$40 sps:$4 sm:$0xff]  }
 0x2d6   :  { %12776 = vmatprep.subr.bf16.mxu1 %v20962_v40  ;;  %v23818_v31 = vadd.f32 %v12466_v18, %v12424_v60  ;;  %v20978_v40 = vld [vmem:[#allocation3 + $0x37a8] ss:$40 sps:$4 sm:$0xff]   ;;  %v20981_v60 = vld [vmem:[#allocation3 + $0x3258] ss:$40 sps:$4 sm:$0xff]   ;;  %v21742_v50 = vld [vmem:[#allocation3 + $0x100c] ss:$40 sps:$4 sm:$0xff]  }
 0x2d7   :  { %v20984_v18 = vld [vmem:[#allocation3 + $0x3758] ss:$40 sps:$4 sm:$0xff]  }
 0x2d8   :  { %12734 = vmatpush1.bf16.msra.mxu0 %v20957_v5  ;;  %v20983_v5 = vld [vmem:[#allocation3 + $0x325c] ss:$40 sps:$4 sm:$0xff]  }
 0x2d9   :  { %12777 = vmatpush1.bf16.msra.mxu1 %v20960_v55  ;;  %12735 = vmatprep.subr.bf16.mxu0 %v20965_v11  ;;  %v20986_v55 = vld [vmem:[#allocation3 + $0x375c] ss:$40 sps:$4 sm:$0xff]   ;;  %v20989_v11 = vld [vmem:[#allocation3 + $0x320c] ss:$40 sps:$4 sm:$0xff]  }
 0x2da   :  { %12778 = vmatprep.subr.bf16.mxu1 %v20968_v57  ;;  %v20992_v57 = vld [vmem:[#allocation3 + $0x370c] ss:$40 sps:$4 sm:$0xff]  }
 0x2dc   :  { %12736 = vmatpush1.bf16.msra.mxu0 %v20963_v6  ;;  %v20990_v6 = vld [vmem:[#allocation3 + $0x3708] ss:$40 sps:$4 sm:$0xff]  }
 0x2dd   :  { %12779 = vmatpush1.bf16.msra.mxu1 %v20966_v61  ;;  %12737 = vmatprep.subr.bf16.mxu0 %v20971_v39  ;;  %v20995_v61 = vld [vmem:[#allocation3 + $0x36bc] ss:$40 sps:$4 sm:$0xff]  }
 0x2de   :  { %12780 = vmatprep.subr.bf16.mxu1 %v20974_v7  ;;  %v20987_v7 = vld [vmem:[#allocation3 + $0x3208] ss:$40 sps:$4 sm:$0xff]   ;;  %v20998_v39 = vld [vmem:[#allocation3 + $0x3bbc] ss:$40 sps:$4 sm:$0xff]  }
 0x2e0   :  { %12738 = vmatpush1.bf16.msra.mxu0 %v20969_v12  ;;  %v20993_v12 = vld [vmem:[#allocation3 + $0x36b8] ss:$40 sps:$4 sm:$0xff]  }
 0x2e1   :  { %12781 = vmatpush1.bf16.msra.mxu1 %v20972_v27  ;;  %12739 = vmatprep.subr.bf16.mxu0 %v20977_v45  ;;  %v20996_v27 = vld [vmem:[#allocation3 + $0x3bb8] ss:$40 sps:$4 sm:$0xff]   ;;  %v21001_v45 = vld [vmem:[#allocation3 + $0x366c] ss:$40 sps:$4 sm:$0xff]  }
 0x2e2   :  { %12782 = vmatprep.subr.bf16.mxu1 %v20980_v22  ;;  %v21004_v22 = vld [vmem:[#allocation3 + $0x3b6c] ss:$40 sps:$4 sm:$0xff]  }
 0x2e4   :  { %12740 = vmatpush1.bf16.msra.mxu0 %v20975_v52  ;;  %v20999_v52 = vld [vmem:[#allocation3 + $0x3668] ss:$40 sps:$4 sm:$0xff]  }
 0x2e5   :  { %12783 = vmatpush1.bf16.msra.mxu1 %v20978_v40  ;;  %12741 = vmatprep.subr.bf16.mxu0 %v20983_v5  ;;  %v21002_v40 = vld [vmem:[#allocation3 + $0x3b68] ss:$40 sps:$4 sm:$0xff]   ;;  %v21007_v5 = vld [vmem:[#allocation3 + $0x361c] ss:$40 sps:$4 sm:$0xff]  }
 0x2e6   :  { %12784 = vmatprep.subr.bf16.mxu1 %v20986_v55  ;;  %v21010_v55 = vld [vmem:[#allocation3 + $0x3b1c] ss:$40 sps:$4 sm:$0xff]  }
 0x2e8   :  { %12742 = vmatpush1.bf16.msra.mxu0 %v20981_v60  ;;  %v21005_v60 = vld [vmem:[#allocation3 + $0x3618] ss:$40 sps:$4 sm:$0xff]  }
 0x2e9   :  { %12785 = vmatpush1.bf16.msra.mxu1 %v20984_v18  ;;  %12743 = vmatprep.subr.bf16.mxu0 %v20989_v11  ;;  %v21008_v18 = vld [vmem:[#allocation3 + $0x3b18] ss:$40 sps:$4 sm:$0xff]   ;;  %v21013_v11 = vld [vmem:[#allocation3 + $0x35cc] ss:$40 sps:$4 sm:$0xff]  }
 0x2ea   :  { %12786 = vmatprep.subr.bf16.mxu1 %v20992_v57  ;;  %v21016_v57 = vld [vmem:[#allocation3 + $0x3acc] ss:$40 sps:$4 sm:$0xff]  }
 0x2ec   :  { %12744 = vmatpush1.bf16.msra.mxu0 %v20987_v7  ;;  %v21011_v7 = vld [vmem:[#allocation3 + $0x35c8] ss:$40 sps:$4 sm:$0xff]  }
 0x2ed   :  { %12787 = vmatpush1.bf16.msra.mxu1 %v20990_v6  ;;  %12745 = vmatprep.subr.bf16.mxu0 %v20995_v61  ;;  %v21014_v6 = vld [vmem:[#allocation3 + $0x3ac8] ss:$40 sps:$4 sm:$0xff]   ;;  %v21019_v61 = vld [vmem:[#allocation3 + $0x357c] ss:$40 sps:$4 sm:$0xff]  }
 0x2ee   :  { %12788 = vmatprep.subr.bf16.mxu1 %v20998_v39  ;;  %v21022_v39 = vld [vmem:[#allocation3 + $0x3a7c] ss:$40 sps:$4 sm:$0xff]  }
 0x2f0   :  { %12746 = vmatpush2.bf16.msra.mxu0 %v20993_v12  ;;  %v21017_v12 = vld [vmem:[#allocation3 + $0x3578] ss:$40 sps:$4 sm:$0xff]  }
 0x2f1   :  { %12789 = vmatpush2.bf16.msra.mxu1 %v20996_v27  ;;  %12747 = vmatprep.subr.bf16.mxu0 %v21001_v45  ;;  %v21020_v27 = vld [vmem:[#allocation3 + $0x3a78] ss:$40 sps:$4 sm:$0xff]   ;;  %v21025_v45 = vld [vmem:[#allocation3 + $0x352c] ss:$40 sps:$4 sm:$0xff]  }
 0x2f2   :  { %12790 = vmatprep.subr.bf16.mxu1 %v21004_v22  ;;  %v21028_v22 = vld [vmem:[#allocation3 + $0x3a2c] ss:$40 sps:$4 sm:$0xff]  }
 0x2f4   :  { %12748 = vmatpush2.bf16.msra.mxu0 %v20999_v52  ;;  %v21023_v52 = vld [vmem:[#allocation3 + $0x3528] ss:$40 sps:$4 sm:$0xff]  }
 0x2f5   :  { %12791 = vmatpush2.bf16.msra.mxu1 %v21002_v40  ;;  %12749 = vmatprep.subr.bf16.mxu0 %v21007_v5  ;;  %v21026_v40 = vld [vmem:[#allocation3 + $0x3a28] ss:$40 sps:$4 sm:$0xff]   ;;  %v21031_v5 = vld [vmem:[#allocation3 + $0x34dc] ss:$40 sps:$4 sm:$0xff]  }
 0x2f6   :  { %12792 = vmatprep.subr.bf16.mxu1 %v21010_v55  ;;  %v21034_v55 = vld [vmem:[#allocation3 + $0x39dc] ss:$40 sps:$4 sm:$0xff]  }
 0x2f8   :  { %12750 = vmatpush2.bf16.msra.mxu0 %v21005_v60  ;;  %v21029_v60 = vld [vmem:[#allocation3 + $0x34d8] ss:$40 sps:$4 sm:$0xff]  }
 0x2f9   :  { %12793 = vmatpush2.bf16.msra.mxu1 %v21008_v18  ;;  %12751 = vmatprep.subr.bf16.mxu0 %v21013_v11  ;;  %v21032_v18 = vld [vmem:[#allocation3 + $0x39d8] ss:$40 sps:$4 sm:$0xff]   ;;  %v21037_v11 = vld [vmem:[#allocation3 + $0x348c] ss:$40 sps:$4 sm:$0xff]  }
 0x2fa   :  { %12794 = vmatprep.subr.bf16.mxu1 %v21016_v57  ;;  %v21040_v57 = vld [vmem:[#allocation3 + $0x398c] ss:$40 sps:$4 sm:$0xff]  }
 0x2fc   :  { %12752 = vmatpush2.bf16.msra.mxu0 %v21011_v7  ;;  %v21035_v7 = vld [vmem:[#allocation3 + $0x3488] ss:$40 sps:$4 sm:$0xff]  }
 0x2fd   :  { %12795 = vmatpush2.bf16.msra.mxu1 %v21014_v6  ;;  %12753 = vmatprep.subr.bf16.mxu0 %v21019_v61  ;;  %v21038_v6 = vld [vmem:[#allocation3 + $0x3988] ss:$40 sps:$4 sm:$0xff]   ;;  %v21043_v61 = vld [vmem:[#allocation3 + $0x244] ss:$40 sps:$4 sm:$0xff]  }
 0x2fe   :  { %12796 = vmatprep.subr.bf16.mxu1 %v21022_v39  ;;  %v21046_v39 = vld [vmem:[#allocation3 + $0x744] ss:$40 sps:$4 sm:$0xff]  }
 0x300   :  { %12754 = vmatpush2.bf16.msra.mxu0 %v21017_v12  ;;  %v21041_v12 = vld [vmem:[#allocation3 + $0x240] ss:$40 sps:$4 sm:$0xff]  }
 0x301   :  { %12797 = vmatpush2.bf16.msra.mxu1 %v21020_v27  ;;  %12755 = vmatprep.subr.bf16.mxu0 %v21025_v45  ;;  %v21044_v27 = vld [vmem:[#allocation3 + $0x740] ss:$40 sps:$4 sm:$0xff]   ;;  %v23820_v45 = vpop.f32.mrf.mxu0 }
 0x302   :  { %12798 = vmatprep.subr.bf16.mxu1 %v21028_v22  ;;  %v23822_v22 = vpop.f32.mrf.mxu1 }
 0x303   :  { %25656 = vst [vmem:[#allocation26_spill] sm:$0xff] %v23822_v22 }
 0x304   :  { %12756 = vmatpush2.bf16.msra.mxu0 %v21023_v52  ;;  %v21049_v52 = vld [vmem:[#allocation3 + $0x1f4] ss:$40 sps:$4 sm:$0xff]  }
 0x305   :  { %12799 = vmatpush2.bf16.msra.mxu1 %v21026_v40  ;;  %12757 = vmatprep.subr.bf16.mxu0 %v21031_v5  ;;  %v21052_v40 = vld [vmem:[#allocation3 + $0x6f4] ss:$40 sps:$4 sm:$0xff]   ;;  %v21047_v5 = vld [vmem:[#allocation3 + $0x1f0] ss:$40 sps:$4 sm:$0xff]  }
 0x306   :  { %12800 = vmatprep.subr.bf16.mxu1 %v21034_v55  ;;  %v21050_v55 = vld [vmem:[#allocation3 + $0x6f0] ss:$40 sps:$4 sm:$0xff]  }
 0x308   :  { %12758 = vmatpush2.bf16.msra.mxu0 %v21029_v60 }
 0x309   :  { %12801 = vmatpush2.bf16.msra.mxu1 %v21032_v18  ;;  %12759 = vmatprep.subr.bf16.mxu0 %v21037_v11 }
 0x30a   :  { %12802 = vmatprep.subr.bf16.mxu1 %v21040_v57 }
 0x30c   :  { %12760 = vmatpush2.bf16.msra.mxu0 %v21035_v7 }
 0x30d   :  { %12803 = vmatpush2.bf16.msra.mxu1 %v21038_v6  ;;  %12815 = vmatprep.subr.bf16.mxu0 %v21043_v61  ;;  %v21055_v6 = vld [vmem:[#allocation3 + $0x1a4] ss:$40 sps:$4 sm:$0xff]  }
 0x30e   :  { %12858 = vmatprep.subr.bf16.mxu1 %v21046_v39  ;;  %v21058_v61 = vld [vmem:[#allocation3 + $0x6a4] ss:$40 sps:$4 sm:$0xff]  }
 0x30f   :  { %v12505_v60 = vpop.f32.mrf.mxu0  ;;  %12762 = vmatmul.mubr.bf16.vlgmr.msra.gmra.mxu0 %v23687_v0 }
 0x310   :  { %v12548_v18 = vpop.f32.mrf.mxu1  ;;  %12805 = vmatmul.mubr.bf16.vlgmr.msra.gmra.mxu1 %v23691_v1  ;;  %v12506_v11 = vadd.f32 %v12505_v60, %v23813_v38  ;;  %12816 = vmatpush1.bf16.msra.mxu0 %v21041_v12  ;;  %v21059_v60 = vld [vmem:[#allocation3 + $0x150] ss:$40 sps:$4 sm:$0xff]  }
 0x311   :  { %12859 = vmatpush1.bf16.msra.mxu1 %v21044_v27  ;;  %v23827_v57 = vpop.f32.mrf.mxu0  ;;  %12817 = vmatprep.subr.bf16.mxu0 %v21049_v52  ;;  %v21061_v27 = vld [vmem:[#allocation3 + $0x154] ss:$40 sps:$4 sm:$0xff]  }
 0x312   :  { %25657 = vst [vmem:[#allocation27_spill] sm:$0xff] %v23827_v57  ;;  %v23829_v7 = vpop.f32.mrf.mxu1  ;;  %12860 = vmatprep.subr.bf16.mxu1 %v21052_v40  ;;  %v23831_v39 = vadd.f32 %v12548_v18, %v12506_v11  ;;  %12847 = vmatprep.mubr.bf16.mxu0 %v23448_v53  ;;  %v21064_v52 = vld [vmem:[#allocation3 + $0x654] ss:$40 sps:$4 sm:$0xff]   ;;  %v21062_v18 = vld [vmem:[#allocation3 + $0x650] ss:$40 sps:$4 sm:$0xff]  }
 0x313   :  { %25658 = vst [vmem:[#allocation28_spill] sm:$0xff] %v23829_v7  ;;  %12890 = vmatprep.mubr.bf16.mxu1 %v23450_v54  ;;  %v12509_v26 = vpop.f32.mrf.mxu0  ;;  %v21067_v11 = vld [vmem:[#allocation3 + $0x104] ss:$40 sps:$4 sm:$0xff]   ;;  %v21149_v7 = vld [vmem:[#allocation3 + $0xba0] ss:$40 sps:$4 sm:$0xff]  }
 0x314   :  { %v12510_v38 = vadd.f32 %v12509_v26, %v23818_v31  ;;  %12818 = vmatpush1.bf16.msra.mxu0 %v21047_v5  ;;  %v12552_v12 = vpop.f32.mrf.mxu1  ;;  %v21065_v26 = vld [vmem:[#allocation3 + $0x100] ss:$40 sps:$4 sm:$0xff]   ;;  %v21073_v5 = vld [vmem:[#allocation3 + $0xb4] ss:$40 sps:$4 sm:$0xff]  }
 0x315   :  { %12861 = vmatpush1.bf16.msra.mxu1 %v21050_v55  ;;  %12819 = vmatprep.subr.bf16.mxu0 %v21055_v6  ;;  %v21068_v31 = vld [vmem:[#allocation3 + $0x600] ss:$40 sps:$4 sm:$0xff]   ;;  %v21076_v55 = vld [vmem:[#allocation3 + $0x5b4] ss:$40 sps:$4 sm:$0xff]   ;;  %v21071_v6 = vld [vmem:[#allocation3 + $0xb0] ss:$40 sps:$4 sm:$0xff]  }
 0x316   :  { %12862 = vmatprep.subr.bf16.mxu1 %v21058_v61  ;;  %v23836_v40 = vadd.f32 %v12552_v12, %v12510_v38  ;;  %v21074_v61 = vld [vmem:[#allocation3 + $0x5b0] ss:$40 sps:$4 sm:$0xff]   ;;  %v21077_v38 = vld [vmem:[#allocation3 + $0x60] ss:$40 sps:$4 sm:$0xff]  }
 0x317   :  { %v21080_v12 = vld [vmem:[#allocation3 + $0x560] ss:$40 sps:$4 sm:$0xff]  }
 0x318   :  { %12820 = vmatpush1.bf16.msra.mxu0 %v21053_v62  ;;  %v21082_v62 = vld [vmem:[#allocation3 + $0x564] ss:$40 sps:$4 sm:$0xff]  }
 0x319   :  { %12863 = vmatpush1.bf16.msra.mxu1 %v21056_v23  ;;  %12821 = vmatprep.subr.bf16.mxu0 %v21061_v27  ;;  %v21079_v23 = vld [vmem:[#allocation3 + $0x64] ss:$40 sps:$4 sm:$0xff]   ;;  %v21085_v27 = vld [vmem:[#allocation3 + $0x14] ss:$40 sps:$4 sm:$0xff]  }
 0x31a   :  { %12864 = vmatprep.subr.bf16.mxu1 %v21064_v52  ;;  %v21088_v52 = vld [vmem:[#allocation3 + $0x514] ss:$40 sps:$4 sm:$0xff]  }
 0x31c   :  { %12822 = vmatpush1.bf16.msra.mxu0 %v21059_v60  ;;  %v21086_v60 = vld [vmem:[#allocation3 + $0x510] ss:$40 sps:$4 sm:$0xff]  }
 0x31d   :  { %12865 = vmatpush1.bf16.msra.mxu1 %v21062_v18  ;;  %12823 = vmatprep.subr.bf16.mxu0 %v21067_v11  ;;  %v21091_v18 = vld [vmem:[#allocation3 + $0x4c4] ss:$40 sps:$4 sm:$0xff]  }
 0x31e   :  { %12866 = vmatprep.subr.bf16.mxu1 %v21070_v19  ;;  %v21083_v19 = vld [vmem:[#allocation3 + $0x10] ss:$40 sps:$4 sm:$0xff]   ;;  %v21094_v11 = vld [vmem:[#allocation3 + $0x9c4] ss:$40 sps:$4 sm:$0xff]  }
 0x320   :  { %12824 = vmatpush1.bf16.msra.mxu0 %v21065_v26  ;;  %v21089_v26 = vld [vmem:[#allocation3 + $0x4c0] ss:$40 sps:$4 sm:$0xff]  }
 0x321   :  { %12867 = vmatpush1.bf16.msra.mxu1 %v21068_v31  ;;  %12825 = vmatprep.subr.bf16.mxu0 %v21073_v5  ;;  %v21092_v31 = vld [vmem:[#allocation3 + $0x9c0] ss:$40 sps:$4 sm:$0xff]   ;;  %v21097_v5 = vld [vmem:[#allocation3 + $0x474] ss:$40 sps:$4 sm:$0xff]  }
 0x322   :  { %12868 = vmatprep.subr.bf16.mxu1 %v21076_v55  ;;  %v21100_v55 = vld [vmem:[#allocation3 + $0x974] ss:$40 sps:$4 sm:$0xff]  }
 0x324   :  { %12826 = vmatpush1.bf16.msra.mxu0 %v21071_v6  ;;  %v21095_v6 = vld [vmem:[#allocation3 + $0x470] ss:$40 sps:$4 sm:$0xff]  }
 0x325   :  { %12869 = vmatpush1.bf16.msra.mxu1 %v21074_v61  ;;  %12827 = vmatprep.subr.bf16.mxu0 %v21079_v23  ;;  %v21098_v61 = vld [vmem:[#allocation3 + $0x970] ss:$40 sps:$4 sm:$0xff]   ;;  %v21103_v23 = vld [vmem:[#allocation3 + $0x424] ss:$40 sps:$4 sm:$0xff]  }
 0x326   :  { %12870 = vmatprep.subr.bf16.mxu1 %v21082_v62  ;;  %v21106_v62 = vld [vmem:[#allocation3 + $0x924] ss:$40 sps:$4 sm:$0xff]  }
 0x328   :  { %12828 = vmatpush1.bf16.msra.mxu0 %v21077_v38  ;;  %v21101_v38 = vld [vmem:[#allocation3 + $0x420] ss:$40 sps:$4 sm:$0xff]  }
 0x329   :  { %12871 = vmatpush1.bf16.msra.mxu1 %v21080_v12  ;;  %12829 = vmatprep.subr.bf16.mxu0 %v21085_v27  ;;  %v21104_v12 = vld [vmem:[#allocation3 + $0x920] ss:$40 sps:$4 sm:$0xff]   ;;  %v21109_v27 = vld [vmem:[#allocation3 + $0x3d4] ss:$40 sps:$4 sm:$0xff]  }
 0x32a   :  { %12872 = vmatprep.subr.bf16.mxu1 %v21088_v52  ;;  %v21112_v52 = vld [vmem:[#allocation3 + $0x8d4] ss:$40 sps:$4 sm:$0xff]  }
 0x32c   :  { %12830 = vmatpush1.bf16.msra.mxu0 %v21083_v19  ;;  %v21107_v19 = vld [vmem:[#allocation3 + $0x3d0] ss:$40 sps:$4 sm:$0xff]  }
 0x32d   :  { %12873 = vmatpush1.bf16.msra.mxu1 %v21086_v60  ;;  %12831 = vmatprep.subr.bf16.mxu0 %v21091_v18  ;;  %v21110_v60 = vld [vmem:[#allocation3 + $0x8d0] ss:$40 sps:$4 sm:$0xff]   ;;  %v21115_v18 = vld [vmem:[#allocation3 + $0x384] ss:$40 sps:$4 sm:$0xff]  }
 0x32e   :  { %12874 = vmatprep.subr.bf16.mxu1 %v21094_v11  ;;  %v21118_v11 = vld [vmem:[#allocation3 + $0x884] ss:$40 sps:$4 sm:$0xff]  }
 0x330   :  { %12832 = vmatpush2.bf16.msra.mxu0 %v21089_v26  ;;  %v21113_v26 = vld [vmem:[#allocation3 + $0x380] ss:$40 sps:$4 sm:$0xff]  }
 0x331   :  { %12875 = vmatpush2.bf16.msra.mxu1 %v21092_v31  ;;  %12833 = vmatprep.subr.bf16.mxu0 %v21097_v5  ;;  %v21116_v31 = vld [vmem:[#allocation3 + $0x880] ss:$40 sps:$4 sm:$0xff]   ;;  %v21121_v5 = vld [vmem:[#allocation3 + $0x334] ss:$40 sps:$4 sm:$0xff]  }
 0x332   :  { %12876 = vmatprep.subr.bf16.mxu1 %v21100_v55  ;;  %v21124_v55 = vld [vmem:[#allocation3 + $0x834] ss:$40 sps:$4 sm:$0xff]  }
 0x334   :  { %12834 = vmatpush2.bf16.msra.mxu0 %v21095_v6  ;;  %v21119_v6 = vld [vmem:[#allocation3 + $0x330] ss:$40 sps:$4 sm:$0xff]  }
 0x335   :  { %12877 = vmatpush2.bf16.msra.mxu1 %v21098_v61  ;;  %12835 = vmatprep.subr.bf16.mxu0 %v21103_v23  ;;  %v21122_v61 = vld [vmem:[#allocation3 + $0x830] ss:$40 sps:$4 sm:$0xff]   ;;  %v21127_v23 = vld [vmem:[#allocation3 + $0x2e4] ss:$40 sps:$4 sm:$0xff]  }
 0x336   :  { %12878 = vmatprep.subr.bf16.mxu1 %v21106_v62  ;;  %v21130_v62 = vld [vmem:[#allocation3 + $0x7e4] ss:$40 sps:$4 sm:$0xff]  }
 0x338   :  { %12836 = vmatpush2.bf16.msra.mxu0 %v21101_v38  ;;  %v21125_v38 = vld [vmem:[#allocation3 + $0x2e0] ss:$40 sps:$4 sm:$0xff]  }
 0x339   :  { %12879 = vmatpush2.bf16.msra.mxu1 %v21104_v12  ;;  %12837 = vmatprep.subr.bf16.mxu0 %v21109_v27  ;;  %v21128_v12 = vld [vmem:[#allocation3 + $0x7e0] ss:$40 sps:$4 sm:$0xff]   ;;  %v21133_v27 = vld [vmem:[#allocation3 + $0x294] ss:$40 sps:$4 sm:$0xff]  }
 0x33a   :  { %12880 = vmatprep.subr.bf16.mxu1 %v21112_v52  ;;  %v21136_v52 = vld [vmem:[#allocation3 + $0x794] ss:$40 sps:$4 sm:$0xff]  }
 0x33c   :  { %12838 = vmatpush2.bf16.msra.mxu0 %v21107_v19  ;;  %v21131_v19 = vld [vmem:[#allocation3 + $0x290] ss:$40 sps:$4 sm:$0xff]  }
 0x33d   :  { %12881 = vmatpush2.bf16.msra.mxu1 %v21110_v60  ;;  %12839 = vmatprep.subr.bf16.mxu0 %v21115_v18  ;;  %v21134_v60 = vld [vmem:[#allocation3 + $0x790] ss:$40 sps:$4 sm:$0xff]   ;;  %v21139_v18 = vld [vmem:[#allocation3 + $0xc44] ss:$40 sps:$4 sm:$0xff]  }
 0x33e   :  { %12882 = vmatprep.subr.bf16.mxu1 %v21118_v11  ;;  %v21142_v11 = vld [vmem:[#allocation3 + $0x1144] ss:$40 sps:$4 sm:$0xff]  }
 0x340   :  { %12840 = vmatpush2.bf16.msra.mxu0 %v21113_v26  ;;  %v21137_v26 = vld [vmem:[#allocation3 + $0xc40] ss:$40 sps:$4 sm:$0xff]  }
 0x341   :  { %12883 = vmatpush2.bf16.msra.mxu1 %v21116_v31  ;;  %12841 = vmatprep.subr.bf16.mxu0 %v21121_v5  ;;  %v21140_v31 = vld [vmem:[#allocation3 + $0x1140] ss:$40 sps:$4 sm:$0xff]   ;;  %v23838_v5 = vpop.f32.mrf.mxu0 }
 0x342   :  { %12884 = vmatprep.subr.bf16.mxu1 %v21124_v55  ;;  %25659 = vst [vmem:[#allocation29_spill] sm:$0xff] %v23838_v5  ;;  %v23840_v55 = vpop.f32.mrf.mxu1  ;;  %v21739_v5 = vld [vmem:[#allocation3 + $0xb0c] ss:$40 sps:$4 sm:$0xff]  }
 0x343   :  { %25660 = vst [vmem:[#allocation30_spill] sm:$0xff] %v23840_v55  ;;  %v21440_v55 = vld [vmem:[#allocation3 + $0x2ea0] ss:$40 sps:$4 sm:$0xff]  }
 0x344   :  { %12842 = vmatpush2.bf16.msra.mxu0 %v21119_v6  ;;  %v21145_v6 = vld [vmem:[#allocation3 + $0xbf4] ss:$40 sps:$4 sm:$0xff]  }
 0x345   :  { %12885 = vmatpush2.bf16.msra.mxu1 %v21122_v61  ;;  %12843 = vmatprep.subr.bf16.mxu0 %v21127_v23  ;;  %v21148_v61 = vld [vmem:[#allocation3 + $0x10f4] ss:$40 sps:$4 sm:$0xff]   ;;  %v21143_v23 = vld [vmem:[#allocation3 + $0xbf0] ss:$40 sps:$4 sm:$0xff]  }
 0x346   :  { %12886 = vmatprep.subr.bf16.mxu1 %v21130_v62  ;;  %v21146_v62 = vld [vmem:[#allocation3 + $0x10f0] ss:$40 sps:$4 sm:$0xff]  }
 0x348   :  { %12844 = vmatpush2.bf16.msra.mxu0 %v21125_v38 }
 0x349   :  { %12887 = vmatpush2.bf16.msra.mxu1 %v21128_v12  ;;  %12845 = vmatprep.subr.bf16.mxu0 %v21133_v27 }
 0x34a   :  { %12888 = vmatprep.subr.bf16.mxu1 %v21136_v52 }
 0x34c   :  { %12846 = vmatpush2.bf16.msra.mxu0 %v21131_v19 }
 0x34d   :  { %12889 = vmatpush2.bf16.msra.mxu1 %v21134_v60  ;;  %12901 = vmatprep.subr.bf16.mxu0 %v21139_v18  ;;  %v21151_v60 = vld [vmem:[#allocation3 + $0xba4] ss:$40 sps:$4 sm:$0xff]  }
 0x34e   :  { %12944 = vmatprep.subr.bf16.mxu1 %v21142_v11  ;;  %v21154_v18 = vld [vmem:[#allocation3 + $0x10a4] ss:$40 sps:$4 sm:$0xff]  }
 0x34f   :  { %v12591_v38 = vpop.f32.mrf.mxu0  ;;  %12848 = vmatmul.mubr.bf16.vlgmr.msra.gmra.mxu0 %v23454_v8 }
 0x350   :  { %v12634_v12 = vpop.f32.mrf.mxu1  ;;  %12891 = vmatmul.mubr.bf16.vlgmr.msra.gmra.mxu1 %v23456_v9  ;;  %v12592_v27 = vadd.f32 %v12591_v38, %v23831_v39  ;;  %12902 = vmatpush1.bf16.msra.mxu0 %v21137_v26  ;;  %v21155_v38 = vld [vmem:[#allocation3 + $0xb50] ss:$40 sps:$4 sm:$0xff]  }
 0x351   :  { %12945 = vmatpush1.bf16.msra.mxu1 %v21140_v31  ;;  %v23845_v52 = vpop.f32.mrf.mxu0  ;;  %12903 = vmatprep.subr.bf16.mxu0 %v21145_v6  ;;  %v21157_v31 = vld [vmem:[#allocation3 + $0xb54] ss:$40 sps:$4 sm:$0xff]  }
 0x352   :  { %25661 = vst [vmem:[#allocation31_spill] sm:$0xff] %v23845_v52  ;;  %v23847_v19 = vpop.f32.mrf.mxu1  ;;  %12946 = vmatprep.subr.bf16.mxu1 %v21148_v61  ;;  %v23849_v11 = vadd.f32 %v12634_v12, %v12592_v27  ;;  %12933 = vmatprep.mubr.bf16.mxu0 %v23482_v41  ;;  %v21160_v6 = vld [vmem:[#allocation3 + $0x1054] ss:$40 sps:$4 sm:$0xff]   ;;  %v21158_v12 = vld [vmem:[#allocation3 + $0x1050] ss:$40 sps:$4 sm:$0xff]  }
 0x353   :  { %25662 = vst [vmem:[#allocation32_spill] sm:$0xff] %v23847_v19  ;;  %12976 = vmatprep.mubr.bf16.mxu1 %v23486_v42  ;;  %v12595_v57 = vpop.f32.mrf.mxu0  ;;  %v21163_v27 = vld [vmem:[#allocation3 + $0xb04] ss:$40 sps:$4 sm:$0xff]   ;;  %v21161_v52 = vld [vmem:[#allocation3 + $0xb00] ss:$40 sps:$4 sm:$0xff]  }
 0x354   :  { %v12596_v39 = vadd.f32 %v12595_v57, %v23836_v40  ;;  %12904 = vmatpush1.bf16.msra.mxu0 %v21143_v23  ;;  %v12638_v26 = vpop.f32.mrf.mxu1  ;;  %v21166_v19 = vld [vmem:[#allocation3 + $0x1004] ss:$40 sps:$4 sm:$0xff]   ;;  %v21169_v57 = vld [vmem:[#allocation3 + $0xab4] ss:$40 sps:$4 sm:$0xff]   ;;  %v21167_v23 = vld [vmem:[#allocation3 + $0xab0] ss:$40 sps:$4 sm:$0xff]  }
 0x355   :  { %12947 = vmatpush1.bf16.msra.mxu1 %v21146_v62  ;;  %12905 = vmatprep.subr.bf16.mxu0 %v21151_v60  ;;  %v21172_v40 = vld [vmem:[#allocation3 + $0xfb4] ss:$40 sps:$4 sm:$0xff]   ;;  %v21170_v62 = vld [vmem:[#allocation3 + $0xfb0] ss:$40 sps:$4 sm:$0xff]   ;;  %v21173_v60 = vld [vmem:[#allocation3 + $0xa60] ss:$40 sps:$4 sm:$0xff]  }
 0x356   :  { %12948 = vmatprep.subr.bf16.mxu1 %v21154_v18  ;;  %v23854_v61 = vadd.f32 %v12638_v26, %v12596_v39  ;;  %v21176_v18 = vld [vmem:[#allocation3 + $0xf60] ss:$40 sps:$4 sm:$0xff]   ;;  %v21181_v39 = vld [vmem:[#allocation3 + $0xa14] ss:$40 sps:$4 sm:$0xff]  }
 0x357   :  { %v21184_v26 = vld [vmem:[#allocation3 + $0xf14] ss:$40 sps:$4 sm:$0xff]  }
 0x358   :  { %12906 = vmatpush1.bf16.msra.mxu0 %v21149_v7  ;;  %v21175_v7 = vld [vmem:[#allocation3 + $0xa64] ss:$40 sps:$4 sm:$0xff]  }
 0x359   :  { %12949 = vmatpush1.bf16.msra.mxu1 %v21152_v25  ;;  %12907 = vmatprep.subr.bf16.mxu0 %v21157_v31  ;;  %v21178_v25 = vld [vmem:[#allocation3 + $0xf64] ss:$40 sps:$4 sm:$0xff]   ;;  %v21179_v31 = vld [vmem:[#allocation3 + $0xa10] ss:$40 sps:$4 sm:$0xff]  }
 0x35a   :  { %12950 = vmatprep.subr.bf16.mxu1 %v21160_v6  ;;  %v21185_v6 = vld [vmem:[#allocation3 + $0xec0] ss:$40 sps:$4 sm:$0xff]  }
 0x35c   :  { %12908 = vmatpush1.bf16.msra.mxu0 %v21155_v38  ;;  %v21188_v38 = vld [vmem:[#allocation3 + $0x13c0] ss:$40 sps:$4 sm:$0xff]  }
 0x35d   :  { %12951 = vmatpush1.bf16.msra.mxu1 %v21158_v12  ;;  %12909 = vmatprep.subr.bf16.mxu0 %v21163_v27  ;;  %v21193_v12 = vld [vmem:[#allocation3 + $0xe74] ss:$40 sps:$4 sm:$0xff]  }
 0x35e   :  { %12952 = vmatprep.subr.bf16.mxu1 %v21166_v19  ;;  %v21182_v19 = vld [vmem:[#allocation3 + $0xf10] ss:$40 sps:$4 sm:$0xff]   ;;  %v21196_v27 = vld [vmem:[#allocation3 + $0x1374] ss:$40 sps:$4 sm:$0xff]  }
 0x360   :  { %12910 = vmatpush1.bf16.msra.mxu0 %v21161_v52  ;;  %v21187_v52 = vld [vmem:[#allocation3 + $0xec4] ss:$40 sps:$4 sm:$0xff]  }
 0x361   :  { %12953 = vmatpush1.bf16.msra.mxu1 %v21164_v58  ;;  %12911 = vmatprep.subr.bf16.mxu0 %v21169_v57  ;;  %v21190_v58 = vld [vmem:[#allocation3 + $0x13c4] ss:$40 sps:$4 sm:$0xff]   ;;  %v21191_v57 = vld [vmem:[#allocation3 + $0xe70] ss:$40 sps:$4 sm:$0xff]  }
 0x362   :  { %12954 = vmatprep.subr.bf16.mxu1 %v21172_v40  ;;  %v21194_v40 = vld [vmem:[#allocation3 + $0x1370] ss:$40 sps:$4 sm:$0xff]  }
 0x364   :  { %12912 = vmatpush1.bf16.msra.mxu0 %v21167_v23  ;;  %v21199_v23 = vld [vmem:[#allocation3 + $0xe24] ss:$40 sps:$4 sm:$0xff]  }
 0x365   :  { %12955 = vmatpush1.bf16.msra.mxu1 %v21170_v62  ;;  %12913 = vmatprep.subr.bf16.mxu0 %v21175_v7  ;;  %v21202_v62 = vld [vmem:[#allocation3 + $0x1324] ss:$40 sps:$4 sm:$0xff]   ;;  %v21197_v7 = vld [vmem:[#allocation3 + $0xe20] ss:$40 sps:$4 sm:$0xff]  }
 0x366   :  { %12956 = vmatprep.subr.bf16.mxu1 %v21178_v25  ;;  %v21200_v25 = vld [vmem:[#allocation3 + $0x1320] ss:$40 sps:$4 sm:$0xff]  }
 0x368   :  { %12914 = vmatpush1.bf16.msra.mxu0 %v21173_v60  ;;  %v21205_v60 = vld [vmem:[#allocation3 + $0xdd4] ss:$40 sps:$4 sm:$0xff]  }
 0x369   :  { %12957 = vmatpush1.bf16.msra.mxu1 %v21176_v18  ;;  %12915 = vmatprep.subr.bf16.mxu0 %v21181_v39  ;;  %v21208_v18 = vld [vmem:[#allocation3 + $0x12d4] ss:$40 sps:$4 sm:$0xff]   ;;  %v21203_v39 = vld [vmem:[#allocation3 + $0xdd0] ss:$40 sps:$4 sm:$0xff]  }
 0x36a   :  { %12958 = vmatprep.subr.bf16.mxu1 %v21184_v26  ;;  %v21206_v26 = vld [vmem:[#allocation3 + $0x12d0] ss:$40 sps:$4 sm:$0xff]  }
 0x36c   :  { %12916 = vmatpush1.bf16.msra.mxu0 %v21179_v31  ;;  %v21211_v31 = vld [vmem:[#allocation3 + $0xd84] ss:$40 sps:$4 sm:$0xff]  }
 0x36d   :  { %12959 = vmatpush1.bf16.msra.mxu1 %v21182_v19  ;;  %12917 = vmatprep.subr.bf16.mxu0 %v21187_v52  ;;  %v21214_v19 = vld [vmem:[#allocation3 + $0x1284] ss:$40 sps:$4 sm:$0xff]   ;;  %v21209_v52 = vld [vmem:[#allocation3 + $0xd80] ss:$40 sps:$4 sm:$0xff]  }
 0x36e   :  { %12960 = vmatprep.subr.bf16.mxu1 %v21190_v58  ;;  %v21212_v58 = vld [vmem:[#allocation3 + $0x1280] ss:$40 sps:$4 sm:$0xff]  }
 0x370   :  { %12918 = vmatpush2.bf16.msra.mxu0 %v21185_v6  ;;  %v21217_v6 = vld [vmem:[#allocation3 + $0xd34] ss:$40 sps:$4 sm:$0xff]  }
 0x371   :  { %12961 = vmatpush2.bf16.msra.mxu1 %v21188_v38  ;;  %12919 = vmatprep.subr.bf16.mxu0 %v21193_v12  ;;  %v21220_v38 = vld [vmem:[#allocation3 + $0x1234] ss:$40 sps:$4 sm:$0xff]   ;;  %v21215_v12 = vld [vmem:[#allocation3 + $0xd30] ss:$40 sps:$4 sm:$0xff]  }
 0x372   :  { %12962 = vmatprep.subr.bf16.mxu1 %v21196_v27  ;;  %v21218_v27 = vld [vmem:[#allocation3 + $0x1230] ss:$40 sps:$4 sm:$0xff]  }
 0x374   :  { %12920 = vmatpush2.bf16.msra.mxu0 %v21191_v57  ;;  %v21223_v57 = vld [vmem:[#allocation3 + $0xce4] ss:$40 sps:$4 sm:$0xff]  }
 0x375   :  { %12963 = vmatpush2.bf16.msra.mxu1 %v21194_v40  ;;  %12921 = vmatprep.subr.bf16.mxu0 %v21199_v23  ;;  %v21226_v40 = vld [vmem:[#allocation3 + $0x11e4] ss:$40 sps:$4 sm:$0xff]   ;;  %v21221_v23 = vld [vmem:[#allocation3 + $0xce0] ss:$40 sps:$4 sm:$0xff]  }
 0x376   :  { %12964 = vmatprep.subr.bf16.mxu1 %v21202_v62  ;;  %v21224_v62 = vld [vmem:[#allocation3 + $0x11e0] ss:$40 sps:$4 sm:$0xff]  }
 0x378   :  { %12922 = vmatpush2.bf16.msra.mxu0 %v21197_v7  ;;  %v21229_v7 = vld [vmem:[#allocation3 + $0xc94] ss:$40 sps:$4 sm:$0xff]  }
 0x379   :  { %12965 = vmatpush2.bf16.msra.mxu1 %v21200_v25  ;;  %12923 = vmatprep.subr.bf16.mxu0 %v21205_v60  ;;  %v21232_v25 = vld [vmem:[#allocation3 + $0x1194] ss:$40 sps:$4 sm:$0xff]   ;;  %v21227_v60 = vld [vmem:[#allocation3 + $0xc90] ss:$40 sps:$4 sm:$0xff]  }
 0x37a   :  { %12966 = vmatprep.subr.bf16.mxu1 %v21208_v18  ;;  %v21230_v18 = vld [vmem:[#allocation3 + $0x1190] ss:$40 sps:$4 sm:$0xff]  }
 0x37c   :  { %12924 = vmatpush2.bf16.msra.mxu0 %v21203_v39  ;;  %v21235_v39 = vld [vmem:[#allocation3 + $0x1644] ss:$40 sps:$4 sm:$0xff]  }
 0x37d   :  { %12967 = vmatpush2.bf16.msra.mxu1 %v21206_v26  ;;  %12925 = vmatprep.subr.bf16.mxu0 %v21211_v31  ;;  %v21238_v26 = vld [vmem:[#allocation3 + $0x1b44] ss:$40 sps:$4 sm:$0xff]   ;;  %v21233_v31 = vld [vmem:[#allocation3 + $0x1640] ss:$40 sps:$4 sm:$0xff]  }
 0x37e   :  { %12968 = vmatprep.subr.bf16.mxu1 %v21214_v19  ;;  %v21236_v19 = vld [vmem:[#allocation3 + $0x1b40] ss:$40 sps:$4 sm:$0xff]  }
 0x380   :  { %12926 = vmatpush2.bf16.msra.mxu0 %v21209_v52  ;;  %v23856_v52 = vpop.f32.mrf.mxu0 }
 0x381   :  { %12969 = vmatpush2.bf16.msra.mxu1 %v21212_v58  ;;  %12927 = vmatprep.subr.bf16.mxu0 %v21217_v6  ;;  %25663 = vst [vmem:[#allocation33_spill] sm:$0xff] %v23856_v52  ;;  %v23858_v58 = vpop.f32.mrf.mxu1  ;;  %v21241_v6 = vld [vmem:[#allocation3 + $0x15f4] ss:$40 sps:$4 sm:$0xff]   ;;  %v21404_v52 = vld [vmem:[#allocation3 + $0x2680] ss:$40 sps:$4 sm:$0xff]  }
 0x382   :  { %12970 = vmatprep.subr.bf16.mxu1 %v21220_v38  ;;  %25664 = vst [vmem:[#allocation34_spill] sm:$0xff] %v23858_v58  ;;  %v21244_v38 = vld [vmem:[#allocation3 + $0x1af4] ss:$40 sps:$4 sm:$0xff]  }
 0x384   :  { %12928 = vmatpush2.bf16.msra.mxu0 %v21215_v12  ;;  %v21239_v12 = vld [vmem:[#allocation3 + $0x15f0] ss:$40 sps:$4 sm:$0xff]  }
 0x385   :  { %12971 = vmatpush2.bf16.msra.mxu1 %v21218_v27  ;;  %12929 = vmatprep.subr.bf16.mxu0 %v21223_v57  ;;  %v21242_v27 = vld [vmem:[#allocation3 + $0x1af0] ss:$40 sps:$4 sm:$0xff]  }
 0x386   :  { %12972 = vmatprep.subr.bf16.mxu1 %v21226_v40 }
 0x388   :  { %12930 = vmatpush2.bf16.msra.mxu0 %v21221_v23 }
 0x389   :  { %12973 = vmatpush2.bf16.msra.mxu1 %v21224_v62  ;;  %12931 = vmatprep.subr.bf16.mxu0 %v21229_v7 }
 0x38a   :  { %12974 = vmatprep.subr.bf16.mxu1 %v21232_v25  ;;  %v21247_v25 = vld [vmem:[#allocation3 + $0x15a4] ss:$40 sps:$4 sm:$0xff]  }
 0x38c   :  { %12932 = vmatpush2.bf16.msra.mxu0 %v21227_v60  ;;  %v21250_v60 = vld [vmem:[#allocation3 + $0x1aa4] ss:$40 sps:$4 sm:$0xff]  }
 0x38d   :  { %12975 = vmatpush2.bf16.msra.mxu1 %v21230_v18  ;;  %12987 = vmatprep.subr.bf16.mxu0 %v21235_v39  ;;  %v21245_v39 = vld [vmem:[#allocation3 + $0x15a0] ss:$40 sps:$4 sm:$0xff]  }
 0x38e   :  { %13030 = vmatprep.subr.bf16.mxu1 %v21238_v26  ;;  %v21248_v26 = vld [vmem:[#allocation3 + $0x1aa0] ss:$40 sps:$4 sm:$0xff]  }
 0x38f   :  { %v12677_v57 = vpop.f32.mrf.mxu0  ;;  %12934 = vmatmul.mubr.bf16.vlgmr.msra.gmra.mxu0 %v23492_v20 }
 0x390   :  { %v12720_v40 = vpop.f32.mrf.mxu1  ;;  %12977 = vmatmul.mubr.bf16.vlgmr.msra.gmra.mxu1 %v23496_v21  ;;  %v12678_v23 = vadd.f32 %v12677_v57, %v23849_v11  ;;  %12988 = vmatpush1.bf16.msra.mxu0 %v21233_v31  ;;  %v21251_v57 = vld [vmem:[#allocation3 + $0x1550] ss:$40 sps:$4 sm:$0xff]  }
 0x391   :  { %13031 = vmatpush1.bf16.msra.mxu1 %v21236_v19  ;;  %v23863_v62 = vpop.f32.mrf.mxu0  ;;  %12989 = vmatprep.subr.bf16.mxu0 %v21241_v6  ;;  %v21253_v19 = vld [vmem:[#allocation3 + $0x1554] ss:$40 sps:$4 sm:$0xff]  }
 0x392   :  { %25665 = vst [vmem:[#allocation35_spill] sm:$0xff] %v23863_v62  ;;  %v23865_v7 = vpop.f32.mrf.mxu1  ;;  %13032 = vmatprep.subr.bf16.mxu1 %v21244_v38  ;;  %v23867_v18 = vadd.f32 %v12720_v40, %v12678_v23  ;;  %13019 = vmatprep.mubr.bf16.mxu0 %v23522_v33  ;;  %v21256_v6 = vld [vmem:[#allocation3 + $0x1a54] ss:$40 sps:$4 sm:$0xff]   ;;  %v21254_v40 = vld [vmem:[#allocation3 + $0x1a50] ss:$40 sps:$4 sm:$0xff]  }
 0x393   :  { %25666 = vst [vmem:[#allocation36_spill] sm:$0xff] %v23865_v7  ;;  %13062 = vmatprep.mubr.bf16.mxu1 %v23526_v34  ;;  %v12681_v58 = vpop.f32.mrf.mxu0  ;;  %v21259_v23 = vld [vmem:[#allocation3 + $0x1504] ss:$40 sps:$4 sm:$0xff]   ;;  %v21341_v62 = vld [vmem:[#allocation3 + $0x1fa0] ss:$40 sps:$4 sm:$0xff]  }
 0x394   :  { %v12682_v11 = vadd.f32 %v12681_v58, %v23854_v61  ;;  %12990 = vmatpush1.bf16.msra.mxu0 %v21239_v12  ;;  %v12724_v31 = vpop.f32.mrf.mxu1  ;;  %v21262_v7 = vld [vmem:[#allocation3 + $0x1a04] ss:$40 sps:$4 sm:$0xff]   ;;  %v21257_v61 = vld [vmem:[#allocation3 + $0x1500] ss:$40 sps:$4 sm:$0xff]   ;;  %v21265_v12 = vld [vmem:[#allocation3 + $0x14b4] ss:$40 sps:$4 sm:$0xff]  }
 0x395   :  { %13033 = vmatpush1.bf16.msra.mxu1 %v21242_v27  ;;  %12991 = vmatprep.subr.bf16.mxu0 %v21247_v25  ;;  %v21260_v58 = vld [vmem:[#allocation3 + $0x1a00] ss:$40 sps:$4 sm:$0xff]   ;;  %v21268_v27 = vld [vmem:[#allocation3 + $0x19b4] ss:$40 sps:$4 sm:$0xff]   ;;  %v21263_v25 = vld [vmem:[#allocation3 + $0x14b0] ss:$40 sps:$4 sm:$0xff]  }
 0x396   :  { %13034 = vmatprep.subr.bf16.mxu1 %v21250_v60  ;;  %v23872_v38 = vadd.f32 %v12724_v31, %v12682_v11  ;;  %v21266_v60 = vld [vmem:[#allocation3 + $0x19b0] ss:$40 sps:$4 sm:$0xff]   ;;  %v21269_v11 = vld [vmem:[#allocation3 + $0x1460] ss:$40 sps:$4 sm:$0xff]  }
 0x397   :  { %v21272_v31 = vld [vmem:[#allocation3 + $0x1960] ss:$40 sps:$4 sm:$0xff]  }
 0x398   :  { %12992 = vmatpush1.bf16.msra.mxu0 %v21245_v39  ;;  %v21271_v39 = vld [vmem:[#allocation3 + $0x1464] ss:$40 sps:$4 sm:$0xff]  }
 0x399   :  { %13035 = vmatpush1.bf16.msra.mxu1 %v21248_v26  ;;  %12993 = vmatprep.subr.bf16.mxu0 %v21253_v19  ;;  %v21274_v26 = vld [vmem:[#allocation3 + $0x1964] ss:$40 sps:$4 sm:$0xff]   ;;  %v21277_v19 = vld [vmem:[#allocation3 + $0x1414] ss:$40 sps:$4 sm:$0xff]  }
 0x39a   :  { %13036 = vmatprep.subr.bf16.mxu1 %v21256_v6  ;;  %v21280_v6 = vld [vmem:[#allocation3 + $0x1914] ss:$40 sps:$4 sm:$0xff]  }
 0x39c   :  { %12994 = vmatpush1.bf16.msra.mxu0 %v21251_v57  ;;  %v21278_v57 = vld [vmem:[#allocation3 + $0x1910] ss:$40 sps:$4 sm:$0xff]  }
 0x39d   :  { %13037 = vmatpush1.bf16.msra.mxu1 %v21254_v40  ;;  %12995 = vmatprep.subr.bf16.mxu0 %v21259_v23  ;;  %v21283_v40 = vld [vmem:[#allocation3 + $0x18c4] ss:$40 sps:$4 sm:$0xff]  }
 0x39e   :  { %13038 = vmatprep.subr.bf16.mxu1 %v21262_v7  ;;  %v21275_v7 = vld [vmem:[#allocation3 + $0x1410] ss:$40 sps:$4 sm:$0xff]   ;;  %v21286_v23 = vld [vmem:[#allocation3 + $0x1dc4] ss:$40 sps:$4 sm:$0xff]  }
 0x3a0   :  { %12996 = vmatpush1.bf16.msra.mxu0 %v21257_v61  ;;  %v21281_v61 = vld [vmem:[#allocation3 + $0x18c0] ss:$40 sps:$4 sm:$0xff]  }
 0x3a1   :  { %13039 = vmatpush1.bf16.msra.mxu1 %v21260_v58  ;;  %12997 = vmatprep.subr.bf16.mxu0 %v21265_v12  ;;  %v21284_v58 = vld [vmem:[#allocation3 + $0x1dc0] ss:$40 sps:$4 sm:$0xff]   ;;  %v21289_v12 = vld [vmem:[#allocation3 + $0x1874] ss:$40 sps:$4 sm:$0xff]  }
 0x3a2   :  { %13040 = vmatprep.subr.bf16.mxu1 %v21268_v27  ;;  %v21292_v27 = vld [vmem:[#allocation3 + $0x1d74] ss:$40 sps:$4 sm:$0xff]  }
 0x3a4   :  { %12998 = vmatpush1.bf16.msra.mxu0 %v21263_v25  ;;  %v21287_v25 = vld [vmem:[#allocation3 + $0x1870] ss:$40 sps:$4 sm:$0xff]  }
 0x3a5   :  { %13041 = vmatpush1.bf16.msra.mxu1 %v21266_v60  ;;  %12999 = vmatprep.subr.bf16.mxu0 %v21271_v39  ;;  %v21290_v60 = vld [vmem:[#allocation3 + $0x1d70] ss:$40 sps:$4 sm:$0xff]   ;;  %v21295_v39 = vld [vmem:[#allocation3 + $0x1824] ss:$40 sps:$4 sm:$0xff]  }
 0x3a6   :  { %13042 = vmatprep.subr.bf16.mxu1 %v21274_v26  ;;  %v21298_v26 = vld [vmem:[#allocation3 + $0x1d24] ss:$40 sps:$4 sm:$0xff]  }
 0x3a8   :  { %13000 = vmatpush1.bf16.msra.mxu0 %v21269_v11  ;;  %v21293_v11 = vld [vmem:[#allocation3 + $0x1820] ss:$40 sps:$4 sm:$0xff]  }
 0x3a9   :  { %13043 = vmatpush1.bf16.msra.mxu1 %v21272_v31  ;;  %13001 = vmatprep.subr.bf16.mxu0 %v21277_v19  ;;  %v21296_v31 = vld [vmem:[#allocation3 + $0x1d20] ss:$40 sps:$4 sm:$0xff]   ;;  %v21301_v19 = vld [vmem:[#allocation3 + $0x17d4] ss:$40 sps:$4 sm:$0xff]  }
 0x3aa   :  { %13044 = vmatprep.subr.bf16.mxu1 %v21280_v6  ;;  %v21304_v6 = vld [vmem:[#allocation3 + $0x1cd4] ss:$40 sps:$4 sm:$0xff]  }
 0x3ac   :  { %13002 = vmatpush1.bf16.msra.mxu0 %v21275_v7  ;;  %v21299_v7 = vld [vmem:[#allocation3 + $0x17d0] ss:$40 sps:$4 sm:$0xff]  }
 0x3ad   :  { %13045 = vmatpush1.bf16.msra.mxu1 %v21278_v57  ;;  %13003 = vmatprep.subr.bf16.mxu0 %v21283_v40  ;;  %v21302_v57 = vld [vmem:[#allocation3 + $0x1cd0] ss:$40 sps:$4 sm:$0xff]   ;;  %v21307_v40 = vld [vmem:[#allocation3 + $0x1784] ss:$40 sps:$4 sm:$0xff]  }
 0x3ae   :  { %13046 = vmatprep.subr.bf16.mxu1 %v21286_v23  ;;  %v21310_v23 = vld [vmem:[#allocation3 + $0x1c84] ss:$40 sps:$4 sm:$0xff]  }
 0x3b0   :  { %13004 = vmatpush2.bf16.msra.mxu0 %v21281_v61  ;;  %v21305_v61 = vld [vmem:[#allocation3 + $0x1780] ss:$40 sps:$4 sm:$0xff]  }
 0x3b1   :  { %13047 = vmatpush2.bf16.msra.mxu1 %v21284_v58  ;;  %13005 = vmatprep.subr.bf16.mxu0 %v21289_v12  ;;  %v21308_v58 = vld [vmem:[#allocation3 + $0x1c80] ss:$40 sps:$4 sm:$0xff]   ;;  %v21313_v12 = vld [vmem:[#allocation3 + $0x1734] ss:$40 sps:$4 sm:$0xff]  }
 0x3b2   :  { %13048 = vmatprep.subr.bf16.mxu1 %v21292_v27  ;;  %v21316_v27 = vld [vmem:[#allocation3 + $0x1c34] ss:$40 sps:$4 sm:$0xff]  }
 0x3b4   :  { %13006 = vmatpush2.bf16.msra.mxu0 %v21287_v25  ;;  %v21311_v25 = vld [vmem:[#allocation3 + $0x1730] ss:$40 sps:$4 sm:$0xff]  }
 0x3b5   :  { %13049 = vmatpush2.bf16.msra.mxu1 %v21290_v60  ;;  %13007 = vmatprep.subr.bf16.mxu0 %v21295_v39  ;;  %v21314_v60 = vld [vmem:[#allocation3 + $0x1c30] ss:$40 sps:$4 sm:$0xff]   ;;  %v21319_v39 = vld [vmem:[#allocation3 + $0x16e4] ss:$40 sps:$4 sm:$0xff]  }
 0x3b6   :  { %13050 = vmatprep.subr.bf16.mxu1 %v21298_v26  ;;  %v21322_v26 = vld [vmem:[#allocation3 + $0x1be4] ss:$40 sps:$4 sm:$0xff]  }
 0x3b8   :  { %13008 = vmatpush2.bf16.msra.mxu0 %v21293_v11  ;;  %v21317_v11 = vld [vmem:[#allocation3 + $0x16e0] ss:$40 sps:$4 sm:$0xff]  }
 0x3b9   :  { %13051 = vmatpush2.bf16.msra.mxu1 %v21296_v31  ;;  %13009 = vmatprep.subr.bf16.mxu0 %v21301_v19  ;;  %v21320_v31 = vld [vmem:[#allocation3 + $0x1be0] ss:$40 sps:$4 sm:$0xff]   ;;  %v21325_v19 = vld [vmem:[#allocation3 + $0x1694] ss:$40 sps:$4 sm:$0xff]  }
 0x3ba   :  { %13052 = vmatprep.subr.bf16.mxu1 %v21304_v6  ;;  %v21328_v6 = vld [vmem:[#allocation3 + $0x1b94] ss:$40 sps:$4 sm:$0xff]  }
 0x3bc   :  { %13010 = vmatpush2.bf16.msra.mxu0 %v21299_v7  ;;  %v21323_v7 = vld [vmem:[#allocation3 + $0x1690] ss:$40 sps:$4 sm:$0xff]  }
 0x3bd   :  { %13053 = vmatpush2.bf16.msra.mxu1 %v21302_v57  ;;  %13011 = vmatprep.subr.bf16.mxu0 %v21307_v40  ;;  %v21326_v57 = vld [vmem:[#allocation3 + $0x1b90] ss:$40 sps:$4 sm:$0xff]   ;;  %v21331_v40 = vld [vmem:[#allocation3 + $0x2044] ss:$40 sps:$4 sm:$0xff]  }
 0x3be   :  { %13054 = vmatprep.subr.bf16.mxu1 %v21310_v23  ;;  %v21334_v23 = vld [vmem:[#allocation3 + $0x2544] ss:$40 sps:$4 sm:$0xff]  }
 0x3c0   :  { %13012 = vmatpush2.bf16.msra.mxu0 %v21305_v61  ;;  %v21329_v61 = vld [vmem:[#allocation3 + $0x2040] ss:$40 sps:$4 sm:$0xff]  }
 0x3c1   :  { %13055 = vmatpush2.bf16.msra.mxu1 %v21308_v58  ;;  %13013 = vmatprep.subr.bf16.mxu0 %v21313_v12  ;;  %v21332_v58 = vld [vmem:[#allocation3 + $0x2540] ss:$40 sps:$4 sm:$0xff]   ;;  %v23874_v12 = vpop.f32.mrf.mxu0 }
 0x3c2   :  { %13056 = vmatprep.subr.bf16.mxu1 %v21316_v27  ;;  %25667 = vst [vmem:[#allocation37_spill] sm:$0xff] %v23874_v12  ;;  %v23876_v27 = vpop.f32.mrf.mxu1 }
 0x3c3   :  { %25668 = vst [vmem:[#allocation38_spill] sm:$0xff] %v23876_v27  ;;  %v21344_v27 = vld [vmem:[#allocation3 + $0x24a0] ss:$40 sps:$4 sm:$0xff]  }
 0x3c4   :  { %13014 = vmatpush2.bf16.msra.mxu0 %v21311_v25  ;;  %v21337_v25 = vld [vmem:[#allocation3 + $0x1ff4] ss:$40 sps:$4 sm:$0xff]  }
 0x3c5   :  { %13057 = vmatpush2.bf16.msra.mxu1 %v21314_v60  ;;  %13015 = vmatprep.subr.bf16.mxu0 %v21319_v39  ;;  %v21340_v60 = vld [vmem:[#allocation3 + $0x24f4] ss:$40 sps:$4 sm:$0xff]   ;;  %v21335_v39 = vld [vmem:[#allocation3 + $0x1ff0] ss:$40 sps:$4 sm:$0xff]  }
 0x3c6   :  { %13058 = vmatprep.subr.bf16.mxu1 %v21322_v26  ;;  %v21338_v26 = vld [vmem:[#allocation3 + $0x24f0] ss:$40 sps:$4 sm:$0xff]  }
 0x3c8   :  { %13016 = vmatpush2.bf16.msra.mxu0 %v21317_v11 }
 0x3c9   :  { %13059 = vmatpush2.bf16.msra.mxu1 %v21320_v31  ;;  %13017 = vmatprep.subr.bf16.mxu0 %v21325_v19 }
 0x3ca   :  { %13060 = vmatprep.subr.bf16.mxu1 %v21328_v6 }
 0x3cc   :  { %13018 = vmatpush2.bf16.msra.mxu0 %v21323_v7 }
 0x3cd   :  { %13061 = vmatpush2.bf16.msra.mxu1 %v21326_v57  ;;  %13073 = vmatprep.subr.bf16.mxu0 %v21331_v40  ;;  %v21343_v57 = vld [vmem:[#allocation3 + $0x1fa4] ss:$40 sps:$4 sm:$0xff]  }
 0x3ce   :  { %13116 = vmatprep.subr.bf16.mxu1 %v21334_v23  ;;  %v21346_v40 = vld [vmem:[#allocation3 + $0x24a4] ss:$40 sps:$4 sm:$0xff]  }
 0x3cf   :  { %v12763_v11 = vpop.f32.mrf.mxu0  ;;  %13020 = vmatmul.mubr.bf16.vlgmr.msra.gmra.mxu0 %v23547_v48 }
 0x3d0   :  { %v12806_v31 = vpop.f32.mrf.mxu1  ;;  %13063 = vmatmul.mubr.bf16.vlgmr.msra.gmra.mxu1 %v23551_v49  ;;  %v12764_v19 = vadd.f32 %v12763_v11, %v23867_v18  ;;  %13074 = vmatpush1.bf16.msra.mxu0 %v21329_v61 }
 0x3d1   :  { %13117 = vmatpush1.bf16.msra.mxu1 %v21332_v58  ;;  %v23881_v6 = vpop.f32.mrf.mxu0  ;;  %13075 = vmatprep.subr.bf16.mxu0 %v21337_v25  ;;  %v21349_v25 = vld [vmem:[#allocation3 + $0x1f54] ss:$40 sps:$4 sm:$0xff]  }
 0x3d2   :  { %25669 = vst [vmem:[#allocation39_spill] sm:$0xff] %v23881_v6  ;;  %v23883_v7 = vpop.f32.mrf.mxu1  ;;  %13118 = vmatprep.subr.bf16.mxu1 %v21340_v60  ;;  %v23885_v23 = vadd.f32 %v12806_v31, %v12764_v19  ;;  %13105 = vmatprep.mubr.bf16.mxu0 %v23560_v28  ;;  %v21352_v60 = vld [vmem:[#allocation3 + $0x2454] ss:$40 sps:$4 sm:$0xff]   ;;  %v21347_v19 = vld [vmem:[#allocation3 + $0x1f50] ss:$40 sps:$4 sm:$0xff]  }
 0x3d3   :  { %25670 = vst [vmem:[#allocation40_spill] sm:$0xff] %v23883_v7  ;;  %13148 = vmatprep.mubr.bf16.mxu1 %v23564_v29  ;;  %v12767_v12 = vpop.f32.mrf.mxu0  ;;  %v21350_v7 = vld [vmem:[#allocation3 + $0x2450] ss:$40 sps:$4 sm:$0xff]   ;;  %v21355_v6 = vld [vmem:[#allocation3 + $0x1f04] ss:$40 sps:$4 sm:$0xff]  }
 0x3d4   :  { %v19473_v18 = vmul.f32 -1.442695, %v23885_v23  ;;  %v12768_v61 = vadd.f32 %v12767_v12, %v23872_v38  ;;  %13076 = vmatpush1.bf16.msra.mxu0 %v21335_v39  ;;  %v12810_v58 = vpop.f32.mrf.mxu1  ;;  %v21358_v38 = vld [vmem:[#allocation3 + $0x2404] ss:$40 sps:$4 sm:$0xff]   ;;  %v21353_v12 = vld [vmem:[#allocation3 + $0x1f00] ss:$40 sps:$4 sm:$0xff]  }
 0x3d5   :  { %13119 = vmatpush1.bf16.msra.mxu1 %v21338_v26  ;;  %13077 = vmatprep.subr.bf16.mxu0 %v21343_v57  ;;  %v21356_v39 = vld [vmem:[#allocation3 + $0x2400] ss:$40 sps:$4 sm:$0xff]   ;;  %v21361_v26 = vld [vmem:[#allocation3 + $0x1eb4] ss:$40 sps:$4 sm:$0xff]  }
 0x3d6   :  { %13120 = vmatprep.subr.bf16.mxu1 %v21346_v40  ;;  %23261 = vpow2.f32 %v19473_v18  ;;  %v23891_v11 = vadd.f32 %v12810_v58, %v12768_v61  ;;  %v21364_v57 = vld [vmem:[#allocation3 + $0x23b4] ss:$40 sps:$4 sm:$0xff]   ;;  %v21359_v40 = vld [vmem:[#allocation3 + $0x1eb0] ss:$40 sps:$4 sm:$0xff]   ;;  %v21370_v18 = vld [vmem:[#allocation3 + $0x2364] ss:$40 sps:$4 sm:$0xff]  }
 0x3d8   :  { %v19483_v31 = vmul.f32 -1.442695, %v23891_v11  ;;  %13078 = vmatpush1.bf16.msra.mxu0 %v21341_v62  ;;  %v21362_v62 = vld [vmem:[#allocation3 + $0x23b0] ss:$40 sps:$4 sm:$0xff]  }
 0x3d9   :  { %13121 = vmatpush1.bf16.msra.mxu1 %v21344_v27  ;;  %13079 = vmatprep.subr.bf16.mxu0 %v21349_v25  ;;  %v21367_v27 = vld [vmem:[#allocation3 + $0x1e64] ss:$40 sps:$4 sm:$0xff]   ;;  %v21365_v25 = vld [vmem:[#allocation3 + $0x1e60] ss:$40 sps:$4 sm:$0xff]  }
 0x3da   :  { %13122 = vmatprep.subr.bf16.mxu1 %v21352_v60  ;;  %23263 = vpow2.f32 %v19483_v31  ;;  %v21376_v60 = vld [vmem:[#allocation3 + $0x2314] ss:$40 sps:$4 sm:$0xff]  }
 0x3dc   :  { %13080 = vmatpush1.bf16.msra.mxu0 %v21347_v19 }
 0x3dd   :  { %13123 = vmatpush1.bf16.msra.mxu1 %v21350_v7  ;;  %13081 = vmatprep.subr.bf16.mxu0 %v21355_v6  ;;  %v21368_v7 = vld [vmem:[#allocation3 + $0x2360] ss:$40 sps:$4 sm:$0xff]   ;;  %v21373_v6 = vld [vmem:[#allocation3 + $0x1e14] ss:$40 sps:$4 sm:$0xff]  }
 0x3de   :  { %13124 = vmatprep.subr.bf16.mxu1 %v21358_v38  ;;  %v21371_v38 = vld [vmem:[#allocation3 + $0x1e10] ss:$40 sps:$4 sm:$0xff]  }
 0x3e0   :  { %13082 = vmatpush1.bf16.msra.mxu0 %v21353_v12  ;;  %v21374_v12 = vld [vmem:[#allocation3 + $0x2310] ss:$40 sps:$4 sm:$0xff]  }
 0x3e1   :  { %13125 = vmatpush1.bf16.msra.mxu1 %v21356_v39  ;;  %13083 = vmatprep.subr.bf16.mxu0 %v21361_v26  ;;  %v21379_v39 = vld [vmem:[#allocation3 + $0x22c4] ss:$40 sps:$4 sm:$0xff]  }
 0x3e2   :  { %13126 = vmatprep.subr.bf16.mxu1 %v21364_v57  ;;  %v21382_v26 = vld [vmem:[#allocation3 + $0x27c4] ss:$40 sps:$4 sm:$0xff]   ;;  %v21377_v57 = vld [vmem:[#allocation3 + $0x22c0] ss:$40 sps:$4 sm:$0xff]  }
 0x3e3   :  { %v23262_v61 = vpop.eup %23261 }
 0x3e4   :  { %v14425_v58 = vadd.f32 1.0, %v23262_v61  ;;  %13084 = vmatpush1.bf16.msra.mxu0 %v21359_v40  ;;  %v21380_v40 = vld [vmem:[#allocation3 + $0x27c0] ss:$40 sps:$4 sm:$0xff]   ;;  %v21386_v61 = vld [vmem:[#allocation3 + $0x2770] ss:$40 sps:$4 sm:$0xff]  }
 0x3e5   :  { %13127 = vmatpush1.bf16.msra.mxu1 %v21362_v62  ;;  %13085 = vmatprep.subr.bf16.mxu0 %v21367_v27  ;;  %v21385_v62 = vld [vmem:[#allocation3 + $0x2274] ss:$40 sps:$4 sm:$0xff]  }
 0x3e6   :  { %13128 = vmatprep.subr.bf16.mxu1 %v21370_v18  ;;  %23265 = vrcp.f32 %v14425_v58  ;;  %v21388_v27 = vld [vmem:[#allocation3 + $0x2774] ss:$40 sps:$4 sm:$0xff]   ;;  %v21383_v18 = vld [vmem:[#allocation3 + $0x2270] ss:$40 sps:$4 sm:$0xff]   ;;  %v21391_v58 = vld [vmem:[#allocation3 + $0x2224] ss:$40 sps:$4 sm:$0xff]  }
 0x3e7   :  { %v23264_v31 = vpop.eup %23263 }
 0x3e8   :  { %v14435_v19 = vadd.f32 1.0, %v23264_v31  ;;  %13086 = vmatpush1.bf16.msra.mxu0 %v21365_v25  ;;  %v21394_v25 = vld [vmem:[#allocation3 + $0x2724] ss:$40 sps:$4 sm:$0xff]   ;;  %v21392_v31 = vld [vmem:[#allocation3 + $0x2720] ss:$40 sps:$4 sm:$0xff]  }
 0x3e9   :  { %13129 = vmatpush1.bf16.msra.mxu1 %v21368_v7  ;;  %13087 = vmatprep.subr.bf16.mxu0 %v21373_v6 }
 0x3ea   :  { %13130 = vmatprep.subr.bf16.mxu1 %v21376_v60  ;;  %23267 = vrcp.f32 %v14435_v19  ;;  %v21389_v60 = vld [vmem:[#allocation3 + $0x2220] ss:$40 sps:$4 sm:$0xff]   ;;  %v21397_v19 = vld [vmem:[#allocation3 + $0x21d4] ss:$40 sps:$4 sm:$0xff]  }
 0x3ec   :  { %13088 = vmatpush1.bf16.msra.mxu0 %v21371_v38  ;;  %v21400_v38 = vld [vmem:[#allocation3 + $0x26d4] ss:$40 sps:$4 sm:$0xff]  }
 0x3ed   :  { %13131 = vmatpush1.bf16.msra.mxu1 %v21374_v12  ;;  %13089 = vmatprep.subr.bf16.mxu0 %v21379_v39 }
 0x3ee   :  { %13132 = vmatprep.subr.bf16.mxu1 %v21382_v26 }
 0x3f0   :  { %13090 = vmatpush2.bf16.msra.mxu0 %v21377_v57 }
 0x3f1   :  { %13133 = vmatpush2.bf16.msra.mxu1 %v21380_v40  ;;  %13091 = vmatprep.subr.bf16.mxu0 %v21385_v62  ;;  %v21395_v40 = vld [vmem:[#allocation3 + $0x21d0] ss:$40 sps:$4 sm:$0xff]  }
 0x3f2   :  { %13134 = vmatprep.subr.bf16.mxu1 %v21388_v27  ;;  %v21398_v62 = vld [vmem:[#allocation3 + $0x26d0] ss:$40 sps:$4 sm:$0xff]   ;;  %v21406_v27 = vld [vmem:[#allocation3 + $0x2684] ss:$40 sps:$4 sm:$0xff]  }
 0x3f3   :  { %v23266_v7 = vpop.eup %23265 }
 0x3f4   :  { %v14485_v6 = vmul.f32 %v23266_v7, %v23885_v23  ;;  %13092 = vmatpush2.bf16.msra.mxu0 %v21383_v18  ;;  %v21403_v23 = vld [vmem:[#allocation3 + $0x2184] ss:$40 sps:$4 sm:$0xff]  }
 0x3f5   :  { %13135 = vmatpush2.bf16.msra.mxu1 %v21386_v61  ;;  %13093 = vmatprep.subr.bf16.mxu0 %v21391_v58 }
 0x3f6   :  { %13136 = vmatprep.subr.bf16.mxu1 %v21394_v25  ;;  %v14618_v12 = vrot.slane %v14485_v6, 4  ;;  %v21401_v25 = vld [vmem:[#allocation3 + $0x2180] ss:$40 sps:$4 sm:$0xff]  }
 0x3f7   :  { %v23268_v39 = vpop.eup %23267 }
 0x3f8   :  { %v14619_v26 = vadd.f32 %v14618_v12, %v14485_v6  ;;  %v14495_v57 = vmul.f32 %v23268_v39, %v23891_v11  ;;  %13094 = vmatpush2.bf16.msra.mxu0 %v21389_v60  ;;  %v21409_v6 = vld [vmem:[#allocation3 + $0x2134] ss:$40 sps:$4 sm:$0xff]   ;;  %v14757_v60 = vrot.slane %v23772_v17, %v23777_v4  ;;  %v21407_v39 = vld [vmem:[#allocation3 + $0x2130] ss:$40 sps:$4 sm:$0xff]  }
 0x3f9   :  { %13137 = vmatpush2.bf16.msra.mxu1 %v21392_v31  ;;  %13095 = vmatprep.subr.bf16.mxu0 %v21397_v19  ;;  %v21412_v11 = vld [vmem:[#allocation3 + $0x2634] ss:$40 sps:$4 sm:$0xff]  }
 0x3fa   :  { %13138 = vmatprep.subr.bf16.mxu1 %v21400_v38  ;;  %v14620_v18 = vrot.slane %v14619_v26, 2  ;;  %v14678_v61 = vrot.slane %v14495_v57, 4  ;;  %v21421_v4 = vld [vmem:[#allocation3 + $0x2094] ss:$40 sps:$4 sm:$0xff]  }
 0x3fc   :  { %v14621_v7 = vadd.f32 %v14620_v18, %v14619_v26  ;;  %v14679_v58 = vadd.f32 %v14678_v61, %v14495_v57  ;;  %13096 = vmatpush2.bf16.msra.mxu0 %v21395_v40  ;;  %v21410_v26 = vld [vmem:[#allocation3 + $0x2630] ss:$40 sps:$4 sm:$0xff]   ;;  %v21415_v57 = vld [vmem:[#allocation3 + $0x20e4] ss:$40 sps:$4 sm:$0xff]   ;;  %v21413_v18 = vld [vmem:[#allocation3 + $0x20e0] ss:$40 sps:$4 sm:$0xff]  }
 0x3fd   :  { %13139 = vmatpush2.bf16.msra.mxu1 %v21398_v62  ;;  %13097 = vmatprep.subr.bf16.mxu0 %v21403_v23  ;;  %v21418_v40 = vld [vmem:[#allocation3 + $0x25e4] ss:$40 sps:$4 sm:$0xff]   ;;  %v21416_v61 = vld [vmem:[#allocation3 + $0x25e0] ss:$40 sps:$4 sm:$0xff]  }
 0x3fe   :  { %13140 = vmatprep.subr.bf16.mxu1 %v21406_v27  ;;  %v14622_v31 = vrot.slane %v14621_v7, 1  ;;  %v14680_v19 = vrot.slane %v14679_v58, 2 }
 0x400   :  { %v14623_v38 = vadd.f32 %v14622_v31, %v14621_v7  ;;  %v14681_v12 = vadd.f32 %v14680_v19, %v14679_v58  ;;  %13098 = vmatpush2.bf16.msra.mxu0 %v21401_v25  ;;  %v21424_v7 = vld [vmem:[#allocation3 + $0x2594] ss:$40 sps:$4 sm:$0xff]   ;;  %v21427_v19 = vld [vmem:[#allocation3 + $0x2a44] ss:$40 sps:$4 sm:$0xff]  }
 0x401   :  { %13141 = vmatpush2.bf16.msra.mxu1 %v21404_v52  ;;  %13099 = vmatprep.subr.bf16.mxu0 %v21409_v6  ;;  %v21419_v52 = vld [vmem:[#allocation3 + $0x2090] ss:$40 sps:$4 sm:$0xff]  }
 0x402   :  { %13142 = vmatprep.subr.bf16.mxu1 %v21412_v11  ;;  %v14798_v62 = vsub.f32 %v14623_v38, %v14757_v60  ;;  %v14682_v23 = vrot.slane %v14681_v12, 1  ;;  %v21422_v6 = vld [vmem:[#allocation3 + $0x2590] ss:$40 sps:$4 sm:$0xff]   ;;  %v25636_v11 = vsub.s32 4, %v23570_v63  ;;  %v21430_v38 = vld [vmem:[#allocation3 + $0x2f44] ss:$40 sps:$4 sm:$0xff]  }
 0x404   :  { %v14683_v27 = vadd.f32 %v14682_v23, %v14681_v12  ;;  %13100 = vmatpush2.bf16.msra.mxu0 %v21407_v39  ;;  %v14818_v58 = vmul.f32 0.25, %v14798_v62 }
 0x405   :  { %13143 = vmatpush2.bf16.msra.mxu1 %v21410_v26  ;;  %13101 = vmatprep.subr.bf16.mxu0 %v21415_v57  ;;  %v21425_v26 = vld [vmem:[#allocation3 + $0x2a40] ss:$40 sps:$4 sm:$0xff]  }
 0x406   :  { %13144 = vmatprep.subr.bf16.mxu1 %v21418_v40  ;;  %v14808_v25 = vsub.f32 %v14683_v27, %v14757_v60  ;;  %v14838_v12 = vpack.c.bf16 %v14818_v58, %v14818_v58  ;;  %v21428_v57 = vld [vmem:[#allocation3 + $0x2f40] ss:$40 sps:$4 sm:$0xff]   ;;  %v25637_v40 = vsub.s32 5, %v23570_v63  ;;  %v23907_v27 = vpop.f32.mrf.mxu1 }
 0x407   :  { %v23342_v60 = vld [vmem:[%s25624_s2] sm:$0xff]  ;;  %25672 = vst [vmem:[#allocation42_spill] sm:$0xff] %v23907_v27 }
 0x408   :  { %v14828_v31 = vmul.f32 0.25, %v14808_v25  ;;  %13102 = vmatpush2.bf16.msra.mxu0 %v21413_v18  ;;  %v2032_v62 = vrot.slane %v23342_v60, %v25636_v11  ;;  %v21433_v18 = vld [vmem:[#allocation3 + $0x29f4] ss:$40 sps:$4 sm:$0xff]   ;;  %v2036_v25 = vrot.slane %v23342_v60, %v25637_v40  ;;  %v21442_v60 = vld [vmem:[#allocation3 + $0x2ea4] ss:$40 sps:$4 sm:$0xff]  }
 0x409   :  { %13145 = vmatpush2.bf16.msra.mxu1 %v21416_v61  ;;  %13103 = vmatprep.subr.bf16.mxu0 %v21421_v4  ;;  %v23905_v4 = vpop.f32.mrf.mxu0  ;;  %v21436_v61 = vld [vmem:[#allocation3 + $0x2ef4] ss:$40 sps:$4 sm:$0xff]  }
 0x40a   :  { %13146 = vmatprep.subr.bf16.mxu1 %v21424_v7  ;;  %v14848_v39 = vpack.c.bf16 %v14828_v31, %v14828_v31  ;;  %25671 = vst [vmem:[#allocation41_spill] sm:$0xff] %v23905_v4  ;;  %v15220_v7 = vunpack.c.l.b16 %v14838_v12  ;;  %v21434_v31 = vld [vmem:[#allocation3 + $0x2ef0] ss:$40 sps:$4 sm:$0xff]   ;;  %v21437_v4 = vld [vmem:[#allocation3 + $0x29a0] ss:$40 sps:$4 sm:$0xff]  }
 0x40c   :  { %v15230_v23 = vunpack.c.l.b16 %v14848_v39  ;;  %13104 = vmatpush2.bf16.msra.mxu0 %v21419_v52  ;;  %v21431_v52 = vld [vmem:[#allocation3 + $0x29f0] ss:$40 sps:$4 sm:$0xff]  }
 0x40d   :  { %13147 = vmatpush2.bf16.msra.mxu1 %v21422_v6  ;;  %13159 = vmatprep.subr.bf16.mxu0 %v21427_v19 }
 0x40e   :  { %13202 = vmatprep.subr.bf16.mxu1 %v21430_v38  ;;  %v15243_v58 = vrot.slane %v15230_v23, 7  ;;  %v21439_v23 = vld [vmem:[#allocation3 + $0x29a4] ss:$40 sps:$4 sm:$0xff]  }
 0x40f   :  { %v12849_v6 = vpop.f32.mrf.mxu0  ;;  %13106 = vmatmul.mubr.bf16.vlgmr.msra.gmra.mxu0 %v23598_v15 }
 0x410   :  { %v12892_v39 = vpop.f32.mrf.mxu1  ;;  %13149 = vmatmul.mubr.bf16.vlgmr.msra.gmra.mxu1 %v23602_v16  ;;  %v12850_v11 = vadd.f32 %v12849_v6, %v2032_v62  ;;  %13160 = vmatpush1.bf16.msra.mxu0 %v21425_v26  ;;  %v23914_v19 = vsel %vm15239_vm0, %v15243_v58, %v15220_v7 }
 0x411   :  { %13203 = vmatpush1.bf16.msra.mxu1 %v21428_v57  ;;  %25673 = vst [vmem:[#allocation43_spill] sm:$0xff] %v23914_v19  ;;  %v12851_v38 = vpop.f32.mrf.mxu0  ;;  %13161 = vmatprep.subr.bf16.mxu0 %v21433_v18 }
 0x412   :  { %v12894_v12 = vpop.f32.mrf.mxu1  ;;  %13204 = vmatprep.subr.bf16.mxu1 %v21436_v61  ;;  %v23916_v40 = vadd.f32 %v12892_v39, %v12850_v11  ;;  %v12852_v27 = vadd.f32 %v12851_v38, %v2036_v25  ;;  %13191 = vmatprep.mubr.bf16.mxu0 %v23615_v46  ;;  %v21445_v61 = vld [vmem:[#allocation3 + $0x2954] ss:$40 sps:$4 sm:$0xff]  }
 0x413   :  { %13234 = vmatprep.mubr.bf16.mxu1 %v23619_v47  ;;  %v12853_v26 = vpop.f32.mrf.mxu0  ;;  %v21448_v11 = vld [vmem:[#allocation3 + $0x2e54] ss:$40 sps:$4 sm:$0xff]  }
 0x414   :  { %v12896_v57 = vpop.f32.mrf.mxu1  ;;  %v23920_v6 = vadd.f32 %v12894_v12, %v12852_v27  ;;  %v12854_v7 = vadd.f32 %v12853_v26, %v2032_v62  ;;  %13162 = vmatpush1.bf16.msra.mxu0 %v21431_v52  ;;  %v21451_v62 = vld [vmem:[#allocation3 + $0x2904] ss:$40 sps:$4 sm:$0xff]   ;;  %v21449_v52 = vld [vmem:[#allocation3 + $0x2900] ss:$40 sps:$4 sm:$0xff]   ;;  %v21457_v12 = vld [vmem:[#allocation3 + $0x28b4] ss:$40 sps:$4 sm:$0xff]  }
 0x415   :  { %13205 = vmatpush1.bf16.msra.mxu1 %v21434_v31  ;;  %v12855_v18 = vpop.f32.mrf.mxu0  ;;  %13163 = vmatprep.subr.bf16.mxu0 %v21439_v23  ;;  %v21454_v27 = vld [vmem:[#allocation3 + $0x2e04] ss:$40 sps:$4 sm:$0xff]   ;;  %v21452_v31 = vld [vmem:[#allocation3 + $0x2e00] ss:$40 sps:$4 sm:$0xff]   ;;  %v21460_v23 = vld [vmem:[#allocation3 + $0x2db4] ss:$40 sps:$4 sm:$0xff]  }
 0x416   :  { %13206 = vmatprep.subr.bf16.mxu1 %v21442_v60  ;;  %v23922_v58 = vadd.f32 %v12896_v57, %v12854_v7  ;;  %v12856_v39 = vadd.f32 %v12855_v18, %v2036_v25  ;;  %v12898_v38 = vpop.f32.mrf.mxu1  ;;  %v21455_v25 = vld [vmem:[#allocation3 + $0x28b0] ss:$40 sps:$4 sm:$0xff]   ;;  %v21461_v26 = vld [vmem:[#allocation3 + $0x2860] ss:$40 sps:$4 sm:$0xff]  }
 0x417   :  { %v21458_v60 = vld [vmem:[#allocation3 + $0x2db0] ss:$40 sps:$4 sm:$0xff]   ;;  %v21464_v57 = vld [vmem:[#allocation3 + $0x2d60] ss:$40 sps:$4 sm:$0xff]  }
 0x418   :  { %v23924_v19 = vadd.f32 %v12898_v38, %v12856_v39  ;;  %13164 = vmatpush1.bf16.msra.mxu0 %v21437_v4  ;;  %v21466_v4 = vld [vmem:[#allocation3 + $0x2d64] ss:$40 sps:$4 sm:$0xff]   ;;  %v21467_v7 = vld [vmem:[#allocation3 + $0x2810] ss:$40 sps:$4 sm:$0xff]   ;;  %v21473_v39 = vld [vmem:[#allocation3 + $0x2cc0] ss:$40 sps:$4 sm:$0xff]  }
 0x419   :  { %13207 = vmatpush1.bf16.msra.mxu1 %v21440_v55  ;;  %13165 = vmatprep.subr.bf16.mxu0 %v21445_v61  ;;  %v21463_v55 = vld [vmem:[#allocation3 + $0x2864] ss:$40 sps:$4 sm:$0xff]   ;;  %v21470_v18 = vld [vmem:[#allocation3 + $0x2d10] ss:$40 sps:$4 sm:$0xff]   ;;  %v21476_v38 = vld [vmem:[#allocation3 + $0x31c0] ss:$40 sps:$4 sm:$0xff]  }
 0x41a   :  { %13208 = vmatprep.subr.bf16.mxu1 %v21448_v11  ;;  %v21475_v61 = vld [vmem:[#allocation3 + $0x2cc4] ss:$40 sps:$4 sm:$0xff]  }
 0x41b   :  { %v21478_v11 = vld [vmem:[#allocation3 + $0x31c4] ss:$40 sps:$4 sm:$0xff]  }
 0x41c   :  { %13166 = vmatpush1.bf16.msra.mxu0 %v21443_v14  ;;  %v21472_v14 = vld [vmem:[#allocation3 + $0x2d14] ss:$40 sps:$4 sm:$0xff]  }
 0x41d   :  { %13209 = vmatpush1.bf16.msra.mxu1 %v21446_v51  ;;  %13167 = vmatprep.subr.bf16.mxu0 %v21451_v62  ;;  %v21469_v51 = vld [vmem:[#allocation3 + $0x2814] ss:$40 sps:$4 sm:$0xff]  }
 0x41e   :  { %13210 = vmatprep.subr.bf16.mxu1 %v21454_v27  ;;  %v21481_v62 = vld [vmem:[#allocation3 + $0x2c74] ss:$40 sps:$4 sm:$0xff]  }
 0x41f   :  { %v21484_v27 = vld [vmem:[#allocation3 + $0x3174] ss:$40 sps:$4 sm:$0xff]  }
 0x420   :  { %13168 = vmatpush1.bf16.msra.mxu0 %v21449_v52  ;;  %v21479_v52 = vld [vmem:[#allocation3 + $0x2c70] ss:$40 sps:$4 sm:$0xff]  }
 0x421   :  { %13211 = vmatpush1.bf16.msra.mxu1 %v21452_v31  ;;  %13169 = vmatprep.subr.bf16.mxu0 %v21457_v12  ;;  %v21482_v31 = vld [vmem:[#allocation3 + $0x3170] ss:$40 sps:$4 sm:$0xff]   ;;  %v21487_v12 = vld [vmem:[#allocation3 + $0x2c24] ss:$40 sps:$4 sm:$0xff]  }
 0x422   :  { %13212 = vmatprep.subr.bf16.mxu1 %v21460_v23  ;;  %v21490_v23 = vld [vmem:[#allocation3 + $0x3124] ss:$40 sps:$4 sm:$0xff]  }
 0x424   :  { %13170 = vmatpush1.bf16.msra.mxu0 %v21455_v25  ;;  %v21485_v25 = vld [vmem:[#allocation3 + $0x2c20] ss:$40 sps:$4 sm:$0xff]  }
 0x425   :  { %13213 = vmatpush1.bf16.msra.mxu1 %v21458_v60  ;;  %13171 = vmatprep.subr.bf16.mxu0 %v21463_v55  ;;  %v21488_v60 = vld [vmem:[#allocation3 + $0x3120] ss:$40 sps:$4 sm:$0xff]   ;;  %v21493_v55 = vld [vmem:[#allocation3 + $0x2bd4] ss:$40 sps:$4 sm:$0xff]  }
 0x426   :  { %13214 = vmatprep.subr.bf16.mxu1 %v21466_v4  ;;  %v21496_v4 = vld [vmem:[#allocation3 + $0x30d4] ss:$40 sps:$4 sm:$0xff]  }
 0x428   :  { %13172 = vmatpush1.bf16.msra.mxu0 %v21461_v26  ;;  %v21491_v26 = vld [vmem:[#allocation3 + $0x2bd0] ss:$40 sps:$4 sm:$0xff]  }
 0x429   :  { %13215 = vmatpush1.bf16.msra.mxu1 %v21464_v57  ;;  %13173 = vmatprep.subr.bf16.mxu0 %v21469_v51  ;;  %v21494_v57 = vld [vmem:[#allocation3 + $0x30d0] ss:$40 sps:$4 sm:$0xff]   ;;  %v21499_v51 = vld [vmem:[#allocation3 + $0x2b84] ss:$40 sps:$4 sm:$0xff]  }
 0x42a   :  { %13216 = vmatprep.subr.bf16.mxu1 %v21472_v14  ;;  %v21502_v14 = vld [vmem:[#allocation3 + $0x3084] ss:$40 sps:$4 sm:$0xff]  }
 0x42c   :  { %13174 = vmatpush1.bf16.msra.mxu0 %v21467_v7  ;;  %v21497_v7 = vld [vmem:[#allocation3 + $0x2b80] ss:$40 sps:$4 sm:$0xff]  }
 0x42d   :  { %13217 = vmatpush1.bf16.msra.mxu1 %v21470_v18  ;;  %13175 = vmatprep.subr.bf16.mxu0 %v21475_v61  ;;  %v21500_v18 = vld [vmem:[#allocation3 + $0x3080] ss:$40 sps:$4 sm:$0xff]   ;;  %v21505_v61 = vld [vmem:[#allocation3 + $0x2b34] ss:$40 sps:$4 sm:$0xff]  }
 0x42e   :  { %13218 = vmatprep.subr.bf16.mxu1 %v21478_v11  ;;  %v21508_v11 = vld [vmem:[#allocation3 + $0x3034] ss:$40 sps:$4 sm:$0xff]  }
 0x430   :  { %13176 = vmatpush2.bf16.msra.mxu0 %v21473_v39  ;;  %v21503_v39 = vld [vmem:[#allocation3 + $0x2b30] ss:$40 sps:$4 sm:$0xff]  }
 0x431   :  { %13219 = vmatpush2.bf16.msra.mxu1 %v21476_v38  ;;  %13177 = vmatprep.subr.bf16.mxu0 %v21481_v62  ;;  %v21506_v38 = vld [vmem:[#allocation3 + $0x3030] ss:$40 sps:$4 sm:$0xff]   ;;  %v21511_v62 = vld [vmem:[#allocation3 + $0x2ae4] ss:$40 sps:$4 sm:$0xff]  }
 0x432   :  { %13220 = vmatprep.subr.bf16.mxu1 %v21484_v27  ;;  %v21514_v27 = vld [vmem:[#allocation3 + $0x2fe4] ss:$40 sps:$4 sm:$0xff]  }
 0x434   :  { %13178 = vmatpush2.bf16.msra.mxu0 %v21479_v52  ;;  %v21509_v52 = vld [vmem:[#allocation3 + $0x2ae0] ss:$40 sps:$4 sm:$0xff]  }
 0x435   :  { %13221 = vmatpush2.bf16.msra.mxu1 %v21482_v31  ;;  %13179 = vmatprep.subr.bf16.mxu0 %v21487_v12  ;;  %v21512_v31 = vld [vmem:[#allocation3 + $0x2fe0] ss:$40 sps:$4 sm:$0xff]   ;;  %v21517_v12 = vld [vmem:[#allocation3 + $0x2a94] ss:$40 sps:$4 sm:$0xff]  }
 0x436   :  { %13222 = vmatprep.subr.bf16.mxu1 %v21490_v23  ;;  %v21520_v23 = vld [vmem:[#allocation3 + $0x2f94] ss:$40 sps:$4 sm:$0xff]  }
 0x438   :  { %13180 = vmatpush2.bf16.msra.mxu0 %v21485_v25  ;;  %v21515_v25 = vld [vmem:[#allocation3 + $0x2a90] ss:$40 sps:$4 sm:$0xff]  }
 0x439   :  { %13223 = vmatpush2.bf16.msra.mxu1 %v21488_v60  ;;  %13181 = vmatprep.subr.bf16.mxu0 %v21493_v55  ;;  %v21518_v60 = vld [vmem:[#allocation3 + $0x2f90] ss:$40 sps:$4 sm:$0xff]   ;;  %v21523_v55 = vld [vmem:[#allocation3 + $0x3444] ss:$40 sps:$4 sm:$0xff]  }
 0x43a   :  { %13224 = vmatprep.subr.bf16.mxu1 %v21496_v4  ;;  %v21526_v4 = vld [vmem:[#allocation3 + $0x3944] ss:$40 sps:$4 sm:$0xff]  }
 0x43c   :  { %13182 = vmatpush2.bf16.msra.mxu0 %v21491_v26  ;;  %v21521_v26 = vld [vmem:[#allocation3 + $0x3440] ss:$40 sps:$4 sm:$0xff]  }
 0x43d   :  { %13225 = vmatpush2.bf16.msra.mxu1 %v21494_v57  ;;  %13183 = vmatprep.subr.bf16.mxu0 %v21499_v51  ;;  %v21524_v57 = vld [vmem:[#allocation3 + $0x3940] ss:$40 sps:$4 sm:$0xff]   ;;  %v21529_v51 = vld [vmem:[#allocation3 + $0x33f4] ss:$40 sps:$4 sm:$0xff]  }
 0x43e   :  { %13226 = vmatprep.subr.bf16.mxu1 %v21502_v14  ;;  %v21532_v14 = vld [vmem:[#allocation3 + $0x38f4] ss:$40 sps:$4 sm:$0xff]  }
 0x440   :  { %13184 = vmatpush2.bf16.msra.mxu0 %v21497_v7  ;;  %v21527_v7 = vld [vmem:[#allocation3 + $0x33f0] ss:$40 sps:$4 sm:$0xff]  }
 0x441   :  { %13227 = vmatpush2.bf16.msra.mxu1 %v21500_v18  ;;  %13185 = vmatprep.subr.bf16.mxu0 %v21505_v61  ;;  %v21530_v18 = vld [vmem:[#allocation3 + $0x38f0] ss:$40 sps:$4 sm:$0xff]  }
 0x442   :  { %13228 = vmatprep.subr.bf16.mxu1 %v21508_v11 }
 0x444   :  { %13186 = vmatpush2.bf16.msra.mxu0 %v21503_v39 }
 0x445   :  { %13229 = vmatpush2.bf16.msra.mxu1 %v21506_v38  ;;  %13187 = vmatprep.subr.bf16.mxu0 %v21511_v62 }
 0x446   :  { %13230 = vmatprep.subr.bf16.mxu1 %v21514_v27  ;;  %v21535_v27 = vld [vmem:[#allocation3 + $0x33a4] ss:$40 sps:$4 sm:$0xff]  }
 0x448   :  { %13188 = vmatpush2.bf16.msra.mxu0 %v21509_v52  ;;  %v21538_v52 = vld [vmem:[#allocation3 + $0x38a4] ss:$40 sps:$4 sm:$0xff]  }
 0x449   :  { %13231 = vmatpush2.bf16.msra.mxu1 %v21512_v31  ;;  %13189 = vmatprep.subr.bf16.mxu0 %v21517_v12 }
 0x44a   :  { %13232 = vmatprep.subr.bf16.mxu1 %v21520_v23  ;;  %v21533_v23 = vld [vmem:[#allocation3 + $0x33a0] ss:$40 sps:$4 sm:$0xff]  }
 0x44c   :  { %13190 = vmatpush2.bf16.msra.mxu0 %v21515_v25  ;;  %v21536_v25 = vld [vmem:[#allocation3 + $0x38a0] ss:$40 sps:$4 sm:$0xff]  }
 0x44d   :  { %13233 = vmatpush2.bf16.msra.mxu1 %v21518_v60  ;;  %13245 = vmatprep.subr.bf16.mxu0 %v21523_v55 }
 0x44e   :  { %13288 = vmatprep.subr.bf16.mxu1 %v21526_v4 }
 0x44f   :  { %v12935_v61 = vpop.f32.mrf.mxu0  ;;  %13192 = vmatmul.mubr.bf16.vlgmr.msra.gmra.mxu0 %v23654_v32 }
 0x450   :  { %v12978_v11 = vpop.f32.mrf.mxu1  ;;  %13235 = vmatmul.mubr.bf16.vlgmr.msra.gmra.mxu1 %v23658_v35  ;;  %v12936_v39 = vadd.f32 %v12935_v61, %v23916_v40  ;;  %13246 = vmatpush1.bf16.msra.mxu0 %v21521_v26  ;;  %v21541_v26 = vld [vmem:[#allocation3 + $0x3354] ss:$40 sps:$4 sm:$0xff]   ;;  %v21547_v61 = vld [vmem:[#allocation3 + $0x3304] ss:$40 sps:$4 sm:$0xff]  }
 0x451   :  { %13289 = vmatpush1.bf16.msra.mxu1 %v21524_v57  ;;  %v12937_v38 = vpop.f32.mrf.mxu0  ;;  %13247 = vmatprep.subr.bf16.mxu0 %v21529_v51  ;;  %v21544_v57 = vld [vmem:[#allocation3 + $0x3854] ss:$40 sps:$4 sm:$0xff]  }
 0x452   :  { %v12980_v62 = vpop.f32.mrf.mxu1  ;;  %13290 = vmatprep.subr.bf16.mxu1 %v21532_v14  ;;  %v23929_v31 = vadd.f32 %v12978_v11, %v12936_v39  ;;  %v12938_v12 = vadd.f32 %v12937_v38, %v23920_v6  ;;  %13277 = vmatprep.mubr.bf16.mxu0 %v23666_v10  ;;  %v21539_v6 = vld [vmem:[#allocation3 + $0x3350] ss:$40 sps:$4 sm:$0xff]   ;;  %v21550_v11 = vld [vmem:[#allocation3 + $0x3804] ss:$40 sps:$4 sm:$0xff]   ;;  %v21556_v39 = vld [vmem:[#allocation3 + $0x37b4] ss:$40 sps:$4 sm:$0xff]  }
 0x453   :  { %13320 = vmatprep.mubr.bf16.mxu1 %v23670_v13  ;;  %v12939_v60 = vpop.f32.mrf.mxu0  ;;  %v21542_v14 = vld [vmem:[#allocation3 + $0x3850] ss:$40 sps:$4 sm:$0xff]  }
 0x454   :  { %v23934_v40 = vadd.f32 %v12980_v62, %v12938_v12  ;;  %v12940_v55 = vadd.f32 %v12939_v60, %v23922_v58  ;;  %13248 = vmatpush1.bf16.msra.mxu0 %v21527_v7  ;;  %v12982_v4 = vpop.f32.mrf.mxu1  ;;  %v21545_v58 = vld [vmem:[#allocation3 + $0x3300] ss:$40 sps:$4 sm:$0xff]   ;;  %v21551_v38 = vld [vmem:[#allocation3 + $0x32b0] ss:$40 sps:$4 sm:$0xff]   ;;  %v21568_v60 = vld [vmem:[#allocation3 + $0x3714] ss:$40 sps:$4 sm:$0xff]  }
 0x455   :  { %13291 = vmatpush1.bf16.msra.mxu1 %v21530_v18  ;;  %13249 = vmatprep.subr.bf16.mxu0 %v21535_v27  ;;  %v21548_v7 = vld [vmem:[#allocation3 + $0x3800] ss:$40 sps:$4 sm:$0xff]   ;;  %v21553_v18 = vld [vmem:[#allocation3 + $0x32b4] ss:$40 sps:$4 sm:$0xff]   ;;  %v21554_v62 = vld [vmem:[#allocation3 + $0x37b0] ss:$40 sps:$4 sm:$0xff]  }
 0x456   :  { %13292 = vmatprep.subr.bf16.mxu1 %v21538_v52  ;;  %v23937_v51 = vadd.f32 %v12982_v4, %v12940_v55  ;;  %v21559_v27 = vld [vmem:[#allocation3 + $0x3264] ss:$40 sps:$4 sm:$0xff]   ;;  %v21557_v12 = vld [vmem:[#allocation3 + $0x3260] ss:$40 sps:$4 sm:$0xff]   ;;  %v21563_v55 = vld [vmem:[#allocation3 + $0x3210] ss:$40 sps:$4 sm:$0xff]  }
 0x457   :  { %v21562_v52 = vld [vmem:[#allocation3 + $0x3764] ss:$40 sps:$4 sm:$0xff]   ;;  %v21566_v4 = vld [vmem:[#allocation3 + $0x3710] ss:$40 sps:$4 sm:$0xff]  }
 0x458   :  { %13250 = vmatpush1.bf16.msra.mxu0 %v21533_v23  ;;  %v21560_v23 = vld [vmem:[#allocation3 + $0x3760] ss:$40 sps:$4 sm:$0xff]  }
 0x459   :  { %13293 = vmatpush1.bf16.msra.mxu1 %v21536_v25  ;;  %13251 = vmatprep.subr.bf16.mxu0 %v21541_v26  ;;  %v21565_v25 = vld [vmem:[#allocation3 + $0x3214] ss:$40 sps:$4 sm:$0xff]   ;;  %v21571_v26 = vld [vmem:[#allocation3 + $0x36c4] ss:$40 sps:$4 sm:$0xff]  }
 0x45a   :  { %13294 = vmatprep.subr.bf16.mxu1 %v21544_v57  ;;  %v21574_v57 = vld [vmem:[#allocation3 + $0x3bc4] ss:$40 sps:$4 sm:$0xff]  }
 0x45c   :  { %13252 = vmatpush1.bf16.msra.mxu0 %v21539_v6  ;;  %v21569_v6 = vld [vmem:[#allocation3 + $0x36c0] ss:$40 sps:$4 sm:$0xff]  }
 0x45d   :  { %13295 = vmatpush1.bf16.msra.mxu1 %v21542_v14  ;;  %13253 = vmatprep.subr.bf16.mxu0 %v21547_v61  ;;  %v21572_v14 = vld [vmem:[#allocation3 + $0x3bc0] ss:$40 sps:$4 sm:$0xff]   ;;  %v21577_v61 = vld [vmem:[#allocation3 + $0x3674] ss:$40 sps:$4 sm:$0xff]  }
 0x45e   :  { %13296 = vmatprep.subr.bf16.mxu1 %v21550_v11  ;;  %v21580_v11 = vld [vmem:[#allocation3 + $0x3b74] ss:$40 sps:$4 sm:$0xff]  }
 0x460   :  { %13254 = vmatpush1.bf16.msra.mxu0 %v21545_v58  ;;  %v21575_v58 = vld [vmem:[#allocation3 + $0x3670] ss:$40 sps:$4 sm:$0xff]  }
 0x461   :  { %13297 = vmatpush1.bf16.msra.mxu1 %v21548_v7  ;;  %13255 = vmatprep.subr.bf16.mxu0 %v21553_v18  ;;  %v21578_v7 = vld [vmem:[#allocation3 + $0x3b70] ss:$40 sps:$4 sm:$0xff]   ;;  %v21583_v18 = vld [vmem:[#allocation3 + $0x3624] ss:$40 sps:$4 sm:$0xff]  }
 0x462   :  { %13298 = vmatprep.subr.bf16.mxu1 %v21556_v39  ;;  %v21586_v39 = vld [vmem:[#allocation3 + $0x3b24] ss:$40 sps:$4 sm:$0xff]  }
 0x464   :  { %13256 = vmatpush1.bf16.msra.mxu0 %v21551_v38  ;;  %v21581_v38 = vld [vmem:[#allocation3 + $0x3620] ss:$40 sps:$4 sm:$0xff]  }
 0x465   :  { %13299 = vmatpush1.bf16.msra.mxu1 %v21554_v62  ;;  %13257 = vmatprep.subr.bf16.mxu0 %v21559_v27  ;;  %v21584_v62 = vld [vmem:[#allocation3 + $0x3b20] ss:$40 sps:$4 sm:$0xff]   ;;  %v21589_v27 = vld [vmem:[#allocation3 + $0x35d4] ss:$40 sps:$4 sm:$0xff]  }
 0x466   :  { %13300 = vmatprep.subr.bf16.mxu1 %v21562_v52  ;;  %v21592_v52 = vld [vmem:[#allocation3 + $0x3ad4] ss:$40 sps:$4 sm:$0xff]  }
 0x468   :  { %13258 = vmatpush1.bf16.msra.mxu0 %v21557_v12  ;;  %v21587_v12 = vld [vmem:[#allocation3 + $0x35d0] ss:$40 sps:$4 sm:$0xff]  }
 0x469   :  { %13301 = vmatpush1.bf16.msra.mxu1 %v21560_v23  ;;  %13259 = vmatprep.subr.bf16.mxu0 %v21565_v25  ;;  %v21590_v23 = vld [vmem:[#allocation3 + $0x3ad0] ss:$40 sps:$4 sm:$0xff]   ;;  %v21595_v25 = vld [vmem:[#allocation3 + $0x3584] ss:$40 sps:$4 sm:$0xff]  }
 0x46a   :  { %13302 = vmatprep.subr.bf16.mxu1 %v21568_v60  ;;  %v21598_v60 = vld [vmem:[#allocation3 + $0x3a84] ss:$40 sps:$4 sm:$0xff]  }
 0x46c   :  { %13260 = vmatpush1.bf16.msra.mxu0 %v21563_v55  ;;  %v21593_v55 = vld [vmem:[#allocation3 + $0x3580] ss:$40 sps:$4 sm:$0xff]  }
 0x46d   :  { %13303 = vmatpush1.bf16.msra.mxu1 %v21566_v4  ;;  %13261 = vmatprep.subr.bf16.mxu0 %v21571_v26  ;;  %v21596_v4 = vld [vmem:[#allocation3 + $0x3a80] ss:$40 sps:$4 sm:$0xff]   ;;  %v21601_v26 = vld [vmem:[#allocation3 + $0x3534] ss:$40 sps:$4 sm:$0xff]  }
 0x46e   :  { %13304 = vmatprep.subr.bf16.mxu1 %v21574_v57  ;;  %v21604_v57 = vld [vmem:[#allocation3 + $0x3a34] ss:$40 sps:$4 sm:$0xff]  }
 0x470   :  { %13262 = vmatpush2.bf16.msra.mxu0 %v21569_v6  ;;  %v21599_v6 = vld [vmem:[#allocation3 + $0x3530] ss:$40 sps:$4 sm:$0xff]  }
 0x471   :  { %13305 = vmatpush2.bf16.msra.mxu1 %v21572_v14  ;;  %13263 = vmatprep.subr.bf16.mxu0 %v21577_v61  ;;  %v21602_v14 = vld [vmem:[#allocation3 + $0x3a30] ss:$40 sps:$4 sm:$0xff]   ;;  %v21607_v61 = vld [vmem:[#allocation3 + $0x34e4] ss:$40 sps:$4 sm:$0xff]  }
 0x472   :  { %13306 = vmatprep.subr.bf16.mxu1 %v21580_v11  ;;  %v21610_v11 = vld [vmem:[#allocation3 + $0x39e4] ss:$40 sps:$4 sm:$0xff]  }
 0x474   :  { %13264 = vmatpush2.bf16.msra.mxu0 %v21575_v58  ;;  %v21605_v58 = vld [vmem:[#allocation3 + $0x34e0] ss:$40 sps:$4 sm:$0xff]  }
 0x475   :  { %13307 = vmatpush2.bf16.msra.mxu1 %v21578_v7  ;;  %13265 = vmatprep.subr.bf16.mxu0 %v21583_v18  ;;  %v21608_v7 = vld [vmem:[#allocation3 + $0x39e0] ss:$40 sps:$4 sm:$0xff]   ;;  %v21613_v18 = vld [vmem:[#allocation3 + $0x3494] ss:$40 sps:$4 sm:$0xff]  }
 0x476   :  { %13308 = vmatprep.subr.bf16.mxu1 %v21586_v39  ;;  %v21616_v39 = vld [vmem:[#allocation3 + $0x3994] ss:$40 sps:$4 sm:$0xff]  }
 0x478   :  { %13266 = vmatpush2.bf16.msra.mxu0 %v21581_v38  ;;  %v21611_v38 = vld [vmem:[#allocation3 + $0x3490] ss:$40 sps:$4 sm:$0xff]  }
 0x479   :  { %13309 = vmatpush2.bf16.msra.mxu1 %v21584_v62  ;;  %13267 = vmatprep.subr.bf16.mxu0 %v21589_v27  ;;  %v21614_v62 = vld [vmem:[#allocation3 + $0x3990] ss:$40 sps:$4 sm:$0xff]   ;;  %v21619_v27 = vld [vmem:[#allocation3 + $0x24c] ss:$40 sps:$4 sm:$0xff]  }
 0x47a   :  { %13310 = vmatprep.subr.bf16.mxu1 %v21592_v52  ;;  %v21622_v52 = vld [vmem:[#allocation3 + $0x74c] ss:$40 sps:$4 sm:$0xff]  }
 0x47c   :  { %13268 = vmatpush2.bf16.msra.mxu0 %v21587_v12  ;;  %v21617_v12 = vld [vmem:[#allocation3 + $0x248] ss:$40 sps:$4 sm:$0xff]  }
 0x47d   :  { %13311 = vmatpush2.bf16.msra.mxu1 %v21590_v23  ;;  %13269 = vmatprep.subr.bf16.mxu0 %v21595_v25  ;;  %v21620_v23 = vld [vmem:[#allocation3 + $0x748] ss:$40 sps:$4 sm:$0xff]   ;;  %v23939_v25 = vpop.f32.mrf.mxu0 }
 0x47e   :  { %13312 = vmatprep.subr.bf16.mxu1 %v21598_v60  ;;  %v23941_v60 = vpop.f32.mrf.mxu1 }
 0x480   :  { %13270 = vmatpush2.bf16.msra.mxu0 %v21593_v55  ;;  %v21625_v55 = vld [vmem:[#allocation3 + $0x1fc] ss:$40 sps:$4 sm:$0xff]  }
 0x481   :  { %13313 = vmatpush2.bf16.msra.mxu1 %v21596_v4  ;;  %13271 = vmatprep.subr.bf16.mxu0 %v21601_v26  ;;  %v21628_v4 = vld [vmem:[#allocation3 + $0x6fc] ss:$40 sps:$4 sm:$0xff]   ;;  %v21623_v26 = vld [vmem:[#allocation3 + $0x1f8] ss:$40 sps:$4 sm:$0xff]  }
 0x482   :  { %13314 = vmatprep.subr.bf16.mxu1 %v21604_v57  ;;  %v21626_v57 = vld [vmem:[#allocation3 + $0x6f8] ss:$40 sps:$4 sm:$0xff]  }
 0x484   :  { %13272 = vmatpush2.bf16.msra.mxu0 %v21599_v6 }
 0x485   :  { %13315 = vmatpush2.bf16.msra.mxu1 %v21602_v14  ;;  %13273 = vmatprep.subr.bf16.mxu0 %v21607_v61 }
 0x486   :  { %13316 = vmatprep.subr.bf16.mxu1 %v21610_v11 }
 0x488   :  { %13274 = vmatpush2.bf16.msra.mxu0 %v21605_v58 }
 0x489   :  { %13317 = vmatpush2.bf16.msra.mxu1 %v21608_v7  ;;  %13275 = vmatprep.subr.bf16.mxu0 %v21613_v18  ;;  %v21631_v7 = vld [vmem:[#allocation3 + $0x1ac] ss:$40 sps:$4 sm:$0xff]  }
 0x48a   :  { %13318 = vmatprep.subr.bf16.mxu1 %v21616_v39  ;;  %v21634_v18 = vld [vmem:[#allocation3 + $0x6ac] ss:$40 sps:$4 sm:$0xff]  }
 0x48c   :  { %13276 = vmatpush2.bf16.msra.mxu0 %v21611_v38 }
 0x48d   :  { %13319 = vmatpush2.bf16.msra.mxu1 %v21614_v62  ;;  %13331 = vmatprep.subr.bf16.mxu0 %v21619_v27  ;;  %v21629_v62 = vld [vmem:[#allocation3 + $0x1a8] ss:$40 sps:$4 sm:$0xff]  }
 0x48e   :  { %13374 = vmatprep.subr.bf16.mxu1 %v21622_v52  ;;  %v21632_v27 = vld [vmem:[#allocation3 + $0x6a8] ss:$40 sps:$4 sm:$0xff]  }
 0x48f   :  { %v13021_v6 = vpop.f32.mrf.mxu0  ;;  %13278 = vmatmul.mubr.bf16.vlgmr.msra.gmra.mxu0 %v23687_v0 }
 0x490   :  { %v13064_v14 = vpop.f32.mrf.mxu1  ;;  %13321 = vmatmul.mubr.bf16.vlgmr.msra.gmra.mxu1 %v23691_v1  ;;  %v13022_v61 = vadd.f32 %v13021_v6, %v23929_v31  ;;  %13332 = vmatpush1.bf16.msra.mxu0 %v21617_v12 }
 0x491   :  { %13375 = vmatpush1.bf16.msra.mxu1 %v21620_v23  ;;  %v13023_v11 = vpop.f32.mrf.mxu0  ;;  %13333 = vmatprep.subr.bf16.mxu0 %v21625_v55  ;;  %v21637_v55 = vld [vmem:[#allocation3 + $0x15c] ss:$40 sps:$4 sm:$0xff]  }
 0x492   :  { %v13066_v58 = vpop.f32.mrf.mxu1  ;;  %13376 = vmatprep.subr.bf16.mxu1 %v21628_v4  ;;  %v23946_v39 = vadd.f32 %v13064_v14, %v13022_v61  ;;  %v13024_v38 = vadd.f32 %v13023_v11, %v23934_v40  ;;  %13363 = vmatprep.mubr.bf16.mxu0 %v23448_v53  ;;  %v21640_v4 = vld [vmem:[#allocation3 + $0x65c] ss:$40 sps:$4 sm:$0xff]   ;;  %v21635_v40 = vld [vmem:[#allocation3 + $0x158] ss:$40 sps:$4 sm:$0xff]   ;;  %v21643_v61 = vld [vmem:[#allocation3 + $0x10c] ss:$40 sps:$4 sm:$0xff]  }
 0x493   :  { %13406 = vmatprep.mubr.bf16.mxu1 %v23450_v54  ;;  %v13025_v52 = vpop.f32.mrf.mxu0  ;;  %v21638_v14 = vld [vmem:[#allocation3 + $0x658] ss:$40 sps:$4 sm:$0xff]   ;;  %v21646_v11 = vld [vmem:[#allocation3 + $0x60c] ss:$40 sps:$4 sm:$0xff]  }
 0x494   :  { %v23951_v31 = vadd.f32 %v13066_v58, %v13024_v38  ;;  %v13026_v12 = vadd.f32 %v13025_v52, %v23937_v51  ;;  %13334 = vmatpush1.bf16.msra.mxu0 %v21623_v26  ;;  %v13068_v23 = vpop.f32.mrf.mxu1  ;;  %v21641_v51 = vld [vmem:[#allocation3 + $0x108] ss:$40 sps:$4 sm:$0xff]   ;;  %v21652_v58 = vld [vmem:[#allocation3 + $0x5bc] ss:$40 sps:$4 sm:$0xff]   ;;  %v21655_v38 = vld [vmem:[#allocation3 + $0x6c] ss:$40 sps:$4 sm:$0xff]  }
 0x495   :  { %13377 = vmatpush1.bf16.msra.mxu1 %v21626_v57  ;;  %13335 = vmatprep.subr.bf16.mxu0 %v21631_v7  ;;  %v21644_v26 = vld [vmem:[#allocation3 + $0x608] ss:$40 sps:$4 sm:$0xff]   ;;  %v21649_v57 = vld [vmem:[#allocation3 + $0xbc] ss:$40 sps:$4 sm:$0xff]   ;;  %v21647_v7 = vld [vmem:[#allocation3 + $0xb8] ss:$40 sps:$4 sm:$0xff]  }
 0x496   :  { %13378 = vmatprep.subr.bf16.mxu1 %v21634_v18  ;;  %v23954_v6 = vadd.f32 %v13068_v23, %v13026_v12  ;;  %v21650_v18 = vld [vmem:[#allocation3 + $0x5b8] ss:$40 sps:$4 sm:$0xff]   ;;  %v21656_v52 = vld [vmem:[#allocation3 + $0x568] ss:$40 sps:$4 sm:$0xff]   ;;  %v21661_v12 = vld [vmem:[#allocation3 + $0x1c] ss:$40 sps:$4 sm:$0xff]  }
 0x497   :  { %v21664_v23 = vld [vmem:[#allocation3 + $0x51c] ss:$40 sps:$4 sm:$0xff]  }
 0x498   :  { %13336 = vmatpush1.bf16.msra.mxu0 %v21629_v62  ;;  %v21658_v62 = vld [vmem:[#allocation3 + $0x56c] ss:$40 sps:$4 sm:$0xff]  }
 0x499   :  { %13379 = vmatpush1.bf16.msra.mxu1 %v21632_v27  ;;  %13337 = vmatprep.subr.bf16.mxu0 %v21637_v55  ;;  %v21653_v27 = vld [vmem:[#allocation3 + $0x68] ss:$40 sps:$4 sm:$0xff]   ;;  %v21659_v55 = vld [vmem:[#allocation3 + $0x18] ss:$40 sps:$4 sm:$0xff]  }
 0x49a   :  { %13380 = vmatprep.subr.bf16.mxu1 %v21640_v4  ;;  %v21662_v4 = vld [vmem:[#allocation3 + $0x518] ss:$40 sps:$4 sm:$0xff]  }
 0x49c   :  { %13338 = vmatpush1.bf16.msra.mxu0 %v21635_v40  ;;  %v21667_v40 = vld [vmem:[#allocation3 + $0x4cc] ss:$40 sps:$4 sm:$0xff]  }
 0x49d   :  { %13381 = vmatpush1.bf16.msra.mxu1 %v21638_v14  ;;  %13339 = vmatprep.subr.bf16.mxu0 %v21643_v61  ;;  %v21670_v14 = vld [vmem:[#allocation3 + $0x9cc] ss:$40 sps:$4 sm:$0xff]   ;;  %v21665_v61 = vld [vmem:[#allocation3 + $0x4c8] ss:$40 sps:$4 sm:$0xff]  }
 0x49e   :  { %13382 = vmatprep.subr.bf16.mxu1 %v21646_v11  ;;  %v21668_v11 = vld [vmem:[#allocation3 + $0x9c8] ss:$40 sps:$4 sm:$0xff]  }
 0x4a0   :  { %13340 = vmatpush1.bf16.msra.mxu0 %v21641_v51  ;;  %v21673_v51 = vld [vmem:[#allocation3 + $0x47c] ss:$40 sps:$4 sm:$0xff]  }
 0x4a1   :  { %13383 = vmatpush1.bf16.msra.mxu1 %v21644_v26  ;;  %13341 = vmatprep.subr.bf16.mxu0 %v21649_v57  ;;  %v21676_v26 = vld [vmem:[#allocation3 + $0x97c] ss:$40 sps:$4 sm:$0xff]   ;;  %v21671_v57 = vld [vmem:[#allocation3 + $0x478] ss:$40 sps:$4 sm:$0xff]  }
 0x4a2   :  { %13384 = vmatprep.subr.bf16.mxu1 %v21652_v58  ;;  %v21674_v58 = vld [vmem:[#allocation3 + $0x978] ss:$40 sps:$4 sm:$0xff]  }
 0x4a4   :  { %13342 = vmatpush1.bf16.msra.mxu0 %v21647_v7  ;;  %v21679_v7 = vld [vmem:[#allocation3 + $0x42c] ss:$40 sps:$4 sm:$0xff]  }
 0x4a5   :  { %13385 = vmatpush1.bf16.msra.mxu1 %v21650_v18  ;;  %13343 = vmatprep.subr.bf16.mxu0 %v21655_v38  ;;  %v21682_v18 = vld [vmem:[#allocation3 + $0x92c] ss:$40 sps:$4 sm:$0xff]   ;;  %v21677_v38 = vld [vmem:[#allocation3 + $0x428] ss:$40 sps:$4 sm:$0xff]  }
 0x4a6   :  { %13386 = vmatprep.subr.bf16.mxu1 %v21658_v62  ;;  %v21680_v62 = vld [vmem:[#allocation3 + $0x928] ss:$40 sps:$4 sm:$0xff]  }
 0x4a8   :  { %13344 = vmatpush1.bf16.msra.mxu0 %v21653_v27  ;;  %v21685_v27 = vld [vmem:[#allocation3 + $0x3dc] ss:$40 sps:$4 sm:$0xff]  }
 0x4a9   :  { %13387 = vmatpush1.bf16.msra.mxu1 %v21656_v52  ;;  %13345 = vmatprep.subr.bf16.mxu0 %v21661_v12  ;;  %v21688_v52 = vld [vmem:[#allocation3 + $0x8dc] ss:$40 sps:$4 sm:$0xff]   ;;  %v21683_v12 = vld [vmem:[#allocation3 + $0x3d8] ss:$40 sps:$4 sm:$0xff]  }
 0x4aa   :  { %13388 = vmatprep.subr.bf16.mxu1 %v21664_v23  ;;  %v21686_v23 = vld [vmem:[#allocation3 + $0x8d8] ss:$40 sps:$4 sm:$0xff]  }
 0x4ac   :  { %13346 = vmatpush1.bf16.msra.mxu0 %v21659_v55  ;;  %v21691_v55 = vld [vmem:[#allocation3 + $0x38c] ss:$40 sps:$4 sm:$0xff]  }
 0x4ad   :  { %13389 = vmatpush1.bf16.msra.mxu1 %v21662_v4  ;;  %13347 = vmatprep.subr.bf16.mxu0 %v21667_v40  ;;  %v21694_v4 = vld [vmem:[#allocation3 + $0x88c] ss:$40 sps:$4 sm:$0xff]   ;;  %v21689_v40 = vld [vmem:[#allocation3 + $0x388] ss:$40 sps:$4 sm:$0xff]  }
 0x4ae   :  { %13390 = vmatprep.subr.bf16.mxu1 %v21670_v14  ;;  %v21692_v14 = vld [vmem:[#allocation3 + $0x888] ss:$40 sps:$4 sm:$0xff]  }
 0x4b0   :  { %13348 = vmatpush2.bf16.msra.mxu0 %v21665_v61  ;;  %v21697_v61 = vld [vmem:[#allocation3 + $0x33c] ss:$40 sps:$4 sm:$0xff]  }
 0x4b1   :  { %13391 = vmatpush2.bf16.msra.mxu1 %v21668_v11  ;;  %13349 = vmatprep.subr.bf16.mxu0 %v21673_v51  ;;  %v21700_v11 = vld [vmem:[#allocation3 + $0x83c] ss:$40 sps:$4 sm:$0xff]   ;;  %v21695_v51 = vld [vmem:[#allocation3 + $0x338] ss:$40 sps:$4 sm:$0xff]  }
 0x4b2   :  { %13392 = vmatprep.subr.bf16.mxu1 %v21676_v26  ;;  %v21698_v26 = vld [vmem:[#allocation3 + $0x838] ss:$40 sps:$4 sm:$0xff]  }
 0x4b4   :  { %13350 = vmatpush2.bf16.msra.mxu0 %v21671_v57  ;;  %v21703_v57 = vld [vmem:[#allocation3 + $0x2ec] ss:$40 sps:$4 sm:$0xff]  }
 0x4b5   :  { %13393 = vmatpush2.bf16.msra.mxu1 %v21674_v58  ;;  %13351 = vmatprep.subr.bf16.mxu0 %v21679_v7  ;;  %v21706_v58 = vld [vmem:[#allocation3 + $0x7ec] ss:$40 sps:$4 sm:$0xff]   ;;  %v21701_v7 = vld [vmem:[#allocation3 + $0x2e8] ss:$40 sps:$4 sm:$0xff]  }
 0x4b6   :  { %13394 = vmatprep.subr.bf16.mxu1 %v21682_v18  ;;  %v21704_v18 = vld [vmem:[#allocation3 + $0x7e8] ss:$40 sps:$4 sm:$0xff]  }
 0x4b8   :  { %13352 = vmatpush2.bf16.msra.mxu0 %v21677_v38  ;;  %v21709_v38 = vld [vmem:[#allocation3 + $0x29c] ss:$40 sps:$4 sm:$0xff]  }
 0x4b9   :  { %13395 = vmatpush2.bf16.msra.mxu1 %v21680_v62  ;;  %13353 = vmatprep.subr.bf16.mxu0 %v21685_v27  ;;  %v21712_v62 = vld [vmem:[#allocation3 + $0x79c] ss:$40 sps:$4 sm:$0xff]   ;;  %v21707_v27 = vld [vmem:[#allocation3 + $0x298] ss:$40 sps:$4 sm:$0xff]  }
 0x4ba   :  { %13396 = vmatprep.subr.bf16.mxu1 %v21688_v52  ;;  %v21710_v52 = vld [vmem:[#allocation3 + $0x798] ss:$40 sps:$4 sm:$0xff]  }
 0x4bc   :  { %13354 = vmatpush2.bf16.msra.mxu0 %v21683_v12  ;;  %v21715_v12 = vld [vmem:[#allocation3 + $0xc4c] ss:$40 sps:$4 sm:$0xff]  }
 0x4bd   :  { %13397 = vmatpush2.bf16.msra.mxu1 %v21686_v23  ;;  %13355 = vmatprep.subr.bf16.mxu0 %v21691_v55  ;;  %v21718_v23 = vld [vmem:[#allocation3 + $0x114c] ss:$40 sps:$4 sm:$0xff]   ;;  %v21713_v55 = vld [vmem:[#allocation3 + $0xc48] ss:$40 sps:$4 sm:$0xff]  }
 0x4be   :  { %13398 = vmatprep.subr.bf16.mxu1 %v21694_v4  ;;  %v21716_v4 = vld [vmem:[#allocation3 + $0x1148] ss:$40 sps:$4 sm:$0xff]  }
 0x4c0   :  { %13356 = vmatpush2.bf16.msra.mxu0 %v21689_v40  ;;  %v23956_v40 = vpop.f32.mrf.mxu0 }
 0x4c1   :  { %13399 = vmatpush2.bf16.msra.mxu1 %v21692_v14  ;;  %13357 = vmatprep.subr.bf16.mxu0 %v21697_v61  ;;  %v23958_v14 = vpop.f32.mrf.mxu1  ;;  %v21721_v61 = vld [vmem:[#allocation3 + $0xbfc] ss:$40 sps:$4 sm:$0xff]  }
 0x4c2   :  { %13400 = vmatprep.subr.bf16.mxu1 %v21700_v11  ;;  %v21724_v11 = vld [vmem:[#allocation3 + $0x10fc] ss:$40 sps:$4 sm:$0xff]  }
 0x4c4   :  { %13358 = vmatpush2.bf16.msra.mxu0 %v21695_v51 }
 0x4c5   :  { %13401 = vmatpush2.bf16.msra.mxu1 %v21698_v26  ;;  %13359 = vmatprep.subr.bf16.mxu0 %v21703_v57 }
 0x4c6   :  { %13402 = vmatprep.subr.bf16.mxu1 %v21706_v58  ;;  %v21719_v58 = vld [vmem:[#allocation3 + $0xbf8] ss:$40 sps:$4 sm:$0xff]  }
 0x4c8   :  { %13360 = vmatpush2.bf16.msra.mxu0 %v21701_v7  ;;  %v21722_v7 = vld [vmem:[#allocation3 + $0x10f8] ss:$40 sps:$4 sm:$0xff]  }
 0x4c9   :  { %13403 = vmatpush2.bf16.msra.mxu1 %v21704_v18  ;;  %13361 = vmatprep.subr.bf16.mxu0 %v21709_v38 }
 0x4ca   :  { %13404 = vmatprep.subr.bf16.mxu1 %v21712_v62  ;;  %v21727_v62 = vld [vmem:[#allocation3 + $0xbac] ss:$40 sps:$4 sm:$0xff]  }
 0x4cc   :  { %13362 = vmatpush2.bf16.msra.mxu0 %v21707_v27  ;;  %v21730_v27 = vld [vmem:[#allocation3 + $0x10ac] ss:$40 sps:$4 sm:$0xff]  }
 0x4cd   :  { %13405 = vmatpush2.bf16.msra.mxu1 %v21710_v52  ;;  %13417 = vmatprep.subr.bf16.mxu0 %v21715_v12 }
 0x4ce   :  { %13460 = vmatprep.subr.bf16.mxu1 %v21718_v23  ;;  %v21725_v23 = vld [vmem:[#allocation3 + $0xba8] ss:$40 sps:$4 sm:$0xff]  }
 0x4cf   :  { %v13107_v51 = vpop.f32.mrf.mxu0  ;;  %13364 = vmatmul.mubr.bf16.vlgmr.msra.gmra.mxu0 %v23454_v8 }
 0x4d0   :  { %v13150_v26 = vpop.f32.mrf.mxu1  ;;  %13407 = vmatmul.mubr.bf16.vlgmr.msra.gmra.mxu1 %v23456_v9  ;;  %v13108_v57 = vadd.f32 %v13107_v51, %v23946_v39  ;;  %13418 = vmatpush1.bf16.msra.mxu0 %v21713_v55  ;;  %v21728_v55 = vld [vmem:[#allocation3 + $0x10a8] ss:$40 sps:$4 sm:$0xff]  }
 0x4d1   :  { %13461 = vmatpush1.bf16.msra.mxu1 %v21716_v4  ;;  %v23963_v18 = vpop.f32.mrf.mxu0  ;;  %13419 = vmatprep.subr.bf16.mxu0 %v21721_v61  ;;  %v21733_v61 = vld [vmem:[#allocation3 + $0xb5c] ss:$40 sps:$4 sm:$0xff]  }
 0x4d2   :  { %v23965_v38 = vpop.f32.mrf.mxu1  ;;  %13462 = vmatprep.subr.bf16.mxu1 %v21724_v11  ;;  %v23967_v52 = vadd.f32 %v13150_v26, %v13108_v57  ;;  %13449 = vmatprep.mubr.bf16.mxu0 %v23482_v41  ;;  %v21736_v11 = vld [vmem:[#allocation3 + $0x105c] ss:$40 sps:$4 sm:$0xff]   ;;  %v21731_v26 = vld [vmem:[#allocation3 + $0xb58] ss:$40 sps:$4 sm:$0xff]  }
 0x4d3   :  { %13492 = vmatprep.mubr.bf16.mxu1 %v23486_v42  ;;  %v13111_v12 = vpop.f32.mrf.mxu0  ;;  %v21734_v57 = vld [vmem:[#allocation3 + $0x1058] ss:$40 sps:$4 sm:$0xff]  }
 0x4d4   :  { %v13112_v39 = vadd.f32 %v13111_v12, %v23954_v6  ;;  %13420 = vmatpush1.bf16.msra.mxu0 %v21719_v58  ;;  %v13154_v4 = vpop.f32.mrf.mxu1  ;;  %v21737_v6 = vld [vmem:[#allocation3 + $0xb08] ss:$40 sps:$4 sm:$0xff]   ;;  %v21746_v12 = vld [vmem:[#allocation3 + $0xfb8] ss:$40 sps:$4 sm:$0xff]  }
 0x4d5   :  { %13463 = vmatpush1.bf16.msra.mxu1 %v21722_v7  ;;  %13421 = vmatprep.subr.bf16.mxu0 %v21727_v62  ;;  %v21740_v58 = vld [vmem:[#allocation3 + $0x1008] ss:$40 sps:$4 sm:$0xff]   ;;  %v21745_v7 = vld [vmem:[#allocation3 + $0xabc] ss:$40 sps:$4 sm:$0xff]  }
 0x4d6   :  { %13464 = vmatprep.subr.bf16.mxu1 %v21730_v27  ;;  %v23972_v51 = vadd.f32 %v13154_v4, %v13112_v39  ;;  %v21748_v62 = vld [vmem:[#allocation3 + $0xfbc] ss:$40 sps:$4 sm:$0xff]   ;;  %v21743_v27 = vld [vmem:[#allocation3 + $0xab8] ss:$40 sps:$4 sm:$0xff]   ;;  %v21751_v39 = vld [vmem:[#allocation3 + $0xa6c] ss:$40 sps:$4 sm:$0xff]  }
 0x4d7   :  { %v21752_v4 = vld [vmem:[#allocation3 + $0xf68] ss:$40 sps:$4 sm:$0xff]  }
 0x4d8   :  { %13422 = vmatpush1.bf16.msra.mxu0 %v21725_v23  ;;  %v21754_v23 = vld [vmem:[#allocation3 + $0xf6c] ss:$40 sps:$4 sm:$0xff]  }
 0x4d9   :  { %13465 = vmatpush1.bf16.msra.mxu1 %v21728_v55  ;;  %13423 = vmatprep.subr.bf16.mxu0 %v21733_v61  ;;  %v21749_v55 = vld [vmem:[#allocation3 + $0xa68] ss:$40 sps:$4 sm:$0xff]   ;;  %v21757_v61 = vld [vmem:[#allocation3 + $0xa1c] ss:$40 sps:$4 sm:$0xff]  }
 0x4da   :  { %13466 = vmatprep.subr.bf16.mxu1 %v21736_v11  ;;  %v21760_v11 = vld [vmem:[#allocation3 + $0xf1c] ss:$40 sps:$4 sm:$0xff]  }
 0x4dc   :  { %13424 = vmatpush1.bf16.msra.mxu0 %v21731_v26  ;;  %v21763_v26 = vld [vmem:[#allocation3 + $0xecc] ss:$40 sps:$4 sm:$0xff]  }
 0x4dd   :  { %13467 = vmatpush1.bf16.msra.mxu1 %v21734_v57  ;;  %13425 = vmatprep.subr.bf16.mxu0 %v21739_v5  ;;  %v21758_v5 = vld [vmem:[#allocation3 + $0xf18] ss:$40 sps:$4 sm:$0xff]   ;;  %v21766_v57 = vld [vmem:[#allocation3 + $0x13cc] ss:$40 sps:$4 sm:$0xff]  }
 0x4de   :  { %13468 = vmatprep.subr.bf16.mxu1 %v21742_v50  ;;  %v21755_v50 = vld [vmem:[#allocation3 + $0xa18] ss:$40 sps:$4 sm:$0xff]  }
 0x4e0   :  { %13426 = vmatpush1.bf16.msra.mxu0 %v21737_v6  ;;  %v21761_v6 = vld [vmem:[#allocation3 + $0xec8] ss:$40 sps:$4 sm:$0xff]  }
 0x4e1   :  { %13469 = vmatpush1.bf16.msra.mxu1 %v21740_v58  ;;  %13427 = vmatprep.subr.bf16.mxu0 %v21745_v7  ;;  %v21764_v58 = vld [vmem:[#allocation3 + $0x13c8] ss:$40 sps:$4 sm:$0xff]   ;;  %v21769_v7 = vld [vmem:[#allocation3 + $0xe7c] ss:$40 sps:$4 sm:$0xff]  }
 0x4e2   :  { %13470 = vmatprep.subr.bf16.mxu1 %v21748_v62  ;;  %v21772_v62 = vld [vmem:[#allocation3 + $0x137c] ss:$40 sps:$4 sm:$0xff]  }
 0x4e4   :  { %13428 = vmatpush1.bf16.msra.mxu0 %v21743_v27  ;;  %v21767_v27 = vld [vmem:[#allocation3 + $0xe78] ss:$40 sps:$4 sm:$0xff]  }
 0x4e5   :  { %13471 = vmatpush1.bf16.msra.mxu1 %v21746_v12  ;;  %13429 = vmatprep.subr.bf16.mxu0 %v21751_v39  ;;  %v21770_v12 = vld [vmem:[#allocation3 + $0x1378] ss:$40 sps:$4 sm:$0xff]   ;;  %v21775_v39 = vld [vmem:[#allocation3 + $0xe2c] ss:$40 sps:$4 sm:$0xff]  }
 0x4e6   :  { %13472 = vmatprep.subr.bf16.mxu1 %v21754_v23  ;;  %v21778_v23 = vld [vmem:[#allocation3 + $0x132c] ss:$40 sps:$4 sm:$0xff]  }
 0x4e8   :  { %13430 = vmatpush1.bf16.msra.mxu0 %v21749_v55  ;;  %v21773_v55 = vld [vmem:[#allocation3 + $0xe28] ss:$40 sps:$4 sm:$0xff]  }
 0x4e9   :  { %13473 = vmatpush1.bf16.msra.mxu1 %v21752_v4  ;;  %13431 = vmatprep.subr.bf16.mxu0 %v21757_v61  ;;  %v21776_v4 = vld [vmem:[#allocation3 + $0x1328] ss:$40 sps:$4 sm:$0xff]   ;;  %v21781_v61 = vld [vmem:[#allocation3 + $0xddc] ss:$40 sps:$4 sm:$0xff]  }
 0x4ea   :  { %13474 = vmatprep.subr.bf16.mxu1 %v21760_v11  ;;  %v21784_v11 = vld [vmem:[#allocation3 + $0x12dc] ss:$40 sps:$4 sm:$0xff]  }
 0x4ec   :  { %13432 = vmatpush1.bf16.msra.mxu0 %v21755_v50  ;;  %v21779_v50 = vld [vmem:[#allocation3 + $0xdd8] ss:$40 sps:$4 sm:$0xff]  }
 0x4ed   :  { %13475 = vmatpush1.bf16.msra.mxu1 %v21758_v5  ;;  %13433 = vmatprep.subr.bf16.mxu0 %v21763_v26  ;;  %v21782_v5 = vld [vmem:[#allocation3 + $0x12d8] ss:$40 sps:$4 sm:$0xff]   ;;  %v21787_v26 = vld [vmem:[#allocation3 + $0xd8c] ss:$40 sps:$4 sm:$0xff]  }
 0x4ee   :  { %13476 = vmatprep.subr.bf16.mxu1 %v21766_v57  ;;  %v21790_v57 = vld [vmem:[#allocation3 + $0x128c] ss:$40 sps:$4 sm:$0xff]  }
 0x4f0   :  { %13434 = vmatpush2.bf16.msra.mxu0 %v21761_v6  ;;  %v21785_v6 = vld [vmem:[#allocation3 + $0xd88] ss:$40 sps:$4 sm:$0xff]  }
 0x4f1   :  { %13477 = vmatpush2.bf16.msra.mxu1 %v21764_v58  ;;  %13435 = vmatprep.subr.bf16.mxu0 %v21769_v7  ;;  %v21788_v58 = vld [vmem:[#allocation3 + $0x1288] ss:$40 sps:$4 sm:$0xff]   ;;  %v21793_v7 = vld [vmem:[#allocation3 + $0xd3c] ss:$40 sps:$4 sm:$0xff]  }
 0x4f2   :  { %13478 = vmatprep.subr.bf16.mxu1 %v21772_v62  ;;  %v21796_v62 = vld [vmem:[#allocation3 + $0x123c] ss:$40 sps:$4 sm:$0xff]  }
 0x4f4   :  { %13436 = vmatpush2.bf16.msra.mxu0 %v21767_v27  ;;  %v21791_v27 = vld [vmem:[#allocation3 + $0xd38] ss:$40 sps:$4 sm:$0xff]  }
 0x4f5   :  { %13479 = vmatpush2.bf16.msra.mxu1 %v21770_v12  ;;  %13437 = vmatprep.subr.bf16.mxu0 %v21775_v39  ;;  %v21794_v12 = vld [vmem:[#allocation3 + $0x1238] ss:$40 sps:$4 sm:$0xff]   ;;  %v21799_v39 = vld [vmem:[#allocation3 + $0xcec] ss:$40 sps:$4 sm:$0xff]  }
 0x4f6   :  { %13480 = vmatprep.subr.bf16.mxu1 %v21778_v23  ;;  %v21802_v23 = vld [vmem:[#allocation3 + $0x11ec] ss:$40 sps:$4 sm:$0xff]  }
 0x4f8   :  { %13438 = vmatpush2.bf16.msra.mxu0 %v21773_v55  ;;  %v21797_v55 = vld [vmem:[#allocation3 + $0xce8] ss:$40 sps:$4 sm:$0xff]  }
 0x4f9   :  { %13481 = vmatpush2.bf16.msra.mxu1 %v21776_v4  ;;  %13439 = vmatprep.subr.bf16.mxu0 %v21781_v61  ;;  %v21800_v4 = vld [vmem:[#allocation3 + $0x11e8] ss:$40 sps:$4 sm:$0xff]   ;;  %v21805_v61 = vld [vmem:[#allocation3 + $0xc9c] ss:$40 sps:$4 sm:$0xff]  }
 0x4fa   :  { %13482 = vmatprep.subr.bf16.mxu1 %v21784_v11  ;;  %v21808_v11 = vld [vmem:[#allocation3 + $0x119c] ss:$40 sps:$4 sm:$0xff]  }
 0x4fc   :  { %13440 = vmatpush2.bf16.msra.mxu0 %v21779_v50  ;;  %v21803_v50 = vld [vmem:[#allocation3 + $0xc98] ss:$40 sps:$4 sm:$0xff]  }
 0x4fd   :  { %13483 = vmatpush2.bf16.msra.mxu1 %v21782_v5  ;;  %13441 = vmatprep.subr.bf16.mxu0 %v21787_v26  ;;  %v21806_v5 = vld [vmem:[#allocation3 + $0x1198] ss:$40 sps:$4 sm:$0xff]   ;;  %v21811_v26 = vld [vmem:[#allocation3 + $0x164c] ss:$40 sps:$4 sm:$0xff]  }
 0x4fe   :  { %13484 = vmatprep.subr.bf16.mxu1 %v21790_v57  ;;  %v21814_v57 = vld [vmem:[#allocation3 + $0x1b4c] ss:$40 sps:$4 sm:$0xff]  }
 0x500   :  { %13442 = vmatpush2.bf16.msra.mxu0 %v21785_v6  ;;  %v21809_v6 = vld [vmem:[#allocation3 + $0x1648] ss:$40 sps:$4 sm:$0xff]  }
 0x501   :  { %13485 = vmatpush2.bf16.msra.mxu1 %v21788_v58  ;;  %13443 = vmatprep.subr.bf16.mxu0 %v21793_v7  ;;  %v21812_v58 = vld [vmem:[#allocation3 + $0x1b48] ss:$40 sps:$4 sm:$0xff]   ;;  %v23974_v7 = vpop.f32.mrf.mxu0 }
 0x502   :  { %13486 = vmatprep.subr.bf16.mxu1 %v21796_v62  ;;  %v23976_v62 = vpop.f32.mrf.mxu1 }
 0x504   :  { %13444 = vmatpush2.bf16.msra.mxu0 %v21791_v27  ;;  %v21817_v27 = vld [vmem:[#allocation3 + $0x15fc] ss:$40 sps:$4 sm:$0xff]  }
 0x505   :  { %13487 = vmatpush2.bf16.msra.mxu1 %v21794_v12  ;;  %13445 = vmatprep.subr.bf16.mxu0 %v21799_v39  ;;  %v21820_v12 = vld [vmem:[#allocation3 + $0x1afc] ss:$40 sps:$4 sm:$0xff]  }
 0x506   :  { %13488 = vmatprep.subr.bf16.mxu1 %v21802_v23 }
 0x508   :  { %13446 = vmatpush2.bf16.msra.mxu0 %v21797_v55 }
 0x509   :  { %13489 = vmatpush2.bf16.msra.mxu1 %v21800_v4  ;;  %13447 = vmatprep.subr.bf16.mxu0 %v21805_v61  ;;  %v21815_v4 = vld [vmem:[#allocation3 + $0x15f8] ss:$40 sps:$4 sm:$0xff]  }
 0x50a   :  { %13490 = vmatprep.subr.bf16.mxu1 %v21808_v11  ;;  %v21818_v61 = vld [vmem:[#allocation3 + $0x1af8] ss:$40 sps:$4 sm:$0xff]  }
 0x50c   :  { %13448 = vmatpush2.bf16.msra.mxu0 %v21803_v50 }
 0x50d   :  { %13491 = vmatpush2.bf16.msra.mxu1 %v21806_v5  ;;  %13503 = vmatprep.subr.bf16.mxu0 %v21811_v26  ;;  %v21823_v5 = vld [vmem:[#allocation3 + $0x15ac] ss:$40 sps:$4 sm:$0xff]  }
 0x50e   :  { %13546 = vmatprep.subr.bf16.mxu1 %v21814_v57  ;;  %v21826_v26 = vld [vmem:[#allocation3 + $0x1aac] ss:$40 sps:$4 sm:$0xff]  }
 0x50f   :  { %v13193_v39 = vpop.f32.mrf.mxu0  ;;  %13450 = vmatmul.mubr.bf16.vlgmr.msra.gmra.mxu0 %v23492_v20 }
 0x510   :  { %v13236_v23 = vpop.f32.mrf.mxu1  ;;  %13493 = vmatmul.mubr.bf16.vlgmr.msra.gmra.mxu1 %v23496_v21  ;;  %v13194_v55 = vadd.f32 %v13193_v39, %v23967_v52  ;;  %13504 = vmatpush1.bf16.msra.mxu0 %v21809_v6  ;;  %v21821_v6 = vld [vmem:[#allocation3 + $0x15a8] ss:$40 sps:$4 sm:$0xff]  }
 0x511   :  { %13547 = vmatpush1.bf16.msra.mxu1 %v21812_v58  ;;  %v23981_v11 = vpop.f32.mrf.mxu0  ;;  %13505 = vmatprep.subr.bf16.mxu0 %v21817_v27  ;;  %v21824_v58 = vld [vmem:[#allocation3 + $0x1aa8] ss:$40 sps:$4 sm:$0xff]   ;;  %v21829_v27 = vld [vmem:[#allocation3 + $0x155c] ss:$40 sps:$4 sm:$0xff]  }
 0x512   :  { %v23983_v50 = vpop.f32.mrf.mxu1  ;;  %13548 = vmatprep.subr.bf16.mxu1 %v21820_v12  ;;  %v23985_v57 = vadd.f32 %v13236_v23, %v13194_v55  ;;  %13535 = vmatprep.mubr.bf16.mxu0 %v23522_v33  ;;  %v21832_v12 = vld [vmem:[#allocation3 + $0x1a5c] ss:$40 sps:$4 sm:$0xff]   ;;  %v21827_v23 = vld [vmem:[#allocation3 + $0x1558] ss:$40 sps:$4 sm:$0xff]  }
 0x513   :  { %13578 = vmatprep.mubr.bf16.mxu1 %v23526_v34  ;;  %v13197_v43 = vpop.f32.mrf.mxu0  ;;  %v21830_v55 = vld [vmem:[#allocation3 + $0x1a58] ss:$40 sps:$4 sm:$0xff]  }
 0x514   :  { %v13198_v52 = vadd.f32 %v13197_v43, %v23972_v51  ;;  %13506 = vmatpush1.bf16.msra.mxu0 %v21815_v4  ;;  %v13240_v39 = vpop.f32.mrf.mxu1  ;;  %v21833_v43 = vld [vmem:[#allocation3 + $0x1508] ss:$40 sps:$4 sm:$0xff]   ;;  %v21841_v4 = vld [vmem:[#allocation3 + $0x14bc] ss:$40 sps:$4 sm:$0xff]  }
 0x515   :  { %13549 = vmatpush1.bf16.msra.mxu1 %v21818_v61  ;;  %13507 = vmatprep.subr.bf16.mxu0 %v21823_v5  ;;  %v21836_v51 = vld [vmem:[#allocation3 + $0x1a08] ss:$40 sps:$4 sm:$0xff]   ;;  %v21844_v61 = vld [vmem:[#allocation3 + $0x19bc] ss:$40 sps:$4 sm:$0xff]   ;;  %v21839_v5 = vld [vmem:[#allocation3 + $0x14b8] ss:$40 sps:$4 sm:$0xff]  }
 0x516   :  { %13550 = vmatprep.subr.bf16.mxu1 %v21826_v26  ;;  %v23990_v22 = vadd.f32 %v13240_v39, %v13198_v52  ;;  %v21842_v26 = vld [vmem:[#allocation3 + $0x19b8] ss:$40 sps:$4 sm:$0xff]   ;;  %v21847_v52 = vld [vmem:[#allocation3 + $0x146c] ss:$40 sps:$4 sm:$0xff]   ;;  %v21848_v39 = vld [vmem:[#allocation3 + $0x1968] ss:$40 sps:$4 sm:$0xff]  }
 0x518   :  { %13508 = vmatpush1.bf16.msra.mxu0 %v21821_v6  ;;  %v21850_v6 = vld [vmem:[#allocation3 + $0x196c] ss:$40 sps:$4 sm:$0xff]  }
 0x519   :  { %13551 = vmatpush1.bf16.msra.mxu1 %v21824_v58  ;;  %13509 = vmatprep.subr.bf16.mxu0 %v21829_v27  ;;  %v21845_v58 = vld [vmem:[#allocation3 + $0x1468] ss:$40 sps:$4 sm:$0xff]   ;;  %v21853_v27 = vld [vmem:[#allocation3 + $0x141c] ss:$40 sps:$4 sm:$0xff]  }
 0x51a   :  { %13552 = vmatprep.subr.bf16.mxu1 %v21832_v12  ;;  %v21856_v12 = vld [vmem:[#allocation3 + $0x191c] ss:$40 sps:$4 sm:$0xff]  }
 0x51c   :  { %13510 = vmatpush1.bf16.msra.mxu0 %v21827_v23  ;;  %v21859_v23 = vld [vmem:[#allocation3 + $0x18cc] ss:$40 sps:$4 sm:$0xff]  }
 0x51d   :  { %13553 = vmatpush1.bf16.msra.mxu1 %v21830_v55  ;;  %13511 = vmatprep.subr.bf16.mxu0 %v21835_v56  ;;  %v21854_v56 = vld [vmem:[#allocation3 + $0x1918] ss:$40 sps:$4 sm:$0xff]   ;;  %v21862_v55 = vld [vmem:[#allocation3 + $0x1dcc] ss:$40 sps:$4 sm:$0xff]  }
 0x51e   :  { %13554 = vmatprep.subr.bf16.mxu1 %v21838_v3  ;;  %v21851_v3 = vld [vmem:[#allocation3 + $0x1418] ss:$40 sps:$4 sm:$0xff]  }
 0x520   :  { %13512 = vmatpush1.bf16.msra.mxu0 %v21833_v43  ;;  %v21857_v43 = vld [vmem:[#allocation3 + $0x18c8] ss:$40 sps:$4 sm:$0xff]  }
 0x521   :  { %13555 = vmatpush1.bf16.msra.mxu1 %v21836_v51  ;;  %13513 = vmatprep.subr.bf16.mxu0 %v21841_v4  ;;  %v21860_v51 = vld [vmem:[#allocation3 + $0x1dc8] ss:$40 sps:$4 sm:$0xff]   ;;  %v21865_v4 = vld [vmem:[#allocation3 + $0x187c] ss:$40 sps:$4 sm:$0xff]  }
 0x522   :  { %13556 = vmatprep.subr.bf16.mxu1 %v21844_v61  ;;  %v21868_v61 = vld [vmem:[#allocation3 + $0x1d7c] ss:$40 sps:$4 sm:$0xff]  }
 0x524   :  { %13514 = vmatpush1.bf16.msra.mxu0 %v21839_v5  ;;  %v21863_v5 = vld [vmem:[#allocation3 + $0x1878] ss:$40 sps:$4 sm:$0xff]  }
 0x525   :  { %13557 = vmatpush1.bf16.msra.mxu1 %v21842_v26  ;;  %13515 = vmatprep.subr.bf16.mxu0 %v21847_v52  ;;  %v21866_v26 = vld [vmem:[#allocation3 + $0x1d78] ss:$40 sps:$4 sm:$0xff]   ;;  %v21871_v52 = vld [vmem:[#allocation3 + $0x182c] ss:$40 sps:$4 sm:$0xff]  }
 0x526   :  { %13558 = vmatprep.subr.bf16.mxu1 %v21850_v6  ;;  %v21874_v6 = vld [vmem:[#allocation3 + $0x1d2c] ss:$40 sps:$4 sm:$0xff]  }
 0x528   :  { %13516 = vmatpush1.bf16.msra.mxu0 %v21845_v58  ;;  %v21869_v58 = vld [vmem:[#allocation3 + $0x1828] ss:$40 sps:$4 sm:$0xff]  }
 0x529   :  { %13559 = vmatpush1.bf16.msra.mxu1 %v21848_v39  ;;  %13517 = vmatprep.subr.bf16.mxu0 %v21853_v27  ;;  %v21872_v39 = vld [vmem:[#allocation3 + $0x1d28] ss:$40 sps:$4 sm:$0xff]   ;;  %v21877_v27 = vld [vmem:[#allocation3 + $0x17dc] ss:$40 sps:$4 sm:$0xff]  }
 0x52a   :  { %13560 = vmatprep.subr.bf16.mxu1 %v21856_v12  ;;  %v21880_v12 = vld [vmem:[#allocation3 + $0x1cdc] ss:$40 sps:$4 sm:$0xff]  }
 0x52c   :  { %13518 = vmatpush1.bf16.msra.mxu0 %v21851_v3  ;;  %v21875_v3 = vld [vmem:[#allocation3 + $0x17d8] ss:$40 sps:$4 sm:$0xff]  }
 0x52d   :  { %13561 = vmatpush1.bf16.msra.mxu1 %v21854_v56  ;;  %13519 = vmatprep.subr.bf16.mxu0 %v21859_v23  ;;  %v21878_v56 = vld [vmem:[#allocation3 + $0x1cd8] ss:$40 sps:$4 sm:$0xff]   ;;  %v21883_v23 = vld [vmem:[#allocation3 + $0x178c] ss:$40 sps:$4 sm:$0xff]  }
 0x52e   :  { %13562 = vmatprep.subr.bf16.mxu1 %v21862_v55  ;;  %v21886_v55 = vld [vmem:[#allocation3 + $0x1c8c] ss:$40 sps:$4 sm:$0xff]  }
 0x530   :  { %13520 = vmatpush2.bf16.msra.mxu0 %v21857_v43  ;;  %v21881_v43 = vld [vmem:[#allocation3 + $0x1788] ss:$40 sps:$4 sm:$0xff]  }
 0x531   :  { %13563 = vmatpush2.bf16.msra.mxu1 %v21860_v51  ;;  %13521 = vmatprep.subr.bf16.mxu0 %v21865_v4  ;;  %v21884_v51 = vld [vmem:[#allocation3 + $0x1c88] ss:$40 sps:$4 sm:$0xff]   ;;  %v21889_v4 = vld [vmem:[#allocation3 + $0x173c] ss:$40 sps:$4 sm:$0xff]  }
 0x532   :  { %13564 = vmatprep.subr.bf16.mxu1 %v21868_v61  ;;  %v21892_v61 = vld [vmem:[#allocation3 + $0x1c3c] ss:$40 sps:$4 sm:$0xff]  }
 0x534   :  { %13522 = vmatpush2.bf16.msra.mxu0 %v21863_v5  ;;  %v12942_v5 = vadd.f32 %v23939_v25, %v23924_v19  ;;  %v21904_v19 = vld [vmem:[#allocation3 + $0x1b9c] ss:$40 sps:$4 sm:$0xff]   ;;  %v13110_v25 = vadd.f32 %v23963_v18, %v23951_v31  ;;  %v21908_v31 = vld [vmem:[#allocation3 + $0x2548] ss:$40 sps:$4 sm:$0xff]   ;;  %v13199_v18 = vpop.f32.mrf.mxu0 }
 0x535   :  { %13565 = vmatpush2.bf16.msra.mxu1 %v21866_v26  ;;  %13523 = vmatprep.subr.bf16.mxu0 %v21871_v52  ;;  %v21887_v26 = vld [vmem:[#allocation3 + $0x1738] ss:$40 sps:$4 sm:$0xff]  }
 0x536   :  { %13566 = vmatprep.subr.bf16.mxu1 %v21874_v6  ;;  %v21890_v52 = vld [vmem:[#allocation3 + $0x1c38] ss:$40 sps:$4 sm:$0xff]   ;;  %v21895_v6 = vld [vmem:[#allocation3 + $0x16ec] ss:$40 sps:$4 sm:$0xff]  }
 0x538   :  { %13524 = vmatpush2.bf16.msra.mxu0 %v21869_v58  ;;  %v21898_v58 = vld [vmem:[#allocation3 + $0x1bec] ss:$40 sps:$4 sm:$0xff]  }
 0x539   :  { %13567 = vmatpush2.bf16.msra.mxu1 %v21872_v39  ;;  %13525 = vmatprep.subr.bf16.mxu0 %v21877_v27  ;;  %v12985_v39 = vadd.f32 %v23941_v60, %v12942_v5  ;;  %v21907_v60 = vld [vmem:[#allocation3 + $0x204c] ss:$40 sps:$4 sm:$0xff]   ;;  %v21905_v5 = vld [vmem:[#allocation3 + $0x2048] ss:$40 sps:$4 sm:$0xff]  }
 0x53a   :  { %13568 = vmatprep.subr.bf16.mxu1 %v21880_v12  ;;  %v21893_v12 = vld [vmem:[#allocation3 + $0x16e8] ss:$40 sps:$4 sm:$0xff]  }
 0x53b   :  { %v13028_v27 = vadd.f32 %v23956_v40, %v12985_v39  ;;  %v21910_v40 = vld [vmem:[#allocation3 + $0x254c] ss:$40 sps:$4 sm:$0xff]  }
 0x53c   :  { %13526 = vmatpush2.bf16.msra.mxu0 %v21875_v3  ;;  %v21896_v3 = vld [vmem:[#allocation3 + $0x1be8] ss:$40 sps:$4 sm:$0xff]  }
 0x53d   :  { %13569 = vmatpush2.bf16.msra.mxu1 %v21878_v56  ;;  %13527 = vmatprep.subr.bf16.mxu0 %v21883_v23  ;;  %v21901_v56 = vld [vmem:[#allocation3 + $0x169c] ss:$40 sps:$4 sm:$0xff]   ;;  %v13071_v23 = vadd.f32 %v23958_v14, %v13028_v27  ;;  %v13242_v14 = vpop.f32.mrf.mxu1  ;;  %v21911_v27 = vld [vmem:[#allocation3 + $0x1ff8] ss:$40 sps:$4 sm:$0xff]  }
 0x53e   :  { %13570 = vmatprep.subr.bf16.mxu1 %v21886_v55  ;;  %v21899_v55 = vld [vmem:[#allocation3 + $0x1698] ss:$40 sps:$4 sm:$0xff]  }
 0x540   :  { %13528 = vmatpush2.bf16.msra.mxu0 %v21881_v43  ;;  %v21902_v43 = vld [vmem:[#allocation3 + $0x1b98] ss:$40 sps:$4 sm:$0xff]  }
 0x541   :  { %13571 = vmatpush2.bf16.msra.mxu1 %v21884_v51  ;;  %13529 = vmatprep.subr.bf16.mxu0 %v21889_v4  ;;  %v13153_v51 = vadd.f32 %v23965_v38, %v13110_v25  ;;  %v13114_v4 = vadd.f32 %v23974_v7, %v13071_v23 }
 0x542   :  { %13572 = vmatprep.subr.bf16.mxu1 %v21892_v61 }
 0x543   :  { %v13196_v61 = vadd.f32 %v23981_v11, %v13153_v51  ;;  %v21917_v51 = vld [vmem:[#allocation3 + $0x1fa8] ss:$40 sps:$4 sm:$0xff]  }
 0x544   :  { %13530 = vmatpush2.bf16.msra.mxu0 %v21887_v26  ;;  %v21913_v26 = vld [vmem:[#allocation3 + $0x1ffc] ss:$40 sps:$4 sm:$0xff]  }
 0x545   :  { %13573 = vmatpush2.bf16.msra.mxu1 %v21890_v52  ;;  %13531 = vmatprep.subr.bf16.mxu0 %v21895_v6  ;;  %v21916_v52 = vld [vmem:[#allocation3 + $0x24fc] ss:$40 sps:$4 sm:$0xff]   ;;  %v13157_v6 = vadd.f32 %v23976_v62, %v13114_v4  ;;  %v13239_v38 = vadd.f32 %v23983_v50, %v13196_v61  ;;  %v21919_v62 = vld [vmem:[#allocation3 + $0x1fac] ss:$40 sps:$4 sm:$0xff]   ;;  %v21920_v4 = vld [vmem:[#allocation3 + $0x24a8] ss:$40 sps:$4 sm:$0xff]  }
 0x546   :  { %13574 = vmatprep.subr.bf16.mxu1 %v21898_v58 }
 0x547   :  { %v13200_v7 = vadd.f32 %v13199_v18, %v13157_v6 }
 0x548   :  { %13532 = vmatpush2.bf16.msra.mxu0 %v21893_v12  ;;  %v21914_v12 = vld [vmem:[#allocation3 + $0x24f8] ss:$40 sps:$4 sm:$0xff]  }
 0x549   :  { %13575 = vmatpush2.bf16.msra.mxu1 %v21896_v3  ;;  %13533 = vmatprep.subr.bf16.mxu0 %v21901_v56 }
 0x54a   :  { %13576 = vmatprep.subr.bf16.mxu1 %v21904_v19  ;;  %v21922_v19 = vld [vmem:[#allocation3 + $0x24ac] ss:$40 sps:$4 sm:$0xff]  }
 0x54c   :  { %13534 = vmatpush2.bf16.msra.mxu0 %v21899_v55 }
 0x54d   :  { %13577 = vmatpush2.bf16.msra.mxu1 %v21902_v43  ;;  %13589 = vmatprep.subr.bf16.mxu0 %v21907_v60 }
 0x54e   :  { %13632 = vmatprep.subr.bf16.mxu1 %v21910_v40 }
 0x54f   :  { %v13279_v58 = vpop.f32.mrf.mxu0  ;;  %13536 = vmatmul.mubr.bf16.vlgmr.msra.gmra.mxu0 %v23547_v48 }
 0x550   :  { %v13322_v39 = vpop.f32.mrf.mxu1  ;;  %13579 = vmatmul.mubr.bf16.vlgmr.msra.gmra.mxu1 %v23551_v49  ;;  %v13280_v11 = vadd.f32 %v13279_v58, %v23985_v57  ;;  %13590 = vmatpush1.bf16.msra.mxu0 %v21905_v5  ;;  %v13243_v57 = vadd.f32 %v13242_v14, %v13200_v7  ;;  %v21925_v5 = vld [vmem:[#allocation3 + $0x1f5c] ss:$40 sps:$4 sm:$0xff]   ;;  %v21923_v58 = vld [vmem:[#allocation3 + $0x1f58] ss:$40 sps:$4 sm:$0xff]   ;;  %v21934_v7 = vld [vmem:[#allocation3 + $0x240c] ss:$40 sps:$4 sm:$0xff]  }
 0x551   :  { %13633 = vmatpush1.bf16.msra.mxu1 %v21908_v31  ;;  %v13281_v3 = vpop.f32.mrf.mxu0  ;;  %13591 = vmatprep.subr.bf16.mxu0 %v21913_v26  ;;  %v21928_v31 = vld [vmem:[#allocation3 + $0x245c] ss:$40 sps:$4 sm:$0xff]  }
 0x552   :  { %v13324_v56 = vpop.f32.mrf.mxu1  ;;  %13634 = vmatprep.subr.bf16.mxu1 %v21916_v52  ;;  %v24007_v25 = vadd.f32 %v13322_v39, %v13280_v11  ;;  %v13282_v23 = vadd.f32 %v13281_v3, %v13239_v38  ;;  %13621 = vmatprep.mubr.bf16.mxu0 %v23560_v28  ;;  %v21926_v39 = vld [vmem:[#allocation3 + $0x2458] ss:$40 sps:$4 sm:$0xff]   ;;  %v21931_v38 = vld [vmem:[#allocation3 + $0x1f0c] ss:$40 sps:$4 sm:$0xff]   ;;  %v21937_v3 = vld [vmem:[#allocation3 + $0x1ebc] ss:$40 sps:$4 sm:$0xff]  }
 0x553   :  { %13664 = vmatprep.mubr.bf16.mxu1 %v23564_v29  ;;  %v13283_v50 = vpop.f32.mrf.mxu0 }
 0x554   :  { %v13326_v55 = vpop.f32.mrf.mxu1  ;;  %v19475_v43 = vmul.f32 -1.442695, %v24007_v25  ;;  %v24012_v60 = vadd.f32 %v13324_v56, %v13282_v23  ;;  %v13284_v40 = vadd.f32 %v13283_v50, %v23990_v22  ;;  %13592 = vmatpush1.bf16.msra.mxu0 %v21911_v27  ;;  %v21929_v27 = vld [vmem:[#allocation3 + $0x1f08] ss:$40 sps:$4 sm:$0xff]   ;;  %v21940_v56 = vld [vmem:[#allocation3 + $0x23bc] ss:$40 sps:$4 sm:$0xff]  }
 0x555   :  { %13635 = vmatpush1.bf16.msra.mxu1 %v21914_v12  ;;  %v13285_v61 = vpop.f32.mrf.mxu0  ;;  %13593 = vmatprep.subr.bf16.mxu0 %v21919_v62  ;;  %v21932_v12 = vld [vmem:[#allocation3 + $0x2408] ss:$40 sps:$4 sm:$0xff]   ;;  %v21935_v62 = vld [vmem:[#allocation3 + $0x1eb8] ss:$40 sps:$4 sm:$0xff]   ;;  %v21943_v23 = vld [vmem:[#allocation3 + $0x1e6c] ss:$40 sps:$4 sm:$0xff]  }
 0x556   :  { %13636 = vmatprep.subr.bf16.mxu1 %v21922_v19  ;;  %23269 = vpow2.f32 %v19475_v43  ;;  %v19476_v18 = vmul.f32 -1.442695, %v24012_v60  ;;  %v24016_v26 = vadd.f32 %v13326_v55, %v13284_v40  ;;  %v13286_v14 = vadd.f32 %v13285_v61, %v13243_v57  ;;  %v13328_v52 = vpop.f32.mrf.mxu1  ;;  %v21938_v19 = vld [vmem:[#allocation3 + $0x23b8] ss:$40 sps:$4 sm:$0xff]   ;;  %v21946_v50 = vld [vmem:[#allocation3 + $0x236c] ss:$40 sps:$4 sm:$0xff]  }
 0x557   :  { %v21941_v43 = vld [vmem:[#allocation3 + $0x1e68] ss:$40 sps:$4 sm:$0xff]   ;;  %v21952_v61 = vld [vmem:[#allocation3 + $0x231c] ss:$40 sps:$4 sm:$0xff]  }
 0x558   :  { %23271 = vpow2.f32 %v19476_v18  ;;  %v19485_v6 = vmul.f32 -1.442695, %v24016_v26  ;;  %v24019_v22 = vadd.f32 %v13328_v52, %v13286_v14  ;;  %13594 = vmatpush1.bf16.msra.mxu0 %v21917_v51  ;;  %v21944_v40 = vld [vmem:[#allocation3 + $0x2368] ss:$40 sps:$4 sm:$0xff]   ;;  %v21947_v14 = vld [vmem:[#allocation3 + $0x1e18] ss:$40 sps:$4 sm:$0xff]  }
 0x559   :  { %13637 = vmatpush1.bf16.msra.mxu1 %v21920_v4  ;;  %13595 = vmatprep.subr.bf16.mxu0 %v21925_v5  ;;  %v21949_v4 = vld [vmem:[#allocation3 + $0x1e1c] ss:$40 sps:$4 sm:$0xff]   ;;  %v21950_v52 = vld [vmem:[#allocation3 + $0x2318] ss:$40 sps:$4 sm:$0xff]  }
 0x55a   :  { %13638 = vmatprep.subr.bf16.mxu1 %v21928_v31  ;;  %23273 = vpow2.f32 %v19485_v6  ;;  %v19486_v11 = vmul.f32 -1.442695, %v24019_v22 }
 0x55c   :  { %23275 = vpow2.f32 %v19486_v11  ;;  %13596 = vmatpush1.bf16.msra.mxu0 %v21923_v58  ;;  %v21955_v58 = vld [vmem:[#allocation3 + $0x22cc] ss:$40 sps:$4 sm:$0xff]   ;;  %v21956_v11 = vld [vmem:[#allocation3 + $0x27c8] ss:$40 sps:$4 sm:$0xff]  }
 0x55d   :  { %13639 = vmatpush1.bf16.msra.mxu1 %v21926_v39  ;;  %13597 = vmatprep.subr.bf16.mxu0 %v21931_v38  ;;  %v21958_v39 = vld [vmem:[#allocation3 + $0x27cc] ss:$40 sps:$4 sm:$0xff]  }
 0x55e   :  { %13640 = vmatprep.subr.bf16.mxu1 %v21934_v7  ;;  %v21953_v7 = vld [vmem:[#allocation3 + $0x22c8] ss:$40 sps:$4 sm:$0xff]  }
 0x560   :  { %13598 = vmatpush1.bf16.msra.mxu0 %v21929_v27  ;;  %v21961_v27 = vld [vmem:[#allocation3 + $0x227c] ss:$40 sps:$4 sm:$0xff]  }
 0x561   :  { %13641 = vmatpush1.bf16.msra.mxu1 %v21932_v12  ;;  %13599 = vmatprep.subr.bf16.mxu0 %v21937_v3  ;;  %v21964_v12 = vld [vmem:[#allocation3 + $0x277c] ss:$40 sps:$4 sm:$0xff]   ;;  %v21959_v3 = vld [vmem:[#allocation3 + $0x2278] ss:$40 sps:$4 sm:$0xff]  }
 0x562   :  { %13642 = vmatprep.subr.bf16.mxu1 %v21940_v56  ;;  %v21962_v56 = vld [vmem:[#allocation3 + $0x2778] ss:$40 sps:$4 sm:$0xff]  }
 0x563   :  { %v23270_v55 = vpop.eup %23269 }
 0x564   :  { %v14427_v57 = vadd.f32 1.0, %v23270_v55  ;;  %13600 = vmatpush1.bf16.msra.mxu0 %v21935_v62  ;;  %v21967_v62 = vld [vmem:[#allocation3 + $0x222c] ss:$40 sps:$4 sm:$0xff]   ;;  %v21965_v55 = vld [vmem:[#allocation3 + $0x2228] ss:$40 sps:$4 sm:$0xff]  }
 0x565   :  { %13643 = vmatpush1.bf16.msra.mxu1 %v21938_v19  ;;  %v23272_v51 = vpop.eup %23271  ;;  %13601 = vmatprep.subr.bf16.mxu0 %v21943_v23  ;;  %v21970_v19 = vld [vmem:[#allocation3 + $0x272c] ss:$40 sps:$4 sm:$0xff]  }
 0x566   :  { %13644 = vmatprep.subr.bf16.mxu1 %v21946_v50  ;;  %23277 = vrcp.f32 %v14427_v57  ;;  %v14428_v5 = vadd.f32 1.0, %v23272_v51  ;;  %v21968_v57 = vld [vmem:[#allocation3 + $0x2728] ss:$40 sps:$4 sm:$0xff]   ;;  %v21976_v51 = vld [vmem:[#allocation3 + $0x26dc] ss:$40 sps:$4 sm:$0xff]  }
 0x567   :  { %v23274_v31 = vpop.eup %23273 }
 0x568   :  { %23279 = vrcp.f32 %v14428_v5  ;;  %v14437_v18 = vadd.f32 1.0, %v23274_v31  ;;  %13602 = vmatpush1.bf16.msra.mxu0 %v21941_v43 }
 0x569   :  { %13645 = vmatpush1.bf16.msra.mxu1 %v21944_v40  ;;  %v23276_v6 = vpop.eup %23275  ;;  %13603 = vmatprep.subr.bf16.mxu0 %v21949_v4  ;;  %v21973_v40 = vld [vmem:[#allocation3 + $0x21dc] ss:$40 sps:$4 sm:$0xff]  }
 0x56a   :  { %13646 = vmatprep.subr.bf16.mxu1 %v21952_v61  ;;  %23281 = vrcp.f32 %v14437_v18  ;;  %v14438_v38 = vadd.f32 1.0, %v23276_v6 }
 0x56c   :  { %23283 = vrcp.f32 %v14438_v38  ;;  %13604 = vmatpush1.bf16.msra.mxu0 %v21947_v14 }
 0x56d   :  { %13647 = vmatpush1.bf16.msra.mxu1 %v21950_v52  ;;  %13605 = vmatprep.subr.bf16.mxu0 %v21955_v58  ;;  %v21974_v52 = vld [vmem:[#allocation3 + $0x26d8] ss:$40 sps:$4 sm:$0xff]   ;;  %v21979_v58 = vld [vmem:[#allocation3 + $0x218c] ss:$40 sps:$4 sm:$0xff]  }
 0x56e   :  { %13648 = vmatprep.subr.bf16.mxu1 %v21958_v39  ;;  %v21982_v39 = vld [vmem:[#allocation3 + $0x268c] ss:$40 sps:$4 sm:$0xff]  }
 0x570   :  { %13606 = vmatpush2.bf16.msra.mxu0 %v21953_v7 }
 0x571   :  { %13649 = vmatpush2.bf16.msra.mxu1 %v21956_v11  ;;  %13607 = vmatprep.subr.bf16.mxu0 %v21961_v27 }
 0x572   :  { %13650 = vmatprep.subr.bf16.mxu1 %v21964_v12 }
 0x573   :  { %v23278_v23 = vpop.eup %23277 }
 0x574   :  { %v14487_v50 = vmul.f32 %v23278_v23, %v24007_v25  ;;  %13608 = vmatpush2.bf16.msra.mxu0 %v21959_v3  ;;  %v21971_v25 = vld [vmem:[#allocation3 + $0x21d8] ss:$40 sps:$4 sm:$0xff]  }
 0x575   :  { %13651 = vmatpush2.bf16.msra.mxu1 %v21962_v56  ;;  %v23280_v43 = vpop.eup %23279  ;;  %13609 = vmatprep.subr.bf16.mxu0 %v21967_v62  ;;  %v21980_v62 = vld [vmem:[#allocation3 + $0x2688] ss:$40 sps:$4 sm:$0xff]  }
 0x576   :  { %13652 = vmatprep.subr.bf16.mxu1 %v21970_v19  ;;  %v14630_v4 = vrot.slane %v14487_v50, 4  ;;  %v14488_v61 = vmul.f32 %v23280_v43, %v24012_v60  ;;  %v25674_v19 = vsub.s32 4, %v23570_v63 }
 0x577   :  { %v23282_v5 = vpop.eup %23281 }
 0x578   :  { %v14631_v31 = vadd.f32 %v14630_v4, %v14487_v50  ;;  %v14636_v18 = vrot.slane %v14488_v61, 4  ;;  %v14497_v14 = vmul.f32 %v23282_v5, %v24016_v26  ;;  %13610 = vmatpush2.bf16.msra.mxu0 %v21965_v55  ;;  %v21977_v26 = vld [vmem:[#allocation3 + $0x2188] ss:$40 sps:$4 sm:$0xff]   ;;  %v14765_v23 = vrot.slane %v23772_v17, %v25674_v19  ;;  %v21985_v50 = vld [vmem:[#allocation3 + $0x213c] ss:$40 sps:$4 sm:$0xff]  }
 0x579   :  { %13653 = vmatpush2.bf16.msra.mxu1 %v21968_v57  ;;  %v23284_v6 = vpop.eup %23283  ;;  %13611 = vmatprep.subr.bf16.mxu0 %v21973_v40  ;;  %v21988_v55 = vld [vmem:[#allocation3 + $0x263c] ss:$40 sps:$4 sm:$0xff]  }
 0x57a   :  { %13654 = vmatprep.subr.bf16.mxu1 %v21976_v51  ;;  %v14632_v38 = vrot.slane %v14631_v31, 2  ;;  %v14637_v7 = vadd.f32 %v14636_v18, %v14488_v61  ;;  %v14690_v11 = vrot.slane %v14497_v14, 4  ;;  %v14498_v27 = vmul.f32 %v23284_v6, %v24019_v22  ;;  %v21994_v6 = vld [vmem:[#allocation3 + $0x25ec] ss:$40 sps:$4 sm:$0xff]  }
 0x57b   :  { %v25675_v51 = vsub.s32 5, %v23570_v63 }
 0x57c   :  { %v14633_v60 = vadd.f32 %v14632_v38, %v14631_v31  ;;  %v14638_v12 = vrot.slane %v14637_v7, 2  ;;  %v14691_v3 = vadd.f32 %v14690_v11, %v14497_v14  ;;  %v14696_v56 = vrot.slane %v14498_v27, 4  ;;  %13612 = vmatpush2.bf16.msra.mxu0 %v21971_v25  ;;  %v21983_v14 = vld [vmem:[#allocation3 + $0x2138] ss:$40 sps:$4 sm:$0xff]  }
 0x57d   :  { %13655 = vmatpush2.bf16.msra.mxu1 %v21974_v52  ;;  %13613 = vmatprep.subr.bf16.mxu0 %v21979_v58  ;;  %v14769_v4 = vrot.slane %v23772_v17, %v25675_v51  ;;  %v21986_v25 = vld [vmem:[#allocation3 + $0x2638] ss:$40 sps:$4 sm:$0xff]   ;;  %v21991_v52 = vld [vmem:[#allocation3 + $0x20ec] ss:$40 sps:$4 sm:$0xff]  }
 0x57e   :  { %13656 = vmatprep.subr.bf16.mxu1 %v21982_v39  ;;  %v14634_v57 = vrot.slane %v14633_v60, 1  ;;  %v14639_v43 = vadd.f32 %v14638_v12, %v14637_v7  ;;  %v14692_v40 = vrot.slane %v14691_v3, 2  ;;  %v14697_v22 = vadd.f32 %v14696_v56, %v14498_v27  ;;  %v21992_v12 = vld [vmem:[#allocation3 + $0x25e8] ss:$40 sps:$4 sm:$0xff]   ;;  %v21997_v56 = vld [vmem:[#allocation3 + $0x209c] ss:$40 sps:$4 sm:$0xff]  }
 0x580   :  { %v14635_v61 = vadd.f32 %v14634_v57, %v14633_v60  ;;  %v14640_v5 = vrot.slane %v14639_v43, 1  ;;  %v14693_v31 = vadd.f32 %v14692_v40, %v14691_v3  ;;  %v14698_v18 = vrot.slane %v14697_v22, 2  ;;  %13614 = vmatpush2.bf16.msra.mxu0 %v21977_v26  ;;  %v21989_v60 = vld [vmem:[#allocation3 + $0x20e8] ss:$40 sps:$4 sm:$0xff]   ;;  %v22000_v26 = vld [vmem:[#allocation3 + $0x259c] ss:$40 sps:$4 sm:$0xff]  }
 0x581   :  { %13657 = vmatpush2.bf16.msra.mxu1 %v21980_v62  ;;  %13615 = vmatprep.subr.bf16.mxu0 %v21985_v50 }
 0x582   :  { %13658 = vmatprep.subr.bf16.mxu1 %v21988_v55  ;;  %v14800_v58 = vsub.f32 %v14635_v61, %v14765_v23  ;;  %v14641_v39 = vadd.f32 %v14640_v5, %v14639_v43  ;;  %v14694_v38 = vrot.slane %v14693_v31, 1  ;;  %v14699_v7 = vadd.f32 %v14698_v18, %v14697_v22  ;;  %v21995_v55 = vld [vmem:[#allocation3 + $0x2098] ss:$40 sps:$4 sm:$0xff]   ;;  %v22003_v61 = vld [vmem:[#allocation3 + $0x2a4c] ss:$40 sps:$4 sm:$0xff]  }
 0x583   :  { %v21998_v43 = vld [vmem:[#allocation3 + $0x2598] ss:$40 sps:$4 sm:$0xff]   ;;  %v25638_v22 = vsub.s32 6, %v23570_v63  ;;  %v22006_v5 = vld [vmem:[#allocation3 + $0x2f4c] ss:$40 sps:$4 sm:$0xff]  }
 0x584   :  { %v14695_v11 = vadd.f32 %v14694_v38, %v14693_v31  ;;  %v14700_v27 = vrot.slane %v14699_v7, 1  ;;  %13616 = vmatpush2.bf16.msra.mxu0 %v21983_v14  ;;  %v14801_v3 = vsub.f32 %v14641_v39, %v14769_v4  ;;  %v14820_v62 = vmul.f32 0.25, %v14800_v58  ;;  %v22009_v38 = vld [vmem:[#allocation3 + $0x29fc] ss:$40 sps:$4 sm:$0xff]  }
 0x585   :  { %13659 = vmatpush2.bf16.msra.mxu1 %v21986_v25  ;;  %13617 = vmatprep.subr.bf16.mxu0 %v21991_v52  ;;  %v22001_v52 = vld [vmem:[#allocation3 + $0x2a48] ss:$40 sps:$4 sm:$0xff]  }
 0x586   :  { %13660 = vmatprep.subr.bf16.mxu1 %v21994_v6  ;;  %v14810_v19 = vsub.f32 %v14695_v11, %v14765_v23  ;;  %v14701_v50 = vadd.f32 %v14700_v27, %v14699_v7  ;;  %v14821_v51 = vmul.f32 0.25, %v14801_v3  ;;  %v14840_v31 = vpack.c.bf16 %v14820_v62, %v14820_v62  ;;  %v23343_v23 = vld [vmem:[%s25624_s2] sm:$0xff]  ;;  %v22004_v6 = vld [vmem:[#allocation3 + $0x2f48] ss:$40 sps:$4 sm:$0xff]  }
 0x587   :  { %v22012_v7 = vld [vmem:[#allocation3 + $0x2efc] ss:$40 sps:$4 sm:$0xff]   ;;  %v22010_v62 = vld [vmem:[#allocation3 + $0x2ef8] ss:$40 sps:$4 sm:$0xff]  }
 0x588   :  { %v14830_v57 = vmul.f32 0.25, %v14810_v19  ;;  %v14811_v40 = vsub.f32 %v14701_v50, %v14769_v4  ;;  %13618 = vmatpush2.bf16.msra.mxu0 %v21989_v60  ;;  %v2040_v4 = vrot.slane %v23343_v23, %v25638_v22  ;;  %v14841_v58 = vpack.c.bf16 %v14821_v51, %v14821_v51  ;;  %v22018_v51 = vld [vmem:[#allocation3 + $0x2eac] ss:$40 sps:$4 sm:$0xff]   ;;  %v22556_v22 = vld [vmem:[#allocation3 + $0x2690] ss:$40 sps:$4 sm:$0xff]  }
 0x589   :  { %13661 = vmatpush2.bf16.msra.mxu1 %v21992_v12  ;;  %13619 = vmatprep.subr.bf16.mxu0 %v21997_v56  ;;  %v15222_v11 = vunpack.c.l.b16 %v14840_v31 }
 0x58a   :  { %13662 = vmatprep.subr.bf16.mxu1 %v22000_v26  ;;  %v14850_v18 = vpack.c.bf16 %v14830_v57, %v14830_v57  ;;  %v14831_v14 = vmul.f32 0.25, %v14811_v40  ;;  %v22007_v26 = vld [vmem:[#allocation3 + $0x29f8] ss:$40 sps:$4 sm:$0xff]   ;;  %v15223_v19 = vunpack.c.l.b16 %v14841_v58 }
 0x58c   :  { %v15232_v25 = vunpack.c.l.b16 %v14850_v18  ;;  %13620 = vmatpush2.bf16.msra.mxu0 %v21995_v55  ;;  %v14851_v39 = vpack.c.bf16 %v14831_v14, %v14831_v14  ;;  %v22013_v14 = vld [vmem:[#allocation3 + $0x29a8] ss:$40 sps:$4 sm:$0xff]  }
 0x58d   :  { %13663 = vmatpush2.bf16.msra.mxu1 %v21998_v43  ;;  %13675 = vmatprep.subr.bf16.mxu0 %v22003_v61  ;;  %v22015_v43 = vld [vmem:[#allocation3 + $0x29ac] ss:$40 sps:$4 sm:$0xff]  }
 0x58e   :  { %13718 = vmatprep.subr.bf16.mxu1 %v22006_v5  ;;  %v15247_v27 = vrot.slane %v15232_v25, 7  ;;  %v15233_v60 = vunpack.c.l.b16 %v14851_v39  ;;  %v22016_v25 = vld [vmem:[#allocation3 + $0x2ea8] ss:$40 sps:$4 sm:$0xff]   ;;  %v22019_v39 = vld [vmem:[#allocation3 + $0x2958] ss:$40 sps:$4 sm:$0xff]  }
 0x58f   :  { %v13365_v12 = vpop.f32.mrf.mxu0  ;;  %13622 = vmatmul.mubr.bf16.vlgmr.msra.gmra.mxu0 %v23598_v15 }
 0x590   :  { %v13408_v3 = vpop.f32.mrf.mxu1  ;;  %13665 = vmatmul.mubr.bf16.vlgmr.msra.gmra.mxu1 %v23602_v16  ;;  %v13366_v56 = vadd.f32 %v13365_v12, %v2040_v4  ;;  %13676 = vmatpush1.bf16.msra.mxu0 %v22001_v52  ;;  %v15249_v50 = vrot.slane %v15233_v60, 7  ;;  %v24041_v55 = vsel %vm15239_vm0, %v15247_v27, %v15222_v11  ;;  %v22021_v52 = vld [vmem:[#allocation3 + $0x295c] ss:$40 sps:$4 sm:$0xff]   ;;  %v22030_v11 = vld [vmem:[#allocation3 + $0x2e0c] ss:$40 sps:$4 sm:$0xff]  }
 0x591   :  { %13719 = vmatpush1.bf16.msra.mxu1 %v22004_v6  ;;  %25676 = vst [vmem:[#allocation44_spill] sm:$0xff] %v24041_v55  ;;  %v24043_v57 = vpop.f32.mrf.mxu0  ;;  %13677 = vmatprep.subr.bf16.mxu0 %v22009_v38  ;;  %v22024_v6 = vld [vmem:[#allocation3 + $0x2e5c] ss:$40 sps:$4 sm:$0xff]   ;;  %v22022_v38 = vld [vmem:[#allocation3 + $0x2e58] ss:$40 sps:$4 sm:$0xff]  }
 0x592   :  { %v24045_v40 = vpop.f32.mrf.mxu1  ;;  %13720 = vmatprep.subr.bf16.mxu1 %v22012_v7  ;;  %v24047_v61 = vadd.f32 %v13408_v3, %v13366_v56  ;;  %13707 = vmatprep.mubr.bf16.mxu0 %v23615_v46  ;;  %v24052_v5 = vsel %vm15239_vm0, %v15249_v50, %v15223_v19  ;;  %v22027_v7 = vld [vmem:[#allocation3 + $0x290c] ss:$40 sps:$4 sm:$0xff]   ;;  %v22028_v27 = vld [vmem:[#allocation3 + $0x2e08] ss:$40 sps:$4 sm:$0xff]   ;;  %v22033_v60 = vld [vmem:[#allocation3 + $0x28bc] ss:$40 sps:$4 sm:$0xff]  }
 0x593   :  { %13750 = vmatprep.mubr.bf16.mxu1 %v23619_v47  ;;  %v13369_v31 = vpop.f32.mrf.mxu0  ;;  %v22036_v12 = vld [vmem:[#allocation3 + $0x2dbc] ss:$40 sps:$4 sm:$0xff]   ;;  %v22031_v3 = vld [vmem:[#allocation3 + $0x28b8] ss:$40 sps:$4 sm:$0xff]   ;;  %v22037_v19 = vld [vmem:[#allocation3 + $0x2868] ss:$40 sps:$4 sm:$0xff]  }
 0x594   :  { %v13370_v18 = vadd.f32 %v13369_v31, %v2040_v4  ;;  %13678 = vmatpush1.bf16.msra.mxu0 %v22007_v26  ;;  %v13412_v23 = vpop.f32.mrf.mxu1  ;;  %v22025_v4 = vld [vmem:[#allocation3 + $0x2908] ss:$40 sps:$4 sm:$0xff]   ;;  %v22034_v56 = vld [vmem:[#allocation3 + $0x2db8] ss:$40 sps:$4 sm:$0xff]   ;;  %v22039_v26 = vld [vmem:[#allocation3 + $0x286c] ss:$40 sps:$4 sm:$0xff]  }
 0x595   :  { %13721 = vmatpush1.bf16.msra.mxu1 %v22010_v62  ;;  %13679 = vmatprep.subr.bf16.mxu0 %v22015_v43  ;;  %v22042_v62 = vld [vmem:[#allocation3 + $0x2d6c] ss:$40 sps:$4 sm:$0xff]   ;;  %v22040_v50 = vld [vmem:[#allocation3 + $0x2d68] ss:$40 sps:$4 sm:$0xff]   ;;  %v22045_v43 = vld [vmem:[#allocation3 + $0x281c] ss:$40 sps:$4 sm:$0xff]  }
 0x596   :  { %13722 = vmatprep.subr.bf16.mxu1 %v22018_v51  ;;  %v24054_v58 = vadd.f32 %v13412_v23, %v13370_v18  ;;  %v22048_v51 = vld [vmem:[#allocation3 + $0x2d1c] ss:$40 sps:$4 sm:$0xff]   ;;  %v22043_v31 = vld [vmem:[#allocation3 + $0x2818] ss:$40 sps:$4 sm:$0xff]   ;;  %v22049_v23 = vld [vmem:[#allocation3 + $0x2cc8] ss:$40 sps:$4 sm:$0xff]  }
 0x597   :  { %v22046_v18 = vld [vmem:[#allocation3 + $0x2d18] ss:$40 sps:$4 sm:$0xff]  }
 0x598   :  { %13680 = vmatpush1.bf16.msra.mxu0 %v22013_v14  ;;  %v22051_v14 = vld [vmem:[#allocation3 + $0x2ccc] ss:$40 sps:$4 sm:$0xff]   ;;  %v22568_v55 = vld [vmem:[#allocation3 + $0x25f0] ss:$40 sps:$4 sm:$0xff]  }
 0x599   :  { %13723 = vmatpush1.bf16.msra.mxu1 %v22016_v25  ;;  %13681 = vmatprep.subr.bf16.mxu0 %v22021_v52  ;;  %v22054_v25 = vld [vmem:[#allocation3 + $0x31cc] ss:$40 sps:$4 sm:$0xff]   ;;  %v22052_v52 = vld [vmem:[#allocation3 + $0x31c8] ss:$40 sps:$4 sm:$0xff]  }
 0x59a   :  { %13724 = vmatprep.subr.bf16.mxu1 %v22024_v6  ;;  %v22057_v6 = vld [vmem:[#allocation3 + $0x2c7c] ss:$40 sps:$4 sm:$0xff]  }
 0x59c   :  { %13682 = vmatpush1.bf16.msra.mxu0 %v22019_v39  ;;  %v22060_v39 = vld [vmem:[#allocation3 + $0x317c] ss:$40 sps:$4 sm:$0xff]  }
 0x59d   :  { %13725 = vmatpush1.bf16.msra.mxu1 %v22022_v38  ;;  %13683 = vmatprep.subr.bf16.mxu0 %v22027_v7  ;;  %v22055_v38 = vld [vmem:[#allocation3 + $0x2c78] ss:$40 sps:$4 sm:$0xff]  }
 0x59e   :  { %13726 = vmatprep.subr.bf16.mxu1 %v22030_v11  ;;  %v22058_v7 = vld [vmem:[#allocation3 + $0x3178] ss:$40 sps:$4 sm:$0xff]   ;;  %v22063_v11 = vld [vmem:[#allocation3 + $0x2c2c] ss:$40 sps:$4 sm:$0xff]  }
 0x5a0   :  { %13684 = vmatpush1.bf16.msra.mxu0 %v22025_v4  ;;  %v22066_v4 = vld [vmem:[#allocation3 + $0x312c] ss:$40 sps:$4 sm:$0xff]  }
 0x5a1   :  { %13727 = vmatpush1.bf16.msra.mxu1 %v22028_v27  ;;  %13685 = vmatprep.subr.bf16.mxu0 %v22033_v60  ;;  %v22061_v27 = vld [vmem:[#allocation3 + $0x2c28] ss:$40 sps:$4 sm:$0xff]  }
 0x5a2   :  { %13728 = vmatprep.subr.bf16.mxu1 %v22036_v12  ;;  %v22064_v60 = vld [vmem:[#allocation3 + $0x3128] ss:$40 sps:$4 sm:$0xff]   ;;  %v22069_v12 = vld [vmem:[#allocation3 + $0x2bdc] ss:$40 sps:$4 sm:$0xff]  }
 0x5a4   :  { %13686 = vmatpush1.bf16.msra.mxu0 %v22031_v3  ;;  %v22072_v3 = vld [vmem:[#allocation3 + $0x30dc] ss:$40 sps:$4 sm:$0xff]  }
 0x5a5   :  { %13729 = vmatpush1.bf16.msra.mxu1 %v22034_v56  ;;  %13687 = vmatprep.subr.bf16.mxu0 %v22039_v26  ;;  %v22067_v56 = vld [vmem:[#allocation3 + $0x2bd8] ss:$40 sps:$4 sm:$0xff]  }
 0x5a6   :  { %13730 = vmatprep.subr.bf16.mxu1 %v22042_v62  ;;  %v22070_v26 = vld [vmem:[#allocation3 + $0x30d8] ss:$40 sps:$4 sm:$0xff]   ;;  %v22075_v62 = vld [vmem:[#allocation3 + $0x2b8c] ss:$40 sps:$4 sm:$0xff]  }
 0x5a8   :  { %13688 = vmatpush1.bf16.msra.mxu0 %v22037_v19  ;;  %v22078_v19 = vld [vmem:[#allocation3 + $0x308c] ss:$40 sps:$4 sm:$0xff]  }
 0x5a9   :  { %13731 = vmatpush1.bf16.msra.mxu1 %v22040_v50  ;;  %13689 = vmatprep.subr.bf16.mxu0 %v22045_v43  ;;  %v22073_v50 = vld [vmem:[#allocation3 + $0x2b88] ss:$40 sps:$4 sm:$0xff]  }
 0x5aa   :  { %13732 = vmatprep.subr.bf16.mxu1 %v22048_v51  ;;  %v22076_v43 = vld [vmem:[#allocation3 + $0x3088] ss:$40 sps:$4 sm:$0xff]   ;;  %v22081_v51 = vld [vmem:[#allocation3 + $0x2b3c] ss:$40 sps:$4 sm:$0xff]  }
 0x5ac   :  { %13690 = vmatpush1.bf16.msra.mxu0 %v22043_v31  ;;  %v22084_v31 = vld [vmem:[#allocation3 + $0x303c] ss:$40 sps:$4 sm:$0xff]  }
 0x5ad   :  { %13733 = vmatpush1.bf16.msra.mxu1 %v22046_v18  ;;  %13691 = vmatprep.subr.bf16.mxu0 %v22051_v14  ;;  %v22079_v18 = vld [vmem:[#allocation3 + $0x2b38] ss:$40 sps:$4 sm:$0xff]  }
 0x5ae   :  { %13734 = vmatprep.subr.bf16.mxu1 %v22054_v25  ;;  %v22082_v14 = vld [vmem:[#allocation3 + $0x3038] ss:$40 sps:$4 sm:$0xff]   ;;  %v22087_v25 = vld [vmem:[#allocation3 + $0x2aec] ss:$40 sps:$4 sm:$0xff]  }
 0x5b0   :  { %13692 = vmatpush2.bf16.msra.mxu0 %v22049_v23  ;;  %v22090_v23 = vld [vmem:[#allocation3 + $0x2fec] ss:$40 sps:$4 sm:$0xff]  }
 0x5b1   :  { %13735 = vmatpush2.bf16.msra.mxu1 %v22052_v52  ;;  %13693 = vmatprep.subr.bf16.mxu0 %v22057_v6  ;;  %v22085_v52 = vld [vmem:[#allocation3 + $0x2ae8] ss:$40 sps:$4 sm:$0xff]  }
 0x5b2   :  { %13736 = vmatprep.subr.bf16.mxu1 %v22060_v39  ;;  %v22088_v6 = vld [vmem:[#allocation3 + $0x2fe8] ss:$40 sps:$4 sm:$0xff]   ;;  %v22093_v39 = vld [vmem:[#allocation3 + $0x2a9c] ss:$40 sps:$4 sm:$0xff]  }
 0x5b4   :  { %13694 = vmatpush2.bf16.msra.mxu0 %v22055_v38  ;;  %v22096_v38 = vld [vmem:[#allocation3 + $0x2f9c] ss:$40 sps:$4 sm:$0xff]  }
 0x5b5   :  { %13737 = vmatpush2.bf16.msra.mxu1 %v22058_v7  ;;  %13695 = vmatprep.subr.bf16.mxu0 %v22063_v11  ;;  %v22091_v7 = vld [vmem:[#allocation3 + $0x2a98] ss:$40 sps:$4 sm:$0xff]  }
 0x5b6   :  { %13738 = vmatprep.subr.bf16.mxu1 %v22066_v4  ;;  %v22094_v11 = vld [vmem:[#allocation3 + $0x2f98] ss:$40 sps:$4 sm:$0xff]   ;;  %v22099_v4 = vld [vmem:[#allocation3 + $0x344c] ss:$40 sps:$4 sm:$0xff]  }
 0x5b8   :  { %13696 = vmatpush2.bf16.msra.mxu0 %v22061_v27  ;;  %v22102_v27 = vld [vmem:[#allocation3 + $0x394c] ss:$40 sps:$4 sm:$0xff]  }
 0x5b9   :  { %13739 = vmatpush2.bf16.msra.mxu1 %v22064_v60  ;;  %13697 = vmatprep.subr.bf16.mxu0 %v22069_v12  ;;  %v22097_v60 = vld [vmem:[#allocation3 + $0x3448] ss:$40 sps:$4 sm:$0xff]  }
 0x5ba   :  { %13740 = vmatprep.subr.bf16.mxu1 %v22072_v3  ;;  %v22100_v12 = vld [vmem:[#allocation3 + $0x3948] ss:$40 sps:$4 sm:$0xff]   ;;  %v24056_v3 = vpop.f32.mrf.mxu0 }
 0x5bc   :  { %13698 = vmatpush2.bf16.msra.mxu0 %v22067_v56  ;;  %v24058_v56 = vpop.f32.mrf.mxu1 }
 0x5bd   :  { %13741 = vmatpush2.bf16.msra.mxu1 %v22070_v26  ;;  %13699 = vmatprep.subr.bf16.mxu0 %v22075_v62  ;;  %v22105_v26 = vld [vmem:[#allocation3 + $0x33fc] ss:$40 sps:$4 sm:$0xff]  }
 0x5be   :  { %13742 = vmatprep.subr.bf16.mxu1 %v22078_v19  ;;  %v22108_v62 = vld [vmem:[#allocation3 + $0x38fc] ss:$40 sps:$4 sm:$0xff]  }
 0x5c0   :  { %13700 = vmatpush2.bf16.msra.mxu0 %v22073_v50 }
 0x5c1   :  { %13743 = vmatpush2.bf16.msra.mxu1 %v22076_v43  ;;  %13701 = vmatprep.subr.bf16.mxu0 %v22081_v51  ;;  %v22103_v51 = vld [vmem:[#allocation3 + $0x33f8] ss:$40 sps:$4 sm:$0xff]  }
 0x5c2   :  { %13744 = vmatprep.subr.bf16.mxu1 %v22084_v31  ;;  %v22106_v31 = vld [vmem:[#allocation3 + $0x38f8] ss:$40 sps:$4 sm:$0xff]  }
 0x5c4   :  { %13702 = vmatpush2.bf16.msra.mxu0 %v22079_v18 }
 0x5c5   :  { %13745 = vmatpush2.bf16.msra.mxu1 %v22082_v14  ;;  %13703 = vmatprep.subr.bf16.mxu0 %v22087_v25  ;;  %v22111_v25 = vld [vmem:[#allocation3 + $0x33ac] ss:$40 sps:$4 sm:$0xff]  }
 0x5c6   :  { %13746 = vmatprep.subr.bf16.mxu1 %v22090_v23  ;;  %v22114_v23 = vld [vmem:[#allocation3 + $0x38ac] ss:$40 sps:$4 sm:$0xff]  }
 0x5c8   :  { %13704 = vmatpush2.bf16.msra.mxu0 %v22085_v52 }
 0x5c9   :  { %13747 = vmatpush2.bf16.msra.mxu1 %v22088_v6  ;;  %13705 = vmatprep.subr.bf16.mxu0 %v22093_v39  ;;  %v22109_v39 = vld [vmem:[#allocation3 + $0x33a8] ss:$40 sps:$4 sm:$0xff]  }
 0x5ca   :  { %13748 = vmatprep.subr.bf16.mxu1 %v22096_v38  ;;  %v22112_v38 = vld [vmem:[#allocation3 + $0x38a8] ss:$40 sps:$4 sm:$0xff]  }
 0x5cc   :  { %13706 = vmatpush2.bf16.msra.mxu0 %v22091_v7 }
 0x5cd   :  { %13749 = vmatpush2.bf16.msra.mxu1 %v22094_v11  ;;  %13761 = vmatprep.subr.bf16.mxu0 %v22099_v4  ;;  %v22117_v11 = vld [vmem:[#allocation3 + $0x335c] ss:$40 sps:$4 sm:$0xff]  }
 0x5ce   :  { %13804 = vmatprep.subr.bf16.mxu1 %v22102_v27  ;;  %v22120_v4 = vld [vmem:[#allocation3 + $0x385c] ss:$40 sps:$4 sm:$0xff]  }
 0x5cf   :  { %v13451_v19 = vpop.f32.mrf.mxu0  ;;  %13708 = vmatmul.mubr.bf16.vlgmr.msra.gmra.mxu0 %v23654_v32 }
 0x5d0   :  { %v13494_v50 = vpop.f32.mrf.mxu1  ;;  %13751 = vmatmul.mubr.bf16.vlgmr.msra.gmra.mxu1 %v23658_v35  ;;  %v13452_v43 = vadd.f32 %v13451_v19, %v24047_v61  ;;  %13762 = vmatpush1.bf16.msra.mxu0 %v22097_v60  ;;  %v22115_v60 = vld [vmem:[#allocation3 + $0x3358] ss:$40 sps:$4 sm:$0xff]   ;;  %v22124_v19 = vld [vmem:[#allocation3 + $0x3808] ss:$40 sps:$4 sm:$0xff]  }
 0x5d1   :  { %13805 = vmatpush1.bf16.msra.mxu1 %v22100_v12  ;;  %v24063_v18 = vpop.f32.mrf.mxu0  ;;  %13763 = vmatprep.subr.bf16.mxu0 %v22105_v26  ;;  %v22118_v12 = vld [vmem:[#allocation3 + $0x3858] ss:$40 sps:$4 sm:$0xff]   ;;  %v22123_v26 = vld [vmem:[#allocation3 + $0x330c] ss:$40 sps:$4 sm:$0xff]  }
 0x5d2   :  { %v24065_v14 = vpop.f32.mrf.mxu1  ;;  %13806 = vmatprep.subr.bf16.mxu1 %v22108_v62  ;;  %v24067_v52 = vadd.f32 %v13494_v50, %v13452_v43  ;;  %13793 = vmatprep.mubr.bf16.mxu0 %v23666_v10  ;;  %v22126_v62 = vld [vmem:[#allocation3 + $0x380c] ss:$40 sps:$4 sm:$0xff]   ;;  %v22129_v50 = vld [vmem:[#allocation3 + $0x32bc] ss:$40 sps:$4 sm:$0xff]  }
 0x5d3   :  { %13836 = vmatprep.mubr.bf16.mxu1 %v23670_v13  ;;  %v13455_v6 = vpop.f32.mrf.mxu0  ;;  %v22132_v43 = vld [vmem:[#allocation3 + $0x37bc] ss:$40 sps:$4 sm:$0xff]  }
 0x5d4   :  { %v13456_v61 = vadd.f32 %v13455_v6, %v24054_v58  ;;  %13764 = vmatpush1.bf16.msra.mxu0 %v22103_v51  ;;  %v13498_v7 = vpop.f32.mrf.mxu1  ;;  %v22121_v58 = vld [vmem:[#allocation3 + $0x3308] ss:$40 sps:$4 sm:$0xff]   ;;  %v22127_v51 = vld [vmem:[#allocation3 + $0x32b8] ss:$40 sps:$4 sm:$0xff]  }
 0x5d5   :  { %13807 = vmatpush1.bf16.msra.mxu1 %v22106_v31  ;;  %13765 = vmatprep.subr.bf16.mxu0 %v22111_v25  ;;  %v22130_v31 = vld [vmem:[#allocation3 + $0x37b8] ss:$40 sps:$4 sm:$0xff]   ;;  %v22135_v25 = vld [vmem:[#allocation3 + $0x326c] ss:$40 sps:$4 sm:$0xff]   ;;  %v22133_v6 = vld [vmem:[#allocation3 + $0x3268] ss:$40 sps:$4 sm:$0xff]  }
 0x5d6   :  { %13808 = vmatprep.subr.bf16.mxu1 %v22114_v23  ;;  %v24072_v27 = vadd.f32 %v13498_v7, %v13456_v61  ;;  %v22138_v23 = vld [vmem:[#allocation3 + $0x376c] ss:$40 sps:$4 sm:$0xff]   ;;  %v22136_v61 = vld [vmem:[#allocation3 + $0x3768] ss:$40 sps:$4 sm:$0xff]   ;;  %v22139_v7 = vld [vmem:[#allocation3 + $0x3218] ss:$40 sps:$4 sm:$0xff]  }
 0x5d8   :  { %13766 = vmatpush1.bf16.msra.mxu0 %v22109_v39  ;;  %v22141_v39 = vld [vmem:[#allocation3 + $0x321c] ss:$40 sps:$4 sm:$0xff]  }
 0x5d9   :  { %13809 = vmatpush1.bf16.msra.mxu1 %v22112_v38  ;;  %13767 = vmatprep.subr.bf16.mxu0 %v22117_v11  ;;  %v22144_v38 = vld [vmem:[#allocation3 + $0x371c] ss:$40 sps:$4 sm:$0xff]   ;;  %v22142_v11 = vld [vmem:[#allocation3 + $0x3718] ss:$40 sps:$4 sm:$0xff]  }
 0x5da   :  { %13810 = vmatprep.subr.bf16.mxu1 %v22120_v4  ;;  %v22147_v4 = vld [vmem:[#allocation3 + $0x36cc] ss:$40 sps:$4 sm:$0xff]  }
 0x5dc   :  { %13768 = vmatpush1.bf16.msra.mxu0 %v22115_v60  ;;  %v22150_v60 = vld [vmem:[#allocation3 + $0x3bcc] ss:$40 sps:$4 sm:$0xff]  }
 0x5dd   :  { %13811 = vmatpush1.bf16.msra.mxu1 %v22118_v12  ;;  %13769 = vmatprep.subr.bf16.mxu0 %v22123_v26  ;;  %v22145_v12 = vld [vmem:[#allocation3 + $0x36c8] ss:$40 sps:$4 sm:$0xff]  }
 0x5de   :  { %13812 = vmatprep.subr.bf16.mxu1 %v22126_v62  ;;  %v22148_v26 = vld [vmem:[#allocation3 + $0x3bc8] ss:$40 sps:$4 sm:$0xff]   ;;  %v22153_v62 = vld [vmem:[#allocation3 + $0x367c] ss:$40 sps:$4 sm:$0xff]  }
 0x5e0   :  { %13770 = vmatpush1.bf16.msra.mxu0 %v22121_v58  ;;  %v22156_v58 = vld [vmem:[#allocation3 + $0x3b7c] ss:$40 sps:$4 sm:$0xff]  }
 0x5e1   :  { %13813 = vmatpush1.bf16.msra.mxu1 %v22124_v19  ;;  %13771 = vmatprep.subr.bf16.mxu0 %v22129_v50  ;;  %v22151_v19 = vld [vmem:[#allocation3 + $0x3678] ss:$40 sps:$4 sm:$0xff]  }
 0x5e2   :  { %13814 = vmatprep.subr.bf16.mxu1 %v22132_v43  ;;  %v22154_v50 = vld [vmem:[#allocation3 + $0x3b78] ss:$40 sps:$4 sm:$0xff]   ;;  %v22159_v43 = vld [vmem:[#allocation3 + $0x362c] ss:$40 sps:$4 sm:$0xff]  }
 0x5e4   :  { %13772 = vmatpush1.bf16.msra.mxu0 %v22127_v51  ;;  %v22162_v51 = vld [vmem:[#allocation3 + $0x3b2c] ss:$40 sps:$4 sm:$0xff]  }
 0x5e5   :  { %13815 = vmatpush1.bf16.msra.mxu1 %v22130_v31  ;;  %13773 = vmatprep.subr.bf16.mxu0 %v22135_v25  ;;  %v22157_v31 = vld [vmem:[#allocation3 + $0x3628] ss:$40 sps:$4 sm:$0xff]  }
 0x5e6   :  { %13816 = vmatprep.subr.bf16.mxu1 %v22138_v23  ;;  %v22160_v25 = vld [vmem:[#allocation3 + $0x3b28] ss:$40 sps:$4 sm:$0xff]   ;;  %v22165_v23 = vld [vmem:[#allocation3 + $0x35dc] ss:$40 sps:$4 sm:$0xff]  }
 0x5e8   :  { %13774 = vmatpush1.bf16.msra.mxu0 %v22133_v6  ;;  %v22168_v6 = vld [vmem:[#allocation3 + $0x3adc] ss:$40 sps:$4 sm:$0xff]  }
 0x5e9   :  { %13817 = vmatpush1.bf16.msra.mxu1 %v22136_v61  ;;  %13775 = vmatprep.subr.bf16.mxu0 %v22141_v39  ;;  %v22163_v61 = vld [vmem:[#allocation3 + $0x35d8] ss:$40 sps:$4 sm:$0xff]  }
 0x5ea   :  { %13818 = vmatprep.subr.bf16.mxu1 %v22144_v38  ;;  %v22166_v39 = vld [vmem:[#allocation3 + $0x3ad8] ss:$40 sps:$4 sm:$0xff]   ;;  %v22171_v38 = vld [vmem:[#allocation3 + $0x358c] ss:$40 sps:$4 sm:$0xff]  }
 0x5ec   :  { %13776 = vmatpush1.bf16.msra.mxu0 %v22139_v7  ;;  %v22174_v7 = vld [vmem:[#allocation3 + $0x3a8c] ss:$40 sps:$4 sm:$0xff]  }
 0x5ed   :  { %13819 = vmatpush1.bf16.msra.mxu1 %v22142_v11  ;;  %13777 = vmatprep.subr.bf16.mxu0 %v22147_v4  ;;  %v22169_v11 = vld [vmem:[#allocation3 + $0x3588] ss:$40 sps:$4 sm:$0xff]  }
 0x5ee   :  { %13820 = vmatprep.subr.bf16.mxu1 %v22150_v60  ;;  %v22172_v4 = vld [vmem:[#allocation3 + $0x3a88] ss:$40 sps:$4 sm:$0xff]   ;;  %v22177_v60 = vld [vmem:[#allocation3 + $0x353c] ss:$40 sps:$4 sm:$0xff]  }
 0x5f0   :  { %13778 = vmatpush2.bf16.msra.mxu0 %v22145_v12  ;;  %v22180_v12 = vld [vmem:[#allocation3 + $0x3a3c] ss:$40 sps:$4 sm:$0xff]  }
 0x5f1   :  { %13821 = vmatpush2.bf16.msra.mxu1 %v22148_v26  ;;  %13779 = vmatprep.subr.bf16.mxu0 %v22153_v62  ;;  %v22175_v26 = vld [vmem:[#allocation3 + $0x3538] ss:$40 sps:$4 sm:$0xff]  }
 0x5f2   :  { %13822 = vmatprep.subr.bf16.mxu1 %v22156_v58  ;;  %v22178_v62 = vld [vmem:[#allocation3 + $0x3a38] ss:$40 sps:$4 sm:$0xff]   ;;  %v22183_v58 = vld [vmem:[#allocation3 + $0x34ec] ss:$40 sps:$4 sm:$0xff]  }
 0x5f4   :  { %13780 = vmatpush2.bf16.msra.mxu0 %v22151_v19  ;;  %v22186_v19 = vld [vmem:[#allocation3 + $0x39ec] ss:$40 sps:$4 sm:$0xff]  }
 0x5f5   :  { %13823 = vmatpush2.bf16.msra.mxu1 %v22154_v50  ;;  %13781 = vmatprep.subr.bf16.mxu0 %v22159_v43  ;;  %v22181_v50 = vld [vmem:[#allocation3 + $0x34e8] ss:$40 sps:$4 sm:$0xff]  }
 0x5f6   :  { %13824 = vmatprep.subr.bf16.mxu1 %v22162_v51  ;;  %v22184_v43 = vld [vmem:[#allocation3 + $0x39e8] ss:$40 sps:$4 sm:$0xff]   ;;  %v22189_v51 = vld [vmem:[#allocation3 + $0x349c] ss:$40 sps:$4 sm:$0xff]  }
 0x5f8   :  { %13782 = vmatpush2.bf16.msra.mxu0 %v22157_v31  ;;  %v22192_v31 = vld [vmem:[#allocation3 + $0x399c] ss:$40 sps:$4 sm:$0xff]  }
 0x5f9   :  { %13825 = vmatpush2.bf16.msra.mxu1 %v22160_v25  ;;  %13783 = vmatprep.subr.bf16.mxu0 %v22165_v23  ;;  %v22187_v25 = vld [vmem:[#allocation3 + $0x3498] ss:$40 sps:$4 sm:$0xff]  }
 0x5fa   :  { %13826 = vmatprep.subr.bf16.mxu1 %v22168_v6  ;;  %v22190_v23 = vld [vmem:[#allocation3 + $0x3998] ss:$40 sps:$4 sm:$0xff]   ;;  %v22195_v6 = vld [vmem:[#allocation3 + $0x254] ss:$40 sps:$4 sm:$0xff]  }
 0x5fc   :  { %13784 = vmatpush2.bf16.msra.mxu0 %v22163_v61  ;;  %v22198_v61 = vld [vmem:[#allocation3 + $0x754] ss:$40 sps:$4 sm:$0xff]  }
 0x5fd   :  { %13827 = vmatpush2.bf16.msra.mxu1 %v22166_v39  ;;  %13785 = vmatprep.subr.bf16.mxu0 %v22171_v38  ;;  %v22193_v39 = vld [vmem:[#allocation3 + $0x250] ss:$40 sps:$4 sm:$0xff]  }
 0x5fe   :  { %13828 = vmatprep.subr.bf16.mxu1 %v22174_v7  ;;  %v22196_v38 = vld [vmem:[#allocation3 + $0x750] ss:$40 sps:$4 sm:$0xff]   ;;  %v24074_v7 = vpop.f32.mrf.mxu0 }
 0x600   :  { %13786 = vmatpush2.bf16.msra.mxu0 %v22169_v11  ;;  %v24076_v11 = vpop.f32.mrf.mxu1 }
 0x601   :  { %13829 = vmatpush2.bf16.msra.mxu1 %v22172_v4  ;;  %13787 = vmatprep.subr.bf16.mxu0 %v22177_v60  ;;  %v22201_v4 = vld [vmem:[#allocation3 + $0x204] ss:$40 sps:$4 sm:$0xff]  }
 0x602   :  { %13830 = vmatprep.subr.bf16.mxu1 %v22180_v12  ;;  %v22204_v60 = vld [vmem:[#allocation3 + $0x704] ss:$40 sps:$4 sm:$0xff]  }
 0x604   :  { %13788 = vmatpush2.bf16.msra.mxu0 %v22175_v26 }
 0x605   :  { %13831 = vmatpush2.bf16.msra.mxu1 %v22178_v62  ;;  %13789 = vmatprep.subr.bf16.mxu0 %v22183_v58  ;;  %v22199_v58 = vld [vmem:[#allocation3 + $0x200] ss:$40 sps:$4 sm:$0xff]  }
 0x606   :  { %13832 = vmatprep.subr.bf16.mxu1 %v22186_v19  ;;  %v22202_v19 = vld [vmem:[#allocation3 + $0x700] ss:$40 sps:$4 sm:$0xff]  }
 0x608   :  { %13790 = vmatpush2.bf16.msra.mxu0 %v22181_v50 }
 0x609   :  { %13833 = vmatpush2.bf16.msra.mxu1 %v22184_v43  ;;  %13791 = vmatprep.subr.bf16.mxu0 %v22189_v51  ;;  %v22207_v51 = vld [vmem:[#allocation3 + $0x1b4] ss:$40 sps:$4 sm:$0xff]  }
 0x60a   :  { %13834 = vmatprep.subr.bf16.mxu1 %v22192_v31  ;;  %v22210_v31 = vld [vmem:[#allocation3 + $0x6b4] ss:$40 sps:$4 sm:$0xff]  }
 0x60c   :  { %13792 = vmatpush2.bf16.msra.mxu0 %v22187_v25 }
 0x60d   :  { %13835 = vmatpush2.bf16.msra.mxu1 %v22190_v23  ;;  %13847 = vmatprep.subr.bf16.mxu0 %v22195_v6  ;;  %v22205_v6 = vld [vmem:[#allocation3 + $0x1b0] ss:$40 sps:$4 sm:$0xff]  }
 0x60e   :  { %13890 = vmatprep.subr.bf16.mxu1 %v22198_v61  ;;  %v22208_v61 = vld [vmem:[#allocation3 + $0x6b0] ss:$40 sps:$4 sm:$0xff]  }
 0x60f   :  { %v13537_v12 = vpop.f32.mrf.mxu0  ;;  %13794 = vmatmul.mubr.bf16.vlgmr.msra.gmra.mxu0 %v23687_v0 }
 0x610   :  { %v13580_v26 = vpop.f32.mrf.mxu1  ;;  %13837 = vmatmul.mubr.bf16.vlgmr.msra.gmra.mxu1 %v23691_v1  ;;  %v13538_v62 = vadd.f32 %v13537_v12, %v24067_v52  ;;  %13848 = vmatpush1.bf16.msra.mxu0 %v22193_v39  ;;  %v22211_v12 = vld [vmem:[#allocation3 + $0x160] ss:$40 sps:$4 sm:$0xff]  }
 0x611   :  { %13891 = vmatpush1.bf16.msra.mxu1 %v22196_v38  ;;  %v24081_v50 = vpop.f32.mrf.mxu0  ;;  %13849 = vmatprep.subr.bf16.mxu0 %v22201_v4  ;;  %v22213_v38 = vld [vmem:[#allocation3 + $0x164] ss:$40 sps:$4 sm:$0xff]  }
 0x612   :  { %v24083_v43 = vpop.f32.mrf.mxu1  ;;  %13892 = vmatprep.subr.bf16.mxu1 %v22204_v60  ;;  %v24085_v25 = vadd.f32 %v13580_v26, %v13538_v62  ;;  %13879 = vmatprep.mubr.bf16.mxu0 %v23448_v53  ;;  %v22216_v4 = vld [vmem:[#allocation3 + $0x664] ss:$40 sps:$4 sm:$0xff]   ;;  %v22214_v53 = vld [vmem:[#allocation3 + $0x660] ss:$40 sps:$4 sm:$0xff]   ;;  %v22222_v26 = vld [vmem:[#allocation3 + $0x614] ss:$40 sps:$4 sm:$0xff]  }
 0x613   :  { %13922 = vmatprep.mubr.bf16.mxu1 %v23450_v54  ;;  %v13541_v23 = vpop.f32.mrf.mxu0  ;;  %v22219_v54 = vld [vmem:[#allocation3 + $0x114] ss:$40 sps:$4 sm:$0xff]   ;;  %v22220_v62 = vld [vmem:[#allocation3 + $0x610] ss:$40 sps:$4 sm:$0xff]  }
 0x614   :  { %v13542_v52 = vadd.f32 %v13541_v23, %v24072_v27  ;;  %13850 = vmatpush1.bf16.msra.mxu0 %v22199_v58  ;;  %v13584_v39 = vpop.f32.mrf.mxu1  ;;  %v22217_v27 = vld [vmem:[#allocation3 + $0x110] ss:$40 sps:$4 sm:$0xff]   ;;  %v22225_v58 = vld [vmem:[#allocation3 + $0xc4] ss:$40 sps:$4 sm:$0xff]   ;;  %v22231_v23 = vld [vmem:[#allocation3 + $0x74] ss:$40 sps:$4 sm:$0xff]  }
 0x615   :  { %13893 = vmatpush1.bf16.msra.mxu1 %v22202_v19  ;;  %13851 = vmatprep.subr.bf16.mxu0 %v22207_v51  ;;  %v22228_v19 = vld [vmem:[#allocation3 + $0x5c4] ss:$40 sps:$4 sm:$0xff]   ;;  %v22223_v51 = vld [vmem:[#allocation3 + $0xc0] ss:$40 sps:$4 sm:$0xff]  }
 0x616   :  { %13894 = vmatprep.subr.bf16.mxu1 %v22210_v31  ;;  %v24090_v60 = vadd.f32 %v13584_v39, %v13542_v52  ;;  %v22226_v31 = vld [vmem:[#allocation3 + $0x5c0] ss:$40 sps:$4 sm:$0xff]   ;;  %v22234_v52 = vld [vmem:[#allocation3 + $0x574] ss:$40 sps:$4 sm:$0xff]   ;;  %v22237_v39 = vld [vmem:[#allocation3 + $0x24] ss:$40 sps:$4 sm:$0xff]  }
 0x618   :  { %13852 = vmatpush1.bf16.msra.mxu0 %v22205_v6  ;;  %v22229_v6 = vld [vmem:[#allocation3 + $0x70] ss:$40 sps:$4 sm:$0xff]  }
 0x619   :  { %13895 = vmatpush1.bf16.msra.mxu1 %v22208_v61  ;;  %13853 = vmatprep.subr.bf16.mxu0 %v22213_v38  ;;  %v22232_v61 = vld [vmem:[#allocation3 + $0x570] ss:$40 sps:$4 sm:$0xff]   ;;  %v22240_v38 = vld [vmem:[#allocation3 + $0x524] ss:$40 sps:$4 sm:$0xff]  }
 0x61a   :  { %13896 = vmatprep.subr.bf16.mxu1 %v22216_v4  ;;  %v22235_v4 = vld [vmem:[#allocation3 + $0x20] ss:$40 sps:$4 sm:$0xff]  }
 0x61c   :  { %13854 = vmatpush1.bf16.msra.mxu0 %v22211_v12  ;;  %v22238_v12 = vld [vmem:[#allocation3 + $0x520] ss:$40 sps:$4 sm:$0xff]  }
 0x61d   :  { %13897 = vmatpush1.bf16.msra.mxu1 %v22214_v53  ;;  %13855 = vmatprep.subr.bf16.mxu0 %v22219_v54  ;;  %v22243_v53 = vld [vmem:[#allocation3 + $0x4d4] ss:$40 sps:$4 sm:$0xff]  }
 0x61e   :  { %13898 = vmatprep.subr.bf16.mxu1 %v22222_v26  ;;  %v22246_v54 = vld [vmem:[#allocation3 + $0x9d4] ss:$40 sps:$4 sm:$0xff]   ;;  %v22241_v26 = vld [vmem:[#allocation3 + $0x4d0] ss:$40 sps:$4 sm:$0xff]  }
 0x620   :  { %13856 = vmatpush1.bf16.msra.mxu0 %v22217_v27  ;;  %v22244_v27 = vld [vmem:[#allocation3 + $0x9d0] ss:$40 sps:$4 sm:$0xff]  }
 0x621   :  { %13899 = vmatpush1.bf16.msra.mxu1 %v22220_v62  ;;  %13857 = vmatprep.subr.bf16.mxu0 %v22225_v58  ;;  %v22249_v62 = vld [vmem:[#allocation3 + $0x484] ss:$40 sps:$4 sm:$0xff]  }
 0x622   :  { %13900 = vmatprep.subr.bf16.mxu1 %v22228_v19  ;;  %v22252_v58 = vld [vmem:[#allocation3 + $0x984] ss:$40 sps:$4 sm:$0xff]   ;;  %v22247_v19 = vld [vmem:[#allocation3 + $0x480] ss:$40 sps:$4 sm:$0xff]  }
 0x624   :  { %13858 = vmatpush1.bf16.msra.mxu0 %v22223_v51  ;;  %v22250_v51 = vld [vmem:[#allocation3 + $0x980] ss:$40 sps:$4 sm:$0xff]  }
 0x625   :  { %13901 = vmatpush1.bf16.msra.mxu1 %v22226_v31  ;;  %13859 = vmatprep.subr.bf16.mxu0 %v22231_v23  ;;  %v22255_v31 = vld [vmem:[#allocation3 + $0x434] ss:$40 sps:$4 sm:$0xff]  }
 0x626   :  { %13902 = vmatprep.subr.bf16.mxu1 %v22234_v52  ;;  %v22258_v23 = vld [vmem:[#allocation3 + $0x934] ss:$40 sps:$4 sm:$0xff]   ;;  %v22253_v52 = vld [vmem:[#allocation3 + $0x430] ss:$40 sps:$4 sm:$0xff]  }
 0x628   :  { %13860 = vmatpush1.bf16.msra.mxu0 %v22229_v6  ;;  %v22256_v6 = vld [vmem:[#allocation3 + $0x930] ss:$40 sps:$4 sm:$0xff]  }
 0x629   :  { %13903 = vmatpush1.bf16.msra.mxu1 %v22232_v61  ;;  %13861 = vmatprep.subr.bf16.mxu0 %v22237_v39  ;;  %v22261_v61 = vld [vmem:[#allocation3 + $0x3e4] ss:$40 sps:$4 sm:$0xff]  }
 0x62a   :  { %13904 = vmatprep.subr.bf16.mxu1 %v22240_v38  ;;  %v22264_v39 = vld [vmem:[#allocation3 + $0x8e4] ss:$40 sps:$4 sm:$0xff]   ;;  %v22259_v38 = vld [vmem:[#allocation3 + $0x3e0] ss:$40 sps:$4 sm:$0xff]  }
 0x62c   :  { %13862 = vmatpush1.bf16.msra.mxu0 %v22235_v4  ;;  %v22262_v4 = vld [vmem:[#allocation3 + $0x8e0] ss:$40 sps:$4 sm:$0xff]  }
 0x62d   :  { %13905 = vmatpush1.bf16.msra.mxu1 %v22238_v12  ;;  %13863 = vmatprep.subr.bf16.mxu0 %v22243_v53  ;;  %v22267_v12 = vld [vmem:[#allocation3 + $0x394] ss:$40 sps:$4 sm:$0xff]  }
 0x62e   :  { %13906 = vmatprep.subr.bf16.mxu1 %v22246_v54  ;;  %v22270_v53 = vld [vmem:[#allocation3 + $0x894] ss:$40 sps:$4 sm:$0xff]   ;;  %v22265_v54 = vld [vmem:[#allocation3 + $0x390] ss:$40 sps:$4 sm:$0xff]  }
 0x630   :  { %13864 = vmatpush2.bf16.msra.mxu0 %v22241_v26  ;;  %v22268_v26 = vld [vmem:[#allocation3 + $0x890] ss:$40 sps:$4 sm:$0xff]  }
 0x631   :  { %13907 = vmatpush2.bf16.msra.mxu1 %v22244_v27  ;;  %13865 = vmatprep.subr.bf16.mxu0 %v22249_v62  ;;  %v22273_v27 = vld [vmem:[#allocation3 + $0x344] ss:$40 sps:$4 sm:$0xff]  }
 0x632   :  { %13908 = vmatprep.subr.bf16.mxu1 %v22252_v58  ;;  %v22276_v62 = vld [vmem:[#allocation3 + $0x844] ss:$40 sps:$4 sm:$0xff]   ;;  %v22271_v58 = vld [vmem:[#allocation3 + $0x340] ss:$40 sps:$4 sm:$0xff]  }
 0x634   :  { %13866 = vmatpush2.bf16.msra.mxu0 %v22247_v19  ;;  %v22274_v19 = vld [vmem:[#allocation3 + $0x840] ss:$40 sps:$4 sm:$0xff]  }
 0x635   :  { %13909 = vmatpush2.bf16.msra.mxu1 %v22250_v51  ;;  %13867 = vmatprep.subr.bf16.mxu0 %v22255_v31  ;;  %v22279_v51 = vld [vmem:[#allocation3 + $0x2f4] ss:$40 sps:$4 sm:$0xff]  }
 0x636   :  { %13910 = vmatprep.subr.bf16.mxu1 %v22258_v23  ;;  %v22282_v31 = vld [vmem:[#allocation3 + $0x7f4] ss:$40 sps:$4 sm:$0xff]   ;;  %v22277_v23 = vld [vmem:[#allocation3 + $0x2f0] ss:$40 sps:$4 sm:$0xff]  }
 0x638   :  { %13868 = vmatpush2.bf16.msra.mxu0 %v22253_v52  ;;  %v22280_v52 = vld [vmem:[#allocation3 + $0x7f0] ss:$40 sps:$4 sm:$0xff]  }
 0x639   :  { %13911 = vmatpush2.bf16.msra.mxu1 %v22256_v6  ;;  %13869 = vmatprep.subr.bf16.mxu0 %v22261_v61  ;;  %v22285_v6 = vld [vmem:[#allocation3 + $0x2a4] ss:$40 sps:$4 sm:$0xff]  }
 0x63a   :  { %13912 = vmatprep.subr.bf16.mxu1 %v22264_v39  ;;  %v22288_v61 = vld [vmem:[#allocation3 + $0x7a4] ss:$40 sps:$4 sm:$0xff]   ;;  %v22283_v39 = vld [vmem:[#allocation3 + $0x2a0] ss:$40 sps:$4 sm:$0xff]  }
 0x63c   :  { %13870 = vmatpush2.bf16.msra.mxu0 %v22259_v38  ;;  %v22286_v38 = vld [vmem:[#allocation3 + $0x7a0] ss:$40 sps:$4 sm:$0xff]  }
 0x63d   :  { %13913 = vmatpush2.bf16.msra.mxu1 %v22262_v4  ;;  %13871 = vmatprep.subr.bf16.mxu0 %v22267_v12  ;;  %v22291_v4 = vld [vmem:[#allocation3 + $0xc54] ss:$40 sps:$4 sm:$0xff]  }
 0x63e   :  { %13914 = vmatprep.subr.bf16.mxu1 %v22270_v53  ;;  %v22294_v12 = vld [vmem:[#allocation3 + $0x1154] ss:$40 sps:$4 sm:$0xff]   ;;  %v22289_v53 = vld [vmem:[#allocation3 + $0xc50] ss:$40 sps:$4 sm:$0xff]  }
 0x640   :  { %13872 = vmatpush2.bf16.msra.mxu0 %v22265_v54  ;;  %v22292_v54 = vld [vmem:[#allocation3 + $0x1150] ss:$40 sps:$4 sm:$0xff]  }
 0x641   :  { %13915 = vmatpush2.bf16.msra.mxu1 %v22268_v26  ;;  %13873 = vmatprep.subr.bf16.mxu0 %v22273_v27  ;;  %v24092_v26 = vpop.f32.mrf.mxu0  ;;  %v24094_v27 = vpop.f32.mrf.mxu1 }
 0x642   :  { %13916 = vmatprep.subr.bf16.mxu1 %v22276_v62  ;;  %v22297_v62 = vld [vmem:[#allocation3 + $0xc04] ss:$40 sps:$4 sm:$0xff]  }
 0x644   :  { %13874 = vmatpush2.bf16.msra.mxu0 %v22271_v58  ;;  %v22300_v58 = vld [vmem:[#allocation3 + $0x1104] ss:$40 sps:$4 sm:$0xff]  }
 0x645   :  { %13917 = vmatpush2.bf16.msra.mxu1 %v22274_v19  ;;  %13875 = vmatprep.subr.bf16.mxu0 %v22279_v51 }
 0x646   :  { %13918 = vmatprep.subr.bf16.mxu1 %v22282_v31 }
 0x648   :  { %13876 = vmatpush2.bf16.msra.mxu0 %v22277_v23  ;;  %v22295_v23 = vld [vmem:[#allocation3 + $0xc00] ss:$40 sps:$4 sm:$0xff]  }
 0x649   :  { %13919 = vmatpush2.bf16.msra.mxu1 %v22280_v52  ;;  %13877 = vmatprep.subr.bf16.mxu0 %v22285_v6  ;;  %v22298_v52 = vld [vmem:[#allocation3 + $0x1100] ss:$40 sps:$4 sm:$0xff]  }
 0x64a   :  { %13920 = vmatprep.subr.bf16.mxu1 %v22288_v61 }
 0x64c   :  { %13878 = vmatpush2.bf16.msra.mxu0 %v22283_v39  ;;  %v22303_v39 = vld [vmem:[#allocation3 + $0xbb4] ss:$40 sps:$4 sm:$0xff]  }
 0x64d   :  { %13921 = vmatpush2.bf16.msra.mxu1 %v22286_v38  ;;  %13933 = vmatprep.subr.bf16.mxu0 %v22291_v4  ;;  %v22306_v38 = vld [vmem:[#allocation3 + $0x10b4] ss:$40 sps:$4 sm:$0xff]  }
 0x64e   :  { %13976 = vmatprep.subr.bf16.mxu1 %v22294_v12  ;;  %v22304_v12 = vld [vmem:[#allocation3 + $0x10b0] ss:$40 sps:$4 sm:$0xff]  }
 0x64f   :  { %v13623_v19 = vpop.f32.mrf.mxu0  ;;  %13880 = vmatmul.mubr.bf16.vlgmr.msra.gmra.mxu0 %v23454_v8 }
 0x650   :  { %v13666_v51 = vpop.f32.mrf.mxu1  ;;  %13923 = vmatmul.mubr.bf16.vlgmr.msra.gmra.mxu1 %v23456_v9  ;;  %v13624_v31 = vadd.f32 %v13623_v19, %v24085_v25  ;;  %13934 = vmatpush1.bf16.msra.mxu0 %v22289_v53  ;;  %v22301_v25 = vld [vmem:[#allocation3 + $0xbb0] ss:$40 sps:$4 sm:$0xff]   ;;  %v22307_v19 = vld [vmem:[#allocation3 + $0xb60] ss:$40 sps:$4 sm:$0xff]  }
 0x651   :  { %13977 = vmatpush1.bf16.msra.mxu1 %v22292_v54  ;;  %v24099_v6 = vpop.f32.mrf.mxu0  ;;  %13935 = vmatprep.subr.bf16.mxu0 %v22297_v62  ;;  %v22309_v54 = vld [vmem:[#allocation3 + $0xb64] ss:$40 sps:$4 sm:$0xff]  }
 0x652   :  { %v24101_v61 = vpop.f32.mrf.mxu1  ;;  %13978 = vmatprep.subr.bf16.mxu1 %v22300_v58  ;;  %v24103_v4 = vadd.f32 %v13666_v51, %v13624_v31  ;;  %13965 = vmatprep.mubr.bf16.mxu0 %v23482_v41  ;;  %v22312_v62 = vld [vmem:[#allocation3 + $0x1064] ss:$40 sps:$4 sm:$0xff]   ;;  %v22310_v41 = vld [vmem:[#allocation3 + $0x1060] ss:$40 sps:$4 sm:$0xff]   ;;  %v22318_v51 = vld [vmem:[#allocation3 + $0x1014] ss:$40 sps:$4 sm:$0xff]  }
 0x653   :  { %14008 = vmatprep.mubr.bf16.mxu1 %v23486_v42  ;;  %v13627_v8 = vpop.f32.mrf.mxu0  ;;  %v22315_v42 = vld [vmem:[#allocation3 + $0xb14] ss:$40 sps:$4 sm:$0xff]   ;;  %v22316_v31 = vld [vmem:[#allocation3 + $0x1010] ss:$40 sps:$4 sm:$0xff]  }
 0x654   :  { %v13628_v9 = vadd.f32 %v13627_v8, %v24090_v60  ;;  %13936 = vmatpush1.bf16.msra.mxu0 %v22295_v23  ;;  %v13670_v53 = vpop.f32.mrf.mxu1  ;;  %v22313_v60 = vld [vmem:[#allocation3 + $0xb10] ss:$40 sps:$4 sm:$0xff]   ;;  %v22321_v23 = vld [vmem:[#allocation3 + $0xac4] ss:$40 sps:$4 sm:$0xff]   ;;  %v22327_v8 = vld [vmem:[#allocation3 + $0xa74] ss:$40 sps:$4 sm:$0xff]  }
 0x655   :  { %13979 = vmatpush1.bf16.msra.mxu1 %v22298_v52  ;;  %13937 = vmatprep.subr.bf16.mxu0 %v22303_v39  ;;  %v22324_v52 = vld [vmem:[#allocation3 + $0xfc4] ss:$40 sps:$4 sm:$0xff]   ;;  %v22319_v39 = vld [vmem:[#allocation3 + $0xac0] ss:$40 sps:$4 sm:$0xff]  }
 0x656   :  { %13980 = vmatprep.subr.bf16.mxu1 %v22306_v38  ;;  %v24108_v58 = vadd.f32 %v13670_v53, %v13628_v9  ;;  %v22322_v38 = vld [vmem:[#allocation3 + $0xfc0] ss:$40 sps:$4 sm:$0xff]   ;;  %v22330_v9 = vld [vmem:[#allocation3 + $0xf74] ss:$40 sps:$4 sm:$0xff]   ;;  %v22333_v53 = vld [vmem:[#allocation3 + $0xa24] ss:$40 sps:$4 sm:$0xff]  }
 0x658   :  { %13938 = vmatpush1.bf16.msra.mxu0 %v22301_v25  ;;  %v22325_v25 = vld [vmem:[#allocation3 + $0xa70] ss:$40 sps:$4 sm:$0xff]  }
 0x659   :  { %13981 = vmatpush1.bf16.msra.mxu1 %v22304_v12  ;;  %13939 = vmatprep.subr.bf16.mxu0 %v22309_v54  ;;  %v22328_v12 = vld [vmem:[#allocation3 + $0xf70] ss:$40 sps:$4 sm:$0xff]   ;;  %v22336_v54 = vld [vmem:[#allocation3 + $0xf24] ss:$40 sps:$4 sm:$0xff]  }
 0x65a   :  { %13982 = vmatprep.subr.bf16.mxu1 %v22312_v62  ;;  %v22331_v62 = vld [vmem:[#allocation3 + $0xa20] ss:$40 sps:$4 sm:$0xff]  }
 0x65c   :  { %13940 = vmatpush1.bf16.msra.mxu0 %v22307_v19  ;;  %v22334_v19 = vld [vmem:[#allocation3 + $0xf20] ss:$40 sps:$4 sm:$0xff]  }
 0x65d   :  { %13983 = vmatpush1.bf16.msra.mxu1 %v22310_v41  ;;  %13941 = vmatprep.subr.bf16.mxu0 %v22315_v42  ;;  %v22339_v41 = vld [vmem:[#allocation3 + $0xed4] ss:$40 sps:$4 sm:$0xff]  }
 0x65e   :  { %13984 = vmatprep.subr.bf16.mxu1 %v22318_v51  ;;  %v22342_v42 = vld [vmem:[#allocation3 + $0x13d4] ss:$40 sps:$4 sm:$0xff]   ;;  %v22337_v51 = vld [vmem:[#allocation3 + $0xed0] ss:$40 sps:$4 sm:$0xff]  }
 0x660   :  { %13942 = vmatpush1.bf16.msra.mxu0 %v22313_v60  ;;  %v22340_v60 = vld [vmem:[#allocation3 + $0x13d0] ss:$40 sps:$4 sm:$0xff]  }
 0x661   :  { %13985 = vmatpush1.bf16.msra.mxu1 %v22316_v31  ;;  %13943 = vmatprep.subr.bf16.mxu0 %v22321_v23  ;;  %v22345_v31 = vld [vmem:[#allocation3 + $0xe84] ss:$40 sps:$4 sm:$0xff]  }
 0x662   :  { %13986 = vmatprep.subr.bf16.mxu1 %v22324_v52  ;;  %v22348_v23 = vld [vmem:[#allocation3 + $0x1384] ss:$40 sps:$4 sm:$0xff]   ;;  %v22343_v52 = vld [vmem:[#allocation3 + $0xe80] ss:$40 sps:$4 sm:$0xff]  }
 0x664   :  { %13944 = vmatpush1.bf16.msra.mxu0 %v22319_v39  ;;  %v22346_v39 = vld [vmem:[#allocation3 + $0x1380] ss:$40 sps:$4 sm:$0xff]  }
 0x665   :  { %13987 = vmatpush1.bf16.msra.mxu1 %v22322_v38  ;;  %13945 = vmatprep.subr.bf16.mxu0 %v22327_v8  ;;  %v22351_v38 = vld [vmem:[#allocation3 + $0xe34] ss:$40 sps:$4 sm:$0xff]  }
 0x666   :  { %13988 = vmatprep.subr.bf16.mxu1 %v22330_v9  ;;  %v22354_v8 = vld [vmem:[#allocation3 + $0x1334] ss:$40 sps:$4 sm:$0xff]   ;;  %v22349_v9 = vld [vmem:[#allocation3 + $0xe30] ss:$40 sps:$4 sm:$0xff]  }
 0x668   :  { %13946 = vmatpush1.bf16.msra.mxu0 %v22325_v25  ;;  %v22352_v25 = vld [vmem:[#allocation3 + $0x1330] ss:$40 sps:$4 sm:$0xff]  }
 0x669   :  { %13989 = vmatpush1.bf16.msra.mxu1 %v22328_v12  ;;  %13947 = vmatprep.subr.bf16.mxu0 %v22333_v53  ;;  %v22357_v12 = vld [vmem:[#allocation3 + $0xde4] ss:$40 sps:$4 sm:$0xff]  }
 0x66a   :  { %13990 = vmatprep.subr.bf16.mxu1 %v22336_v54  ;;  %v22360_v53 = vld [vmem:[#allocation3 + $0x12e4] ss:$40 sps:$4 sm:$0xff]   ;;  %v22355_v54 = vld [vmem:[#allocation3 + $0xde0] ss:$40 sps:$4 sm:$0xff]  }
 0x66c   :  { %13948 = vmatpush1.bf16.msra.mxu0 %v22331_v62  ;;  %v22358_v62 = vld [vmem:[#allocation3 + $0x12e0] ss:$40 sps:$4 sm:$0xff]  }
 0x66d   :  { %13991 = vmatpush1.bf16.msra.mxu1 %v22334_v19  ;;  %13949 = vmatprep.subr.bf16.mxu0 %v22339_v41  ;;  %v22363_v19 = vld [vmem:[#allocation3 + $0xd94] ss:$40 sps:$4 sm:$0xff]  }
 0x66e   :  { %13992 = vmatprep.subr.bf16.mxu1 %v22342_v42  ;;  %v22366_v41 = vld [vmem:[#allocation3 + $0x1294] ss:$40 sps:$4 sm:$0xff]   ;;  %v22361_v42 = vld [vmem:[#allocation3 + $0xd90] ss:$40 sps:$4 sm:$0xff]  }
 0x670   :  { %13950 = vmatpush2.bf16.msra.mxu0 %v22337_v51  ;;  %v22364_v51 = vld [vmem:[#allocation3 + $0x1290] ss:$40 sps:$4 sm:$0xff]  }
 0x671   :  { %13993 = vmatpush2.bf16.msra.mxu1 %v22340_v60  ;;  %13951 = vmatprep.subr.bf16.mxu0 %v22345_v31  ;;  %v22369_v60 = vld [vmem:[#allocation3 + $0xd44] ss:$40 sps:$4 sm:$0xff]  }
 0x672   :  { %13994 = vmatprep.subr.bf16.mxu1 %v22348_v23  ;;  %v22372_v31 = vld [vmem:[#allocation3 + $0x1244] ss:$40 sps:$4 sm:$0xff]   ;;  %v22367_v23 = vld [vmem:[#allocation3 + $0xd40] ss:$40 sps:$4 sm:$0xff]  }
 0x674   :  { %13952 = vmatpush2.bf16.msra.mxu0 %v22343_v52  ;;  %v22370_v52 = vld [vmem:[#allocation3 + $0x1240] ss:$40 sps:$4 sm:$0xff]  }
 0x675   :  { %13995 = vmatpush2.bf16.msra.mxu1 %v22346_v39  ;;  %13953 = vmatprep.subr.bf16.mxu0 %v22351_v38  ;;  %v22375_v39 = vld [vmem:[#allocation3 + $0xcf4] ss:$40 sps:$4 sm:$0xff]  }
 0x676   :  { %13996 = vmatprep.subr.bf16.mxu1 %v22354_v8  ;;  %v22378_v38 = vld [vmem:[#allocation3 + $0x11f4] ss:$40 sps:$4 sm:$0xff]   ;;  %v22373_v8 = vld [vmem:[#allocation3 + $0xcf0] ss:$40 sps:$4 sm:$0xff]  }
 0x678   :  { %13954 = vmatpush2.bf16.msra.mxu0 %v22349_v9  ;;  %v22376_v9 = vld [vmem:[#allocation3 + $0x11f0] ss:$40 sps:$4 sm:$0xff]  }
 0x679   :  { %13997 = vmatpush2.bf16.msra.mxu1 %v22352_v25  ;;  %13955 = vmatprep.subr.bf16.mxu0 %v22357_v12  ;;  %v22381_v25 = vld [vmem:[#allocation3 + $0xca4] ss:$40 sps:$4 sm:$0xff]  }
 0x67a   :  { %13998 = vmatprep.subr.bf16.mxu1 %v22360_v53  ;;  %v22384_v12 = vld [vmem:[#allocation3 + $0x11a4] ss:$40 sps:$4 sm:$0xff]   ;;  %v22379_v53 = vld [vmem:[#allocation3 + $0xca0] ss:$40 sps:$4 sm:$0xff]  }
 0x67c   :  { %13956 = vmatpush2.bf16.msra.mxu0 %v22355_v54  ;;  %v22382_v54 = vld [vmem:[#allocation3 + $0x11a0] ss:$40 sps:$4 sm:$0xff]  }
 0x67d   :  { %13999 = vmatpush2.bf16.msra.mxu1 %v22358_v62  ;;  %13957 = vmatprep.subr.bf16.mxu0 %v22363_v19  ;;  %v22387_v62 = vld [vmem:[#allocation3 + $0x1654] ss:$40 sps:$4 sm:$0xff]  }
 0x67e   :  { %14000 = vmatprep.subr.bf16.mxu1 %v22366_v41  ;;  %v22390_v19 = vld [vmem:[#allocation3 + $0x1b54] ss:$40 sps:$4 sm:$0xff]   ;;  %v22385_v41 = vld [vmem:[#allocation3 + $0x1650] ss:$40 sps:$4 sm:$0xff]  }
 0x680   :  { %13958 = vmatpush2.bf16.msra.mxu0 %v22361_v42  ;;  %v22388_v42 = vld [vmem:[#allocation3 + $0x1b50] ss:$40 sps:$4 sm:$0xff]  }
 0x681   :  { %14001 = vmatpush2.bf16.msra.mxu1 %v22364_v51  ;;  %13959 = vmatprep.subr.bf16.mxu0 %v22369_v60  ;;  %v24110_v51 = vpop.f32.mrf.mxu0  ;;  %v24112_v60 = vpop.f32.mrf.mxu1 }
 0x682   :  { %14002 = vmatprep.subr.bf16.mxu1 %v22372_v31  ;;  %v22393_v31 = vld [vmem:[#allocation3 + $0x1604] ss:$40 sps:$4 sm:$0xff]  }
 0x684   :  { %13960 = vmatpush2.bf16.msra.mxu0 %v22367_v23  ;;  %v22396_v23 = vld [vmem:[#allocation3 + $0x1b04] ss:$40 sps:$4 sm:$0xff]  }
 0x685   :  { %14003 = vmatpush2.bf16.msra.mxu1 %v22370_v52  ;;  %13961 = vmatprep.subr.bf16.mxu0 %v22375_v39 }
 0x686   :  { %14004 = vmatprep.subr.bf16.mxu1 %v22378_v38 }
 0x688   :  { %13962 = vmatpush2.bf16.msra.mxu0 %v22373_v8  ;;  %v22391_v8 = vld [vmem:[#allocation3 + $0x1600] ss:$40 sps:$4 sm:$0xff]  }
 0x689   :  { %14005 = vmatpush2.bf16.msra.mxu1 %v22376_v9  ;;  %13963 = vmatprep.subr.bf16.mxu0 %v22381_v25  ;;  %v22394_v9 = vld [vmem:[#allocation3 + $0x1b00] ss:$40 sps:$4 sm:$0xff]  }
 0x68a   :  { %14006 = vmatprep.subr.bf16.mxu1 %v22384_v12 }
 0x68c   :  { %13964 = vmatpush2.bf16.msra.mxu0 %v22379_v53  ;;  %v22399_v53 = vld [vmem:[#allocation3 + $0x15b4] ss:$40 sps:$4 sm:$0xff]  }
 0x68d   :  { %14007 = vmatpush2.bf16.msra.mxu1 %v22382_v54  ;;  %14019 = vmatprep.subr.bf16.mxu0 %v22387_v62  ;;  %v22402_v54 = vld [vmem:[#allocation3 + $0x1ab4] ss:$40 sps:$4 sm:$0xff]  }
 0x68e   :  { %14062 = vmatprep.subr.bf16.mxu1 %v22390_v19  ;;  %v22400_v19 = vld [vmem:[#allocation3 + $0x1ab0] ss:$40 sps:$4 sm:$0xff]  }
 0x68f   :  { %v13709_v52 = vpop.f32.mrf.mxu0  ;;  %13966 = vmatmul.mubr.bf16.vlgmr.msra.gmra.mxu0 %v23492_v20 }
 0x690   :  { %v13752_v39 = vpop.f32.mrf.mxu1  ;;  %14009 = vmatmul.mubr.bf16.vlgmr.msra.gmra.mxu1 %v23496_v21  ;;  %v13710_v38 = vadd.f32 %v13709_v52, %v24103_v4  ;;  %14020 = vmatpush1.bf16.msra.mxu0 %v22385_v41  ;;  %v22397_v4 = vld [vmem:[#allocation3 + $0x15b0] ss:$40 sps:$4 sm:$0xff]   ;;  %v22403_v52 = vld [vmem:[#allocation3 + $0x1560] ss:$40 sps:$4 sm:$0xff]  }
 0x691   :  { %14063 = vmatpush1.bf16.msra.mxu1 %v22388_v42  ;;  %v24117_v25 = vpop.f32.mrf.mxu0  ;;  %14021 = vmatprep.subr.bf16.mxu0 %v22393_v31  ;;  %v22405_v42 = vld [vmem:[#allocation3 + $0x1564] ss:$40 sps:$4 sm:$0xff]  }
 0x692   :  { %v24119_v12 = vpop.f32.mrf.mxu1  ;;  %14064 = vmatprep.subr.bf16.mxu1 %v22396_v23  ;;  %v24121_v62 = vadd.f32 %v13752_v39, %v13710_v38  ;;  %14051 = vmatprep.mubr.bf16.mxu0 %v23522_v33  ;;  %v22408_v31 = vld [vmem:[#allocation3 + $0x1a64] ss:$40 sps:$4 sm:$0xff]   ;;  %v22406_v33 = vld [vmem:[#allocation3 + $0x1a60] ss:$40 sps:$4 sm:$0xff]   ;;  %v22414_v39 = vld [vmem:[#allocation3 + $0x1a14] ss:$40 sps:$4 sm:$0xff]  }
 0x693   :  { %14094 = vmatprep.mubr.bf16.mxu1 %v23526_v34  ;;  %v13713_v20 = vpop.f32.mrf.mxu0  ;;  %v22411_v34 = vld [vmem:[#allocation3 + $0x1514] ss:$40 sps:$4 sm:$0xff]   ;;  %v22412_v38 = vld [vmem:[#allocation3 + $0x1a10] ss:$40 sps:$4 sm:$0xff]  }
 0x694   :  { %v13714_v21 = vadd.f32 %v13713_v20, %v24108_v58  ;;  %14022 = vmatpush1.bf16.msra.mxu0 %v22391_v8  ;;  %v13756_v41 = vpop.f32.mrf.mxu1  ;;  %v22409_v58 = vld [vmem:[#allocation3 + $0x1510] ss:$40 sps:$4 sm:$0xff]   ;;  %v22417_v8 = vld [vmem:[#allocation3 + $0x14c4] ss:$40 sps:$4 sm:$0xff]   ;;  %v22423_v20 = vld [vmem:[#allocation3 + $0x1474] ss:$40 sps:$4 sm:$0xff]  }
 0x695   :  { %14065 = vmatpush1.bf16.msra.mxu1 %v22394_v9  ;;  %14023 = vmatprep.subr.bf16.mxu0 %v22399_v53  ;;  %v22420_v9 = vld [vmem:[#allocation3 + $0x19c4] ss:$40 sps:$4 sm:$0xff]   ;;  %v22415_v53 = vld [vmem:[#allocation3 + $0x14c0] ss:$40 sps:$4 sm:$0xff]  }
 0x696   :  { %14066 = vmatprep.subr.bf16.mxu1 %v22402_v54  ;;  %v24126_v23 = vadd.f32 %v13756_v41, %v13714_v21  ;;  %v22418_v54 = vld [vmem:[#allocation3 + $0x19c0] ss:$40 sps:$4 sm:$0xff]   ;;  %v22426_v21 = vld [vmem:[#allocation3 + $0x1974] ss:$40 sps:$4 sm:$0xff]   ;;  %v22429_v41 = vld [vmem:[#allocation3 + $0x1424] ss:$40 sps:$4 sm:$0xff]  }
 0x698   :  { %14024 = vmatpush1.bf16.msra.mxu0 %v22397_v4  ;;  %v22421_v4 = vld [vmem:[#allocation3 + $0x1470] ss:$40 sps:$4 sm:$0xff]  }
 0x699   :  { %14067 = vmatpush1.bf16.msra.mxu1 %v22400_v19  ;;  %14025 = vmatprep.subr.bf16.mxu0 %v22405_v42  ;;  %v22424_v19 = vld [vmem:[#allocation3 + $0x1970] ss:$40 sps:$4 sm:$0xff]   ;;  %v22432_v42 = vld [vmem:[#allocation3 + $0x1924] ss:$40 sps:$4 sm:$0xff]  }
 0x69a   :  { %14068 = vmatprep.subr.bf16.mxu1 %v22408_v31  ;;  %v22427_v31 = vld [vmem:[#allocation3 + $0x1420] ss:$40 sps:$4 sm:$0xff]  }
 0x69c   :  { %14026 = vmatpush1.bf16.msra.mxu0 %v22403_v52  ;;  %v22430_v52 = vld [vmem:[#allocation3 + $0x1920] ss:$40 sps:$4 sm:$0xff]  }
 0x69d   :  { %14069 = vmatpush1.bf16.msra.mxu1 %v22406_v33  ;;  %14027 = vmatprep.subr.bf16.mxu0 %v22411_v34  ;;  %v22435_v33 = vld [vmem:[#allocation3 + $0x18d4] ss:$40 sps:$4 sm:$0xff]  }
 0x69e   :  { %14070 = vmatprep.subr.bf16.mxu1 %v22414_v39  ;;  %v22438_v34 = vld [vmem:[#allocation3 + $0x1dd4] ss:$40 sps:$4 sm:$0xff]   ;;  %v22433_v39 = vld [vmem:[#allocation3 + $0x18d0] ss:$40 sps:$4 sm:$0xff]  }
 0x6a0   :  { %14028 = vmatpush1.bf16.msra.mxu0 %v22409_v58  ;;  %v22436_v58 = vld [vmem:[#allocation3 + $0x1dd0] ss:$40 sps:$4 sm:$0xff]  }
 0x6a1   :  { %14071 = vmatpush1.bf16.msra.mxu1 %v22412_v38  ;;  %14029 = vmatprep.subr.bf16.mxu0 %v22417_v8  ;;  %v22441_v38 = vld [vmem:[#allocation3 + $0x1884] ss:$40 sps:$4 sm:$0xff]  }
 0x6a2   :  { %14072 = vmatprep.subr.bf16.mxu1 %v22420_v9  ;;  %v22444_v8 = vld [vmem:[#allocation3 + $0x1d84] ss:$40 sps:$4 sm:$0xff]   ;;  %v22439_v9 = vld [vmem:[#allocation3 + $0x1880] ss:$40 sps:$4 sm:$0xff]  }
 0x6a4   :  { %14030 = vmatpush1.bf16.msra.mxu0 %v22415_v53  ;;  %v22442_v53 = vld [vmem:[#allocation3 + $0x1d80] ss:$40 sps:$4 sm:$0xff]  }
 0x6a5   :  { %14073 = vmatpush1.bf16.msra.mxu1 %v22418_v54  ;;  %14031 = vmatprep.subr.bf16.mxu0 %v22423_v20  ;;  %v22447_v54 = vld [vmem:[#allocation3 + $0x1834] ss:$40 sps:$4 sm:$0xff]  }
 0x6a6   :  { %14074 = vmatprep.subr.bf16.mxu1 %v22426_v21  ;;  %v22450_v20 = vld [vmem:[#allocation3 + $0x1d34] ss:$40 sps:$4 sm:$0xff]   ;;  %v22445_v21 = vld [vmem:[#allocation3 + $0x1830] ss:$40 sps:$4 sm:$0xff]  }
 0x6a8   :  { %14032 = vmatpush1.bf16.msra.mxu0 %v22421_v4  ;;  %v22448_v4 = vld [vmem:[#allocation3 + $0x1d30] ss:$40 sps:$4 sm:$0xff]  }
 0x6a9   :  { %14075 = vmatpush1.bf16.msra.mxu1 %v22424_v19  ;;  %14033 = vmatprep.subr.bf16.mxu0 %v22429_v41  ;;  %v22453_v19 = vld [vmem:[#allocation3 + $0x17e4] ss:$40 sps:$4 sm:$0xff]  }
 0x6aa   :  { %14076 = vmatprep.subr.bf16.mxu1 %v22432_v42  ;;  %v22456_v41 = vld [vmem:[#allocation3 + $0x1ce4] ss:$40 sps:$4 sm:$0xff]   ;;  %v22451_v42 = vld [vmem:[#allocation3 + $0x17e0] ss:$40 sps:$4 sm:$0xff]  }
 0x6ac   :  { %14034 = vmatpush1.bf16.msra.mxu0 %v22427_v31  ;;  %v22454_v31 = vld [vmem:[#allocation3 + $0x1ce0] ss:$40 sps:$4 sm:$0xff]  }
 0x6ad   :  { %14077 = vmatpush1.bf16.msra.mxu1 %v22430_v52  ;;  %14035 = vmatprep.subr.bf16.mxu0 %v22435_v33  ;;  %v22459_v52 = vld [vmem:[#allocation3 + $0x1794] ss:$40 sps:$4 sm:$0xff]  }
 0x6ae   :  { %14078 = vmatprep.subr.bf16.mxu1 %v22438_v34  ;;  %v22462_v33 = vld [vmem:[#allocation3 + $0x1c94] ss:$40 sps:$4 sm:$0xff]   ;;  %v22457_v34 = vld [vmem:[#allocation3 + $0x1790] ss:$40 sps:$4 sm:$0xff]  }
 0x6b0   :  { %14036 = vmatpush2.bf16.msra.mxu0 %v22433_v39  ;;  %v22460_v39 = vld [vmem:[#allocation3 + $0x1c90] ss:$40 sps:$4 sm:$0xff]  }
 0x6b1   :  { %14079 = vmatpush2.bf16.msra.mxu1 %v22436_v58  ;;  %14037 = vmatprep.subr.bf16.mxu0 %v22441_v38  ;;  %v22465_v58 = vld [vmem:[#allocation3 + $0x1744] ss:$40 sps:$4 sm:$0xff]  }
 0x6b2   :  { %14080 = vmatprep.subr.bf16.mxu1 %v22444_v8  ;;  %v22468_v38 = vld [vmem:[#allocation3 + $0x1c44] ss:$40 sps:$4 sm:$0xff]   ;;  %v22463_v8 = vld [vmem:[#allocation3 + $0x1740] ss:$40 sps:$4 sm:$0xff]  }
 0x6b4   :  { %14038 = vmatpush2.bf16.msra.mxu0 %v22439_v9  ;;  %v22466_v9 = vld [vmem:[#allocation3 + $0x1c40] ss:$40 sps:$4 sm:$0xff]  }
 0x6b5   :  { %14081 = vmatpush2.bf16.msra.mxu1 %v22442_v53  ;;  %14039 = vmatprep.subr.bf16.mxu0 %v22447_v54  ;;  %v22471_v53 = vld [vmem:[#allocation3 + $0x16f4] ss:$40 sps:$4 sm:$0xff]  }
 0x6b6   :  { %14082 = vmatprep.subr.bf16.mxu1 %v22450_v20  ;;  %v22474_v54 = vld [vmem:[#allocation3 + $0x1bf4] ss:$40 sps:$4 sm:$0xff]   ;;  %v22469_v20 = vld [vmem:[#allocation3 + $0x16f0] ss:$40 sps:$4 sm:$0xff]  }
 0x6b8   :  { %14040 = vmatpush2.bf16.msra.mxu0 %v22445_v21  ;;  %v22472_v21 = vld [vmem:[#allocation3 + $0x1bf0] ss:$40 sps:$4 sm:$0xff]  }
 0x6b9   :  { %14083 = vmatpush2.bf16.msra.mxu1 %v22448_v4  ;;  %14041 = vmatprep.subr.bf16.mxu0 %v22453_v19  ;;  %v22477_v4 = vld [vmem:[#allocation3 + $0x16a4] ss:$40 sps:$4 sm:$0xff]  }
 0x6ba   :  { %14084 = vmatprep.subr.bf16.mxu1 %v22456_v41  ;;  %v22480_v19 = vld [vmem:[#allocation3 + $0x1ba4] ss:$40 sps:$4 sm:$0xff]   ;;  %v22475_v41 = vld [vmem:[#allocation3 + $0x16a0] ss:$40 sps:$4 sm:$0xff]  }
 0x6bc   :  { %14042 = vmatpush2.bf16.msra.mxu0 %v22451_v42  ;;  %v22478_v42 = vld [vmem:[#allocation3 + $0x1ba0] ss:$40 sps:$4 sm:$0xff]  }
 0x6bd   :  { %14085 = vmatpush2.bf16.msra.mxu1 %v22454_v31  ;;  %14043 = vmatprep.subr.bf16.mxu0 %v22459_v52  ;;  %v22483_v31 = vld [vmem:[#allocation3 + $0x2054] ss:$40 sps:$4 sm:$0xff]  }
 0x6be   :  { %14086 = vmatprep.subr.bf16.mxu1 %v22462_v33  ;;  %v22486_v52 = vld [vmem:[#allocation3 + $0x2554] ss:$40 sps:$4 sm:$0xff]   ;;  %v22481_v33 = vld [vmem:[#allocation3 + $0x2050] ss:$40 sps:$4 sm:$0xff]  }
 0x6c0   :  { %14044 = vmatpush2.bf16.msra.mxu0 %v22457_v34  ;;  %v22484_v34 = vld [vmem:[#allocation3 + $0x2550] ss:$40 sps:$4 sm:$0xff]  }
 0x6c1   :  { %14087 = vmatpush2.bf16.msra.mxu1 %v22460_v39  ;;  %14045 = vmatprep.subr.bf16.mxu0 %v22465_v58  ;;  %v24128_v39 = vpop.f32.mrf.mxu0  ;;  %v24130_v58 = vpop.f32.mrf.mxu1 }
 0x6c2   :  { %14088 = vmatprep.subr.bf16.mxu1 %v22468_v38  ;;  %v22489_v38 = vld [vmem:[#allocation3 + $0x2004] ss:$40 sps:$4 sm:$0xff]  }
 0x6c4   :  { %14046 = vmatpush2.bf16.msra.mxu0 %v22463_v8  ;;  %v22492_v8 = vld [vmem:[#allocation3 + $0x2504] ss:$40 sps:$4 sm:$0xff]  }
 0x6c5   :  { %14089 = vmatpush2.bf16.msra.mxu1 %v22466_v9  ;;  %14047 = vmatprep.subr.bf16.mxu0 %v22471_v53 }
 0x6c6   :  { %14090 = vmatprep.subr.bf16.mxu1 %v22474_v54 }
 0x6c8   :  { %14048 = vmatpush2.bf16.msra.mxu0 %v22469_v20  ;;  %v22487_v20 = vld [vmem:[#allocation3 + $0x2000] ss:$40 sps:$4 sm:$0xff]  }
 0x6c9   :  { %14091 = vmatpush2.bf16.msra.mxu1 %v22472_v21  ;;  %14049 = vmatprep.subr.bf16.mxu0 %v22477_v4  ;;  %v22490_v21 = vld [vmem:[#allocation3 + $0x2500] ss:$40 sps:$4 sm:$0xff]  }
 0x6ca   :  { %14092 = vmatprep.subr.bf16.mxu1 %v22480_v19 }
 0x6cc   :  { %14050 = vmatpush2.bf16.msra.mxu0 %v22475_v41  ;;  %v22495_v41 = vld [vmem:[#allocation3 + $0x1fb4] ss:$40 sps:$4 sm:$0xff]  }
 0x6cd   :  { %14093 = vmatpush2.bf16.msra.mxu1 %v22478_v42  ;;  %14105 = vmatprep.subr.bf16.mxu0 %v22483_v31  ;;  %v22498_v42 = vld [vmem:[#allocation3 + $0x24b4] ss:$40 sps:$4 sm:$0xff]  }
 0x6ce   :  { %14148 = vmatprep.subr.bf16.mxu1 %v22486_v52  ;;  %v22493_v52 = vld [vmem:[#allocation3 + $0x1fb0] ss:$40 sps:$4 sm:$0xff]  }
 0x6cf   :  { %v13795_v9 = vpop.f32.mrf.mxu0  ;;  %14052 = vmatmul.mubr.bf16.vlgmr.msra.gmra.mxu0 %v23547_v48 }
 0x6d0   :  { %v13838_v53 = vpop.f32.mrf.mxu1  ;;  %14095 = vmatmul.mubr.bf16.vlgmr.msra.gmra.mxu1 %v23551_v49  ;;  %v13796_v54 = vadd.f32 %v13795_v9, %v24121_v62  ;;  %14106 = vmatpush1.bf16.msra.mxu0 %v22481_v33  ;;  %v22496_v33 = vld [vmem:[#allocation3 + $0x24b0] ss:$40 sps:$4 sm:$0xff]  }
 0x6d1   :  { %14149 = vmatpush1.bf16.msra.mxu1 %v22484_v34  ;;  %v24135_v4 = vpop.f32.mrf.mxu0  ;;  %14107 = vmatprep.subr.bf16.mxu0 %v22489_v38  ;;  %v22501_v38 = vld [vmem:[#allocation3 + $0x1f64] ss:$40 sps:$4 sm:$0xff]  }
 0x6d2   :  { %v24137_v19 = vpop.f32.mrf.mxu1  ;;  %14150 = vmatprep.subr.bf16.mxu1 %v22492_v8  ;;  %v24139_v31 = vadd.f32 %v13838_v53, %v13796_v54  ;;  %14137 = vmatprep.mubr.bf16.mxu0 %v23560_v28  ;;  %v22504_v8 = vld [vmem:[#allocation3 + $0x2464] ss:$40 sps:$4 sm:$0xff]   ;;  %v22502_v53 = vld [vmem:[#allocation3 + $0x2460] ss:$40 sps:$4 sm:$0xff]   ;;  %v22510_v54 = vld [vmem:[#allocation3 + $0x2414] ss:$40 sps:$4 sm:$0xff]  }
 0x6d3   :  { %14180 = vmatprep.mubr.bf16.mxu1 %v23564_v29  ;;  %v13799_v48 = vpop.f32.mrf.mxu0  ;;  %v22499_v29 = vld [vmem:[#allocation3 + $0x1f60] ss:$40 sps:$4 sm:$0xff]  }
 0x6d4   :  { %v19477_v49 = vmul.f32 -1.442695, %v24139_v31  ;;  %v13800_v62 = vadd.f32 %v13799_v48, %v24126_v23  ;;  %14108 = vmatpush1.bf16.msra.mxu0 %v22487_v20  ;;  %v13842_v34 = vpop.f32.mrf.mxu1  ;;  %v22507_v23 = vld [vmem:[#allocation3 + $0x1f14] ss:$40 sps:$4 sm:$0xff]   ;;  %v22505_v20 = vld [vmem:[#allocation3 + $0x1f10] ss:$40 sps:$4 sm:$0xff]  }
 0x6d5   :  { %14151 = vmatpush1.bf16.msra.mxu1 %v22490_v21  ;;  %14109 = vmatprep.subr.bf16.mxu0 %v22495_v41  ;;  %v22508_v21 = vld [vmem:[#allocation3 + $0x2410] ss:$40 sps:$4 sm:$0xff]   ;;  %v22513_v41 = vld [vmem:[#allocation3 + $0x1ec4] ss:$40 sps:$4 sm:$0xff]   ;;  %v22511_v48 = vld [vmem:[#allocation3 + $0x1ec0] ss:$40 sps:$4 sm:$0xff]  }
 0x6d6   :  { %14152 = vmatprep.subr.bf16.mxu1 %v22498_v42  ;;  %23285 = vpow2.f32 %v19477_v49  ;;  %v24145_v9 = vadd.f32 %v13842_v34, %v13800_v62  ;;  %v22516_v42 = vld [vmem:[#allocation3 + $0x23c4] ss:$40 sps:$4 sm:$0xff]   ;;  %v22514_v49 = vld [vmem:[#allocation3 + $0x23c0] ss:$40 sps:$4 sm:$0xff]   ;;  %v22519_v62 = vld [vmem:[#allocation3 + $0x1e74] ss:$40 sps:$4 sm:$0xff]  }
 0x6d8   :  { %v19487_v28 = vmul.f32 -1.442695, %v24145_v9  ;;  %14110 = vmatpush1.bf16.msra.mxu0 %v22493_v52  ;;  %v22522_v52 = vld [vmem:[#allocation3 + $0x2374] ss:$40 sps:$4 sm:$0xff]  }
 0x6d9   :  { %14153 = vmatpush1.bf16.msra.mxu1 %v22496_v33  ;;  %14111 = vmatprep.subr.bf16.mxu0 %v22501_v38  ;;  %v22517_v38 = vld [vmem:[#allocation3 + $0x1e70] ss:$40 sps:$4 sm:$0xff]  }
 0x6da   :  { %14154 = vmatprep.subr.bf16.mxu1 %v22504_v8  ;;  %23287 = vpow2.f32 %v19487_v28  ;;  %v22520_v8 = vld [vmem:[#allocation3 + $0x2370] ss:$40 sps:$4 sm:$0xff]   ;;  %v22525_v28 = vld [vmem:[#allocation3 + $0x1e24] ss:$40 sps:$4 sm:$0xff]  }
 0x6dc   :  { %14112 = vmatpush1.bf16.msra.mxu0 %v22499_v29  ;;  %v22528_v29 = vld [vmem:[#allocation3 + $0x2324] ss:$40 sps:$4 sm:$0xff]  }
 0x6dd   :  { %14155 = vmatpush1.bf16.msra.mxu1 %v22502_v53  ;;  %14113 = vmatprep.subr.bf16.mxu0 %v22507_v23 }
 0x6de   :  { %14156 = vmatprep.subr.bf16.mxu1 %v22510_v54  ;;  %v22523_v54 = vld [vmem:[#allocation3 + $0x1e20] ss:$40 sps:$4 sm:$0xff]  }
 0x6e0   :  { %14114 = vmatpush1.bf16.msra.mxu0 %v22505_v20  ;;  %v22526_v20 = vld [vmem:[#allocation3 + $0x2320] ss:$40 sps:$4 sm:$0xff]  }
 0x6e1   :  { %14157 = vmatpush1.bf16.msra.mxu1 %v22508_v21  ;;  %14115 = vmatprep.subr.bf16.mxu0 %v22513_v41  ;;  %v22531_v21 = vld [vmem:[#allocation3 + $0x22d4] ss:$40 sps:$4 sm:$0xff]  }
 0x6e2   :  { %14158 = vmatprep.subr.bf16.mxu1 %v22516_v42  ;;  %v22534_v41 = vld [vmem:[#allocation3 + $0x27d4] ss:$40 sps:$4 sm:$0xff]   ;;  %v22529_v42 = vld [vmem:[#allocation3 + $0x22d0] ss:$40 sps:$4 sm:$0xff]  }
 0x6e3   :  { %v23286_v33 = vpop.eup %23285 }
 0x6e4   :  { %v14429_v34 = vadd.f32 1.0, %v23286_v33  ;;  %14116 = vmatpush1.bf16.msra.mxu0 %v22511_v48  ;;  %v22532_v48 = vld [vmem:[#allocation3 + $0x27d0] ss:$40 sps:$4 sm:$0xff]   ;;  %v22538_v33 = vld [vmem:[#allocation3 + $0x2780] ss:$40 sps:$4 sm:$0xff]  }
 0x6e5   :  { %14159 = vmatpush1.bf16.msra.mxu1 %v22514_v49  ;;  %14117 = vmatprep.subr.bf16.mxu0 %v22519_v62  ;;  %v22537_v49 = vld [vmem:[#allocation3 + $0x2284] ss:$40 sps:$4 sm:$0xff]  }
 0x6e6   :  { %14160 = vmatprep.subr.bf16.mxu1 %v22522_v52  ;;  %23289 = vrcp.f32 %v14429_v34  ;;  %v22540_v62 = vld [vmem:[#allocation3 + $0x2784] ss:$40 sps:$4 sm:$0xff]   ;;  %v22535_v52 = vld [vmem:[#allocation3 + $0x2280] ss:$40 sps:$4 sm:$0xff]   ;;  %v22543_v34 = vld [vmem:[#allocation3 + $0x2234] ss:$40 sps:$4 sm:$0xff]  }
 0x6e7   :  { %v23288_v53 = vpop.eup %23287 }
 0x6e8   :  { %v14439_v23 = vadd.f32 1.0, %v23288_v53  ;;  %14118 = vmatpush1.bf16.msra.mxu0 %v22517_v38  ;;  %v22546_v38 = vld [vmem:[#allocation3 + $0x2734] ss:$40 sps:$4 sm:$0xff]   ;;  %v22544_v53 = vld [vmem:[#allocation3 + $0x2730] ss:$40 sps:$4 sm:$0xff]  }
 0x6e9   :  { %14161 = vmatpush1.bf16.msra.mxu1 %v22520_v8  ;;  %14119 = vmatprep.subr.bf16.mxu0 %v22525_v28 }
 0x6ea   :  { %14162 = vmatprep.subr.bf16.mxu1 %v22528_v29  ;;  %23291 = vrcp.f32 %v14439_v23  ;;  %v22541_v29 = vld [vmem:[#allocation3 + $0x2230] ss:$40 sps:$4 sm:$0xff]   ;;  %v22549_v23 = vld [vmem:[#allocation3 + $0x21e4] ss:$40 sps:$4 sm:$0xff]  }
 0x6ec   :  { %14120 = vmatpush1.bf16.msra.mxu0 %v22523_v54  ;;  %v22552_v54 = vld [vmem:[#allocation3 + $0x26e4] ss:$40 sps:$4 sm:$0xff]  }
 0x6ed   :  { %14163 = vmatpush1.bf16.msra.mxu1 %v22526_v20  ;;  %14121 = vmatprep.subr.bf16.mxu0 %v22531_v21 }
 0x6ee   :  { %14164 = vmatprep.subr.bf16.mxu1 %v22534_v41 }
 0x6f0   :  { %14122 = vmatpush2.bf16.msra.mxu0 %v22529_v42 }
 0x6f1   :  { %14165 = vmatpush2.bf16.msra.mxu1 %v22532_v48  ;;  %14123 = vmatprep.subr.bf16.mxu0 %v22537_v49  ;;  %v22547_v48 = vld [vmem:[#allocation3 + $0x21e0] ss:$40 sps:$4 sm:$0xff]  }
 0x6f2   :  { %14166 = vmatprep.subr.bf16.mxu1 %v22540_v62  ;;  %v22550_v49 = vld [vmem:[#allocation3 + $0x26e0] ss:$40 sps:$4 sm:$0xff]   ;;  %v22558_v62 = vld [vmem:[#allocation3 + $0x2694] ss:$40 sps:$4 sm:$0xff]  }
 0x6f3   :  { %v23290_v8 = vpop.eup %23289 }
 0x6f4   :  { %v14489_v28 = vmul.f32 %v23290_v8, %v24139_v31  ;;  %14124 = vmatpush2.bf16.msra.mxu0 %v22535_v52  ;;  %v22555_v31 = vld [vmem:[#allocation3 + $0x2194] ss:$40 sps:$4 sm:$0xff]  }
 0x6f5   :  { %14167 = vmatpush2.bf16.msra.mxu1 %v22538_v33  ;;  %14125 = vmatprep.subr.bf16.mxu0 %v22543_v34 }
 0x6f6   :  { %14168 = vmatprep.subr.bf16.mxu1 %v22546_v38  ;;  %v14642_v20 = vrot.slane %v14489_v28, 4  ;;  %v22553_v38 = vld [vmem:[#allocation3 + $0x2190] ss:$40 sps:$4 sm:$0xff]  }
 0x6f7   :  { %v23292_v21 = vpop.eup %23291 }
 0x6f8   :  { %v14643_v41 = vadd.f32 %v14642_v20, %v14489_v28  ;;  %v14499_v42 = vmul.f32 %v23292_v21, %v24145_v9  ;;  %14126 = vmatpush2.bf16.msra.mxu0 %v22541_v29  ;;  %v22561_v28 = vld [vmem:[#allocation3 + $0x2144] ss:$40 sps:$4 sm:$0xff]   ;;  %v25677_v29 = vsub.s32 6, %v23570_v63 }
 0x6f9   :  { %14169 = vmatpush2.bf16.msra.mxu1 %v22544_v53  ;;  %14127 = vmatprep.subr.bf16.mxu0 %v22549_v23  ;;  %v22564_v9 = vld [vmem:[#allocation3 + $0x2644] ss:$40 sps:$4 sm:$0xff]  }
 0x6fa   :  { %14170 = vmatprep.subr.bf16.mxu1 %v22552_v54  ;;  %v14644_v52 = vrot.slane %v14643_v41, 2  ;;  %v14702_v33 = vrot.slane %v14499_v42, 4  ;;  %v14773_v53 = vrot.slane %v23772_v17, %v25677_v29  ;;  %v22573_v29 = vld [vmem:[#allocation3 + $0x20a4] ss:$40 sps:$4 sm:$0xff]  }
 0x6fc   :  { %v14645_v8 = vadd.f32 %v14644_v52, %v14643_v41  ;;  %v14703_v34 = vadd.f32 %v14702_v33, %v14499_v42  ;;  %14128 = vmatpush2.bf16.msra.mxu0 %v22547_v48  ;;  %v22559_v41 = vld [vmem:[#allocation3 + $0x2140] ss:$40 sps:$4 sm:$0xff]   ;;  %v22567_v48 = vld [vmem:[#allocation3 + $0x20f4] ss:$40 sps:$4 sm:$0xff]   ;;  %v22565_v33 = vld [vmem:[#allocation3 + $0x20f0] ss:$40 sps:$4 sm:$0xff]  }
 0x6fd   :  { %14171 = vmatpush2.bf16.msra.mxu1 %v22550_v49  ;;  %14129 = vmatprep.subr.bf16.mxu0 %v22555_v31  ;;  %v22562_v42 = vld [vmem:[#allocation3 + $0x2640] ss:$40 sps:$4 sm:$0xff]   ;;  %v22570_v49 = vld [vmem:[#allocation3 + $0x25f4] ss:$40 sps:$4 sm:$0xff]  }
 0x6fe   :  { %14172 = vmatprep.subr.bf16.mxu1 %v22558_v62  ;;  %v14646_v23 = vrot.slane %v14645_v8, 1  ;;  %v14704_v54 = vrot.slane %v14703_v34, 2 }
 0x700   :  { %v14647_v20 = vadd.f32 %v14646_v23, %v14645_v8  ;;  %v14705_v21 = vadd.f32 %v14704_v54, %v14703_v34  ;;  %14130 = vmatpush2.bf16.msra.mxu0 %v22553_v38  ;;  %v22576_v8 = vld [vmem:[#allocation3 + $0x25a4] ss:$40 sps:$4 sm:$0xff]   ;;  %v22574_v23 = vld [vmem:[#allocation3 + $0x25a0] ss:$40 sps:$4 sm:$0xff]   ;;  %v22579_v54 = vld [vmem:[#allocation3 + $0x2a54] ss:$40 sps:$4 sm:$0xff]  }
 0x701   :  { %14173 = vmatpush2.bf16.msra.mxu1 %v22556_v22  ;;  %14131 = vmatprep.subr.bf16.mxu0 %v22561_v28  ;;  %v24154_v22 = vsub.s32 3, %v23570_v63 }
 0x702   :  { %14174 = vmatprep.subr.bf16.mxu1 %v22564_v9  ;;  %v14802_v31 = vsub.f32 %v14647_v20, %v14773_v53  ;;  %v14706_v62 = vrot.slane %v14705_v21, 1  ;;  %v22571_v9 = vld [vmem:[#allocation3 + $0x20a0] ss:$40 sps:$4 sm:$0xff]   ;;  %v22582_v20 = vld [vmem:[#allocation3 + $0x2f54] ss:$40 sps:$4 sm:$0xff]  }
 0x704   :  { %v14707_v52 = vadd.f32 %v14706_v62, %v14705_v21  ;;  %14132 = vmatpush2.bf16.msra.mxu0 %v22559_v41  ;;  %v14822_v34 = vmul.f32 0.25, %v14802_v31  ;;  %v11824_v31 = vadd.f32 %v23660_v36, %v23611_v44  ;;  %v22585_v62 = vld [vmem:[#allocation3 + $0x2a04] ss:$40 sps:$4 sm:$0xff]   ;;  %v22591_v36 = vld [vmem:[#allocation3 + $0x29b4] ss:$40 sps:$4 sm:$0xff]  }
 0x705   :  { %14175 = vmatpush2.bf16.msra.mxu1 %v22562_v42  ;;  %14133 = vmatprep.subr.bf16.mxu0 %v22567_v48  ;;  %v24159_v42 = vld [vmem:[%s25624_s2] sm:$0xff] }
 0x706   :  { %14176 = vmatprep.subr.bf16.mxu1 %v22570_v49  ;;  %v14812_v38 = vsub.f32 %v14707_v52, %v14773_v53  ;;  %v14842_v21 = vpack.c.bf16 %v14822_v34, %v14822_v34  ;;  %v2028_v53 = vrot.slane %v24159_v42, %v24154_v22  ;;  %v22580_v49 = vld [vmem:[#allocation3 + $0x2f50] ss:$40 sps:$4 sm:$0xff]   ;;  %v22588_v52 = vld [vmem:[#allocation3 + $0x2f04] ss:$40 sps:$4 sm:$0xff]   ;;  %v22583_v34 = vld [vmem:[#allocation3 + $0x2a00] ss:$40 sps:$4 sm:$0xff]   ;;  %v11867_v44 = vadd.f32 %v23662_v37, %v11824_v31 }
 0x707   :  { %v22592_v37 = vld [vmem:[#allocation3 + $0x2eb0] ss:$40 sps:$4 sm:$0xff]   ;;  %v22606_v31 = vld [vmem:[#allocation3 + $0x2e14] ss:$40 sps:$4 sm:$0xff]  }
 0x708   :  { %v14832_v28 = vmul.f32 0.25, %v14812_v38  ;;  %14134 = vmatpush2.bf16.msra.mxu0 %v22565_v33  ;;  %v12340_v33 = vadd.f32 %v23802_v59, %v2028_v53  ;;  %v22586_v38 = vld [vmem:[#allocation3 + $0x2f00] ss:$40 sps:$4 sm:$0xff]  }
 0x709   :  { %14177 = vmatpush2.bf16.msra.mxu1 %v22568_v55  ;;  %14135 = vmatprep.subr.bf16.mxu0 %v22573_v29  ;;  %v22577_v55 = vld [vmem:[#allocation3 + $0x2a50] ss:$40 sps:$4 sm:$0xff]   ;;  %v15224_v29 = vunpack.c.l.b16 %v14842_v21  ;;  %v22600_v21 = vld [vmem:[#allocation3 + $0x2e64] ss:$40 sps:$4 sm:$0xff]  }
 0x70a   :  { %14178 = vmatprep.subr.bf16.mxu1 %v22576_v8  ;;  %v14852_v41 = vpack.c.bf16 %v14832_v28, %v14832_v28  ;;  %v12383_v59 = vadd.f32 %v23804_v24, %v12340_v33  ;;  %v25683_v33 = vld [vmem:[#allocation29_spill] sm:$0xff] }
 0x70c   :  { %v15234_v48 = vunpack.c.l.b16 %v14852_v41  ;;  %14136 = vmatpush2.bf16.msra.mxu0 %v22571_v9  ;;  %v22594_v9 = vld [vmem:[#allocation3 + $0x2eb4] ss:$40 sps:$4 sm:$0xff]  }
 0x70d   :  { %14179 = vmatpush2.bf16.msra.mxu1 %v22574_v23  ;;  %14191 = vmatprep.subr.bf16.mxu0 %v22579_v54  ;;  %v12426_v23 = vadd.f32 %v23820_v45, %v12383_v59  ;;  %v22589_v54 = vld [vmem:[#allocation3 + $0x29b0] ss:$40 sps:$4 sm:$0xff]   ;;  %v25685_v59 = vld [vmem:[#allocation25_spill] sm:$0xff] }
 0x70e   :  { %14234 = vmatprep.subr.bf16.mxu1 %v22582_v20  ;;  %v15251_v8 = vrot.slane %v15234_v48, 7  ;;  %v22597_v20 = vld [vmem:[#allocation3 + $0x2964] ss:$40 sps:$4 sm:$0xff]   ;;  %v25678_v41 = vld [vmem:[#allocation11_spill] sm:$0xff] }
 0x70f   :  { %14138 = vmatmul.mubr.bf16.vlgmr.msra.gmra.mxu0 %v23598_v15  ;;  %v11910_v15 = vadd.f32 %v23693_v2, %v11867_v44  ;;  %v25679_v48 = vld [vmem:[#allocation23_spill] sm:$0xff]  ;;  %v22595_v2 = vld [vmem:[#allocation3 + $0x2960] ss:$40 sps:$4 sm:$0xff]  }
 0x710   :  { %14181 = vmatmul.mubr.bf16.vlgmr.msra.gmra.mxu1 %v23602_v16  ;;  %14192 = vmatpush1.bf16.msra.mxu0 %v22577_v55  ;;  %v24169_v28 = vsel %vm15239_vm0, %v15251_v8, %v15224_v29  ;;  %v12336_v16 = vadd.f32 %v23792_v30, %v2028_v53  ;;  %v25680_v55 = vld [vmem:[#allocation26_spill] sm:$0xff]  ;;  %v25681_v53 = vld [vmem:[#allocation12_spill] sm:$0xff] }
 0x711   :  { %14235 = vmatpush1.bf16.msra.mxu1 %v22580_v49  ;;  %14193 = vmatprep.subr.bf16.mxu0 %v22585_v62  ;;  %v11953_v24 = vadd.f32 %v25678_v41, %v11910_v15  ;;  %v22598_v30 = vld [vmem:[#allocation3 + $0x2e60] ss:$40 sps:$4 sm:$0xff]   ;;  %v22603_v49 = vld [vmem:[#allocation3 + $0x2914] ss:$40 sps:$4 sm:$0xff]   ;;  %v22601_v8 = vld [vmem:[#allocation3 + $0x2910] ss:$40 sps:$4 sm:$0xff]  }
 0x712   :  { %14236 = vmatprep.subr.bf16.mxu1 %v22588_v52  ;;  %14223 = vmatprep.mubr.bf16.mxu0 %v23615_v46  ;;  %v12379_v46 = vadd.f32 %v25679_v48, %v12336_v16  ;;  %v25682_v62 = vld [vmem:[#allocation24_spill] sm:$0xff]  ;;  %v25686_v16 = vld [vmem:[#allocation30_spill] sm:$0xff]  ;;  %v25689_v41 = vld [vmem:[#allocation33_spill] sm:$0xff] }
 0x713   :  { %14266 = vmatprep.mubr.bf16.mxu1 %v23619_v47  ;;  %v12469_v47 = vadd.f32 %v25680_v55, %v12426_v23  ;;  %v11996_v45 = vadd.f32 %v25681_v53, %v11953_v24  ;;  %v22607_v48 = vld [vmem:[#allocation3 + $0x28c0] ss:$40 sps:$4 sm:$0xff]   ;;  %v22615_v55 = vld [vmem:[#allocation3 + $0x2874] ss:$40 sps:$4 sm:$0xff]  }
 0x714   :  { %14194 = vmatpush1.bf16.msra.mxu0 %v22583_v34  ;;  %v12422_v52 = vadd.f32 %v25682_v62, %v12379_v46  ;;  %v22604_v34 = vld [vmem:[#allocation3 + $0x2e10] ss:$40 sps:$4 sm:$0xff]   ;;  %v22610_v46 = vld [vmem:[#allocation3 + $0x2dc0] ss:$40 sps:$4 sm:$0xff]  }
 0x715   :  { %14237 = vmatpush1.bf16.msra.mxu1 %v22586_v38  ;;  %14195 = vmatprep.subr.bf16.mxu0 %v22591_v36  ;;  %v12512_v29 = vadd.f32 %v25683_v33, %v12469_v47  ;;  %v25684_v38 = vld [vmem:[#allocation13_spill] sm:$0xff]  ;;  %v22618_v47 = vld [vmem:[#allocation3 + $0x2d74] ss:$40 sps:$4 sm:$0xff]   ;;  %v22613_v62 = vld [vmem:[#allocation3 + $0x2870] ss:$40 sps:$4 sm:$0xff]  }
 0x716   :  { %14238 = vmatprep.subr.bf16.mxu1 %v22594_v9  ;;  %v12039_v44 = vadd.f32 %v25684_v38, %v11996_v45  ;;  %v22609_v36 = vld [vmem:[#allocation3 + $0x28c4] ss:$40 sps:$4 sm:$0xff]   ;;  %v12465_v15 = vadd.f32 %v25685_v59, %v12422_v52  ;;  %v25691_v53 = vld [vmem:[#allocation28_spill] sm:$0xff]  ;;  %v25694_v38 = vld [vmem:[#allocation31_spill] sm:$0xff] }
 0x717   :  { %v22612_v9 = vld [vmem:[#allocation3 + $0x2dc4] ss:$40 sps:$4 sm:$0xff]   ;;  %v12555_v23 = vadd.f32 %v25686_v16, %v12512_v29  ;;  %v22616_v52 = vld [vmem:[#allocation3 + $0x2d70] ss:$40 sps:$4 sm:$0xff]   ;;  %v22619_v59 = vld [vmem:[#allocation3 + $0x2820] ss:$40 sps:$4 sm:$0xff]  }
 0x718   :  { %14196 = vmatpush1.bf16.msra.mxu0 %v22589_v54  ;;  %v25687_v54 = vld [vmem:[#allocation14_spill] sm:$0xff]  ;;  %v25693_v33 = vld [vmem:[#allocation16_spill] sm:$0xff]  ;;  %v25696_v16 = vld [vmem:[#allocation17_spill] sm:$0xff] }
 0x719   :  { %14239 = vmatpush1.bf16.msra.mxu1 %v22592_v37  ;;  %14197 = vmatprep.subr.bf16.mxu0 %v22597_v20  ;;  %v12082_v37 = vadd.f32 %v25687_v54, %v12039_v44  ;;  %v25688_v20 = vld [vmem:[#allocation27_spill] sm:$0xff]  ;;  %v12598_v24 = vadd.f32 %v25689_v41, %v12555_v23  ;;  %v25698_v41 = vld [vmem:[#allocation38_spill] sm:$0xff] }
 0x71a   :  { %14240 = vmatprep.subr.bf16.mxu1 %v22600_v21  ;;  %v12508_v21 = vadd.f32 %v25688_v20, %v12465_v15  ;;  %v22622_v15 = vld [vmem:[#allocation3 + $0x2d20] ss:$40 sps:$4 sm:$0xff]   ;;  %v22627_v54 = vld [vmem:[#allocation3 + $0x2cd4] ss:$40 sps:$4 sm:$0xff]  }
 0x71b   :  { %v25697_v20 = vld [vmem:[#allocation32_spill] sm:$0xff] }
 0x71c   :  { %14198 = vmatpush1.bf16.msra.mxu0 %v22595_v2  ;;  %v25690_v2 = vld [vmem:[#allocation15_spill] sm:$0xff]  ;;  %v12551_v45 = vadd.f32 %v25691_v53, %v12508_v21 }
 0x71d   :  { %14241 = vmatpush1.bf16.msra.mxu1 %v22598_v30  ;;  %14199 = vmatprep.subr.bf16.mxu0 %v22603_v49  ;;  %v12125_v30 = vadd.f32 %v25690_v2, %v12082_v37  ;;  %v25692_v49 = vld [vmem:[#allocation34_spill] sm:$0xff]  ;;  %v22630_v37 = vld [vmem:[#allocation3 + $0x31d4] ss:$40 sps:$4 sm:$0xff]   ;;  %v25701_v2 = vld [vmem:[#allocation41_spill] sm:$0xff] }
 0x71e   :  { %14242 = vmatprep.subr.bf16.mxu1 %v22606_v31  ;;  %v12641_v31 = vadd.f32 %v25692_v49, %v12598_v24  ;;  %v12594_v44 = vadd.f32 %v25694_v38, %v12551_v45  ;;  %v22625_v53 = vld [vmem:[#allocation3 + $0x2cd0] ss:$40 sps:$4 sm:$0xff]   ;;  %v22633_v49 = vld [vmem:[#allocation3 + $0x2c84] ss:$40 sps:$4 sm:$0xff]   ;;  %v22631_v38 = vld [vmem:[#allocation3 + $0x2c80] ss:$40 sps:$4 sm:$0xff]  }
 0x71f   :  { %v12168_v29 = vadd.f32 %v25693_v33, %v12125_v30  ;;  %v22628_v45 = vld [vmem:[#allocation3 + $0x31d0] ss:$40 sps:$4 sm:$0xff]  }
 0x720   :  { %14200 = vmatpush1.bf16.msra.mxu0 %v22601_v8  ;;  %v22621_v8 = vld [vmem:[#allocation3 + $0x2824] ss:$40 sps:$4 sm:$0xff]   ;;  %v12637_v21 = vadd.f32 %v25697_v20, %v12594_v44  ;;  %v25703_v33 = vld [vmem:[#allocation36_spill] sm:$0xff] }
 0x721   :  { %14243 = vmatpush1.bf16.msra.mxu1 %v22604_v34  ;;  %14201 = vmatprep.subr.bf16.mxu0 %v22609_v36  ;;  %v22624_v34 = vld [vmem:[#allocation3 + $0x2d24] ss:$40 sps:$4 sm:$0xff]   ;;  %v12211_v23 = vadd.f32 %v25696_v16, %v12168_v29  ;;  %v22634_v44 = vld [vmem:[#allocation3 + $0x3180] ss:$40 sps:$4 sm:$0xff]  }
 0x722   :  { %14244 = vmatprep.subr.bf16.mxu1 %v22612_v9  ;;  %v25695_v36 = vld [vmem:[#allocation37_spill] sm:$0xff] }
 0x723   :  { %v12684_v9 = vadd.f32 %v25695_v36, %v12641_v31  ;;  %v22636_v31 = vld [vmem:[#allocation3 + $0x3184] ss:$40 sps:$4 sm:$0xff]   ;;  %v22639_v36 = vld [vmem:[#allocation3 + $0x2c34] ss:$40 sps:$4 sm:$0xff]  }
 0x724   :  { %14202 = vmatpush1.bf16.msra.mxu0 %v22607_v48  ;;  %v25699_v48 = vld [vmem:[#allocation20_spill] sm:$0xff]  ;;  %v22645_v20 = vld [vmem:[#allocation3 + $0x2be4] ss:$40 sps:$4 sm:$0xff]  }
 0x725   :  { %14245 = vmatpush1.bf16.msra.mxu1 %v22610_v46  ;;  %14203 = vmatprep.subr.bf16.mxu0 %v22615_v55  ;;  %v12727_v24 = vadd.f32 %v25698_v41, %v12684_v9  ;;  %v12254_v46 = vadd.f32 %v25699_v48, %v12211_v23  ;;  %v25700_v55 = vld [vmem:[#allocation35_spill] sm:$0xff]  ;;  %v25706_v41 = vld [vmem:[#allocation40_spill] sm:$0xff]  ;;  %v25707_v48 = vld [vmem:[#allocation18_spill] sm:$0xff] }
 0x726   :  { %14246 = vmatprep.subr.bf16.mxu1 %v22618_v47  ;;  %v12680_v47 = vadd.f32 %v25700_v55, %v12637_v21  ;;  %v22642_v9 = vld [vmem:[#allocation3 + $0x3134] ss:$40 sps:$4 sm:$0xff]   ;;  %v22648_v21 = vld [vmem:[#allocation3 + $0x30e4] ss:$40 sps:$4 sm:$0xff]   ;;  %v22643_v55 = vld [vmem:[#allocation3 + $0x2be0] ss:$40 sps:$4 sm:$0xff]  }
 0x727   :  { %v12770_v30 = vadd.f32 %v25701_v2, %v12727_v24  ;;  %v22651_v2 = vld [vmem:[#allocation3 + $0x2b94] ss:$40 sps:$4 sm:$0xff]  }
 0x728   :  { %14204 = vmatpush1.bf16.msra.mxu0 %v22613_v62  ;;  %v25702_v62 = vld [vmem:[#allocation21_spill] sm:$0xff]  ;;  %v12723_v29 = vadd.f32 %v25703_v33, %v12680_v47 }
 0x729   :  { %14247 = vmatpush1.bf16.msra.mxu1 %v22616_v52  ;;  %14205 = vmatprep.subr.bf16.mxu0 %v22621_v8  ;;  %v24203_v52 = vadd.f32 %v25702_v62, %v12254_v46  ;;  %v25704_v8 = vld [vmem:[#allocation42_spill] sm:$0xff]  ;;  %v19472_v46 = vmul.f32 -1.442695, %v25707_v48 }
 0x72a   :  { %14248 = vmatprep.subr.bf16.mxu1 %v22624_v34  ;;  %v24207_v34 = vadd.f32 %v25704_v8, %v12770_v30  ;;  %v22646_v47 = vld [vmem:[#allocation3 + $0x30e0] ss:$40 sps:$4 sm:$0xff]   ;;  %v22654_v30 = vld [vmem:[#allocation3 + $0x3094] ss:$40 sps:$4 sm:$0xff]   ;;  %v22660_v62 = vld [vmem:[#allocation3 + $0x3044] ss:$40 sps:$4 sm:$0xff]  }
 0x72b   :  { %v19482_v16 = vmul.f32 -1.442695, %v24203_v52  ;;  %v22655_v33 = vld [vmem:[#allocation3 + $0x2b40] ss:$40 sps:$4 sm:$0xff]   ;;  %v22663_v8 = vld [vmem:[#allocation3 + $0x2af4] ss:$40 sps:$4 sm:$0xff]  }
 0x72c   :  { %14206 = vmatpush1.bf16.msra.mxu0 %v22619_v59  ;;  %v25705_v59 = vld [vmem:[#allocation39_spill] sm:$0xff]  ;;  %v19484_v23 = vmul.f32 -1.442695, %v24207_v34 }
 0x72d   :  { %14249 = vmatpush1.bf16.msra.mxu1 %v22622_v15  ;;  %14207 = vmatprep.subr.bf16.mxu0 %v22627_v54  ;;  %v12766_v15 = vadd.f32 %v25705_v59, %v12723_v29  ;;  %v22637_v54 = vld [vmem:[#allocation3 + $0x2c30] ss:$40 sps:$4 sm:$0xff]   ;;  %23293 = vpow2.f32 %v19482_v16  ;;  %v22658_v29 = vld [vmem:[#allocation3 + $0x3040] ss:$40 sps:$4 sm:$0xff]   ;;  %v22672_v16 = vld [vmem:[#allocation3 + $0x2fa4] ss:$40 sps:$4 sm:$0xff]  }
 0x72e   :  { %14250 = vmatprep.subr.bf16.mxu1 %v22630_v37  ;;  %v22640_v37 = vld [vmem:[#allocation3 + $0x3130] ss:$40 sps:$4 sm:$0xff]   ;;  %23295 = vpow2.f32 %v19484_v23 }
 0x72f   :  { %v24213_v24 = vadd.f32 %v25706_v41, %v12766_v15  ;;  %23297 = vpow2.f32 %v19472_v46  ;;  %v22669_v15 = vld [vmem:[#allocation3 + $0x2aa4] ss:$40 sps:$4 sm:$0xff]   ;;  %v2043_v41 = vsub.s32 7, %v23570_v63  ;;  %v22675_v46 = vld [vmem:[#allocation3 + $0x3454] ss:$40 sps:$4 sm:$0xff]  }
 0x730   :  { %14208 = vmatpush2.bf16.msra.mxu0 %v22625_v53  ;;  %v22846_v63 = vld [vmem:[%s25625_s3 + $0x364] ss:$16 sps:$4 sm:$0xff]  }
 0x731   :  { %14251 = vmatpush2.bf16.msra.mxu1 %v22628_v45  ;;  %14209 = vmatprep.subr.bf16.mxu0 %v22633_v49  ;;  %v19474_v53 = vmul.f32 -1.442695, %v24213_v24  ;;  %v22649_v45 = vld [vmem:[#allocation3 + $0x2b90] ss:$40 sps:$4 sm:$0xff]  }
 0x732   :  { %14252 = vmatprep.subr.bf16.mxu1 %v22636_v31  ;;  %v22652_v49 = vld [vmem:[#allocation3 + $0x3090] ss:$40 sps:$4 sm:$0xff]   ;;  %v22657_v31 = vld [vmem:[#allocation3 + $0x2b44] ss:$40 sps:$4 sm:$0xff]  }
 0x733   :  { %23299 = vpow2.f32 %v19474_v53  ;;  %v22676_v53 = vld [vmem:[#allocation3 + $0x3950] ss:$40 sps:$4 sm:$0xff]  }
 0x734   :  { %14210 = vmatpush2.bf16.msra.mxu0 %v22631_v38  ;;  %v22666_v38 = vld [vmem:[#allocation3 + $0x2ff4] ss:$40 sps:$4 sm:$0xff]  }
 0x735   :  { %14253 = vmatpush2.bf16.msra.mxu1 %v22634_v44  ;;  %14211 = vmatprep.subr.bf16.mxu0 %v22639_v36  ;;  %v22661_v36 = vld [vmem:[#allocation3 + $0x2af0] ss:$40 sps:$4 sm:$0xff]  }
 0x736   :  { %14254 = vmatprep.subr.bf16.mxu1 %v22642_v9  ;;  %v22664_v9 = vld [vmem:[#allocation3 + $0x2ff0] ss:$40 sps:$4 sm:$0xff]  }
 0x738   :  { %14212 = vmatpush2.bf16.msra.mxu0 %v22637_v54 }
 0x739   :  { %14255 = vmatpush2.bf16.msra.mxu1 %v22640_v37  ;;  %14213 = vmatprep.subr.bf16.mxu0 %v22645_v20  ;;  %v22667_v37 = vld [vmem:[#allocation3 + $0x2aa0] ss:$40 sps:$4 sm:$0xff]  }
 0x73a   :  { %14256 = vmatprep.subr.bf16.mxu1 %v22648_v21  ;;  %v23294_v44 = vpop.eup %23293  ;;  %v22670_v20 = vld [vmem:[#allocation3 + $0x2fa0] ss:$40 sps:$4 sm:$0xff]  }
 0x73b   :  { %v23296_v59 = vpop.eup %23295  ;;  %v14434_v23 = vadd.f32 1.0, %v23294_v44 }
 0x73c   :  { %14214 = vmatpush2.bf16.msra.mxu0 %v22643_v55  ;;  %v14436_v54 = vadd.f32 1.0, %v23296_v59  ;;  %v23298_v21 = vpop.eup %23297  ;;  %v22678_v55 = vld [vmem:[#allocation3 + $0x3954] ss:$40 sps:$4 sm:$0xff]   ;;  %v22696_v59 = vld [vmem:[#allocation3 + $0x3864] ss:$40 sps:$4 sm:$0xff]  }
 0x73d   :  { %14257 = vmatpush2.bf16.msra.mxu1 %v22646_v47  ;;  %14215 = vmatprep.subr.bf16.mxu0 %v22651_v2  ;;  %23301 = vrcp.f32 %v14434_v23  ;;  %v14424_v2 = vadd.f32 1.0, %v23298_v21 }
 0x73e   :  { %14258 = vmatprep.subr.bf16.mxu1 %v22654_v30  ;;  %23303 = vrcp.f32 %v14436_v54  ;;  %v22673_v30 = vld [vmem:[#allocation3 + $0x3450] ss:$40 sps:$4 sm:$0xff]   ;;  %v22699_v54 = vld [vmem:[#allocation3 + $0x3314] ss:$40 sps:$4 sm:$0xff]  }
 0x73f   :  { %23305 = vrcp.f32 %v14424_v2 }
 0x740   :  { %14216 = vmatpush2.bf16.msra.mxu0 %v22649_v45  ;;  %v23300_v47 = vpop.eup %23299  ;;  %v2044_v45 = vrot.slane %v24159_v42, %v2043_v41  ;;  %v22690_v42 = vld [vmem:[#allocation3 + $0x38b4] ss:$40 sps:$4 sm:$0xff]  }
 0x741   :  { %14259 = vmatpush2.bf16.msra.mxu1 %v22652_v49  ;;  %14217 = vmatprep.subr.bf16.mxu0 %v22657_v31  ;;  %v22681_v49 = vld [vmem:[#allocation3 + $0x3404] ss:$40 sps:$4 sm:$0xff]  }
 0x742   :  { %14260 = vmatprep.subr.bf16.mxu1 %v22660_v62  ;;  %v22684_v31 = vld [vmem:[#allocation3 + $0x3904] ss:$40 sps:$4 sm:$0xff]   ;;  %v14426_v62 = vadd.f32 1.0, %v23300_v47  ;;  %v13368_v44 = vadd.f32 %v24043_v57, %v2044_v45  ;;  %v22702_v57 = vld [vmem:[#allocation3 + $0x3814] ss:$40 sps:$4 sm:$0xff]  }
 0x744   :  { %14218 = vmatpush2.bf16.msra.mxu0 %v22655_v33  ;;  %v13372_v33 = vadd.f32 %v24056_v3, %v2044_v45  ;;  %23307 = vrcp.f32 %v14426_v62  ;;  %v22706_v45 = vld [vmem:[#allocation3 + $0x37c0] ss:$40 sps:$4 sm:$0xff]   ;;  %v22711_v62 = vld [vmem:[#allocation3 + $0x3274] ss:$40 sps:$4 sm:$0xff]  }
 0x745   :  { %14261 = vmatpush2.bf16.msra.mxu1 %v22658_v29  ;;  %14219 = vmatprep.subr.bf16.mxu0 %v22663_v8  ;;  %v22679_v29 = vld [vmem:[#allocation3 + $0x3400] ss:$40 sps:$4 sm:$0xff]  }
 0x746   :  { %14262 = vmatprep.subr.bf16.mxu1 %v22666_v38  ;;  %v22682_v8 = vld [vmem:[#allocation3 + $0x3900] ss:$40 sps:$4 sm:$0xff]   ;;  %v22687_v38 = vld [vmem:[#allocation3 + $0x33b4] ss:$40 sps:$4 sm:$0xff]   ;;  %v13415_v3 = vadd.f32 %v24058_v56, %v13372_v33  ;;  %v13411_v56 = vadd.f32 %v24045_v40, %v13368_v44  ;;  %v22705_v40 = vld [vmem:[#allocation3 + $0x32c4] ss:$40 sps:$4 sm:$0xff]  }
 0x747   :  { %v22714_v33 = vld [vmem:[#allocation3 + $0x3774] ss:$40 sps:$4 sm:$0xff]  }
 0x748   :  { %14220 = vmatpush2.bf16.msra.mxu0 %v22661_v36  ;;  %v13458_v36 = vadd.f32 %v24074_v7, %v13415_v3 }
 0x749   :  { %14263 = vmatpush2.bf16.msra.mxu1 %v22664_v9  ;;  %14221 = vmatprep.subr.bf16.mxu0 %v22669_v15  ;;  %v22693_v9 = vld [vmem:[#allocation3 + $0x3364] ss:$40 sps:$4 sm:$0xff]  }
 0x74a   :  { %14264 = vmatprep.subr.bf16.mxu1 %v22672_v16  ;;  %v23302_v15 = vpop.eup %23301  ;;  %v22694_v16 = vld [vmem:[#allocation3 + $0x3860] ss:$40 sps:$4 sm:$0xff]   ;;  %v13501_v23 = vadd.f32 %v24076_v11, %v13458_v36  ;;  %v22708_v11 = vld [vmem:[#allocation3 + $0x37c4] ss:$40 sps:$4 sm:$0xff]  }
 0x74b   :  { %v14494_v7 = vmul.f32 %v23302_v15, %v24203_v52  ;;  %v22718_v15 = vld [vmem:[#allocation3 + $0x3720] ss:$40 sps:$4 sm:$0xff]  }
 0x74c   :  { %14222 = vmatpush2.bf16.msra.mxu0 %v22667_v37  ;;  %v13454_v37 = vadd.f32 %v24063_v18, %v13411_v56 }
 0x74d   :  { %14265 = vmatpush2.bf16.msra.mxu1 %v22670_v20  ;;  %14277 = vmatprep.subr.bf16.mxu0 %v22675_v46  ;;  %v13544_v20 = vadd.f32 %v24092_v26, %v13501_v23  ;;  %v22697_v46 = vld [vmem:[#allocation3 + $0x3310] ss:$40 sps:$4 sm:$0xff]  }
 0x74e   :  { %14320 = vmatprep.subr.bf16.mxu1 %v22678_v55  ;;  %v22700_v55 = vld [vmem:[#allocation3 + $0x3810] ss:$40 sps:$4 sm:$0xff]  }
 0x74f   :  { %14224 = vmatmul.mubr.bf16.vlgmr.msra.gmra.mxu0 %v23654_v32  ;;  %v22685_v32 = vld [vmem:[#allocation3 + $0x33b0] ss:$40 sps:$4 sm:$0xff]   ;;  %v13587_v52 = vadd.f32 %v24094_v27, %v13544_v20  ;;  %v22729_v20 = vld [vmem:[#allocation3 + $0x3684] ss:$40 sps:$4 sm:$0xff]  }
 0x750   :  { %14267 = vmatmul.mubr.bf16.vlgmr.msra.gmra.mxu1 %v23658_v35  ;;  %14278 = vmatpush1.bf16.msra.mxu0 %v22673_v30  ;;  %v22688_v35 = vld [vmem:[#allocation3 + $0x38b0] ss:$40 sps:$4 sm:$0xff]   ;;  %v14672_v30 = vrot.slane %v14494_v7, 4 }
 0x751   :  { %14321 = vmatpush1.bf16.msra.mxu1 %v22676_v53  ;;  %14279 = vmatprep.subr.bf16.mxu0 %v22681_v49  ;;  %v13497_v53 = vadd.f32 %v24065_v14, %v13454_v37 }
 0x752   :  { %14322 = vmatprep.subr.bf16.mxu1 %v22684_v31  ;;  %14309 = vmatprep.mubr.bf16.mxu0 %v23666_v10  ;;  %v22691_v10 = vld [vmem:[#allocation3 + $0x3360] ss:$40 sps:$4 sm:$0xff]   ;;  %v13630_v31 = vadd.f32 %v24110_v51, %v13587_v52  ;;  %v14673_v14 = vadd.f32 %v14672_v30, %v14494_v7  ;;  %v22720_v51 = vld [vmem:[#allocation3 + $0x3724] ss:$40 sps:$4 sm:$0xff]  }
 0x753   :  { %14352 = vmatprep.mubr.bf16.mxu1 %v23670_v13  ;;  %v23304_v13 = vpop.eup %23303  ;;  %v13540_v49 = vadd.f32 %v24081_v50, %v13497_v53  ;;  %v22717_v50 = vld [vmem:[#allocation3 + $0x3224] ss:$40 sps:$4 sm:$0xff]   ;;  %v22738_v53 = vld [vmem:[#allocation3 + $0x3b34] ss:$40 sps:$4 sm:$0xff]  }
 0x754   :  { %14280 = vmatpush1.bf16.msra.mxu0 %v22679_v29  ;;  %v14496_v21 = vmul.f32 %v23304_v13, %v24207_v34  ;;  %v23306_v47 = vpop.eup %23305  ;;  %v22703_v34 = vld [vmem:[#allocation3 + $0x32c0] ss:$40 sps:$4 sm:$0xff]   ;;  %v13673_v3 = vadd.f32 %v24112_v60, %v13630_v31  ;;  %v22726_v60 = vld [vmem:[#allocation3 + $0x3bd4] ss:$40 sps:$4 sm:$0xff]   ;;  %v22736_v31 = vld [vmem:[#allocation3 + $0x3b30] ss:$40 sps:$4 sm:$0xff]  }
 0x755   :  { %14323 = vmatpush1.bf16.msra.mxu1 %v22682_v8  ;;  %14281 = vmatprep.subr.bf16.mxu0 %v22687_v38  ;;  %v23308_v2 = vpop.eup %23307  ;;  %v14484_v18 = vmul.f32 %v23306_v47, %v25707_v48  ;;  %v22709_v48 = vld [vmem:[#allocation3 + $0x3270] ss:$40 sps:$4 sm:$0xff]  }
 0x756   :  { %14324 = vmatprep.subr.bf16.mxu1 %v22690_v42  ;;  %v14684_v26 = vrot.slane %v14496_v21, 4  ;;  %v14486_v29 = vmul.f32 %v23308_v2, %v24213_v24  ;;  %v22712_v38 = vld [vmem:[#allocation3 + $0x3770] ss:$40 sps:$4 sm:$0xff]   ;;  %v13583_v42 = vadd.f32 %v24083_v43, %v13540_v49  ;;  %v13716_v24 = vadd.f32 %v24128_v39, %v13673_v3  ;;  %v22723_v43 = vld [vmem:[#allocation3 + $0x36d4] ss:$40 sps:$4 sm:$0xff]  }
 0x757   :  { %v14612_v8 = vrot.slane %v14484_v18, 4  ;;  %v22721_v39 = vld [vmem:[#allocation3 + $0x36d0] ss:$40 sps:$4 sm:$0xff]   ;;  %v22742_v3 = vld [vmem:[#allocation3 + $0x3ae0] ss:$40 sps:$4 sm:$0xff]  }
 0x758   :  { %14282 = vmatpush1.bf16.msra.mxu0 %v22685_v32  ;;  %v14685_v27 = vadd.f32 %v14684_v26, %v14496_v21  ;;  %v14624_v32 = vrot.slane %v14486_v29, 4  ;;  %v13626_v44 = vadd.f32 %v24099_v6, %v13583_v42  ;;  %v13759_v23 = vadd.f32 %v24130_v58, %v13716_v24  ;;  %v22732_v21 = vld [vmem:[#allocation3 + $0x3b84] ss:$40 sps:$4 sm:$0xff]   ;;  %v22727_v58 = vld [vmem:[#allocation3 + $0x3680] ss:$40 sps:$4 sm:$0xff]  }
 0x759   :  { %14325 = vmatpush1.bf16.msra.mxu1 %v22688_v35  ;;  %14283 = vmatprep.subr.bf16.mxu0 %v22693_v9  ;;  %v14674_v35 = vrot.slane %v14673_v14, 2  ;;  %v14613_v36 = vadd.f32 %v14612_v8, %v14484_v18  ;;  %v22733_v49 = vld [vmem:[#allocation3 + $0x3630] ss:$40 sps:$4 sm:$0xff]   ;;  %v14761_v8 = vrot.slane %v23772_v17, %v24154_v22  ;;  %v22739_v42 = vld [vmem:[#allocation3 + $0x35e0] ss:$40 sps:$4 sm:$0xff]  }
 0x75a   :  { %14326 = vmatprep.subr.bf16.mxu1 %v22696_v59  ;;  %v14686_v9 = vrot.slane %v14685_v27, 2  ;;  %v22715_v59 = vld [vmem:[#allocation3 + $0x3220] ss:$40 sps:$4 sm:$0xff]   ;;  %v13669_v56 = vadd.f32 %v24101_v61, %v13626_v44  ;;  %v13844_v61 = vpop.f32.mrf.mxu1 }
 0x75b   :  { %v14675_v13 = vadd.f32 %v14674_v35, %v14673_v14  ;;  %v14614_v6 = vrot.slane %v14613_v36, 2 }
 0x75c   :  { %14284 = vmatpush1.bf16.msra.mxu0 %v22691_v10  ;;  %v14625_v10 = vadd.f32 %v14624_v32, %v14486_v29  ;;  %v13712_v7 = vadd.f32 %v24117_v25, %v13669_v56  ;;  %v22735_v25 = vld [vmem:[#allocation3 + $0x3634] ss:$40 sps:$4 sm:$0xff]   ;;  %v25708_v29 = vld [vmem:[#allocation10_spill] sm:$0xff] }
 0x75d   :  { %14327 = vmatpush1.bf16.msra.mxu1 %v22694_v16  ;;  %14285 = vmatprep.subr.bf16.mxu0 %v22699_v54  ;;  %v13801_v16 = vpop.f32.mrf.mxu0  ;;  %v14687_v54 = vadd.f32 %v14686_v9, %v14685_v27  ;;  %v14615_v47 = vadd.f32 %v14614_v6, %v14613_v36  ;;  %v14753_v14 = vrot.slane %v23772_v17, %v25708_v29  ;;  %v22750_v32 = vld [vmem:[#allocation3 + $0x3a94] ss:$40 sps:$4 sm:$0xff]   ;;  %v22748_v36 = vld [vmem:[#allocation3 + $0x3a90] ss:$40 sps:$4 sm:$0xff]  }
 0x75e   :  { %14328 = vmatprep.subr.bf16.mxu1 %v22702_v57  ;;  %v22724_v57 = vld [vmem:[#allocation3 + $0x3bd0] ss:$40 sps:$4 sm:$0xff]   ;;  %v13802_v37 = vadd.f32 %v13801_v16, %v13759_v23  ;;  %v13755_v2 = vadd.f32 %v24119_v12, %v13712_v7  ;;  %v22741_v12 = vld [vmem:[#allocation3 + $0x35e4] ss:$40 sps:$4 sm:$0xff]   ;;  %v22751_v16 = vld [vmem:[#allocation3 + $0x3540] ss:$40 sps:$4 sm:$0xff]  }
 0x75f   :  { %v22759_v23 = vld [vmem:[#allocation3 + $0x34f4] ss:$40 sps:$4 sm:$0xff]   ;;  %v22757_v7 = vld [vmem:[#allocation3 + $0x34f0] ss:$40 sps:$4 sm:$0xff]  }
 0x760   :  { %14286 = vmatpush1.bf16.msra.mxu0 %v22697_v46  ;;  %v14626_v46 = vrot.slane %v14625_v10, 2  ;;  %v24249_v30 = vadd.f32 %v13844_v61, %v13802_v37  ;;  %v13798_v26 = vadd.f32 %v24135_v4, %v13755_v2  ;;  %v22762_v6 = vld [vmem:[#allocation3 + $0x39f4] ss:$40 sps:$4 sm:$0xff]   ;;  %v22760_v37 = vld [vmem:[#allocation3 + $0x39f0] ss:$40 sps:$4 sm:$0xff]  }
 0x761   :  { %14329 = vmatpush1.bf16.msra.mxu1 %v22700_v55  ;;  %14287 = vmatprep.subr.bf16.mxu0 %v22705_v40  ;;  %v14676_v55 = vrot.slane %v14675_v13, 1  ;;  %v14688_v40 = vrot.slane %v14687_v54, 1 }
 0x762   :  { %14330 = vmatprep.subr.bf16.mxu1 %v22708_v11  ;;  %v22730_v11 = vld [vmem:[#allocation3 + $0x3b80] ss:$40 sps:$4 sm:$0xff]   ;;  %v14627_v52 = vadd.f32 %v14626_v46, %v14625_v10  ;;  %v24258_v4 = vadd.f32 %v24137_v19, %v13798_v26  ;;  %v22745_v19 = vld [vmem:[#allocation3 + $0x3590] ss:$40 sps:$4 sm:$0xff]   ;;  %v22768_v46 = vld [vmem:[#allocation3 + $0x39a4] ss:$40 sps:$4 sm:$0xff]  }
 0x763   :  { %v14677_v18 = vadd.f32 %v14676_v55, %v14675_v13  ;;  %v22754_v13 = vld [vmem:[#allocation3 + $0x3a40] ss:$40 sps:$4 sm:$0xff]  }
 0x764   :  { %14288 = vmatpush1.bf16.msra.mxu0 %v22703_v34  ;;  %v14616_v34 = vrot.slane %v14615_v47, 1  ;;  %v14628_v27 = vrot.slane %v14627_v52, 1  ;;  %v19478_v44 = vmul.f32 -1.442695, %v24258_v4 }
 0x765   :  { %14331 = vmatpush1.bf16.msra.mxu1 %v22706_v45  ;;  %14289 = vmatprep.subr.bf16.mxu0 %v22711_v62  ;;  %v14689_v45 = vadd.f32 %v14688_v40, %v14687_v54  ;;  %v19488_v62 = vmul.f32 -1.442695, %v24249_v30 }
 0x766   :  { %14332 = vmatprep.subr.bf16.mxu1 %v22714_v33  ;;  %v22744_v33 = vld [vmem:[#allocation3 + $0x3ae4] ss:$40 sps:$4 sm:$0xff]   ;;  %v14629_v35 = vadd.f32 %v14628_v27, %v14627_v52 }
 0x767   :  { %23309 = vpow2.f32 %v19488_v62  ;;  %v22774_v52 = vld [vmem:[%s25625_s3 + $0x2e4] ss:$16 sps:$4 sm:$0xff]   ;;  %v22772_v62 = vld [vmem:[%s25625_s3 + $0x2e0] ss:$16 sps:$4 sm:$0xff]  }
 0x768   :  { %14290 = vmatpush1.bf16.msra.mxu0 %v22709_v48  ;;  %v14807_v48 = vsub.f32 %v14677_v18, %v14753_v14  ;;  %23311 = vpow2.f32 %v19478_v44  ;;  %v22795_v44 = vld [vmem:[%s25625_s3 + $0x64] ss:$16 sps:$4 sm:$0xff]  }
 0x769   :  { %14333 = vmatpush1.bf16.msra.mxu1 %v22712_v38  ;;  %14291 = vmatprep.subr.bf16.mxu0 %v22717_v50  ;;  %v14809_v38 = vsub.f32 %v14689_v45, %v14761_v8  ;;  %v14617_v50 = vadd.f32 %v14616_v34, %v14615_v47 }
 0x76a   :  { %14334 = vmatprep.subr.bf16.mxu1 %v22720_v51  ;;  %v22747_v51 = vld [vmem:[#allocation3 + $0x3594] ss:$40 sps:$4 sm:$0xff]   ;;  %v14827_v24 = vmul.f32 0.25, %v14807_v48  ;;  %v22775_v48 = vld [vmem:[%s25625_s3 + $0xc0] ss:$16 sps:$4 sm:$0xff]  }
 0x76b   :  { %v14829_v9 = vmul.f32 0.25, %v14809_v38  ;;  %v22778_v38 = vld [vmem:[%s25625_s3 + $0x2c0] ss:$16 sps:$4 sm:$0xff]  }
 0x76c   :  { %14292 = vmatpush1.bf16.msra.mxu0 %v22715_v59  ;;  %v22753_v59 = vld [vmem:[#allocation3 + $0x3544] ss:$40 sps:$4 sm:$0xff]   ;;  %v14847_v10 = vpack.c.bf16 %v14827_v24, %v14827_v24 }
 0x76d   :  { %14335 = vmatpush1.bf16.msra.mxu1 %v22718_v15  ;;  %14293 = vmatprep.subr.bf16.mxu0 %v22723_v43  ;;  %v22756_v15 = vld [vmem:[#allocation3 + $0x3a44] ss:$40 sps:$4 sm:$0xff]   ;;  %v14797_v43 = vsub.f32 %v14617_v50, %v14753_v14  ;;  %v14849_v56 = vpack.c.bf16 %v14829_v9, %v14829_v9 }
 0x76e   :  { %14336 = vmatprep.subr.bf16.mxu1 %v22726_v60  ;;  %v14799_v60 = vsub.f32 %v14629_v35, %v14761_v8  ;;  %v22780_v14 = vld [vmem:[%s25625_s3 + $0x2c4] ss:$16 sps:$4 sm:$0xff]   ;;  %v22790_v35 = vld [vmem:[%s25625_s3 + $0x280] ss:$16 sps:$4 sm:$0xff]  }
 0x76f   :  { %v14817_v54 = vmul.f32 0.25, %v14797_v43  ;;  %v22789_v50 = vld [vmem:[%s25625_s3 + $0x84] ss:$16 sps:$4 sm:$0xff]  }
 0x770   :  { %14294 = vmatpush2.bf16.msra.mxu0 %v22721_v39  ;;  %v14819_v39 = vmul.f32 0.25, %v14799_v60  ;;  %v22804_v43 = vld [vmem:[%s25625_s3 + $0x244] ss:$16 sps:$4 sm:$0xff]  }
 0x771   :  { %14337 = vmatpush2.bf16.msra.mxu1 %v22724_v57  ;;  %14295 = vmatprep.subr.bf16.mxu0 %v22729_v20  ;;  %v15229_v57 = vunpack.c.l.b16 %v14847_v10  ;;  %v15231_v20 = vunpack.c.l.b16 %v14849_v56  ;;  %v14837_v55 = vpack.c.bf16 %v14817_v54, %v14817_v54  ;;  %v22810_v56 = vld [vmem:[%s25625_s3 + $0x224] ss:$16 sps:$4 sm:$0xff]  }
 0x772   :  { %14338 = vmatprep.subr.bf16.mxu1 %v22732_v21  ;;  %v22765_v21 = vld [vmem:[#allocation3 + $0x34a4] ss:$40 sps:$4 sm:$0xff]   ;;  %v14839_v40 = vpack.c.bf16 %v14819_v39, %v14819_v39  ;;  %v22808_v39 = vld [vmem:[%s25625_s3 + $0x220] ss:$16 sps:$4 sm:$0xff]  }
 0x773   :  { %v15241_v61 = vrot.slane %v15229_v57, 7  ;;  %v15245_v2 = vrot.slane %v15231_v20, 7  ;;  %v15219_v18 = vunpack.c.l.b16 %v14837_v55  ;;  %v22813_v57 = vld [vmem:[%s25625_s3 + $0x4] ss:$16 sps:$4 sm:$0xff]  }
 0x774   :  { %14296 = vmatpush2.bf16.msra.mxu0 %v22727_v58  ;;  %v23310_v47 = vpop.eup %23309  ;;  %v22763_v58 = vld [vmem:[#allocation3 + $0x34a0] ss:$40 sps:$4 sm:$0xff]   ;;  %v15221_v26 = vunpack.c.l.b16 %v14839_v40  ;;  %v22822_v55 = vld [vmem:[%s25625_s3 + $0x3e4] ss:$16 sps:$4 sm:$0xff]  }
 0x775   :  { %14339 = vmatpush2.bf16.msra.mxu1 %v22730_v11  ;;  %14297 = vmatprep.subr.bf16.mxu0 %v22735_v25  ;;  %v22766_v11 = vld [vmem:[#allocation3 + $0x39a0] ss:$40 sps:$4 sm:$0xff]   ;;  %v14440_v25 = vadd.f32 1.0, %v23310_v47  ;;  %v15242_v34 = vsel %vm15239_vm0, %v15241_v61, %v15219_v18  ;;  %v23312_v45 = vpop.eup %23311 }
 0x776   :  { %14340 = vmatprep.subr.bf16.mxu1 %v22738_v53  ;;  %v22771_v53 = vld [vmem:[%s25625_s3 + $0xe4] ss:$16 sps:$4 sm:$0xff]   ;;  %v14430_v8 = vadd.f32 1.0, %v23312_v45  ;;  %v22817_v40 = vld [vmem:[%s25625_s3 + $0x1e0] ss:$16 sps:$4 sm:$0xff]  }
 0x777   :  { %23313 = vrcp.f32 %v14440_v25  ;;  %v22826_v18 = vld [vmem:[%s25625_s3 + $0x3c0] ss:$16 sps:$4 sm:$0xff]  }
 0x778   :  { %14298 = vmatpush2.bf16.msra.mxu0 %v22733_v49  ;;  %v22769_v49 = vld [vmem:[%s25625_s3 + $0xe0] ss:$16 sps:$4 sm:$0xff]   ;;  %23315 = vrcp.f32 %v14430_v8  ;;  %v14777_v8 = vrot.slane %v23772_v17, %v2043_v41 }
 0x779   :  { %14341 = vmatpush2.bf16.msra.mxu1 %v22736_v31  ;;  %14299 = vmatprep.subr.bf16.mxu0 %v22741_v12  ;;  %v15246_v31 = vsel %vm15239_vm0, %v15245_v2, %v15221_v26  ;;  %v24275_v12 = vpack.c.b16 %v15242_v34, %v15242_v34  ;;  %v22828_v2 = vld [vmem:[%s25625_s3 + $0x3c4] ss:$16 sps:$4 sm:$0xff]   ;;  %v22841_v41 = vld [vmem:[%s25625_s3 + $0x160] ss:$16 sps:$4 sm:$0xff]  }
 0x77a   :  { %14342 = vmatprep.subr.bf16.mxu1 %v22744_v33  ;;  %v22777_v33 = vld [vmem:[%s25625_s3 + $0xc4] ss:$16 sps:$4 sm:$0xff]   ;;  %v24285_v27 = vpack.c.b16 %v15246_v31, %v15246_v31 }
 0x77b   :  { %v22831_v26 = vld [vmem:[%s25625_s3 + $0x1a4] ss:$16 sps:$4 sm:$0xff]  }
 0x77c   :  { %14300 = vmatpush2.bf16.msra.mxu0 %v22739_v42  ;;  %v22781_v42 = vld [vmem:[%s25625_s3 + $0xa0] ss:$16 sps:$4 sm:$0xff]   ;;  %v22834_v34 = vld [vmem:[%s25625_s3 + $0x3a4] ss:$16 sps:$4 sm:$0xff]  }
 0x77d   :  { %14343 = vmatpush2.bf16.msra.mxu1 %v22742_v3  ;;  %14301 = vmatprep.subr.bf16.mxu0 %v22747_v51  ;;  %v22784_v3 = vld [vmem:[%s25625_s3 + $0x2a0] ss:$16 sps:$4 sm:$0xff]   ;;  %v22792_v51 = vld [vmem:[%s25625_s3 + $0x284] ss:$16 sps:$4 sm:$0xff]  }
 0x77e   :  { %14344 = vmatprep.subr.bf16.mxu1 %v22750_v32  ;;  %v22787_v32 = vld [vmem:[%s25625_s3 + $0x80] ss:$16 sps:$4 sm:$0xff]  }
 0x780   :  { %14302 = vmatpush2.bf16.msra.mxu0 %v22745_v19  ;;  %v22798_v19 = vld [vmem:[%s25625_s3 + $0x264] ss:$16 sps:$4 sm:$0xff]  }
 0x781   :  { %14345 = vmatpush2.bf16.msra.mxu1 %v22748_v36  ;;  %14303 = vmatprep.subr.bf16.mxu0 %v22753_v59  ;;  %v22793_v36 = vld [vmem:[%s25625_s3 + $0x60] ss:$16 sps:$4 sm:$0xff]  }
 0x782   :  { %14346 = vmatprep.subr.bf16.mxu1 %v22756_v15  ;;  %v22796_v59 = vld [vmem:[%s25625_s3 + $0x260] ss:$16 sps:$4 sm:$0xff]   ;;  %v22801_v15 = vld [vmem:[%s25625_s3 + $0x44] ss:$16 sps:$4 sm:$0xff]  }
 0x784   :  { %14304 = vmatpush2.bf16.msra.mxu0 %v22751_v16  ;;  %v23314_v24 = vpop.eup %23313  ;;  %v22802_v16 = vld [vmem:[%s25625_s3 + $0x240] ss:$16 sps:$4 sm:$0xff]  }
 0x785   :  { %14347 = vmatpush2.bf16.msra.mxu1 %v22754_v13  ;;  %14305 = vmatprep.subr.bf16.mxu0 %v22759_v23  ;;  %v14500_v9 = vmul.f32 %v23314_v24, %v24249_v30  ;;  %v23316_v60 = vpop.eup %23315  ;;  %v22799_v30 = vld [vmem:[%s25625_s3 + $0x40] ss:$16 sps:$4 sm:$0xff]   ;;  %v22807_v13 = vld [vmem:[%s25625_s3 + $0x24] ss:$16 sps:$4 sm:$0xff]  }
 0x786   :  { %14348 = vmatprep.subr.bf16.mxu1 %v22762_v6  ;;  %v14490_v23 = vmul.f32 %v23316_v60, %v24258_v4  ;;  %v22805_v6 = vld [vmem:[%s25625_s3 + $0x20] ss:$16 sps:$4 sm:$0xff]   ;;  %v22816_v4 = vld [vmem:[%s25625_s3 + $0x204] ss:$16 sps:$4 sm:$0xff]  }
 0x787   :  { %v14708_v10 = vrot.slane %v14500_v9, 4  ;;  %v22850_v24 = vld [vmem:[%s25625_s3 + $0x340] ss:$16 sps:$4 sm:$0xff]   ;;  %v22861_v60 = vld [vmem:[%s25625_s3 + $0x104] ss:$16 sps:$4 sm:$0xff]  }
 0x788   :  { %14306 = vmatpush2.bf16.msra.mxu0 %v22757_v7  ;;  %v14648_v7 = vrot.slane %v14490_v23, 4 }
 0x789   :  { %14349 = vmatpush2.bf16.msra.mxu1 %v22760_v37  ;;  %14307 = vmatprep.subr.bf16.mxu0 %v22765_v21  ;;  %v14709_v54 = vadd.f32 %v14708_v10, %v14500_v9  ;;  %v22811_v37 = vld [vmem:[%s25625_s3] ss:$16 sps:$4 sm:$0xff]   ;;  %v22858_v9 = vld [vmem:[%s25625_s3 + $0x324] ss:$16 sps:$4 sm:$0xff]  }
 0x78a   :  { %14350 = vmatprep.subr.bf16.mxu1 %v22768_v46  ;;  %v22814_v21 = vld [vmem:[%s25625_s3 + $0x200] ss:$16 sps:$4 sm:$0xff]   ;;  %v22819_v46 = vld [vmem:[%s25625_s3 + $0x1e4] ss:$16 sps:$4 sm:$0xff]   ;;  %v14649_v47 = vadd.f32 %v14648_v7, %v14490_v23 }
 0x78b   :  { %v14710_v20 = vrot.slane %v14709_v54, 2  ;;  %v22864_v10 = vld [vmem:[%s25625_s3 + $0x304] ss:$16 sps:$4 sm:$0xff]  }
 0x78c   :  { %14308 = vmatpush2.bf16.msra.mxu0 %v22763_v58  ;;  %v22820_v58 = vld [vmem:[%s25625_s3 + $0x3e0] ss:$16 sps:$4 sm:$0xff]   ;;  %v14650_v25 = vrot.slane %v14649_v47, 2  ;;  %v22867_v23 = vld [vmem:[%s25625_s3 + $0x4e4] ss:$16 sps:$4 sm:$0xff]  }
 0x78d   :  { %14351 = vmatpush2.bf16.msra.mxu1 %v22766_v11  ;;  %16879 = vmatprep.subr.bf16.mxu0 %v22771_v53  ;;  %v14711_v61 = vadd.f32 %v14710_v20, %v14709_v54  ;;  %v22825_v11 = vld [vmem:[%s25625_s3 + $0x1c4] ss:$16 sps:$4 sm:$0xff]   ;;  %v22823_v53 = vld [vmem:[%s25625_s3 + $0x1c0] ss:$16 sps:$4 sm:$0xff]  }
 0x78e   :  { %16920 = vmatprep.subr.bf16.mxu1 %v22774_v52  ;;  %v14651_v45 = vadd.f32 %v14650_v25, %v14649_v47  ;;  %v22870_v54 = vld [vmem:[%s25625_s3 + $0x6e4] ss:$16 sps:$4 sm:$0xff]   ;;  %v24495_v47 = vpack.c.b16 %v24052_v5, %v24052_v5  ;;  %v22874_v5 = vld [vmem:[%s25625_s3 + $0x6c0] ss:$16 sps:$4 sm:$0xff]  }
 0x78f   :  { %14310 = vmatmul.mubr.bf16.vlgmr.msra.gmra.mxu0 %v23687_v0  ;;  %v22783_v0 = vld [vmem:[%s25625_s3 + $0xa4] ss:$16 sps:$4 sm:$0xff]   ;;  %v14712_v52 = vrot.slane %v14711_v61, 1  ;;  %v22877_v25 = vld [vmem:[%s25625_s3 + $0x4a0] ss:$16 sps:$4 sm:$0xff]  }
 0x790   :  { %14353 = vmatmul.mubr.bf16.vlgmr.msra.gmra.mxu1 %v23691_v1  ;;  %16880 = vmatpush1.bf16.msra.mxu0 %v22769_v49  ;;  %v22786_v1 = vld [vmem:[%s25625_s3 + $0x2a4] ss:$16 sps:$4 sm:$0xff]   ;;  %v22829_v49 = vld [vmem:[%s25625_s3 + $0x1a0] ss:$16 sps:$4 sm:$0xff]  }
 0x791   :  { %16911 = vmatprep.mubr.bf16.mxu0 %v24275_v12  ;;  %16921 = vmatpush1.bf16.msra.mxu1 %v22772_v62  ;;  %v14713_v31 = vadd.f32 %v14712_v52, %v14711_v61  ;;  %v22832_v62 = vld [vmem:[%s25625_s3 + $0x3a0] ss:$16 sps:$4 sm:$0xff]   ;;  %v22885_v52 = vld [vmem:[%s25625_s3 + $0x484] ss:$16 sps:$4 sm:$0xff]  }
 0x792   :  { %16952 = vmatprep.mubr.bf16.mxu1 %v24285_v27  ;;  %16881 = vmatprep.subr.bf16.mxu0 %v22777_v33  ;;  %v22837_v33 = vld [vmem:[%s25625_s3 + $0x184] ss:$16 sps:$4 sm:$0xff]  }
 0x793   :  { %16922 = vmatprep.subr.bf16.mxu1 %v22780_v14  ;;  %v22840_v14 = vld [vmem:[%s25625_s3 + $0x384] ss:$16 sps:$4 sm:$0xff]  }
 0x794   :  { %16882 = vmatpush1.bf16.msra.mxu0 %v22775_v48  ;;  %v14652_v48 = vrot.slane %v14651_v45, 1 }
 0x795   :  { %16923 = vmatpush1.bf16.msra.mxu1 %v22778_v38  ;;  %16883 = vmatprep.subr.bf16.mxu0 %v22783_v0  ;;  %v22835_v38 = vld [vmem:[%s25625_s3 + $0x180] ss:$16 sps:$4 sm:$0xff]   ;;  %v14813_v0 = vsub.f32 %v14713_v31, %v14777_v8 }
 0x796   :  { %16924 = vmatprep.subr.bf16.mxu1 %v22786_v1  ;;  %v22838_v1 = vld [vmem:[%s25625_s3 + $0x380] ss:$16 sps:$4 sm:$0xff]   ;;  %v14653_v17 = vadd.f32 %v14652_v48, %v14651_v45  ;;  %v22891_v45 = vld [vmem:[%s25625_s3 + $0x464] ss:$16 sps:$4 sm:$0xff]  }
 0x797   :  { %v22889_v31 = vld [vmem:[%s25625_s3 + $0x460] ss:$16 sps:$4 sm:$0xff]  }
 0x798   :  { %16884 = vmatpush1.bf16.msra.mxu0 %v22781_v42  ;;  %v22843_v42 = vld [vmem:[%s25625_s3 + $0x164] ss:$16 sps:$4 sm:$0xff]   ;;  %v22898_v48 = vld [vmem:[%s25625_s3 + $0x640] ss:$16 sps:$4 sm:$0xff]  }
 0x799   :  { %16925 = vmatpush1.bf16.msra.mxu1 %v22784_v3  ;;  %16885 = vmatprep.subr.bf16.mxu0 %v22789_v50  ;;  %v22844_v3 = vld [vmem:[%s25625_s3 + $0x360] ss:$16 sps:$4 sm:$0xff]   ;;  %v22849_v50 = vld [vmem:[%s25625_s3 + $0x144] ss:$16 sps:$4 sm:$0xff]  }
 0x79a   :  { %16926 = vmatprep.subr.bf16.mxu1 %v22792_v51  ;;  %v14833_v51 = vmul.f32 0.25, %v14813_v0  ;;  %v22906_v0 = vld [vmem:[%s25625_s3 + $0x624] ss:$16 sps:$4 sm:$0xff]  }
 0x79c   :  { %16886 = vmatpush1.bf16.msra.mxu0 %v22787_v32  ;;  %v22852_v32 = vld [vmem:[%s25625_s3 + $0x344] ss:$16 sps:$4 sm:$0xff]  }
 0x79d   :  { %16927 = vmatpush1.bf16.msra.mxu1 %v22790_v35  ;;  %16887 = vmatprep.subr.bf16.mxu0 %v22795_v44  ;;  %v14803_v35 = vsub.f32 %v14653_v17, %v14777_v8  ;;  %v22847_v44 = vld [vmem:[%s25625_s3 + $0x140] ss:$16 sps:$4 sm:$0xff]   ;;  %v22912_v17 = vld [vmem:[%s25625_s3 + $0x604] ss:$16 sps:$4 sm:$0xff]  }
 0x79e   :  { %16928 = vmatprep.subr.bf16.mxu1 %v22798_v19  ;;  %v22855_v19 = vld [vmem:[%s25625_s3 + $0x124] ss:$16 sps:$4 sm:$0xff]   ;;  %v22895_v8 = vld [vmem:[%s25625_s3 + $0x440] ss:$16 sps:$4 sm:$0xff]  }
 0x7a0   :  { %16888 = vmatpush1.bf16.msra.mxu0 %v22793_v36  ;;  %v14853_v36 = vpack.c.bf16 %v14833_v51, %v14833_v51  ;;  %v22918_v51 = vld [vmem:[%s25625_s3 + $0x7e4] ss:$16 sps:$4 sm:$0xff]  }
 0x7a1   :  { %16929 = vmatpush1.bf16.msra.mxu1 %v22796_v59  ;;  %16889 = vmatprep.subr.bf16.mxu0 %v22801_v15  ;;  %v14823_v59 = vmul.f32 0.25, %v14803_v35  ;;  %v22853_v15 = vld [vmem:[%s25625_s3 + $0x120] ss:$16 sps:$4 sm:$0xff]  }
 0x7a2   :  { %16930 = vmatprep.subr.bf16.mxu1 %v22804_v43  ;;  %v22856_v43 = vld [vmem:[%s25625_s3 + $0x320] ss:$16 sps:$4 sm:$0xff]  }
 0x7a3   :  { %v22916_v35 = vld [vmem:[%s25625_s3 + $0x7e0] ss:$16 sps:$4 sm:$0xff]  }
 0x7a4   :  { %16890 = vmatpush1.bf16.msra.mxu0 %v22799_v30  ;;  %v15235_v30 = vunpack.c.l.b16 %v14853_v36  ;;  %v22922_v36 = vld [vmem:[%s25625_s3 + $0x7c0] ss:$16 sps:$4 sm:$0xff]  }
 0x7a5   :  { %16931 = vmatpush1.bf16.msra.mxu1 %v22802_v16  ;;  %16891 = vmatprep.subr.bf16.mxu0 %v22807_v13  ;;  %v14843_v16 = vpack.c.bf16 %v14823_v59, %v14823_v59  ;;  %v22859_v13 = vld [vmem:[%s25625_s3 + $0x100] ss:$16 sps:$4 sm:$0xff]   ;;  %v22930_v59 = vld [vmem:[%s25625_s3 + $0x7a4] ss:$16 sps:$4 sm:$0xff]  }
 0x7a6   :  { %16932 = vmatprep.subr.bf16.mxu1 %v22810_v56  ;;  %v22862_v56 = vld [vmem:[%s25625_s3 + $0x300] ss:$16 sps:$4 sm:$0xff]  }
 0x7a8   :  { %16892 = vmatpush1.bf16.msra.mxu0 %v22805_v6  ;;  %v15253_v6 = vrot.slane %v15235_v30, 7  ;;  %v22936_v30 = vld [vmem:[%s25625_s3 + $0x784] ss:$16 sps:$4 sm:$0xff]  }
 0x7a9   :  { %16933 = vmatpush1.bf16.msra.mxu1 %v22808_v39  ;;  %16893 = vmatprep.subr.bf16.mxu0 %v22813_v57  ;;  %v15225_v39 = vunpack.c.l.b16 %v14843_v16  ;;  %v22865_v57 = vld [vmem:[%s25625_s3 + $0x4e0] ss:$16 sps:$4 sm:$0xff]  }
 0x7aa   :  { %16934 = vmatprep.subr.bf16.mxu1 %v22816_v4  ;;  %v25709_v4 = vld [vmem:[#allocation22_spill] sm:$0xff] }
 0x7ab   :  { %v24479_v7 = vpack.c.b16 %v25709_v4, %v25709_v4  ;;  %v15254_v20 = vsel %vm15239_vm0, %v15253_v6, %v15225_v39  ;;  %v22934_v16 = vld [vmem:[%s25625_s3 + $0x780] ss:$16 sps:$4 sm:$0xff]   ;;  %v22948_v39 = vld [vmem:[%s25625_s3 + $0x744] ss:$16 sps:$4 sm:$0xff]  }
 0x7ac   :  { %16894 = vmatpush1.bf16.msra.mxu0 %v22811_v37  ;;  %v22868_v37 = vld [vmem:[%s25625_s3 + $0x6e0] ss:$16 sps:$4 sm:$0xff]   ;;  %v24501_v61 = vpack.c.b16 %v15254_v20, %v15254_v20  ;;  %v22954_v20 = vld [vmem:[%s25625_s3 + $0x724] ss:$16 sps:$4 sm:$0xff]  }
 0x7ad   :  { %16935 = vmatpush1.bf16.msra.mxu1 %v22814_v21  ;;  %16895 = vmatprep.subr.bf16.mxu0 %v22819_v46  ;;  %v25710_v21 = vld [vmem:[#allocation43_spill] sm:$0xff] }
 0x7ae   :  { %16936 = vmatprep.subr.bf16.mxu1 %v22822_v55  ;;  %v24487_v46 = vpack.c.b16 %v25710_v21, %v25710_v21  ;;  %v22873_v55 = vld [vmem:[%s25625_s3 + $0x4c4] ss:$16 sps:$4 sm:$0xff]   ;;  %v22940_v6 = vld [vmem:[%s25625_s3 + $0x760] ss:$16 sps:$4 sm:$0xff]  }
 0x7af   :  { %v22946_v4 = vld [vmem:[%s25625_s3 + $0x740] ss:$16 sps:$4 sm:$0xff]  }
 0x7b0   :  { %16896 = vmatpush2.bf16.msra.mxu0 %v22817_v40  ;;  %v22876_v40 = vld [vmem:[%s25625_s3 + $0x6c4] ss:$16 sps:$4 sm:$0xff]   ;;  %v22949_v21 = vld [vmem:[%s25625_s3 + $0x520] ss:$16 sps:$4 sm:$0xff]  }
 0x7b1   :  { %16937 = vmatpush2.bf16.msra.mxu1 %v22820_v58  ;;  %16897 = vmatprep.subr.bf16.mxu0 %v22825_v11  ;;  %v22871_v58 = vld [vmem:[%s25625_s3 + $0x4c0] ss:$16 sps:$4 sm:$0xff]   ;;  %v22879_v11 = vld [vmem:[%s25625_s3 + $0x4a4] ss:$16 sps:$4 sm:$0xff]  }
 0x7b2   :  { %16938 = vmatprep.subr.bf16.mxu1 %v22828_v2  ;;  %v22882_v2 = vld [vmem:[%s25625_s3 + $0x6a4] ss:$16 sps:$4 sm:$0xff]  }
 0x7b4   :  { %16898 = vmatpush2.bf16.msra.mxu0 %v22823_v53  ;;  %v22880_v53 = vld [vmem:[%s25625_s3 + $0x6a0] ss:$16 sps:$4 sm:$0xff]  }
 0x7b5   :  { %16939 = vmatpush2.bf16.msra.mxu1 %v22826_v18  ;;  %16899 = vmatprep.subr.bf16.mxu0 %v22831_v26  ;;  %v22888_v18 = vld [vmem:[%s25625_s3 + $0x684] ss:$16 sps:$4 sm:$0xff]   ;;  %v22883_v26 = vld [vmem:[%s25625_s3 + $0x480] ss:$16 sps:$4 sm:$0xff]  }
 0x7b6   :  { %16940 = vmatprep.subr.bf16.mxu1 %v22834_v34  ;;  %v22886_v34 = vld [vmem:[%s25625_s3 + $0x680] ss:$16 sps:$4 sm:$0xff]  }
 0x7b8   :  { %16900 = vmatpush2.bf16.msra.mxu0 %v22829_v49  ;;  %v22894_v49 = vld [vmem:[%s25625_s3 + $0x664] ss:$16 sps:$4 sm:$0xff]  }
 0x7b9   :  { %16941 = vmatpush2.bf16.msra.mxu1 %v22832_v62  ;;  %16901 = vmatprep.subr.bf16.mxu0 %v22837_v33  ;;  %v22892_v62 = vld [vmem:[%s25625_s3 + $0x660] ss:$16 sps:$4 sm:$0xff]   ;;  %v22897_v33 = vld [vmem:[%s25625_s3 + $0x444] ss:$16 sps:$4 sm:$0xff]  }
 0x7ba   :  { %16942 = vmatprep.subr.bf16.mxu1 %v22840_v14  ;;  %v22900_v14 = vld [vmem:[%s25625_s3 + $0x644] ss:$16 sps:$4 sm:$0xff]  }
 0x7bc   :  { %16902 = vmatpush2.bf16.msra.mxu0 %v22835_v38  ;;  %v22903_v38 = vld [vmem:[%s25625_s3 + $0x424] ss:$16 sps:$4 sm:$0xff]  }
 0x7bd   :  { %16943 = vmatpush2.bf16.msra.mxu1 %v22838_v1  ;;  %16903 = vmatprep.subr.bf16.mxu0 %v22843_v42  ;;  %v22901_v1 = vld [vmem:[%s25625_s3 + $0x420] ss:$16 sps:$4 sm:$0xff]  }
 0x7be   :  { %16944 = vmatprep.subr.bf16.mxu1 %v22846_v63  ;;  %v22904_v42 = vld [vmem:[%s25625_s3 + $0x620] ss:$16 sps:$4 sm:$0xff]   ;;  %v22909_v63 = vld [vmem:[%s25625_s3 + $0x404] ss:$16 sps:$4 sm:$0xff]  }
 0x7c0   :  { %16904 = vmatpush2.bf16.msra.mxu0 %v22841_v41  ;;  %v22907_v41 = vld [vmem:[%s25625_s3 + $0x400] ss:$16 sps:$4 sm:$0xff]  }
 0x7c1   :  { %16945 = vmatpush2.bf16.msra.mxu1 %v22844_v3  ;;  %16905 = vmatprep.subr.bf16.mxu0 %v22849_v50  ;;  %v22910_v3 = vld [vmem:[%s25625_s3 + $0x600] ss:$16 sps:$4 sm:$0xff]   ;;  %v22915_v50 = vld [vmem:[%s25625_s3 + $0x5e4] ss:$16 sps:$4 sm:$0xff]  }
 0x7c2   :  { %16946 = vmatprep.subr.bf16.mxu1 %v22852_v32  ;;  %v22913_v32 = vld [vmem:[%s25625_s3 + $0x5e0] ss:$16 sps:$4 sm:$0xff]  }
 0x7c4   :  { %16906 = vmatpush2.bf16.msra.mxu0 %v22847_v44  ;;  %v22921_v44 = vld [vmem:[%s25625_s3 + $0x5c4] ss:$16 sps:$4 sm:$0xff]  }
 0x7c5   :  { %16947 = vmatpush2.bf16.msra.mxu1 %v22850_v24  ;;  %16907 = vmatprep.subr.bf16.mxu0 %v22855_v19  ;;  %v22924_v24 = vld [vmem:[%s25625_s3 + $0x7c4] ss:$16 sps:$4 sm:$0xff]   ;;  %v22919_v19 = vld [vmem:[%s25625_s3 + $0x5c0] ss:$16 sps:$4 sm:$0xff]  }
 0x7c6   :  { %16948 = vmatprep.subr.bf16.mxu1 %v22858_v9  ;;  %v22927_v9 = vld [vmem:[%s25625_s3 + $0x5a4] ss:$16 sps:$4 sm:$0xff]  }
 0x7c8   :  { %16908 = vmatpush2.bf16.msra.mxu0 %v22853_v15  ;;  %v22925_v15 = vld [vmem:[%s25625_s3 + $0x5a0] ss:$16 sps:$4 sm:$0xff]  }
 0x7c9   :  { %16949 = vmatpush2.bf16.msra.mxu1 %v22856_v43  ;;  %16909 = vmatprep.subr.bf16.mxu0 %v22861_v60  ;;  %v22928_v43 = vld [vmem:[%s25625_s3 + $0x7a0] ss:$16 sps:$4 sm:$0xff]   ;;  %v22933_v60 = vld [vmem:[%s25625_s3 + $0x584] ss:$16 sps:$4 sm:$0xff]  }
 0x7ca   :  { %16950 = vmatprep.subr.bf16.mxu1 %v22864_v10  ;;  %v22931_v10 = vld [vmem:[%s25625_s3 + $0x580] ss:$16 sps:$4 sm:$0xff]  }
 0x7cc   :  { %16910 = vmatpush2.bf16.msra.mxu0 %v22859_v13  ;;  %v22939_v13 = vld [vmem:[%s25625_s3 + $0x564] ss:$16 sps:$4 sm:$0xff]  }
 0x7cd   :  { %16951 = vmatpush2.bf16.msra.mxu1 %v22862_v56  ;;  %16961 = vmatprep.subr.bf16.mxu0 %v22867_v23  ;;  %v22942_v56 = vld [vmem:[%s25625_s3 + $0x764] ss:$16 sps:$4 sm:$0xff]   ;;  %v22937_v23 = vld [vmem:[%s25625_s3 + $0x560] ss:$16 sps:$4 sm:$0xff]  }
 0x7ce   :  { %17002 = vmatprep.subr.bf16.mxu1 %v22870_v54  ;;  %v22945_v54 = vld [vmem:[%s25625_s3 + $0x544] ss:$16 sps:$4 sm:$0xff]  }
 0x7cf   :  { %16912 = vmatmul.mubr.bf16.vlgmr.msra.gmra.mxu0 %v24479_v7 }
 0x7d0   :  { %16953 = vmatmul.mubr.bf16.vlgmr.msra.gmra.mxu1 %v24487_v46  ;;  %16962 = vmatpush1.bf16.msra.mxu0 %v22865_v57  ;;  %v22943_v57 = vld [vmem:[%s25625_s3 + $0x540] ss:$16 sps:$4 sm:$0xff]  }
 0x7d1   :  { %16993 = vmatprep.mubr.bf16.mxu0 %v24495_v47  ;;  %17003 = vmatpush1.bf16.msra.mxu1 %v22868_v37  ;;  %v22951_v37 = vld [vmem:[%s25625_s3 + $0x524] ss:$16 sps:$4 sm:$0xff]  }
 0x7d2   :  { %17034 = vmatprep.mubr.bf16.mxu1 %v24501_v61  ;;  %16963 = vmatprep.subr.bf16.mxu0 %v22873_v55  ;;  %v22952_v55 = vld [vmem:[%s25625_s3 + $0x720] ss:$16 sps:$4 sm:$0xff]  }
 0x7d3   :  { %17004 = vmatprep.subr.bf16.mxu1 %v22876_v40  ;;  %v22957_v40 = vld [vmem:[%s25625_s3 + $0x504] ss:$16 sps:$4 sm:$0xff]  }
 0x7d4   :  { %16964 = vmatpush1.bf16.msra.mxu0 %v22871_v58  ;;  %v22960_v58 = vld [vmem:[%s25625_s3 + $0x704] ss:$16 sps:$4 sm:$0xff]  }
 0x7d5   :  { %17005 = vmatpush1.bf16.msra.mxu1 %v22874_v5  ;;  %16965 = vmatprep.subr.bf16.mxu0 %v22879_v11  ;;  %v22955_v5 = vld [vmem:[%s25625_s3 + $0x500] ss:$16 sps:$4 sm:$0xff]   ;;  %v24676_v11 = vpop.f32.mrf.mxu0 }
 0x7d6   :  { %17006 = vmatprep.subr.bf16.mxu1 %v22882_v2  ;;  %v24678_v2 = vpop.f32.mrf.mxu1 }
 0x7d8   :  { %16966 = vmatpush1.bf16.msra.mxu0 %v22877_v25  ;;  %v22958_v25 = vld [vmem:[%s25625_s3 + $0x700] ss:$16 sps:$4 sm:$0xff]  }
 0x7d9   :  { %17007 = vmatpush1.bf16.msra.mxu1 %v22880_v53  ;;  %16967 = vmatprep.subr.bf16.mxu0 %v22885_v52  ;;  %v23017_v53 = vld [vmem:[%s25625_s3 + $0x8e4] ss:$16 sps:$4 sm:$0xff]   ;;  %v22963_v52 = vld [vmem:[%s25625_s3 + $0xec] ss:$16 sps:$4 sm:$0xff]  }
 0x7da   :  { %17008 = vmatprep.subr.bf16.mxu1 %v22888_v18  ;;  %v23015_v18 = vld [vmem:[%s25625_s3 + $0x8e0] ss:$16 sps:$4 sm:$0xff]  }
 0x7dc   :  { %16968 = vmatpush1.bf16.msra.mxu0 %v22883_v26  ;;  %v24692_v26 = vpop.f32.mrf.mxu0 }
 0x7dd   :  { %17009 = vmatpush1.bf16.msra.mxu1 %v22886_v34  ;;  %16969 = vmatprep.subr.bf16.mxu0 %v22891_v45  ;;  %v24694_v34 = vpop.f32.mrf.mxu1  ;;  %v25711_v45 = vld [vmem:[#allocation44_spill] sm:$0xff] }
 0x7de   :  { %17010 = vmatprep.subr.bf16.mxu1 %v22894_v49  ;;  %v24698_v49 = vpack.c.b16 %v25711_v45, %v25711_v45 }
 0x7e0   :  { %16970 = vmatpush1.bf16.msra.mxu0 %v22889_v31  ;;  %v22961_v31 = vld [vmem:[%s25625_s3 + $0xe8] ss:$16 sps:$4 sm:$0xff]  }
 0x7e1   :  { %17011 = vmatpush1.bf16.msra.mxu1 %v22892_v62  ;;  %16971 = vmatprep.subr.bf16.mxu0 %v22897_v33  ;;  %v24705_v62 = vpack.c.b16 %v24169_v28, %v24169_v28  ;;  %v22966_v33 = vld [vmem:[%s25625_s3 + $0xcc] ss:$16 sps:$4 sm:$0xff]   ;;  %v24718_v28 = vpop.f32.mrf.mxu0 }
 0x7e2   :  { %17012 = vmatprep.subr.bf16.mxu1 %v22900_v14  ;;  %v23023_v14 = vld [vmem:[%s25625_s3 + $0x8c4] ss:$16 sps:$4 sm:$0xff]  }
 0x7e4   :  { %16972 = vmatpush1.bf16.msra.mxu0 %v22895_v8  ;;  %v23021_v8 = vld [vmem:[%s25625_s3 + $0x8c0] ss:$16 sps:$4 sm:$0xff]  }
 0x7e5   :  { %17013 = vmatpush1.bf16.msra.mxu1 %v22898_v48  ;;  %16973 = vmatprep.subr.bf16.mxu0 %v22903_v38  ;;  %v24720_v48 = vpop.f32.mrf.mxu1  ;;  %v22964_v38 = vld [vmem:[%s25625_s3 + $0xc8] ss:$16 sps:$4 sm:$0xff]  }
 0x7e6   :  { %17014 = vmatprep.subr.bf16.mxu1 %v22906_v0  ;;  %v23029_v0 = vld [vmem:[%s25625_s3 + $0x8a4] ss:$16 sps:$4 sm:$0xff]  }
 0x7e8   :  { %16974 = vmatpush1.bf16.msra.mxu0 %v22901_v1  ;;  %v22969_v1 = vld [vmem:[%s25625_s3 + $0xac] ss:$16 sps:$4 sm:$0xff]  }
 0x7e9   :  { %17015 = vmatpush1.bf16.msra.mxu1 %v22904_v42  ;;  %16975 = vmatprep.subr.bf16.mxu0 %v22909_v63  ;;  %v23027_v42 = vld [vmem:[%s25625_s3 + $0x8a0] ss:$16 sps:$4 sm:$0xff]   ;;  %v24737_v63 = vpop.f32.mrf.mxu1 }
 0x7ea   :  { %17016 = vmatprep.subr.bf16.mxu1 %v22912_v17  ;;  %v22967_v17 = vld [vmem:[%s25625_s3 + $0xa8] ss:$16 sps:$4 sm:$0xff]  }
 0x7ec   :  { %16976 = vmatpush1.bf16.msra.mxu0 %v22907_v41  ;;  %v23035_v41 = vld [vmem:[%s25625_s3 + $0x884] ss:$16 sps:$4 sm:$0xff]  }
 0x7ed   :  { %17017 = vmatpush1.bf16.msra.mxu1 %v22910_v3  ;;  %16977 = vmatprep.subr.bf16.mxu0 %v22915_v50  ;;  %v22972_v3 = vld [vmem:[%s25625_s3 + $0x8c] ss:$16 sps:$4 sm:$0xff]  }
 0x7ee   :  { %17018 = vmatprep.subr.bf16.mxu1 %v22918_v51  ;;  %v24750_v51 = vpop.f32.mrf.mxu1 }
 0x7f0   :  { %16978 = vmatpush2.bf16.msra.mxu0 %v22913_v32  ;;  %v23033_v32 = vld [vmem:[%s25625_s3 + $0x880] ss:$16 sps:$4 sm:$0xff]  }
 0x7f1   :  { %17019 = vmatpush2.bf16.msra.mxu1 %v22916_v35  ;;  %16979 = vmatprep.subr.bf16.mxu0 %v22921_v44  ;;  %v22970_v35 = vld [vmem:[%s25625_s3 + $0x88] ss:$16 sps:$4 sm:$0xff]   ;;  %v23041_v44 = vld [vmem:[%s25625_s3 + $0x864] ss:$16 sps:$4 sm:$0xff]  }
 0x7f2   :  { %17020 = vmatprep.subr.bf16.mxu1 %v22924_v24  ;;  %v22975_v24 = vld [vmem:[%s25625_s3 + $0x6c] ss:$16 sps:$4 sm:$0xff]  }
 0x7f4   :  { %16980 = vmatpush2.bf16.msra.mxu0 %v22919_v19 }
 0x7f5   :  { %17021 = vmatpush2.bf16.msra.mxu1 %v22922_v36  ;;  %16981 = vmatprep.subr.bf16.mxu0 %v22927_v9  ;;  %v24766_v36 = vpop.f32.mrf.mxu1  ;;  %v23039_v9 = vld [vmem:[%s25625_s3 + $0x860] ss:$16 sps:$4 sm:$0xff]  }
 0x7f6   :  { %17022 = vmatprep.subr.bf16.mxu1 %v22930_v59  ;;  %v22973_v59 = vld [vmem:[%s25625_s3 + $0x68] ss:$16 sps:$4 sm:$0xff]  }
 0x7f8   :  { %16982 = vmatpush2.bf16.msra.mxu0 %v22925_v15  ;;  %v23047_v15 = vld [vmem:[%s25625_s3 + $0x844] ss:$16 sps:$4 sm:$0xff]  }
 0x7f9   :  { %17023 = vmatpush2.bf16.msra.mxu1 %v22928_v43  ;;  %16983 = vmatprep.subr.bf16.mxu0 %v22933_v60  ;;  %v22978_v43 = vld [vmem:[%s25625_s3 + $0x4c] ss:$16 sps:$4 sm:$0xff]  }
 0x7fa   :  { %17024 = vmatprep.subr.bf16.mxu1 %v22936_v30  ;;  %v24782_v30 = vpop.f32.mrf.mxu1 }
 0x7fc   :  { %16984 = vmatpush2.bf16.msra.mxu0 %v22931_v10  ;;  %v23045_v10 = vld [vmem:[%s25625_s3 + $0x840] ss:$16 sps:$4 sm:$0xff]  }
 0x7fd   :  { %17025 = vmatpush2.bf16.msra.mxu1 %v22934_v16  ;;  %16985 = vmatprep.subr.bf16.mxu0 %v22939_v13  ;;  %v22976_v16 = vld [vmem:[%s25625_s3 + $0x48] ss:$16 sps:$4 sm:$0xff]   ;;  %v23053_v13 = vld [vmem:[%s25625_s3 + $0x824] ss:$16 sps:$4 sm:$0xff]  }
 0x7fe   :  { %17026 = vmatprep.subr.bf16.mxu1 %v22942_v56  ;;  %v22981_v56 = vld [vmem:[%s25625_s3 + $0x2c] ss:$16 sps:$4 sm:$0xff]  }
 0x800   :  { %16986 = vmatpush2.bf16.msra.mxu0 %v22937_v23 }
 0x801   :  { %17027 = vmatpush2.bf16.msra.mxu1 %v22940_v6  ;;  %16987 = vmatprep.subr.bf16.mxu0 %v22945_v54  ;;  %v24798_v6 = vpop.f32.mrf.mxu1  ;;  %v23051_v54 = vld [vmem:[%s25625_s3 + $0x820] ss:$16 sps:$4 sm:$0xff]  }
 0x802   :  { %17028 = vmatprep.subr.bf16.mxu1 %v22948_v39 }
 0x804   :  { %16988 = vmatpush2.bf16.msra.mxu0 %v22943_v57  ;;  %v24805_v57 = vpop.f32.mrf.mxu1 }
 0x805   :  { %17029 = vmatpush2.bf16.msra.mxu1 %v22946_v4  ;;  %16989 = vmatprep.subr.bf16.mxu0 %v22951_v37  ;;  %v22979_v4 = vld [vmem:[%s25625_s3 + $0x28] ss:$16 sps:$4 sm:$0xff]   ;;  %v23059_v37 = vld [vmem:[%s25625_s3 + $0x804] ss:$16 sps:$4 sm:$0xff]  }
 0x806   :  { %17030 = vmatprep.subr.bf16.mxu1 %v22954_v20  ;;  %v22984_v20 = vld [vmem:[%s25625_s3 + $0xc] ss:$16 sps:$4 sm:$0xff]  }
 0x808   :  { %16990 = vmatpush2.bf16.msra.mxu0 %v22949_v21  ;;  %v23057_v21 = vld [vmem:[%s25625_s3 + $0x800] ss:$16 sps:$4 sm:$0xff]  }
 0x809   :  { %17031 = vmatpush2.bf16.msra.mxu1 %v22952_v55  ;;  %16991 = vmatprep.subr.bf16.mxu0 %v22957_v40  ;;  %v24821_v40 = vpop.f32.mrf.mxu1 }
 0x80a   :  { %17032 = vmatprep.subr.bf16.mxu1 %v22960_v58  ;;  %v22982_v58 = vld [vmem:[%s25625_s3 + $0x8] ss:$16 sps:$4 sm:$0xff]  }
 0x80b   :  { %v24840_v45 = vpop.f32.mrf.mxu1 }
 0x80c   :  { %16992 = vmatpush2.bf16.msra.mxu0 %v22955_v5  ;;  %v23065_v5 = vld [vmem:[%s25625_s3 + $0x9e4] ss:$16 sps:$4 sm:$0xff]  }
 0x80d   :  { %17033 = vmatpush2.bf16.msra.mxu1 %v22958_v25  ;;  %17043 = vmatprep.subr.bf16.mxu0 %v23017_v53  ;;  %v22987_v25 = vld [vmem:[%s25625_s3 + $0x1ec] ss:$16 sps:$4 sm:$0xff]   ;;  %v2010_v53 = vld [vmem:[%s25624_s2 + $0x8] sm:$0x3] }
 0x80e   :  { %17084 = vmatprep.subr.bf16.mxu1 %v22963_v52  ;;  %v23063_v52 = vld [vmem:[%s25625_s3 + $0x9e0] ss:$16 sps:$4 sm:$0xff]  }
 0x80f   :  { %16994 = vmatmul.mubr.bf16.vlgmr.msra.gmra.mxu0 %v24698_v49 }
 0x810   :  { %17035 = vmatmul.mubr.bf16.vlgmr.msra.gmra.mxu1 %v24705_v62  ;;  %17044 = vmatpush1.bf16.msra.mxu0 %v23015_v18 }
 0x811   :  { %17085 = vmatpush1.bf16.msra.mxu1 %v22961_v31  ;;  %17116 = vmatprep.mubr.bf16.mxu1 %v24275_v12  ;;  %v24735_v12 = vpop.f32.mrf.mxu0  ;;  %v22985_v31 = vld [vmem:[%s25625_s3 + $0x1e8] ss:$16 sps:$4 sm:$0xff]  }
 0x812   :  { %17086 = vmatprep.subr.bf16.mxu1 %v22966_v33  ;;  %17045 = vmatprep.subr.bf16.mxu0 %v23023_v14  ;;  %v23071_v33 = vld [vmem:[%s25625_s3 + $0x9c4] ss:$16 sps:$4 sm:$0xff]  }
 0x813   :  { %v24748_v50 = vpop.f32.mrf.mxu0  ;;  %v25712_v14 = vld [vmem:[#allocation9_spill] sm:$0xff] }
 0x814   :  { %17046 = vmatpush1.bf16.msra.mxu0 %v23021_v8  ;;  %v2048_v8 = vrot.slane %v2010_v53, %v25712_v14 }
 0x815   :  { %17087 = vmatpush1.bf16.msra.mxu1 %v22964_v38  ;;  %17047 = vmatprep.subr.bf16.mxu0 %v23029_v0  ;;  %v24764_v19 = vpop.f32.mrf.mxu0  ;;  %v22990_v38 = vld [vmem:[%s25625_s3 + $0x1cc] ss:$16 sps:$4 sm:$0xff]   ;;  %v2052_v0 = vrot.slane %v2010_v53, %v25708_v29  ;;  %v23095_v53 = vld [vmem:[%s25625_s3 + $0x944] ss:$16 sps:$4 sm:$0xff]  }
 0x816   :  { %17088 = vmatprep.subr.bf16.mxu1 %v22969_v1  ;;  %v23069_v1 = vld [vmem:[%s25625_s3 + $0x9c0] ss:$16 sps:$4 sm:$0xff]  }
 0x817   :  { %v24780_v60 = vpop.f32.mrf.mxu0 }
 0x818   :  { %17048 = vmatpush1.bf16.msra.mxu0 %v23027_v42 }
 0x819   :  { %17089 = vmatpush1.bf16.msra.mxu1 %v22967_v17  ;;  %17049 = vmatprep.subr.bf16.mxu0 %v23035_v41  ;;  %v24796_v23 = vpop.f32.mrf.mxu0  ;;  %v24858_v17 = vpop.f32.mrf.mxu1  ;;  %v22988_v41 = vld [vmem:[%s25625_s3 + $0x1c8] ss:$16 sps:$4 sm:$0xff]  }
 0x81a   :  { %17090 = vmatprep.subr.bf16.mxu1 %v22972_v3  ;;  %v23077_v3 = vld [vmem:[%s25625_s3 + $0x9a4] ss:$16 sps:$4 sm:$0xff]  }
 0x81b   :  { %v24803_v39 = vpop.f32.mrf.mxu0 }
 0x81c   :  { %17050 = vmatpush1.bf16.msra.mxu0 %v23033_v32  ;;  %v13882_v32 = vadd.f32 %v24676_v11, %v2048_v8  ;;  %v22991_v11 = vld [vmem:[%s25625_s3 + $0x1a8] ss:$16 sps:$4 sm:$0xff]  }
 0x81d   :  { %17091 = vmatpush1.bf16.msra.mxu1 %v22970_v35  ;;  %17051 = vmatprep.subr.bf16.mxu0 %v23041_v44  ;;  %v24819_v55 = vpop.f32.mrf.mxu0  ;;  %v22993_v35 = vld [vmem:[%s25625_s3 + $0x1ac] ss:$16 sps:$4 sm:$0xff]  }
 0x81e   :  { %17092 = vmatprep.subr.bf16.mxu1 %v22975_v24  ;;  %v24872_v24 = vpop.f32.mrf.mxu1 }
 0x81f   :  { %v24838_v18 = vpop.f32.mrf.mxu0 }
 0x820   :  { %17052 = vmatpush1.bf16.msra.mxu0 %v23039_v9  ;;  %v13884_v9 = vadd.f32 %v24692_v26, %v2052_v0  ;;  %v22996_v26 = vld [vmem:[%s25625_s3 + $0x18c] ss:$16 sps:$4 sm:$0xff]  }
 0x821   :  { %17093 = vmatpush1.bf16.msra.mxu1 %v22973_v59  ;;  %17053 = vmatprep.subr.bf16.mxu0 %v23047_v15  ;;  %v24856_v42 = vpop.f32.mrf.mxu0  ;;  %v23075_v59 = vld [vmem:[%s25625_s3 + $0x9a0] ss:$16 sps:$4 sm:$0xff]   ;;  %v23083_v15 = vld [vmem:[%s25625_s3 + $0x984] ss:$16 sps:$4 sm:$0xff]  }
 0x822   :  { %17094 = vmatprep.subr.bf16.mxu1 %v22978_v43  ;;  %v13925_v43 = vadd.f32 %v24678_v2, %v13882_v32  ;;  %v23081_v2 = vld [vmem:[%s25625_s3 + $0x980] ss:$16 sps:$4 sm:$0xff]  }
 0x823   :  { %v24870_v44 = vpop.f32.mrf.mxu0 }
 0x824   :  { %17054 = vmatpush1.bf16.msra.mxu0 %v23045_v10  ;;  %v13886_v10 = vadd.f32 %v24718_v28, %v2048_v8  ;;  %v22994_v28 = vld [vmem:[%s25625_s3 + $0x188] ss:$16 sps:$4 sm:$0xff]  }
 0x825   :  { %17095 = vmatpush1.bf16.msra.mxu1 %v22976_v16  ;;  %17055 = vmatprep.subr.bf16.mxu0 %v23053_v13  ;;  %v14141_v16 = vpop.f32.mrf.mxu0  ;;  %v24889_v13 = vpop.f32.mrf.mxu1 }
 0x826   :  { %17096 = vmatprep.subr.bf16.mxu1 %v22981_v56  ;;  %v13927_v56 = vadd.f32 %v24694_v34, %v13884_v9  ;;  %v13929_v34 = vadd.f32 %v24720_v48, %v13886_v10  ;;  %v23087_v48 = vld [vmem:[%s25625_s3 + $0x960] ss:$16 sps:$4 sm:$0xff]  }
 0x828   :  { %17056 = vmatpush1.bf16.msra.mxu0 %v23051_v54  ;;  %v13888_v54 = vadd.f32 %v24735_v12, %v2052_v0  ;;  %v13970_v12 = vadd.f32 %v24764_v19, %v13927_v56  ;;  %v22997_v19 = vld [vmem:[%s25625_s3 + $0x168] ss:$16 sps:$4 sm:$0xff]  }
 0x829   :  { %17097 = vmatpush1.bf16.msra.mxu1 %v22979_v4  ;;  %17057 = vmatprep.subr.bf16.mxu0 %v23059_v37  ;;  %v13968_v4 = vadd.f32 %v24748_v50, %v13925_v43  ;;  %v23089_v37 = vld [vmem:[%s25625_s3 + $0x964] ss:$16 sps:$4 sm:$0xff]   ;;  %v22999_v50 = vld [vmem:[%s25625_s3 + $0x16c] ss:$16 sps:$4 sm:$0xff]  }
 0x82a   :  { %17098 = vmatprep.subr.bf16.mxu1 %v22984_v20  ;;  %v14143_v20 = vpop.f32.mrf.mxu0 }
 0x82c   :  { %17058 = vmatpush1.bf16.msra.mxu0 %v23057_v21  ;;  %v24908_v21 = vpop.f32.mrf.mxu1 }
 0x82d   :  { %17099 = vmatpush1.bf16.msra.mxu1 %v22982_v58  ;;  %17059 = vmatprep.subr.bf16.mxu0 %v23065_v5  ;;  %v13931_v58 = vadd.f32 %v24737_v63, %v13888_v54  ;;  %v14011_v5 = vadd.f32 %v24750_v51, %v13968_v4  ;;  %v14013_v63 = vadd.f32 %v24766_v36, %v13970_v12  ;;  %v23093_v36 = vld [vmem:[%s25625_s3 + $0x940] ss:$16 sps:$4 sm:$0xff]  }
 0x82e   :  { %17100 = vmatprep.subr.bf16.mxu1 %v22987_v25  ;;  %v13972_v25 = vadd.f32 %v24780_v60, %v13929_v34  ;;  %v24980_v34 = vld [vmem:[%s25624_s2 + $0x8] sm:$0x3]  ;;  %s23365_s2 = scalar_lea.vmem %s17519_s13, 32 }
 0x82f   :  { %v13974_v51 = vadd.f32 %v24796_v23, %v13931_v58  ;;  %v14054_v60 = vadd.f32 %v24803_v39, %v14011_v5  ;;  %v23000_v39 = vld [vmem:[%s25625_s3 + $0x148] ss:$16 sps:$4 sm:$0xff]   ;;  %p23366_p5 = scmp.ne.s32.totalorder %s17519_s13, %s23365_s2  ;;  %p23371_p7 = scmp.lt.s32.totalorder %s23365_s2, %s23365_s2 }
 0x830   :  { %17060 = vmatpush2.bf16.msra.mxu0 %v23063_v52  ;;  %v23002_v52 = vld [vmem:[%s25625_s3 + $0x14c] ss:$16 sps:$4 sm:$0xff]   ;;  %v14015_v8 = vadd.f32 %v24782_v30, %v13972_v25 }
 0x831   :  { %17101 = vmatpush2.bf16.msra.mxu1 %v22985_v31  ;;  %17061 = vmatprep.subr.bf16.mxu0 %v23071_v33  ;;  %v14145_v31 = vpop.f32.mrf.mxu0  ;;  %v14188_v33 = vpop.f32.mrf.mxu1  ;;  %v14017_v30 = vadd.f32 %v24798_v6, %v13974_v51  ;;  %v23099_v6 = vld [vmem:[%s25625_s3 + $0x920] ss:$16 sps:$4 sm:$0xff]   ;;  %p23372_p8 = por %p23371_p7, %p23370_p6 }
 0x832   :  { %17102 = vmatprep.subr.bf16.mxu1 %v22990_v38  ;;  %v14056_v38 = vadd.f32 %v24819_v55, %v14013_v63  ;;  %v14097_v55 = vadd.f32 %v24805_v57, %v14054_v60 }
 0x833   :  { %v14225_v0 = vpop.f32.mrf.mxu0  ;;  %v14268_v23 = vpop.f32.mrf.mxu1  ;;  %p23373_p9 = pnand %p23372_p8, %p23366_p5 }
 0x834   :  { %17062 = vmatpush2.bf16.msra.mxu0 %v23069_v1  ;;  %v23101_v1 = vld [vmem:[%s25625_s3 + $0x924] ss:$16 sps:$4 sm:$0xff]   ;;  %v14099_v32 = vadd.f32 %v24821_v40, %v14056_v38  ;;  %v14140_v9 = vadd.f32 %v24870_v44, %v14097_v55  ;;  %v23018_v55 = vld [vmem:[%s25625_s3 + $0x4a8] ss:$16 sps:$4 sm:$0xff]  }
 0x835   :  { %17103 = vmatpush2.bf16.msra.mxu1 %v22988_v41  ;;  %17063 = vmatprep.subr.bf16.mxu0 %v23077_v3  ;;  %v14058_v41 = vadd.f32 %v24838_v18, %v14015_v8  ;;  %v23005_v3 = vld [vmem:[%s25625_s3 + $0x12c] ss:$16 sps:$4 sm:$0xff]   ;;  %v14270_v57 = vpop.f32.mrf.mxu1  ;;  %v23003_v18 = vld [vmem:[%s25625_s3 + $0x128] ss:$16 sps:$4 sm:$0xff]   ;;  %v23107_v40 = vld [vmem:[%s25625_s3 + $0x904] ss:$16 sps:$4 sm:$0xff]  }
 0x836   :  { %17104 = vmatprep.subr.bf16.mxu1 %v22993_v35  ;;  %v14060_v35 = vadd.f32 %v24856_v42, %v14017_v30  ;;  %v14142_v44 = vadd.f32 %v14141_v16, %v14099_v32  ;;  %v14183_v43 = vadd.f32 %v24872_v24, %v14140_v9 }
 0x837   :  { %v14101_v42 = vadd.f32 %v24840_v45, %v14058_v41  ;;  %v14272_v54 = vpop.f32.mrf.mxu1  ;;  %v23006_v45 = vld [vmem:[%s25625_s3 + $0x108] ss:$16 sps:$4 sm:$0xff]  }
 0x838   :  { %17064 = vmatpush2.bf16.msra.mxu0 %v23075_v59  ;;  %v14227_v59 = vpop.f32.mrf.mxu0  ;;  %v14185_v24 = vadd.f32 %v24889_v13, %v14142_v44  ;;  %v14226_v4 = vadd.f32 %v14225_v0, %v14183_v43  ;;  %v23009_v13 = vld [vmem:[%s25625_s3 + $0x4e8] ss:$16 sps:$4 sm:$0xff]   ;;  %v23038_v44 = vld [vmem:[%s25625_s3 + $0x44c] ss:$16 sps:$4 sm:$0xff]  }
 0x839   :  { %17105 = vmatpush2.bf16.msra.mxu1 %v22991_v11  ;;  %17065 = vmatprep.subr.bf16.mxu0 %v23083_v15  ;;  %v23008_v11 = vld [vmem:[%s25625_s3 + $0x10c] ss:$16 sps:$4 sm:$0xff]   ;;  %v14103_v15 = vadd.f32 %v24858_v17, %v14060_v35  ;;  %v14144_v10 = vadd.f32 %v14143_v20, %v14101_v42  ;;  %v23030_v42 = vld [vmem:[%s25625_s3 + $0x468] ss:$16 sps:$4 sm:$0xff]  }
 0x83a   :  { %17106 = vmatprep.subr.bf16.mxu1 %v22996_v26  ;;  %v23105_v26 = vld [vmem:[%s25625_s3 + $0x900] ss:$16 sps:$4 sm:$0xff]   ;;  %v14229_v56 = vpop.f32.mrf.mxu0  ;;  %v23113_v17 = vld [vmem:[%s25625_s3 + $0x2ec] ss:$16 sps:$4 sm:$0xff]   ;;  %v14269_v58 = vadd.f32 %v14268_v23, %v14226_v4 }
 0x83b   :  { %v14146_v16 = vadd.f32 %v14145_v31, %v14103_v15  ;;  %v23012_v31 = vld [vmem:[%s25625_s3 + $0x4c8] ss:$16 sps:$4 sm:$0xff]   ;;  %v23026_v35 = vld [vmem:[%s25625_s3 + $0x48c] ss:$16 sps:$4 sm:$0xff]  }
 0x83c   :  { %17066 = vmatpush2.bf16.msra.mxu0 %v23081_v2  ;;  %v23011_v2 = vld [vmem:[%s25625_s3 + $0x4ec] ss:$16 sps:$4 sm:$0xff]   ;;  %v14231_v12 = vpop.f32.mrf.mxu0  ;;  %v23036_v15 = vld [vmem:[%s25625_s3 + $0x448] ss:$16 sps:$4 sm:$0xff]  }
 0x83d   :  { %17107 = vmatpush2.bf16.msra.mxu1 %v22994_v28  ;;  %17067 = vmatprep.subr.bf16.mxu0 %v23089_v37  ;;  %v14187_v28 = vadd.f32 %v24908_v21, %v14144_v10  ;;  %v14228_v37 = vadd.f32 %v14227_v59, %v14185_v24  ;;  %v14189_v20 = vadd.f32 %v14188_v33, %v14146_v16  ;;  %v23014_v21 = vld [vmem:[%s25625_s3 + $0x4cc] ss:$16 sps:$4 sm:$0xff]  }
 0x83e   :  { %17108 = vmatprep.subr.bf16.mxu1 %v22999_v50  ;;  %v14274_v50 = vpop.f32.mrf.mxu1  ;;  %v23044_v43 = vld [vmem:[%s25625_s3 + $0x42c] ss:$16 sps:$4 sm:$0xff]  }
 0x83f   :  { %v14230_v5 = vadd.f32 %v14229_v56, %v14187_v28  ;;  %v14232_v63 = vadd.f32 %v14231_v12, %v14189_v20  ;;  %v23050_v24 = vld [vmem:[%s25625_s3 + $0x40c] ss:$16 sps:$4 sm:$0xff]   ;;  %v23048_v28 = vld [vmem:[%s25625_s3 + $0x408] ss:$16 sps:$4 sm:$0xff]  }
 0x840   :  { %17068 = vmatpush2.bf16.msra.mxu0 %v23087_v48  ;;  %v23056_v12 = vld [vmem:[%s25625_s3 + $0x5ec] ss:$16 sps:$4 sm:$0xff]   ;;  %v23060_v20 = vld [vmem:[%s25625_s3 + $0x5c8] ss:$16 sps:$4 sm:$0xff]  }
 0x841   :  { %17109 = vmatpush2.bf16.msra.mxu1 %v22997_v19  ;;  %17069 = vmatprep.subr.bf16.mxu0 %v23095_v53  ;;  %v19492_v19 = vmul.f32 -1.442695, %v24980_v34  ;;  %v14271_v53 = vadd.f32 %v14270_v57, %v14228_v37  ;;  %v14273_v33 = vadd.f32 %v14272_v54, %v14230_v5  ;;  %v14275_v23 = vadd.f32 %v14274_v50, %v14232_v63  ;;  %v23024_v57 = vld [vmem:[%s25625_s3 + $0x488] ss:$16 sps:$4 sm:$0xff]  }
 0x842   :  { %17110 = vmatprep.subr.bf16.mxu1 %v23002_v52  ;;  %v23054_v50 = vld [vmem:[%s25625_s3 + $0x5e8] ss:$16 sps:$4 sm:$0xff]  }
 0x843   :  { %23317 = vpow2.f32 %v19492_v19  ;;  %v23066_v19 = vld [vmem:[%s25625_s3 + $0x5a8] ss:$16 sps:$4 sm:$0xff]  }
 0x844   :  { %17070 = vmatpush2.bf16.msra.mxu0 %v23093_v36  ;;  %v23020_v36 = vld [vmem:[%s25625_s3 + $0x4ac] ss:$16 sps:$4 sm:$0xff]  }
 0x845   :  { %17111 = vmatpush2.bf16.msra.mxu1 %v23000_v39  ;;  %17071 = vmatprep.subr.bf16.mxu0 %v23101_v1 }
 0x846   :  { %17112 = vmatprep.subr.bf16.mxu1 %v23005_v3 }
 0x848   :  { %17072 = vmatpush2.bf16.msra.mxu0 %v23099_v6 }
 0x849   :  { %17113 = vmatpush2.bf16.msra.mxu1 %v23003_v18  ;;  %17073 = vmatprep.subr.bf16.mxu0 %v23107_v40  ;;  %v23032_v40 = vld [vmem:[%s25625_s3 + $0x46c] ss:$16 sps:$4 sm:$0xff]  }
 0x84a   :  { %17114 = vmatprep.subr.bf16.mxu1 %v23008_v11 }
 0x84c   :  { %17074 = vmatpush2.bf16.msra.mxu0 %v23105_v26 }
 0x84d   :  { %17115 = vmatpush2.bf16.msra.mxu1 %v23006_v45  ;;  %17125 = vmatprep.subr.bf16.mxu0 %v23113_v17  ;;  %v23042_v45 = vld [vmem:[%s25625_s3 + $0x428] ss:$16 sps:$4 sm:$0xff]  }
 0x84e   :  { %17166 = vmatprep.subr.bf16.mxu1 %v23011_v2 }
 0x84f   :  { %v14311_v25 = vpop.f32.mrf.mxu0 }
 0x850   :  { %v14354_v48 = vpop.f32.mrf.mxu1  ;;  %v14312_v51 = vadd.f32 %v14311_v25, %v14269_v58  ;;  %17117 = vmatmul.mubr.bf16.vlgmr.msra.gmra.mxu1 %v24479_v7  ;;  %v23318_v11 = vpop.eup %23317  ;;  %v23068_v58 = vld [vmem:[%s25625_s3 + $0x5ac] ss:$16 sps:$4 sm:$0xff]  }
 0x851   :  { %17167 = vmatpush1.bf16.msra.mxu1 %v23009_v13  ;;  %17198 = vmatprep.mubr.bf16.mxu1 %v24495_v47  ;;  %v14313_v60 = vpop.f32.mrf.mxu0  ;;  %v14735_v26 = vadd.f32 1.0, %v23318_v11  ;;  %v23062_v13 = vld [vmem:[%s25625_s3 + $0x5cc] ss:$16 sps:$4 sm:$0xff]  }
 0x852   :  { %v14356_v52 = vpop.f32.mrf.mxu1  ;;  %v24994_v8 = vadd.f32 %v14354_v48, %v14312_v51  ;;  %v14314_v38 = vadd.f32 %v14313_v60, %v14271_v53  ;;  %17168 = vmatprep.subr.bf16.mxu1 %v23014_v21  ;;  %v23074_v51 = vld [vmem:[%s25625_s3 + $0x58c] ss:$16 sps:$4 sm:$0xff]  }
 0x853   :  { %v14315_v7 = vpop.f32.mrf.mxu0 }
 0x854   :  { %v14358_v0 = vpop.f32.mrf.mxu1  ;;  %v19479_v47 = vmul.f32 -1.442695, %v24994_v8  ;;  %v25000_v39 = vadd.f32 %v14356_v52, %v14314_v38  ;;  %v14316_v1 = vadd.f32 %v14315_v7, %v14273_v33 }
 0x855   :  { %17169 = vmatpush1.bf16.msra.mxu1 %v23012_v31  ;;  %v14317_v30 = vpop.f32.mrf.mxu0 }
 0x856   :  { %23319 = vpow2.f32 %v19479_v47  ;;  %v19480_v41 = vmul.f32 -1.442695, %v25000_v39  ;;  %v25006_v3 = vadd.f32 %v14358_v0, %v14316_v1  ;;  %v14318_v32 = vadd.f32 %v14317_v30, %v14275_v23  ;;  %17170 = vmatprep.subr.bf16.mxu1 %v23020_v36  ;;  %v14360_v9 = vpop.f32.mrf.mxu1  ;;  %v23072_v36 = vld [vmem:[%s25625_s3 + $0x588] ss:$16 sps:$4 sm:$0xff]  }
 0x858   :  { %23321 = vpow2.f32 %v19480_v41  ;;  %v19489_v6 = vmul.f32 -1.442695, %v25006_v3  ;;  %v25012_v59 = vadd.f32 %v14360_v9, %v14318_v32 }
 0x859   :  { %17171 = vmatpush1.bf16.msra.mxu1 %v23018_v55 }
 0x85a   :  { %23323 = vpow2.f32 %v19489_v6  ;;  %v19490_v18 = vmul.f32 -1.442695, %v25012_v59  ;;  %17172 = vmatprep.subr.bf16.mxu1 %v23026_v35 }
 0x85c   :  { %23325 = vpow2.f32 %v19490_v18 }
 0x85d   :  { %17173 = vmatpush1.bf16.msra.mxu1 %v23024_v57 }
 0x85e   :  { %17174 = vmatprep.subr.bf16.mxu1 %v23032_v40 }
 0x861   :  { %17175 = vmatpush1.bf16.msra.mxu1 %v23030_v42 }
 0x862   :  { %17176 = vmatprep.subr.bf16.mxu1 %v23038_v44 }
 0x863   :  { %v23320_v10 = vpop.eup %23319 }
 0x864   :  { %v14431_v56 = vadd.f32 1.0, %v23320_v10 }
 0x865   :  { %v23322_v54 = vpop.eup %23321  ;;  %17177 = vmatpush1.bf16.msra.mxu1 %v23036_v15  ;;  %v23084_v15 = vld [vmem:[%s25625_s3 + $0x548] ss:$16 sps:$4 sm:$0xff]  }
 0x866   :  { %23327 = vrcp.f32 %v14431_v56  ;;  %v14432_v17 = vadd.f32 1.0, %v23322_v54  ;;  %17178 = vmatprep.subr.bf16.mxu1 %v23044_v43  ;;  %v23092_v56 = vld [vmem:[%s25625_s3 + $0x52c] ss:$16 sps:$4 sm:$0xff]  }
 0x867   :  { %v23324_v16 = vpop.eup %23323  ;;  %23329 = vrcp.f32 %v14735_v26 }
 0x868   :  { %23331 = vrcp.f32 %v14432_v17  ;;  %v14441_v4 = vadd.f32 1.0, %v23324_v16  ;;  %v23090_v16 = vld [vmem:[%s25625_s3 + $0x528] ss:$16 sps:$4 sm:$0xff]  }
 0x869   :  { %v23326_v2 = vpop.eup %23325  ;;  %17179 = vmatpush1.bf16.msra.mxu1 %v23042_v45 }
 0x86a   :  { %23333 = vrcp.f32 %v14441_v4  ;;  %v14442_v37 = vadd.f32 1.0, %v23326_v2  ;;  %17180 = vmatprep.subr.bf16.mxu1 %v23050_v24 }
 0x86c   :  { %23335 = vrcp.f32 %v14442_v37 }
 0x86d   :  { %17181 = vmatpush1.bf16.msra.mxu1 %v23048_v28  ;;  %v23098_v28 = vld [vmem:[%s25625_s3 + $0x50c] ss:$16 sps:$4 sm:$0xff]  }
 0x86e   :  { %17182 = vmatprep.subr.bf16.mxu1 %v23056_v12 }
 0x871   :  { %17183 = vmatpush2.bf16.msra.mxu1 %v23054_v50 }
 0x872   :  { %17184 = vmatprep.subr.bf16.mxu1 %v23062_v13 }
 0x873   :  { %v23328_v5 = vpop.eup %23327 }
 0x874   :  { %v23330_v21 = vpop.eup %23329  ;;  %v14491_v25 = vmul.f32 %v23328_v5, %v24994_v8 }
 0x875   :  { %v23332_v48 = vpop.eup %23331  ;;  %17185 = vmatpush2.bf16.msra.mxu1 %v23060_v20  ;;  %v14741_v52 = vmul.f32 %v23330_v21, %v24980_v34  ;;  %v23080_v34 = vld [vmem:[%s25625_s3 + $0x56c] ss:$16 sps:$4 sm:$0xff]   ;;  %v23096_v20 = vld [vmem:[%s25625_s3 + $0x508] ss:$16 sps:$4 sm:$0xff]  }
 0x876   :  { %v14654_v53 = vrot.slane %v14491_v25, 4  ;;  %v14492_v63 = vmul.f32 %v23332_v48, %v25000_v39  ;;  %17186 = vmatprep.subr.bf16.mxu1 %v23068_v58  ;;  %v25100_v58 = vld [vmem:[%s25626_s4] sm:$0xf]  ;;  %v23104_v21 = vld [vmem:[%s25625_s3 + $0x8ec] ss:$16 sps:$4 sm:$0xff]  }
 0x877   :  { %v23334_v60 = vpop.eup %23333  ;;  %v14743_v39 = vmul.f32 4.0, %v14741_v52 }
 0x878   :  { %v14655_v31 = vadd.f32 %v14654_v53, %v14491_v25  ;;  %v14660_v33 = vrot.slane %v14492_v63, 4  ;;  %v14501_v8 = vmul.f32 %v23334_v60, %v25006_v3  ;;  %v23078_v3 = vld [vmem:[%s25625_s3 + $0x568] ss:$16 sps:$4 sm:$0xff]   ;;  %v15181_v53 = vrot.slane %v25100_v58, %v25712_v14 }
 0x879   :  { %v23336_v38 = vpop.eup %23335  ;;  %17187 = vmatpush2.bf16.msra.mxu1 %v23066_v19  ;;  %v14781_v57 = vrot.slane %v14743_v39, %v25712_v14  ;;  %v14785_v18 = vrot.slane %v14743_v39, %v25708_v29  ;;  %v23102_v60 = vld [vmem:[%s25625_s3 + $0x8e8] ss:$16 sps:$4 sm:$0xff]  }
 0x87a   :  { %v14656_v7 = vrot.slane %v14655_v31, 2  ;;  %v14661_v0 = vadd.f32 %v14660_v33, %v14492_v63  ;;  %v14714_v23 = vrot.slane %v14501_v8, 4  ;;  %v14502_v47 = vmul.f32 %v23336_v38, %v25012_v59  ;;  %17188 = vmatprep.subr.bf16.mxu1 %v23074_v51  ;;  %v23086_v59 = vld [vmem:[%s25625_s3 + $0x54c] ss:$16 sps:$4 sm:$0xff]  }
 0x87b   :  { %v23110_v33 = vld [vmem:[%s25625_s3 + $0x8cc] ss:$16 sps:$4 sm:$0xff]  }
 0x87c   :  { %v14657_v1 = vadd.f32 %v14656_v7, %v14655_v31  ;;  %v14662_v30 = vrot.slane %v14661_v0, 2  ;;  %v14715_v55 = vadd.f32 %v14714_v23, %v14501_v8  ;;  %v14720_v41 = vrot.slane %v14502_v47, 4 }
 0x87d   :  { %17189 = vmatpush2.bf16.msra.mxu1 %v23072_v36  ;;  %v15185_v31 = vrot.slane %v25100_v58, %v25708_v29 }
 0x87e   :  { %v14658_v32 = vrot.slane %v14657_v1, 1  ;;  %v14663_v35 = vadd.f32 %v14662_v30, %v14661_v0  ;;  %v14716_v9 = vrot.slane %v14715_v55, 2  ;;  %v14721_v6 = vadd.f32 %v14720_v41, %v14502_v47  ;;  %17190 = vmatprep.subr.bf16.mxu1 %v23080_v34  ;;  %v23108_v34 = vld [vmem:[%s25625_s3 + $0x8c8] ss:$16 sps:$4 sm:$0xff]  }
 0x880   :  { %v14659_v40 = vadd.f32 %v14658_v32, %v14657_v1  ;;  %v14664_v42 = vrot.slane %v14663_v35, 1  ;;  %v14717_v44 = vadd.f32 %v14716_v9, %v14715_v55  ;;  %v14722_v11 = vrot.slane %v14721_v6, 2 }
 0x881   :  { %17191 = vmatpush2.bf16.msra.mxu1 %v23078_v3 }
 0x882   :  { %v14665_v43 = vadd.f32 %v14664_v42, %v14663_v35  ;;  %v14718_v10 = vrot.slane %v14717_v44, 1  ;;  %v14723_v26 = vadd.f32 %v14722_v11, %v14721_v6  ;;  %17192 = vmatprep.subr.bf16.mxu1 %v23086_v59  ;;  %v14804_v54 = vsub.f32 %v14659_v40, %v14781_v57  ;;  %v23116_v6 = vld [vmem:[%s25625_s3 + $0x8ac] ss:$16 sps:$4 sm:$0xff]  }
 0x883   :  { %v23119_v59 = vld [vmem:[%s25625_s3 + $0x2cc] ss:$16 sps:$4 sm:$0xff]  }
 0x884   :  { %v14719_v45 = vadd.f32 %v14718_v10, %v14717_v44  ;;  %v14724_v17 = vrot.slane %v14723_v26, 1  ;;  %v14805_v24 = vsub.f32 %v14665_v43, %v14785_v18  ;;  %v14824_v37 = vmul.f32 0.25, %v14804_v54  ;;  %v23122_v42 = vld [vmem:[%s25625_s3 + $0x88c] ss:$16 sps:$4 sm:$0xff]   ;;  %v23117_v44 = vld [vmem:[%s25625_s3 + $0x2c8] ss:$16 sps:$4 sm:$0xff]  }
 0x885   :  { %17193 = vmatpush2.bf16.msra.mxu1 %v23084_v15  ;;  %v23125_v11 = vld [vmem:[%s25625_s3 + $0x2ac] ss:$16 sps:$4 sm:$0xff]   ;;  %v23120_v15 = vld [vmem:[%s25625_s3 + $0x888] ss:$16 sps:$4 sm:$0xff]  }
 0x886   :  { %v14814_v4 = vsub.f32 %v14719_v45, %v14781_v57  ;;  %v14725_v2 = vadd.f32 %v14724_v17, %v14723_v26  ;;  %17194 = vmatprep.subr.bf16.mxu1 %v23092_v56  ;;  %v14825_v13 = vmul.f32 0.25, %v14805_v24  ;;  %v14844_v48 = vpack.c.bf16 %v14824_v37, %v14824_v37  ;;  %v23123_v43 = vld [vmem:[%s25625_s3 + $0x2a8] ss:$16 sps:$4 sm:$0xff]   ;;  %v23131_v10 = vld [vmem:[%s25625_s3 + $0x28c] ss:$16 sps:$4 sm:$0xff]  }
 0x887   :  { %v23126_v26 = vld [vmem:[%s25625_s3 + $0x868] ss:$16 sps:$4 sm:$0xff]   ;;  %v23134_v56 = vld [vmem:[%s25625_s3 + $0x84c] ss:$16 sps:$4 sm:$0xff]  }
 0x888   :  { %v14834_v12 = vmul.f32 0.25, %v14814_v4  ;;  %v14815_v50 = vsub.f32 %v14725_v2, %v14785_v18  ;;  %v14845_v63 = vpack.c.bf16 %v14825_v13, %v14825_v13  ;;  %v15226_v38 = vunpack.c.l.b16 %v14844_v48  ;;  %v23114_v18 = vld [vmem:[%s25625_s3 + $0x8a8] ss:$16 sps:$4 sm:$0xff]   ;;  %v23137_v45 = vld [vmem:[%s25625_s3 + $0x26c] ss:$16 sps:$4 sm:$0xff]  }
 0x889   :  { %17195 = vmatpush2.bf16.msra.mxu1 %v23090_v16  ;;  %v23129_v54 = vld [vmem:[%s25625_s3 + $0x288] ss:$16 sps:$4 sm:$0xff]   ;;  %v23140_v24 = vld [vmem:[%s25625_s3 + $0x82c] ss:$16 sps:$4 sm:$0xff]  }
 0x88a   :  { %v14854_v5 = vpack.c.bf16 %v14834_v12, %v14834_v12  ;;  %17196 = vmatprep.subr.bf16.mxu1 %v23098_v28  ;;  %v14835_v25 = vmul.f32 0.25, %v14815_v50  ;;  %v15227_v0 = vunpack.c.l.b16 %v14845_v63  ;;  %v23132_v17 = vld [vmem:[%s25625_s3 + $0x848] ss:$16 sps:$4 sm:$0xff]   ;;  %v23143_v4 = vld [vmem:[%s25625_s3 + $0x24c] ss:$16 sps:$4 sm:$0xff]  }
 0x88b   :  { %v23135_v16 = vld [vmem:[%s25625_s3 + $0x268] ss:$16 sps:$4 sm:$0xff]   ;;  %v23146_v28 = vld [vmem:[%s25625_s3 + $0x80c] ss:$16 sps:$4 sm:$0xff]  }
 0x88c   :  { %v15236_v19 = vunpack.c.l.b16 %v14854_v5  ;;  %v14855_v51 = vpack.c.bf16 %v14835_v25, %v14835_v25  ;;  %v23138_v2 = vld [vmem:[%s25625_s3 + $0x828] ss:$16 sps:$4 sm:$0xff]   ;;  %v23149_v12 = vld [vmem:[%s25625_s3 + $0x22c] ss:$16 sps:$4 sm:$0xff]  }
 0x88d   :  { %17197 = vmatpush2.bf16.msra.mxu1 %v23096_v20  ;;  %v23141_v37 = vld [vmem:[%s25625_s3 + $0x248] ss:$16 sps:$4 sm:$0xff]   ;;  %v23152_v13 = vld [vmem:[%s25625_s3 + $0x9ec] ss:$16 sps:$4 sm:$0xff]  }
 0x88e   :  { %v15255_v52 = vrot.slane %v15236_v19, 7  ;;  %17248 = vmatprep.subr.bf16.mxu1 %v23104_v21  ;;  %v15237_v8 = vunpack.c.l.b16 %v14855_v51  ;;  %v23144_v50 = vld [vmem:[%s25625_s3 + $0x808] ss:$16 sps:$4 sm:$0xff]   ;;  %v23155_v5 = vld [vmem:[%s25625_s3 + $0x20c] ss:$16 sps:$4 sm:$0xff]  }
 0x88f   :  { %v16913_v36 = vpop.f32.mrf.mxu0  ;;  %v23147_v20 = vld [vmem:[%s25625_s3 + $0x228] ss:$16 sps:$4 sm:$0xff]   ;;  %v23158_v25 = vld [vmem:[%s25625_s3 + $0x9cc] ss:$16 sps:$4 sm:$0xff]  }
 0x890   :  { %v16914_v14 = vadd.f32 %v16913_v36, %v15181_v53  ;;  %v16954_v7 = vpop.f32.mrf.mxu1  ;;  %17199 = vmatmul.mubr.bf16.vlgmr.msra.gmra.mxu1 %v24698_v49  ;;  %v15257_v23 = vrot.slane %v15237_v8, 7  ;;  %v15256_v29 = vsel %vm15239_vm0, %v15255_v52, %v15226_v38  ;;  %v23111_v49 = vld [vmem:[%s25625_s3 + $0x2e8] ss:$16 sps:$4 sm:$0xff]   ;;  %v23161_v19 = vld [vmem:[%s25625_s3 + $0x3ec] ss:$16 sps:$4 sm:$0xff]  }
 0x891   :  { %17249 = vmatpush1.bf16.msra.mxu1 %v23102_v60  ;;  %v16915_v47 = vpop.f32.mrf.mxu0  ;;  %v25128_v9 = vpack.c.b16 %v15256_v29, %v15256_v29  ;;  %v23150_v21 = vld [vmem:[%s25625_s3 + $0x9e8] ss:$16 sps:$4 sm:$0xff]   ;;  %v23164_v63 = vld [vmem:[%s25625_s3 + $0x9ac] ss:$16 sps:$4 sm:$0xff]  }
 0x892   :  { %v25120_v39 = vadd.f32 %v16954_v7, %v16914_v14  ;;  %v16916_v1 = vadd.f32 %v16915_v47, %v15185_v31  ;;  %v16956_v30 = vpop.f32.mrf.mxu1  ;;  %17250 = vmatprep.subr.bf16.mxu1 %v23110_v33  ;;  %v15258_v55 = vsel %vm15239_vm0, %v15257_v23, %v15227_v0  ;;  %v23153_v48 = vld [vmem:[%s25625_s3 + $0x208] ss:$16 sps:$4 sm:$0xff]   ;;  %v23167_v60 = vld [vmem:[%s25625_s3 + $0x3cc] ss:$16 sps:$4 sm:$0xff]  }
 0x893   :  { %v16917_v41 = vpop.f32.mrf.mxu0  ;;  %v15268_v3 = vpack.c.b16 %v15258_v55, %v15258_v55  ;;  %v23156_v53 = vld [vmem:[%s25625_s3 + $0x9c8] ss:$16 sps:$4 sm:$0xff]   ;;  %v23170_v31 = vld [vmem:[%s25625_s3 + $0x98c] ss:$16 sps:$4 sm:$0xff]  }
 0x894   :  { %v25126_v32 = vadd.f32 %v16956_v30, %v16916_v1  ;;  %v16958_v35 = vpop.f32.mrf.mxu1  ;;  %v23159_v51 = vld [vmem:[%s25625_s3 + $0x3e8] ss:$16 sps:$4 sm:$0xff]   ;;  %v23173_v8 = vld [vmem:[%s25625_s3 + $0x3ac] ss:$16 sps:$4 sm:$0xff]  }
 0x895   :  { %17251 = vmatpush1.bf16.msra.mxu1 %v23108_v34  ;;  %v16918_v57 = vpop.f32.mrf.mxu0  ;;  %17075 = vmatprep.mubr.bf16.mxu0 %v15268_v3  ;;  %v23162_v52 = vld [vmem:[%s25625_s3 + $0x9a8] ss:$16 sps:$4 sm:$0xff]   ;;  %v23176_v36 = vld [vmem:[%s25625_s3 + $0x96c] ss:$16 sps:$4 sm:$0xff]  }
 0x896   :  { %v16959_v40 = vpop.f32.mrf.mxu1  ;;  %17280 = vmatprep.mubr.bf16.mxu1 %v15268_v3  ;;  %17076 = vmatmul.mubr.bf16.vlgmr.msra.gmra.mxu0 %v25128_v9  ;;  %v23165_v33 = vld [vmem:[%s25625_s3 + $0x3c8] ss:$16 sps:$4 sm:$0xff]   ;;  %v23179_v7 = vld [vmem:[%s25625_s3 + $0x38c] ss:$16 sps:$4 sm:$0xff]  }
 0x897   :  { %17126 = vmatpush1.bf16.msra.mxu0 %v23111_v49  ;;  %17157 = vmatprep.mubr.bf16.mxu0 %v24285_v27  ;;  %v23128_v27 = vld [vmem:[%s25625_s3 + $0x86c] ss:$16 sps:$4 sm:$0xff]   ;;  %v23168_v38 = vld [vmem:[%s25625_s3 + $0x988] ss:$16 sps:$4 sm:$0xff]  }
 0x898   :  { %17252 = vmatprep.subr.bf16.mxu1 %v23116_v6  ;;  %17127 = vmatprep.subr.bf16.mxu0 %v23119_v59  ;;  %v23171_v14 = vld [vmem:[%s25625_s3 + $0x3a8] ss:$16 sps:$4 sm:$0xff]   ;;  %v23182_v23 = vld [vmem:[%s25625_s3 + $0x94c] ss:$16 sps:$4 sm:$0xff]  }
 0x899   :  { %17253 = vmatpush1.bf16.msra.mxu1 %v23114_v18  ;;  %v23174_v0 = vld [vmem:[%s25625_s3 + $0x968] ss:$16 sps:$4 sm:$0xff]   ;;  %v23185_v34 = vld [vmem:[%s25625_s3 + $0x36c] ss:$16 sps:$4 sm:$0xff]  }
 0x89a   :  { %17254 = vmatprep.subr.bf16.mxu1 %v23122_v42  ;;  %v23177_v47 = vld [vmem:[%s25625_s3 + $0x388] ss:$16 sps:$4 sm:$0xff]   ;;  %v23188_v1 = vld [vmem:[%s25625_s3 + $0x92c] ss:$16 sps:$4 sm:$0xff]  }
 0x89b   :  { %17128 = vmatpush1.bf16.msra.mxu0 %v23117_v44  ;;  %v23180_v29 = vld [vmem:[%s25625_s3 + $0x948] ss:$16 sps:$4 sm:$0xff]   ;;  %v23191_v55 = vld [vmem:[%s25625_s3 + $0x34c] ss:$16 sps:$4 sm:$0xff]  }
 0x89c   :  { %17129 = vmatprep.subr.bf16.mxu0 %v23125_v11  ;;  %v23183_v30 = vld [vmem:[%s25625_s3 + $0x368] ss:$16 sps:$4 sm:$0xff]   ;;  %v23194_v3 = vld [vmem:[%s25625_s3 + $0x90c] ss:$16 sps:$4 sm:$0xff]  }
 0x89d   :  { %17255 = vmatpush1.bf16.msra.mxu1 %v23120_v15  ;;  %v23186_v41 = vld [vmem:[%s25625_s3 + $0x928] ss:$16 sps:$4 sm:$0xff]   ;;  %v23197_v35 = vld [vmem:[%s25625_s3 + $0x32c] ss:$16 sps:$4 sm:$0xff]  }
 0x89e   :  { %17256 = vmatprep.subr.bf16.mxu1 %v23128_v27  ;;  %v23189_v49 = vld [vmem:[%s25625_s3 + $0x348] ss:$16 sps:$4 sm:$0xff]   ;;  %v23200_v57 = vld [vmem:[%s25625_s3 + $0x30c] ss:$16 sps:$4 sm:$0xff]  }
 0x89f   :  { %17130 = vmatpush1.bf16.msra.mxu0 %v23123_v43  ;;  %v23192_v6 = vld [vmem:[%s25625_s3 + $0x908] ss:$16 sps:$4 sm:$0xff]   ;;  %v23203_v11 = vld [vmem:[%s25625_s3 + $0x6ec] ss:$16 sps:$4 sm:$0xff]  }
 0x8a0   :  { %17131 = vmatprep.subr.bf16.mxu0 %v23131_v10  ;;  %v23195_v59 = vld [vmem:[%s25625_s3 + $0x328] ss:$16 sps:$4 sm:$0xff]  }
 0x8a1   :  { %17257 = vmatpush1.bf16.msra.mxu1 %v23126_v26  ;;  %v23198_v40 = vld [vmem:[%s25625_s3 + $0x308] ss:$16 sps:$4 sm:$0xff]  }
 0x8a2   :  { %17258 = vmatprep.subr.bf16.mxu1 %v23134_v56 }
 0x8a3   :  { %17132 = vmatpush1.bf16.msra.mxu0 %v23129_v54  ;;  %v23206_v54 = vld [vmem:[%s25625_s3 + $0x6cc] ss:$16 sps:$4 sm:$0xff]  }
 0x8a4   :  { %17133 = vmatprep.subr.bf16.mxu0 %v23137_v45 }
 0x8a5   :  { %17259 = vmatpush1.bf16.msra.mxu1 %v23132_v17 }
 0x8a6   :  { %17260 = vmatprep.subr.bf16.mxu1 %v23140_v24  ;;  %v23209_v24 = vld [vmem:[%s25625_s3 + $0x6ac] ss:$16 sps:$4 sm:$0xff]  }
 0x8a7   :  { %17134 = vmatpush1.bf16.msra.mxu0 %v23135_v16  ;;  %v23207_v16 = vld [vmem:[%s25625_s3 + $0x6a8] ss:$16 sps:$4 sm:$0xff]  }
 0x8a8   :  { %17135 = vmatprep.subr.bf16.mxu0 %v23143_v4  ;;  %v23215_v4 = vld [vmem:[%s25625_s3 + $0x66c] ss:$16 sps:$4 sm:$0xff]  }
 0x8a9   :  { %17261 = vmatpush1.bf16.msra.mxu1 %v23138_v2  ;;  %v23213_v2 = vld [vmem:[%s25625_s3 + $0x668] ss:$16 sps:$4 sm:$0xff]  }
 0x8aa   :  { %17262 = vmatprep.subr.bf16.mxu1 %v23146_v28  ;;  %v23218_v28 = vld [vmem:[%s25625_s3 + $0x64c] ss:$16 sps:$4 sm:$0xff]  }
 0x8ab   :  { %17136 = vmatpush1.bf16.msra.mxu0 %v23141_v37  ;;  %v23216_v37 = vld [vmem:[%s25625_s3 + $0x648] ss:$16 sps:$4 sm:$0xff]  }
 0x8ac   :  { %17137 = vmatprep.subr.bf16.mxu0 %v23149_v12  ;;  %v23221_v12 = vld [vmem:[%s25625_s3 + $0x62c] ss:$16 sps:$4 sm:$0xff]  }
 0x8ad   :  { %17263 = vmatpush1.bf16.msra.mxu1 %v23144_v50  ;;  %v23219_v50 = vld [vmem:[%s25625_s3 + $0x628] ss:$16 sps:$4 sm:$0xff]  }
 0x8ae   :  { %17264 = vmatprep.subr.bf16.mxu1 %v23152_v13  ;;  %v23224_v13 = vld [vmem:[%s25625_s3 + $0x60c] ss:$16 sps:$4 sm:$0xff]  }
 0x8af   :  { %17138 = vmatpush1.bf16.msra.mxu0 %v23147_v20  ;;  %v23222_v20 = vld [vmem:[%s25625_s3 + $0x608] ss:$16 sps:$4 sm:$0xff]  }
 0x8b0   :  { %17139 = vmatprep.subr.bf16.mxu0 %v23155_v5  ;;  %v23227_v5 = vld [vmem:[%s25625_s3 + $0x7ec] ss:$16 sps:$4 sm:$0xff]  }
 0x8b1   :  { %17265 = vmatpush2.bf16.msra.mxu1 %v23150_v21  ;;  %v23225_v21 = vld [vmem:[%s25625_s3 + $0x7e8] ss:$16 sps:$4 sm:$0xff]  }
 0x8b2   :  { %17266 = vmatprep.subr.bf16.mxu1 %v23158_v25  ;;  %v23230_v25 = vld [vmem:[%s25625_s3 + $0x7cc] ss:$16 sps:$4 sm:$0xff]  }
 0x8b3   :  { %17140 = vmatpush1.bf16.msra.mxu0 %v23153_v48  ;;  %v23228_v48 = vld [vmem:[%s25625_s3 + $0x7c8] ss:$16 sps:$4 sm:$0xff]  }
 0x8b4   :  { %17141 = vmatprep.subr.bf16.mxu0 %v23161_v19  ;;  %v23233_v19 = vld [vmem:[%s25625_s3 + $0x7ac] ss:$16 sps:$4 sm:$0xff]  }
 0x8b5   :  { %17267 = vmatpush2.bf16.msra.mxu1 %v23156_v53  ;;  %v23231_v53 = vld [vmem:[%s25625_s3 + $0x7a8] ss:$16 sps:$4 sm:$0xff]  }
 0x8b6   :  { %17268 = vmatprep.subr.bf16.mxu1 %v23164_v63  ;;  %v23236_v63 = vld [vmem:[%s25625_s3 + $0x78c] ss:$16 sps:$4 sm:$0xff]  }
 0x8b7   :  { %17142 = vmatpush2.bf16.msra.mxu0 %v23159_v51  ;;  %v23234_v51 = vld [vmem:[%s25625_s3 + $0x788] ss:$16 sps:$4 sm:$0xff]  }
 0x8b8   :  { %17143 = vmatprep.subr.bf16.mxu0 %v23167_v60  ;;  %v23239_v60 = vld [vmem:[%s25625_s3 + $0x76c] ss:$16 sps:$4 sm:$0xff]  }
 0x8b9   :  { %17269 = vmatpush2.bf16.msra.mxu1 %v23162_v52  ;;  %v23237_v52 = vld [vmem:[%s25625_s3 + $0x768] ss:$16 sps:$4 sm:$0xff]  }
 0x8ba   :  { %17270 = vmatprep.subr.bf16.mxu1 %v23170_v31  ;;  %v23242_v31 = vld [vmem:[%s25625_s3 + $0x74c] ss:$16 sps:$4 sm:$0xff]  }
 0x8bb   :  { %17144 = vmatpush2.bf16.msra.mxu0 %v23165_v33  ;;  %v23240_v33 = vld [vmem:[%s25625_s3 + $0x748] ss:$16 sps:$4 sm:$0xff]  }
 0x8bc   :  { %17145 = vmatprep.subr.bf16.mxu0 %v23173_v8  ;;  %v23245_v8 = vld [vmem:[%s25625_s3 + $0x72c] ss:$16 sps:$4 sm:$0xff]  }
 0x8bd   :  { %17271 = vmatpush2.bf16.msra.mxu1 %v23168_v38  ;;  %v23243_v38 = vld [vmem:[%s25625_s3 + $0x728] ss:$16 sps:$4 sm:$0xff]  }
 0x8be   :  { %17272 = vmatprep.subr.bf16.mxu1 %v23176_v36  ;;  %v23248_v36 = vld [vmem:[%s25625_s3 + $0x70c] ss:$16 sps:$4 sm:$0xff]  }
 0x8bf   :  { %17146 = vmatpush2.bf16.msra.mxu0 %v23171_v14  ;;  %v23246_v14 = vld [vmem:[%s25625_s3 + $0x708] ss:$16 sps:$4 sm:$0xff]  }
 0x8c0   :  { %17147 = vmatprep.subr.bf16.mxu0 %v23179_v7 }
 0x8c1   :  { %17273 = vmatpush2.bf16.msra.mxu1 %v23174_v0  ;;  %v17324_v0 = vld [vmem:[%s25627_s5 + $0xf8] sm:$0xff] }
 0x8c2   :  { %17274 = vmatprep.subr.bf16.mxu1 %v23182_v23 }
 0x8c3   :  { %17148 = vmatpush2.bf16.msra.mxu0 %v23177_v47 }
 0x8c4   :  { %17149 = vmatprep.subr.bf16.mxu0 %v23185_v34  ;;  %v17308_v34 = vld [vmem:[%s25627_s5 + $0x78] sm:$0xff] }
 0x8c5   :  { %17275 = vmatpush2.bf16.msra.mxu1 %v23180_v29  ;;  %v17323_v29 = vld [vmem:[%s25627_s5 + $0xf0] sm:$0xff] }
 0x8c6   :  { %17276 = vmatprep.subr.bf16.mxu1 %v23188_v1 }
 0x8c7   :  { %17150 = vmatpush2.bf16.msra.mxu0 %v23183_v30  ;;  %v17307_v30 = vld [vmem:[%s25627_s5 + $0x70] sm:$0xff] }
 0x8c8   :  { %17151 = vmatprep.subr.bf16.mxu0 %v23191_v55  ;;  %v17322_v55 = vld [vmem:[%s25627_s5 + $0xe8] sm:$0xff] }
 0x8c9   :  { %17277 = vmatpush2.bf16.msra.mxu1 %v23186_v41  ;;  %v17306_v41 = vld [vmem:[%s25627_s5 + $0x68] sm:$0xff] }
 0x8ca   :  { %17278 = vmatprep.subr.bf16.mxu1 %v23194_v3  ;;  %v17321_v3 = vld [vmem:[%s25627_s5 + $0xe0] sm:$0xff] }
 0x8cb   :  { %17152 = vmatpush2.bf16.msra.mxu0 %v23189_v49  ;;  %v17320_v49 = vld [vmem:[%s25627_s5 + $0xd8] sm:$0xff] }
 0x8cc   :  { %17153 = vmatprep.subr.bf16.mxu0 %v23197_v35  ;;  %v17304_v35 = vld [vmem:[%s25627_s5 + $0x58] sm:$0xff] }
 0x8cd   :  { %17279 = vmatpush2.bf16.msra.mxu1 %v23192_v6  ;;  %v17356_v6 = vld [vmem:[%s25627_s5 + $0x1f8] sm:$0xff] }
 0x8ce   :  { %19850 = vmatprep.subr.mxu1 %v17356_v6  ;;  %v17327_v6 = vld [vmem:[%s25627_s5 + $0x110] sm:$0xff] }
 0x8cf   :  { %17154 = vmatpush2.bf16.msra.mxu0 %v23195_v59  ;;  %v16995_v18 = vpop.f32.mrf.mxu0  ;;  %v17340_v59 = vld [vmem:[%s25627_s5 + $0x178] sm:$0xff] }
 0x8d0   :  { %v16996_v42 = vadd.f32 %v16995_v18, %v25120_v39  ;;  %v17036_v44 = vpop.f32.mrf.mxu1  ;;  %17281 = vmatmul.mubr.bf16.vlgmr.msra.gmra.mxu1 %v25128_v9  ;;  %17155 = vmatprep.subr.bf16.mxu0 %v23200_v57  ;;  %v23201_v39 = vld [vmem:[%s25625_s3 + $0x6e8] ss:$16 sps:$4 sm:$0xff]   ;;  %v17355_v57 = vld [vmem:[%s25627_s5 + $0x1f0] sm:$0xff] }
 0x8d1   :  { %v16997_v15 = vpop.f32.mrf.mxu0  ;;  %v17319_v18 = vld [vmem:[%s25627_s5 + $0xd0] sm:$0xff]  ;;  %19851 = vmatpush3.msra.mxu1 %v17340_v59 }
 0x8d2   :  { %v25311_v27 = vadd.f32 %v17036_v44, %v16996_v42  ;;  %v16998_v43 = vadd.f32 %v16997_v15, %v25126_v32  ;;  %v17038_v10 = vpop.f32.mrf.mxu1  ;;  %v23204_v32 = vld [vmem:[%s25625_s3 + $0x6c8] ss:$16 sps:$4 sm:$0xff]   ;;  %v17303_v42 = vld [vmem:[%s25627_s5 + $0x50] sm:$0xff]  ;;  %19852 = vmatprep.subr.mxu1 %v17355_v57 }
 0x8d3   :  { %17156 = vmatpush2.bf16.msra.mxu0 %v23198_v40  ;;  %v16999_v26 = vpop.f32.mrf.mxu0  ;;  %v17339_v40 = vld [vmem:[%s25627_s5 + $0x170] sm:$0xff]  ;;  %v17354_v44 = vld [vmem:[%s25627_s5 + $0x1e8] sm:$0xff] }
 0x8d4   :  { %v25317_v56 = vadd.f32 %v17038_v10, %v16998_v43  ;;  %v17040_v9 = vpop.f32.mrf.mxu1  ;;  %17207 = vmatprep.subr.bf16.mxu0 %v23203_v11  ;;  %v17318_v11 = vld [vmem:[%s25627_s5 + $0xc8] sm:$0xff]  ;;  %19853 = vmatpush3.msra.mxu1 %v17339_v40  ;;  %v17353_v10 = vld [vmem:[%s25627_s5 + $0x1e0] sm:$0xff] }
 0x8d5   :  { %v17000_v45 = vpop.f32.mrf.mxu0  ;;  %v17338_v15 = vld [vmem:[%s25627_s5 + $0x168] sm:$0xff]  ;;  %v17317_v26 = vld [vmem:[%s25627_s5 + $0xc0] sm:$0xff]  ;;  %19854 = vmatprep.subr.mxu1 %v17354_v44 }
 0x8d6   :  { %v17041_v17 = vpop.f32.mrf.mxu1  ;;  %17158 = vmatmul.mubr.bf16.vlgmr.msra.gmra.mxu0 %v24487_v46  ;;  %v23212_v46 = vld [vmem:[%s25625_s3 + $0x68c] ss:$16 sps:$4 sm:$0xff]   ;;  %v17301_v9 = vld [vmem:[%s25627_s5 + $0x40] sm:$0xff]  ;;  %19855 = vmatpush3.msra.mxu1 %v17338_v15 }
 0x8d7   :  { %17208 = vmatpush1.bf16.msra.mxu0 %v23201_v39  ;;  %17239 = vmatprep.mubr.bf16.mxu0 %v24501_v61  ;;  %v23210_v61 = vld [vmem:[%s25625_s3 + $0x688] ss:$16 sps:$4 sm:$0xff]   ;;  %v17337_v39 = vld [vmem:[%s25627_s5 + $0x160] sm:$0xff] }
 0x8d8   :  { %17209 = vmatprep.subr.bf16.mxu0 %v23206_v54  ;;  %v17302_v43 = vld [vmem:[%s25627_s5 + $0x48] sm:$0xff]  ;;  %v17352_v54 = vld [vmem:[%s25627_s5 + $0x1d8] sm:$0xff]  ;;  %19856 = vmatprep.subr.mxu1 %v17353_v10  ;;  %v17341_v40 = vld [vmem:[%s25627_s5 + $0x180] sm:$0xff] }
 0x8d9   :  { %v17316_v45 = vld [vmem:[%s25627_s5 + $0xb8] sm:$0xff]  ;;  %19857 = vmatpush3.msra.mxu1 %v17337_v39 }
 0x8da   :  { %v17336_v17 = vld [vmem:[%s25627_s5 + $0x158] sm:$0xff]  ;;  %19858 = vmatprep.subr.mxu1 %v17352_v54 }
 0x8db   :  { %17210 = vmatpush1.bf16.msra.mxu0 %v23204_v32  ;;  %v17300_v32 = vld [vmem:[%s25627_s5 + $0x38] sm:$0xff]  ;;  %19859 = vmatpush3.msra.mxu1 %v17336_v17  ;;  %v15193_v17 = vrot.slane %v25100_v58, %v24154_v22 }
 0x8dc   :  { %17211 = vmatprep.subr.bf16.mxu0 %v23209_v24  ;;  %v17351_v24 = vld [vmem:[%s25627_s5 + $0x1d0] sm:$0xff] }
 0x8dd   :  { %19860 = vmatprep.subr.mxu1 %v17351_v24  ;;  %v25713_v54 = vld [vmem:[#allocation19_spill] sm:$0xff] }
 0x8df   :  { %17212 = vmatpush1.bf16.msra.mxu0 %v23207_v16  ;;  %v17315_v16 = vld [vmem:[%s25627_s5 + $0xb0] sm:$0xff] }
 0x8e0   :  { %17213 = vmatprep.subr.bf16.mxu0 %v23212_v46  ;;  %v17335_v46 = vld [vmem:[%s25627_s5 + $0x150] sm:$0xff] }
 0x8e1   :  { %19861 = vmatpush3.msra.mxu1 %v17335_v46 }
 0x8e3   :  { %17214 = vmatpush1.bf16.msra.mxu0 %v23210_v61  ;;  %v17299_v61 = vld [vmem:[%s25627_s5 + $0x30] sm:$0xff] }
 0x8e4   :  { %17215 = vmatprep.subr.bf16.mxu0 %v23215_v4  ;;  %v17350_v4 = vld [vmem:[%s25627_s5 + $0x1c8] sm:$0xff] }
 0x8e5   :  { %19862 = vmatprep.subr.mxu1 %v17350_v4 }
 0x8e7   :  { %17216 = vmatpush1.bf16.msra.mxu0 %v23213_v2  ;;  %v17314_v2 = vld [vmem:[%s25627_s5 + $0xa8] sm:$0xff] }
 0x8e8   :  { %17217 = vmatprep.subr.bf16.mxu0 %v23218_v28  ;;  %v17334_v28 = vld [vmem:[%s25627_s5 + $0x148] sm:$0xff] }
 0x8e9   :  { %19863 = vmatpush3.msra.mxu1 %v17334_v28 }
 0x8eb   :  { %17218 = vmatpush1.bf16.msra.mxu0 %v23216_v37  ;;  %v17298_v37 = vld [vmem:[%s25627_s5 + $0x28] sm:$0xff] }
 0x8ec   :  { %17219 = vmatprep.subr.bf16.mxu0 %v23221_v12  ;;  %v17349_v12 = vld [vmem:[%s25627_s5 + $0x1c0] sm:$0xff] }
 0x8ed   :  { %19864 = vmatprep.subr.mxu1 %v17349_v12 }
 0x8ef   :  { %17220 = vmatpush1.bf16.msra.mxu0 %v23219_v50  ;;  %v17313_v50 = vld [vmem:[%s25627_s5 + $0xa0] sm:$0xff] }
 0x8f0   :  { %17221 = vmatprep.subr.bf16.mxu0 %v23224_v13  ;;  %v17333_v13 = vld [vmem:[%s25627_s5 + $0x140] sm:$0xff] }
 0x8f1   :  { %19865 = vmatpush3.msra.mxu1 %v17333_v13 }
 0x8f3   :  { %17222 = vmatpush1.bf16.msra.mxu0 %v23222_v20  ;;  %v17297_v20 = vld [vmem:[%s25627_s5 + $0x20] sm:$0xff] }
 0x8f4   :  { %17223 = vmatprep.subr.bf16.mxu0 %v23227_v5  ;;  %v17348_v5 = vld [vmem:[%s25627_s5 + $0x1b8] sm:$0xff] }
 0x8f5   :  { %19866 = vmatprep.subr.mxu1 %v17348_v5 }
 0x8f7   :  { %17224 = vmatpush2.bf16.msra.mxu0 %v23225_v21  ;;  %v17312_v21 = vld [vmem:[%s25627_s5 + $0x98] sm:$0xff] }
 0x8f8   :  { %17225 = vmatprep.subr.bf16.mxu0 %v23230_v25  ;;  %v17332_v25 = vld [vmem:[%s25627_s5 + $0x138] sm:$0xff] }
 0x8f9   :  { %19867 = vmatpush3.msra.mxu1 %v17332_v25 }
 0x8fb   :  { %17226 = vmatpush2.bf16.msra.mxu0 %v23228_v48  ;;  %v17296_v48 = vld [vmem:[%s25627_s5 + $0x18] sm:$0xff] }
 0x8fc   :  { %17227 = vmatprep.subr.bf16.mxu0 %v23233_v19  ;;  %v17347_v19 = vld [vmem:[%s25627_s5 + $0x1b0] sm:$0xff] }
 0x8fd   :  { %19868 = vmatprep.subr.mxu1 %v17347_v19 }
 0x8ff   :  { %17228 = vmatpush2.bf16.msra.mxu0 %v23231_v53  ;;  %v17311_v53 = vld [vmem:[%s25627_s5 + $0x90] sm:$0xff] }
 0x900   :  { %17229 = vmatprep.subr.bf16.mxu0 %v23236_v63  ;;  %v17331_v63 = vld [vmem:[%s25627_s5 + $0x130] sm:$0xff] }
 0x901   :  { %19869 = vmatpush3.msra.mxu1 %v17331_v63 }
 0x903   :  { %17230 = vmatpush2.bf16.msra.mxu0 %v23234_v51  ;;  %v17295_v51 = vld [vmem:[%s25627_s5 + $0x10] sm:$0xff] }
 0x904   :  { %17231 = vmatprep.subr.bf16.mxu0 %v23239_v60  ;;  %v17346_v60 = vld [vmem:[%s25627_s5 + $0x1a8] sm:$0xff] }
 0x905   :  { %19870 = vmatprep.subr.mxu1 %v17346_v60 }
 0x907   :  { %17232 = vmatpush2.bf16.msra.mxu0 %v23237_v52  ;;  %v17310_v52 = vld [vmem:[%s25627_s5 + $0x88] sm:$0xff] }
 0x908   :  { %17233 = vmatprep.subr.bf16.mxu0 %v23242_v31  ;;  %v17330_v31 = vld [vmem:[%s25627_s5 + $0x128] sm:$0xff] }
 0x909   :  { %19871 = vmatpush3.msra.mxu1 %v17330_v31 }
 0x90b   :  { %17234 = vmatpush2.bf16.msra.mxu0 %v23240_v33  ;;  %v17294_v33 = vld [vmem:[%s25627_s5 + $0x8] sm:$0xff] }
 0x90c   :  { %17235 = vmatprep.subr.bf16.mxu0 %v23245_v8  ;;  %v17309_v8 = vld [vmem:[%s25627_s5 + $0x80] sm:$0xff] }
 0x90f   :  { %17236 = vmatpush2.bf16.msra.mxu0 %v23243_v38  ;;  %v17293_v38 = vld [vmem:[%s25627_s5] sm:$0xff] }
 0x910   :  { %v25411_v7 = vpop.f32.mrf.mxu1  ;;  %17237 = vmatprep.subr.bf16.mxu0 %v23248_v36 }
 0x912   :  { %v25416_v23 = vpop.f32.mrf.mxu1 }
 0x913   :  { %17238 = vmatpush2.bf16.msra.mxu0 %v23246_v14  ;;  %v17121_v24 = vadd.f32 %v25416_v23, %v15193_v17  ;;  %v19813_v23 = vld [vmem:[%s25628_s6] ss:$0 sm:$0xff] }
 0x914   :  { %v17122_v47 = vpop.f32.mrf.mxu1  ;;  %19815 = vmatprep.subr.mxu0 %v17324_v0 }
 0x916   :  { %v17123_v1 = vpop.f32.mrf.mxu1  ;;  %17240 = vmatmul.mubr.bf16.vlgmr.msra.gmra.mxu0 %v24705_v62  ;;  %v17305_v62 = vld [vmem:[%s25627_s5 + $0x60] sm:$0xff] }
 0x917   :  { %19816 = vmatpush3.msra.mxu0 %v17308_v34  ;;  %v17329_v1 = vld [vmem:[%s25627_s5 + $0x120] sm:$0xff] }
 0x918   :  { %19817 = vmatprep.subr.mxu0 %v17323_v29  ;;  %v17345_v29 = vld [vmem:[%s25627_s5 + $0x1a0] sm:$0xff] }
 0x919   :  { %19818 = vmatpush3.msra.mxu0 %v17307_v30  ;;  %19872 = vmatprep.subr.mxu1 %v17345_v29 }
 0x91a   :  { %19819 = vmatprep.subr.mxu0 %v17322_v55  ;;  %19873 = vmatpush3.msra.mxu1 %v17329_v1 }
 0x91b   :  { %19820 = vmatpush3.msra.mxu0 %v17306_v41  ;;  %v17344_v41 = vld [vmem:[%s25627_s5 + $0x198] sm:$0xff] }
 0x91c   :  { %19821 = vmatprep.subr.mxu0 %v17321_v3  ;;  %19874 = vmatprep.subr.mxu1 %v17344_v41 }
 0x91d   :  { %19822 = vmatpush3.msra.mxu0 %v17305_v62  ;;  %v17328_v62 = vld [vmem:[%s25627_s5 + $0x118] sm:$0xff] }
 0x91e   :  { %19823 = vmatprep.subr.mxu0 %v17320_v49  ;;  %19875 = vmatpush3.msra.mxu1 %v17328_v62 }
 0x91f   :  { %19824 = vmatpush3.msra.mxu0 %v17304_v35  ;;  %v17343_v35 = vld [vmem:[%s25627_s5 + $0x190] sm:$0xff] }
 0x920   :  { %19825 = vmatprep.subr.mxu0 %v17319_v18  ;;  %19876 = vmatprep.subr.mxu1 %v17343_v35  ;;  %v17326_v18 = vld [vmem:[%s25627_s5 + $0x108] sm:$0xff] }
 0x921   :  { %19826 = vmatpush3.msra.mxu0 %v17303_v42  ;;  %19877 = vmatpush3.msra.mxu1 %v17327_v6  ;;  %v17325_v42 = vld [vmem:[%s25627_s5 + $0x100] sm:$0xff] }
 0x922   :  { %19827 = vmatprep.subr.mxu0 %v17318_v11 }
 0x923   :  { %19828 = vmatpush3.msra.mxu0 %v17302_v43 }
 0x924   :  { %19829 = vmatprep.subr.mxu0 %v17317_v26 }
 0x925   :  { %19830 = vmatpush3.msra.mxu0 %v17301_v9 }
 0x926   :  { %19831 = vmatprep.subr.mxu0 %v17316_v45  ;;  %v15189_v45 = vrot.slane %v25100_v58, %v25713_v54 }
 0x927   :  { %19832 = vmatpush3.msra.mxu0 %v17300_v32 }
 0x928   :  { %19833 = vmatprep.subr.mxu0 %v17315_v16  ;;  %v17119_v32 = vadd.f32 %v25411_v7, %v15189_v45 }
 0x929   :  { %19834 = vmatpush3.msra.mxu0 %v17299_v61 }
 0x92a   :  { %19835 = vmatprep.subr.mxu0 %v17314_v2 }
 0x92b   :  { %19836 = vmatpush3.msra.mxu0 %v17298_v37 }
 0x92c   :  { %19837 = vmatprep.subr.mxu0 %v17313_v50 }
 0x92d   :  { %19838 = vmatpush3.msra.mxu0 %v17297_v20 }
 0x92e   :  { %19839 = vmatprep.subr.mxu0 %v17312_v21 }
 0x92f   :  { %19840 = vmatpush3.msra.mxu0 %v17296_v48 }
 0x930   :  { %19841 = vmatprep.subr.mxu0 %v17311_v53 }
 0x931   :  { %19842 = vmatpush3.msra.mxu0 %v17295_v51 }
 0x932   :  { %19843 = vmatprep.subr.mxu0 %v17310_v52 }
 0x933   :  { %19844 = vmatpush3.msra.mxu0 %v17294_v33 }
 0x934   :  { %19845 = vmatprep.subr.mxu0 %v17309_v8 }
 0x935   :  { %19846 = vmatpush3.msra.mxu0 %v17293_v38 }
 0x950   :  { %v17200_v36 = vpop.f32.mrf.mxu1 }
 0x952   :  { %v17202_v14 = vpop.f32.mrf.mxu1 }
 0x954   :  { %v17204_v0 = vpop.f32.mrf.mxu1 }
 0x956   :  { %v17205_v47 = vpop.f32.mrf.mxu1  ;;  %v17077_v34 = vpop.f32.mrf.mxu0 }
 0x957   :  { %v17078_v30 = vadd.f32 %v17077_v34, %v25311_v27 }
 0x958   :  { %v17079_v55 = vpop.f32.mrf.mxu0 }
 0x959   :  { %v17080_v3 = vadd.f32 %v17079_v55, %v25317_v56  ;;  %v17289_v59 = vmax.f32 %v17078_v30, 0.0  ;;  %v17342_v56 = vld [vmem:[%s25627_s5 + $0x188] sm:$0xff] }
 0x95a   :  { %v17081_v49 = vpop.f32.mrf.mxu0  ;;  %19878 = vmatprep.subr.mxu1 %v17342_v56 }
 0x95b   :  { %v17290_v27 = vmax.f32 %v17080_v3, 0.0  ;;  %19879 = vmatpush3.msra.mxu1 %v17326_v18 }
 0x95c   :  { %v17082_v57 = vpop.f32.mrf.mxu0  ;;  %19880 = vmatprep.subr.mxu1 %v17341_v40 }
 0x95d   :  { %17428 = vmatprep.mubr.f32.mxu0 %v17290_v27  ;;  %19881 = vmatpush3.msra.mxu1 %v17325_v42 }
 0x95e   :  { %17429 = vmatmul.mubr.f32.vlgmr.msra.gmra.mxu0 %v17289_v59 }
 0x990   :  { %v17282_v44 = vpop.f32.mrf.mxu1 }
 0x992   :  { %v17284_v11 = vpop.f32.mrf.mxu1 }
 0x994   :  { %v17286_v15 = vpop.f32.mrf.mxu1 }
 0x996   :  { %v17159_v43 = vpop.f32.mrf.mxu0  ;;  %v17287_v10 = vpop.f32.mrf.mxu1 }
 0x997   :  { %v17160_v16 = vadd.f32 %v17159_v43, %v17119_v32 }
 0x998   :  { %v17161_v26 = vpop.f32.mrf.mxu0 }
 0x999   :  { %v17162_v46 = vadd.f32 %v17161_v26, %v17121_v24  ;;  %v17201_v61 = vadd.f32 %v17200_v36, %v17160_v16 }
 0x99a   :  { %v17163_v39 = vpop.f32.mrf.mxu0 }
 0x99b   :  { %v17203_v28 = vadd.f32 %v17202_v14, %v17162_v46 }
 0x99c   :  { %v17164_v9 = vpop.f32.mrf.mxu0 }
 0x9d6   :  { %v17241_v4 = vpop.f32.mrf.mxu0 }
 0x9d7   :  { %v17242_v2 = vadd.f32 %v17241_v4, %v17201_v61 }
 0x9d8   :  { %v17243_v37 = vpop.f32.mrf.mxu0 }
 0x9d9   :  { %v17244_v12 = vadd.f32 %v17243_v37, %v17203_v28  ;;  %v17283_v50 = vadd.f32 %v17282_v44, %v17242_v2 }
 0x9da   :  { %v17245_v13 = vpop.f32.mrf.mxu0 }
 0x9db   :  { %v17285_v20 = vadd.f32 %v17284_v11, %v17244_v12  ;;  %v17291_v25 = vmax.f32 %v17283_v50, 0.0 }
 0x9dc   :  { %v17246_v5 = vpop.f32.mrf.mxu0 }
 0x9dd   :  { %v17292_v21 = vmax.f32 %v17285_v20, 0.0 }
 0x9df   :  { %17498 = vmatprep.mubr.f32.mxu1 %v17292_v21 }
 0x9e0   :  { %17499 = vmatmul.mubr.f32.vlgmr.msra.gmra.mxu1 %v17291_v25 }
 0xa1e   :  { %v19847_v22 = vpop.f32.mrf.mxu0 }
 0xa20   :  { %v19848_v58 = vpop.f32.mrf.mxu0 }
 0xa21   :  { %v19849_v7 = vadd.f32 %v19848_v58, %v19847_v22 }
 0xa23   :  { %v17431_v53 = vadd.f32 %v19849_v7, %v19813_v23 }
 0xaa0   :  { %v19882_v48 = vpop.f32.mrf.mxu1 }
 0xaa2   :  { %v19883_v19 = vpop.f32.mrf.mxu1 }
 0xaa3   :  { %v19884_v63 = vadd.f32 %v19883_v19, %v19882_v48 }
 0xaa5   :  { %v17501_v51 = vadd.f32 %v19884_v63, %v17431_v53 }
 0xaa7   :  { %v19814_v60 = vmul.f32 -1.442695, %v17501_v51 }
 0xaa9   :  { %23337 = vpow2.f32 %v19814_v60 }
 0xab6   :  { %v23338_v52 = vpop.eup %23337 }
 0xab7   :  { %v17507_v31 = vadd.f32 1.0, %v23338_v52 }
 0xab9   :  { %23339 = vrcp.f32 %v17507_v31 }
 0xac6   :  { %v23340_v33 = vpop.eup %23339 }
 0xac7   :  { %17511 = vst.msk [vmem:[#allocation6] sm:$0x3] %vm17510_vm1, %v23340_v33 }
 0xac8   :  { %23376 = shalt.err (!%p23373_p9)
}
 0xac9   :  { %17521 = dma.vmem_to_hbm [thread:$0]  %s17519_s13, 32, %s25629_s7, [#allocation5]  }
 0xaca   :  { %23387 = dma.done.wait [#allocation5], 32  }
 0xacb   :  { %23388 = vsyncadd [#allocation5], 4294967264 }
 0xacc   :  { %17525 = vsyncpa [#allocation4], 1 }
 0xacd   :  { %17526 = vsyncpa [#allocation5], 1 }

</bundles_post_ra>
